<compile_context>
chip_gen: v6e
topology: v6e:2x2x1
jax: 0.10.0
libtpu: 0.0.40
codegen_flags: <defaults>
</compile_context>

<pallas_src>
import functools
import numpy as np
import jax
import jax.numpy as jnp
from jax import lax
from jax.experimental import pallas as pl
from jax.experimental.pallas import tpu as pltpu

_INV_SQRT2 = float(1.0 / np.sqrt(2.0))


# ------------------------------- fused kernel -------------------------------

def qqq_fused_kernel(x_ref,
                     sel1_ref, w1_ref, b1_ref,
                     sel2_ref, w2_ref, b2_ref,
                     sel3_ref, w3_ref, b3_ref,
                     m46_ref, m26_ref,
                     msum_ref, sew1_ref, sew2_ref, expand_ref, sum_ref,
                     fw1_ref, fb1_ref, fw2_ref, fb2_ref,
                     out_ref):
    """Whole QQQ forward (eval mode), all blocks, in a single invocation.

    Every operand is one full VMEM block.  Activations are 2-D:
    rows ordered (spatial, batch); lanes = 64*blockn concatenated channels.
    """
    f32 = jnp.float32

    def sigmoid(v):
        return 1.0 / (1.0 + jnp.exp(-v))

    def conv_bn_gelu(a, sel_r, w_r, b_r):
        # 3x3 valid conv as 9 accumulated (window-select @ a) @ W_tap matmuls.
        # BN (eval) already folded into w/b; exact (erf) GELU like nn.GELU().
        acc = None
        for k in range(9):
            win = jnp.dot(sel_r[k], a, preferred_element_type=f32)
            t = jnp.dot(win, w_r[k], preferred_element_type=f32)
            acc = t if acc is None else acc + t
        y = acc + b_r[...]
        return 0.5 * y * (1.0 + lax.erf(y * _INV_SQRT2))

    x = x_ref[...]                                          # (H*W*B, Cin)
    a1 = conv_bn_gelu(x, sel1_ref, w1_ref, b1_ref)          # (36*B, CW)
    a2 = conv_bn_gelu(a1, sel2_ref, w2_ref, b2_ref)         # (16*B, CW)
    a3 = conv_bn_gelu(a2, sel3_ref, w3_ref, b3_ref)         # ( 4*B, CW)

    # addmap: bilinear (align_corners=True) upsample as a matmul + residual add
    r2 = jnp.dot(m46_ref[...], a2, preferred_element_type=f32) + a1
    r1 = jnp.dot(m26_ref[...], a3, preferred_element_type=f32) + r2   # (36*B, CW)

    # SE layer (block-diagonal over the blockn channel groups)
    mean = jnp.dot(msum_ref[...], r1, preferred_element_type=f32)     # (B, CW)
    z = jnp.maximum(jnp.dot(mean, sew1_ref[...], preferred_element_type=f32), 0.0)
    gate = sigmoid(jnp.dot(z, sew2_ref[...], preferred_element_type=f32))     # (B, CW)
    gate_rows = jnp.dot(expand_ref[...], gate, preferred_element_type=f32)    # (36*B, CW)
    se_out = r1 * gate_rows

    # QQQ cross-block sum: fold the blockn channel groups back to 64 channels.
    out64 = jnp.dot(se_out, sum_ref[...], preferred_element_type=f32)  # (36*B, 64)

    # fc head: Flatten (NCHW ordering folded into fw1's per-spatial layout)
    #          -> Linear(2304,256) -> Sigmoid -> Dropout2d (eval: identity)
    #          -> Linear(256,64) -> Sigmoid
    B = out_ref.shape[0]
    S = fw1_ref.shape[0]
    acc = None
    for s in range(S):
        rows = out64[s * B:(s + 1) * B, :]                              # (B, 64)
        t = jnp.dot(rows, fw1_ref[s], preferred_element_type=f32)       # (B, 256)
        acc = t if acc is None else acc + t
    h = sigmoid(acc + fb1_ref[...])
    y = jnp.dot(h, fw2_ref[...], preferred_element_type=f32) + fb2_ref[...]
    out_ref[...] = sigmoid(y)


# ------------------------------- host wrapper --------------------------------

def qqq_forward(x_nchw, ops):
    B, Cin, H, W = x_nchw.shape
    # Only wrapper-side layout op: NCHW -> rows (spatial-major, batch-minor) x Cin.
    x2d = jnp.transpose(x_nchw, (2, 3, 0, 1)).reshape(H * W * B, Cin)
    operands = (x2d,) + tuple(ops)
    return pl.pallas_call(
        qqq_fused_kernel,
        out_shape=jax.ShapeDtypeStruct((B, 64), jnp.float32),
        in_specs=[pl.BlockSpec(memory_space=pltpu.MemorySpace.VMEM)
                  for _ in operands],
        out_specs=pl.BlockSpec(memory_space=pltpu.MemorySpace.VMEM),
    )(*operands)


# ------------------------------ parameter build ------------------------------

def init_params(key, blockn, feature, B, H, W):
    eps = 1e-5
    CW = 64 * blockn
    S1 = (H - 2) * (W - 2)                       # spatial size of r1 (= 36)
    assert 64 * S1 == 2304, "QQQ.fc expects 64*(H-2)*(W-2) == 2304 (H = W = 8)"
    keys = jax.random.split(key, blockn + 1)

    # ---- random per-block parameters in PyTorch layouts ----------------------
    def conv_bn_params(k, cin):
        ks = jax.random.split(k, 6)
        return dict(
            w=np.asarray(0.1 * jax.random.normal(ks[0], (64, cin, 3, 3), jnp.float32)),
            b=np.asarray(0.05 * jax.random.normal(ks[1], (64,), jnp.float32)),
            gamma=np.asarray(1.0 + 0.1 * jax.random.normal(ks[2], (64,), jnp.float32)),
            beta=np.asarray(0.1 * jax.random.normal(ks[3], (64,), jnp.float32)),
            mean=np.asarray(0.1 * jax.random.normal(ks[4], (64,), jnp.float32)),
            var=np.asarray(jax.random.uniform(ks[5], (64,), jnp.float32, 0.5, 1.5)),
        )

    blocks = []
    for j in range(blockn):
        ks = jax.random.split(keys[j], 5)
        blocks.append(dict(
            c1=conv_bn_params(ks[0], feature),
            c2=conv_bn_params(ks[1], 64),
            c3=conv_bn_params(ks[2], 64),
            se_w1=np.asarray(0.2 * jax.random.normal(ks[3], (64, 4), jnp.float32)),
            se_w2=np.asarray(0.2 * jax.random.normal(ks[4], (4, 64), jnp.float32)),
        ))

    kf1, kf2, kf3, kf4 = jax.random.split(keys[-1], 4)
    fc_w1 = np.asarray(0.02 * jax.random.normal(kf1, (64 * S1, 256), jnp.float32))
    fc_b1 = np.asarray(0.01 * jax.random.normal(kf2, (256,), jnp.float32))
    fc_w2 = np.asarray(0.05 * jax.random.normal(kf3, (256, 64), jnp.float32))
    fc_b2 = np.asarray(0.01 * jax.random.normal(kf4, (64,), jnp.float32))

    # ---- fold BN (eval), block-concatenate / block-diagonalize conv weights ---
    def fold_conv(name, cin, shared_in):
        cin_tot = cin if shared_in else cin * blockn
        Wf = np.zeros((9, cin_tot, CW), np.float32)
        bf = np.zeros((1, CW), np.float32)
        for j, blk in enumerate(blocks):
            p = blk[name]
            scale = p["gamma"] / np.sqrt(p["var"] + eps)
            w = p["w"] * scale[:, None, None, None]            # (64, cin, 3, 3)
            for kh in range(3):
                for kw in range(3):
                    tap = w[:, :, kh, kw].T                    # (cin, 64)
                    k = kh * 3 + kw
                    if shared_in:
                        Wf[k, :, j * 64:(j + 1) * 64] = tap
                    else:
                        Wf[k, j * cin:(j + 1) * cin, j * 64:(j + 1) * 64] = tap
            bf[0, j * 64:(j + 1) * 64] = (p["b"] - p["mean"]) * scale + p["beta"]
        return Wf, bf

    w1c, b1c = fold_conv("c1", feature, True)
    w2c, b2c = fold_conv("c2", 64, False)
    w3c, b3c = fold_conv("c3", 64, False)

    # ---- 0/1 window-selection matrices for the 3x3 valid convs ---------------
    def window_selectors(Hi, Wi):
        Ho, Wo = Hi - 2, Wi - 2
        sel = np.zeros((9, Ho * Wo * B, Hi * Wi * B), np.float32)
        for kh in range(3):
            for kw in range(3):
                k = kh * 3 + kw
                for io in range(Ho):
                    for jo in range(Wo):
                        for b in range(B):
                            ro = (io * Wo + jo) * B + b
                            ri = ((io + kh) * Wi + (jo + kw)) * B + b
                            sel[k, ro, ri] = 1.0
        return sel

    sel1 = window_selectors(H, W)          # (9, 36B, 64B)
    sel2 = window_selectors(H - 2, W - 2)  # (9, 16B, 36B)
    sel3 = window_selectors(H - 4, W - 4)  # (9,  4B, 16B)

    # ---- bilinear (align_corners=True) upsample as matrices -------------------
    def lin_interp(n_in, n_out):
        L = np.zeros((n_out, n_in), np.float32)
        if n_in == 1:
            L[:, 0] = 1.0
            return L
        for o in range(n_out):
            src = o * (n_in - 1) / (n_out - 1) if n_out > 1 else 0.0
            i0 = int(np.floor(src))
            f = src - i0
            i1 = min(i0 + 1, n_in - 1)
            L[o, i0] += 1.0 - f
            L[o, i1] += f
        return L

    def upsample_matrix(hi, wi, ho, wo):
        M = np.kron(lin_interp(hi, ho), lin_interp(wi, wo))    # (ho*wo, hi*wi)
        return np.kron(M, np.eye(B, dtype=np.float32))         # (spatial, batch) rows

    m46 = upsample_matrix(H - 4, W - 4, H - 2, W - 2)   # 4x4 -> 6x6 : (36B, 16B)
    m26 = upsample_matrix(H - 6, W - 6, H - 2, W - 2)   # 2x2 -> 6x6 : (36B,  4B)

    # ---- SE (block-diagonal) + structural matrices ----------------------------
    se_w1 = np.zeros((CW, 4 * blockn), np.float32)
    se_w2 = np.zeros((4 * blockn, CW), np.float32)
    for j, blk in enumerate(blocks):
        se_w1[j * 64:(j + 1) * 64, j * 4:(j + 1) * 4] = blk["se_w1"]
        se_w2[j * 4:(j + 1) * 4, j * 64:(j + 1) * 64] = blk["se_w2"]

    msum = np.zeros((B, S1 * B), np.float32)      # spatial mean per (batch, chan)
    expand = np.zeros((S1 * B, B), np.float32)    # broadcast gate back to rows
    for s in range(S1):
        for b in range(B):
            msum[b, s * B + b] = 1.0 / S1
            expand[s * B + b, b] = 1.0
    sum_mat = np.concatenate([np.eye(64, dtype=np.float32)] * blockn, axis=0)  # (CW, 64)

    # fc1 weight regrouped per spatial position so the NCHW flatten is pure
    # weight layout: fw1[s, c, k] = fc_w1[c*S1 + s, k].
    fw1 = fc_w1.reshape(64, S1, 256).transpose(1, 0, 2).copy()

    ops = (sel1, w1c, b1c, sel2, w2c, b2c, sel3, w3c, b3c,
           m46, m26, msum, se_w1, se_w2, expand, sum_mat,
           fw1, fc_b1.reshape(1, 256), fc_w2, fc_b2.reshape(1, 64))
    return tuple(jnp.asarray(o) for o in ops)


# ------------------------------------ main ------------------------------------

if __name__ == "__main__":
    blockn, feature = 2, 4
    B, H, W = 2, 8, 8        # QQQ.fc expects 64*(H-2)*(W-2) == 2304  ->  H = W = 8

    key = jax.random.PRNGKey(0)
    kx, kp = jax.random.split(key)
    x = jax.random.normal(kx, (B, feature, H, W), jnp.float32)   # NCHW like PyTorch
    ops = init_params(kp, blockn, feature, B, H, W)

    fwd = jax.jit(qqq_forward)
    out = fwd(x, ops)
    jax.block_until_ready(out)
    assert out.shape == (B, 64) and out.dtype == jnp.float32
    print("KERNEL_OK")
</pallas_src>

<mosaic_0001>
module attributes {stable_mosaic.version = 11 : i64} {
  func.func @qqq_fused_kernel(%arg0: memref<128x4xf32, #tpu.memory_space<vmem>>, %arg1: memref<9x72x128xf32, #tpu.memory_space<vmem>>, %arg2: memref<9x4x128xf32, #tpu.memory_space<vmem>>, %arg3: memref<1x128xf32, #tpu.memory_space<vmem>>, %arg4: memref<9x32x72xf32, #tpu.memory_space<vmem>>, %arg5: memref<9x128x128xf32, #tpu.memory_space<vmem>>, %arg6: memref<1x128xf32, #tpu.memory_space<vmem>>, %arg7: memref<9x8x32xf32, #tpu.memory_space<vmem>>, %arg8: memref<9x128x128xf32, #tpu.memory_space<vmem>>, %arg9: memref<1x128xf32, #tpu.memory_space<vmem>>, %arg10: memref<72x32xf32, #tpu.memory_space<vmem>>, %arg11: memref<72x8xf32, #tpu.memory_space<vmem>>, %arg12: memref<2x72xf32, #tpu.memory_space<vmem>>, %arg13: memref<128x8xf32, #tpu.memory_space<vmem>>, %arg14: memref<8x128xf32, #tpu.memory_space<vmem>>, %arg15: memref<72x2xf32, #tpu.memory_space<vmem>>, %arg16: memref<128x64xf32, #tpu.memory_space<vmem>>, %arg17: memref<36x64x256xf32, #tpu.memory_space<vmem>>, %arg18: memref<1x256xf32, #tpu.memory_space<vmem>>, %arg19: memref<256x64xf32, #tpu.memory_space<vmem>>, %arg20: memref<1x64xf32, #tpu.memory_space<vmem>>, %arg21: memref<2x64xf32, #tpu.memory_space<vmem>>) attributes {dimension_semantics = [], scalar_prefetch = 0 : i64, scratch_operands = 0 : i64, tpu.core_type = #tpu.core_type<tc>} {
    %c0 = arith.constant 0 : index
    %c0_0 = arith.constant 0 : index
    %0 = vector.load %arg0[%c0, %c0_0] : memref<128x4xf32, #tpu.memory_space<vmem>>, vector<128x4xf32>
    %c0_1 = arith.constant 0 : index
    %c0_2 = arith.constant 0 : index
    %c0_3 = arith.constant 0 : index
    %1 = vector.load %arg1[%c0_1, %c0_2, %c0_3] : memref<9x72x128xf32, #tpu.memory_space<vmem>>, vector<1x72x128xf32>
    %2 = vector.shape_cast %1 : vector<1x72x128xf32> to vector<72x128xf32>
    %cst = arith.constant dense<0.000000e+00> : vector<72x4xf32>
    %3 = tpu.matmul %2, %0, %cst {dimension_numbers = #tpu.dot_dimension_numbers<[1], [0], [0], [1], [0, 0, 1, 1], [], []>} : vector<72x128xf32>, vector<128x4xf32>, vector<72x4xf32> -> vector<72x4xf32>
    %c0_4 = arith.constant 0 : index
    %c0_5 = arith.constant 0 : index
    %c0_6 = arith.constant 0 : index
    %4 = vector.load %arg2[%c0_4, %c0_5, %c0_6] : memref<9x4x128xf32, #tpu.memory_space<vmem>>, vector<1x4x128xf32>
    %5 = vector.shape_cast %4 : vector<1x4x128xf32> to vector<4x128xf32>
    %cst_7 = arith.constant dense<0.000000e+00> : vector<72x128xf32>
    %6 = tpu.matmul %3, %5, %cst_7 {dimension_numbers = #tpu.dot_dimension_numbers<[1], [0], [0], [1], [0, 0, 1, 1], [], []>} : vector<72x4xf32>, vector<4x128xf32>, vector<72x128xf32> -> vector<72x128xf32>
    %c1 = arith.constant 1 : index
    %c0_8 = arith.constant 0 : index
    %c0_9 = arith.constant 0 : index
    %7 = vector.load %arg1[%c1, %c0_8, %c0_9] : memref<9x72x128xf32, #tpu.memory_space<vmem>>, vector<1x72x128xf32>
    %8 = vector.shape_cast %7 : vector<1x72x128xf32> to vector<72x128xf32>
    %cst_10 = arith.constant dense<0.000000e+00> : vector<72x4xf32>
    %9 = tpu.matmul %8, %0, %cst_10 {dimension_numbers = #tpu.dot_dimension_numbers<[1], [0], [0], [1], [0, 0, 1, 1], [], []>} : vector<72x128xf32>, vector<128x4xf32>, vector<72x4xf32> -> vector<72x4xf32>
    %c1_11 = arith.constant 1 : index
    %c0_12 = arith.constant 0 : index
    %c0_13 = arith.constant 0 : index
    %10 = vector.load %arg2[%c1_11, %c0_12, %c0_13] : memref<9x4x128xf32, #tpu.memory_space<vmem>>, vector<1x4x128xf32>
    %11 = vector.shape_cast %10 : vector<1x4x128xf32> to vector<4x128xf32>
    %cst_14 = arith.constant dense<0.000000e+00> : vector<72x128xf32>
    %12 = tpu.matmul %9, %11, %cst_14 {dimension_numbers = #tpu.dot_dimension_numbers<[1], [0], [0], [1], [0, 0, 1, 1], [], []>} : vector<72x4xf32>, vector<4x128xf32>, vector<72x128xf32> -> vector<72x128xf32>
    %13 = arith.addf %6, %12 : vector<72x128xf32>
    %c2 = arith.constant 2 : index
    %c0_15 = arith.constant 0 : index
    %c0_16 = arith.constant 0 : index
    %14 = vector.load %arg1[%c2, %c0_15, %c0_16] : memref<9x72x128xf32, #tpu.memory_space<vmem>>, vector<1x72x128xf32>
    %15 = vector.shape_cast %14 : vector<1x72x128xf32> to vector<72x128xf32>
    %cst_17 = arith.constant dense<0.000000e+00> : vector<72x4xf32>
    %16 = tpu.matmul %15, %0, %cst_17 {dimension_numbers = #tpu.dot_dimension_numbers<[1], [0], [0], [1], [0, 0, 1, 1], [], []>} : vector<72x128xf32>, vector<128x4xf32>, vector<72x4xf32> -> vector<72x4xf32>
    %c2_18 = arith.constant 2 : index
    %c0_19 = arith.constant 0 : index
    %c0_20 = arith.constant 0 : index
    %17 = vector.load %arg2[%c2_18, %c0_19, %c0_20] : memref<9x4x128xf32, #tpu.memory_space<vmem>>, vector<1x4x128xf32>
    %18 = vector.shape_cast %17 : vector<1x4x128xf32> to vector<4x128xf32>
    %cst_21 = arith.constant dense<0.000000e+00> : vector<72x128xf32>
    %19 = tpu.matmul %16, %18, %cst_21 {dimension_numbers = #tpu.dot_dimension_numbers<[1], [0], [0], [1], [0, 0, 1, 1], [], []>} : vector<72x4xf32>, vector<4x128xf32>, vector<72x128xf32> -> vector<72x128xf32>
    %20 = arith.addf %13, %19 : vector<72x128xf32>
    %c3 = arith.constant 3 : index
    %c0_22 = arith.constant 0 : index
    %c0_23 = arith.constant 0 : index
    %21 = vector.load %arg1[%c3, %c0_22, %c0_23] : memref<9x72x128xf32, #tpu.memory_space<vmem>>, vector<1x72x128xf32>
    %22 = vector.shape_cast %21 : vector<1x72x128xf32> to vector<72x128xf32>
    %cst_24 = arith.constant dense<0.000000e+00> : vector<72x4xf32>
    %23 = tpu.matmul %22, %0, %cst_24 {dimension_numbers = #tpu.dot_dimension_numbers<[1], [0], [0], [1], [0, 0, 1, 1], [], []>} : vector<72x128xf32>, vector<128x4xf32>, vector<72x4xf32> -> vector<72x4xf32>
    %c3_25 = arith.constant 3 : index
    %c0_26 = arith.constant 0 : index
    %c0_27 = arith.constant 0 : index
    %24 = vector.load %arg2[%c3_25, %c0_26, %c0_27] : memref<9x4x128xf32, #tpu.memory_space<vmem>>, vector<1x4x128xf32>
    %25 = vector.shape_cast %24 : vector<1x4x128xf32> to vector<4x128xf32>
    %cst_28 = arith.constant dense<0.000000e+00> : vector<72x128xf32>
    %26 = tpu.matmul %23, %25, %cst_28 {dimension_numbers = #tpu.dot_dimension_numbers<[1], [0], [0], [1], [0, 0, 1, 1], [], []>} : vector<72x4xf32>, vector<4x128xf32>, vector<72x128xf32> -> vector<72x128xf32>
    %27 = arith.addf %20, %26 : vector<72x128xf32>
    %c4 = arith.constant 4 : index
    %c0_29 = arith.constant 0 : index
    %c0_30 = arith.constant 0 : index
    %28 = vector.load %arg1[%c4, %c0_29, %c0_30] : memref<9x72x128xf32, #tpu.memory_space<vmem>>, vector<1x72x128xf32>
    %29 = vector.shape_cast %28 : vector<1x72x128xf32> to vector<72x128xf32>
    %cst_31 = arith.constant dense<0.000000e+00> : vector<72x4xf32>
    %30 = tpu.matmul %29, %0, %cst_31 {dimension_numbers = #tpu.dot_dimension_numbers<[1], [0], [0], [1], [0, 0, 1, 1], [], []>} : vector<72x128xf32>, vector<128x4xf32>, vector<72x4xf32> -> vector<72x4xf32>
    %c4_32 = arith.constant 4 : index
    %c0_33 = arith.constant 0 : index
    %c0_34 = arith.constant 0 : index
    %31 = vector.load %arg2[%c4_32, %c0_33, %c0_34] : memref<9x4x128xf32, #tpu.memory_space<vmem>>, vector<1x4x128xf32>
    %32 = vector.shape_cast %31 : vector<1x4x128xf32> to vector<4x128xf32>
    %cst_35 = arith.constant dense<0.000000e+00> : vector<72x128xf32>
    %33 = tpu.matmul %30, %32, %cst_35 {dimension_numbers = #tpu.dot_dimension_numbers<[1], [0], [0], [1], [0, 0, 1, 1], [], []>} : vector<72x4xf32>, vector<4x128xf32>, vector<72x128xf32> -> vector<72x128xf32>
    %34 = arith.addf %27, %33 : vector<72x128xf32>
    %c5 = arith.constant 5 : index
    %c0_36 = arith.constant 0 : index
    %c0_37 = arith.constant 0 : index
    %35 = vector.load %arg1[%c5, %c0_36, %c0_37] : memref<9x72x128xf32, #tpu.memory_space<vmem>>, vector<1x72x128xf32>
    %36 = vector.shape_cast %35 : vector<1x72x128xf32> to vector<72x128xf32>
    %cst_38 = arith.constant dense<0.000000e+00> : vector<72x4xf32>
    %37 = tpu.matmul %36, %0, %cst_38 {dimension_numbers = #tpu.dot_dimension_numbers<[1], [0], [0], [1], [0, 0, 1, 1], [], []>} : vector<72x128xf32>, vector<128x4xf32>, vector<72x4xf32> -> vector<72x4xf32>
    %c5_39 = arith.constant 5 : index
    %c0_40 = arith.constant 0 : index
    %c0_41 = arith.constant 0 : index
    %38 = vector.load %arg2[%c5_39, %c0_40, %c0_41] : memref<9x4x128xf32, #tpu.memory_space<vmem>>, vector<1x4x128xf32>
    %39 = vector.shape_cast %38 : vector<1x4x128xf32> to vector<4x128xf32>
    %cst_42 = arith.constant dense<0.000000e+00> : vector<72x128xf32>
    %40 = tpu.matmul %37, %39, %cst_42 {dimension_numbers = #tpu.dot_dimension_numbers<[1], [0], [0], [1], [0, 0, 1, 1], [], []>} : vector<72x4xf32>, vector<4x128xf32>, vector<72x128xf32> -> vector<72x128xf32>
    %41 = arith.addf %34, %40 : vector<72x128xf32>
    %c6 = arith.constant 6 : index
    %c0_43 = arith.constant 0 : index
    %c0_44 = arith.constant 0 : index
    %42 = vector.load %arg1[%c6, %c0_43, %c0_44] : memref<9x72x128xf32, #tpu.memory_space<vmem>>, vector<1x72x128xf32>
    %43 = vector.shape_cast %42 : vector<1x72x128xf32> to vector<72x128xf32>
    %cst_45 = arith.constant dense<0.000000e+00> : vector<72x4xf32>
    %44 = tpu.matmul %43, %0, %cst_45 {dimension_numbers = #tpu.dot_dimension_numbers<[1], [0], [0], [1], [0, 0, 1, 1], [], []>} : vector<72x128xf32>, vector<128x4xf32>, vector<72x4xf32> -> vector<72x4xf32>
    %c6_46 = arith.constant 6 : index
    %c0_47 = arith.constant 0 : index
    %c0_48 = arith.constant 0 : index
    %45 = vector.load %arg2[%c6_46, %c0_47, %c0_48] : memref<9x4x128xf32, #tpu.memory_space<vmem>>, vector<1x4x128xf32>
    %46 = vector.shape_cast %45 : vector<1x4x128xf32> to vector<4x128xf32>
    %cst_49 = arith.constant dense<0.000000e+00> : vector<72x128xf32>
    %47 = tpu.matmul %44, %46, %cst_49 {dimension_numbers = #tpu.dot_dimension_numbers<[1], [0], [0], [1], [0, 0, 1, 1], [], []>} : vector<72x4xf32>, vector<4x128xf32>, vector<72x128xf32> -> vector<72x128xf32>
    %48 = arith.addf %41, %47 : vector<72x128xf32>
    %c7 = arith.constant 7 : index
    %c0_50 = arith.constant 0 : index
    %c0_51 = arith.constant 0 : index
    %49 = vector.load %arg1[%c7, %c0_50, %c0_51] : memref<9x72x128xf32, #tpu.memory_space<vmem>>, vector<1x72x128xf32>
    %50 = vector.shape_cast %49 : vector<1x72x128xf32> to vector<72x128xf32>
    %cst_52 = arith.constant dense<0.000000e+00> : vector<72x4xf32>
    %51 = tpu.matmul %50, %0, %cst_52 {dimension_numbers = #tpu.dot_dimension_numbers<[1], [0], [0], [1], [0, 0, 1, 1], [], []>} : vector<72x128xf32>, vector<128x4xf32>, vector<72x4xf32> -> vector<72x4xf32>
    %c7_53 = arith.constant 7 : index
    %c0_54 = arith.constant 0 : index
    %c0_55 = arith.constant 0 : index
    %52 = vector.load %arg2[%c7_53, %c0_54, %c0_55] : memref<9x4x128xf32, #tpu.memory_space<vmem>>, vector<1x4x128xf32>
    %53 = vector.shape_cast %52 : vector<1x4x128xf32> to vector<4x128xf32>
    %cst_56 = arith.constant dense<0.000000e+00> : vector<72x128xf32>
    %54 = tpu.matmul %51, %53, %cst_56 {dimension_numbers = #tpu.dot_dimension_numbers<[1], [0], [0], [1], [0, 0, 1, 1], [], []>} : vector<72x4xf32>, vector<4x128xf32>, vector<72x128xf32> -> vector<72x128xf32>
    %55 = arith.addf %48, %54 : vector<72x128xf32>
    %c8 = arith.constant 8 : index
    %c0_57 = arith.constant 0 : index
    %c0_58 = arith.constant 0 : index
    %56 = vector.load %arg1[%c8, %c0_57, %c0_58] : memref<9x72x128xf32, #tpu.memory_space<vmem>>, vector<1x72x128xf32>
    %57 = vector.shape_cast %56 : vector<1x72x128xf32> to vector<72x128xf32>
    %cst_59 = arith.constant dense<0.000000e+00> : vector<72x4xf32>
    %58 = tpu.matmul %57, %0, %cst_59 {dimension_numbers = #tpu.dot_dimension_numbers<[1], [0], [0], [1], [0, 0, 1, 1], [], []>} : vector<72x128xf32>, vector<128x4xf32>, vector<72x4xf32> -> vector<72x4xf32>
    %c8_60 = arith.constant 8 : index
    %c0_61 = arith.constant 0 : index
    %c0_62 = arith.constant 0 : index
    %59 = vector.load %arg2[%c8_60, %c0_61, %c0_62] : memref<9x4x128xf32, #tpu.memory_space<vmem>>, vector<1x4x128xf32>
    %60 = vector.shape_cast %59 : vector<1x4x128xf32> to vector<4x128xf32>
    %cst_63 = arith.constant dense<0.000000e+00> : vector<72x128xf32>
    %61 = tpu.matmul %58, %60, %cst_63 {dimension_numbers = #tpu.dot_dimension_numbers<[1], [0], [0], [1], [0, 0, 1, 1], [], []>} : vector<72x4xf32>, vector<4x128xf32>, vector<72x128xf32> -> vector<72x128xf32>
    %62 = arith.addf %55, %61 : vector<72x128xf32>
    %c0_64 = arith.constant 0 : index
    %c0_65 = arith.constant 0 : index
    %63 = vector.load %arg3[%c0_64, %c0_65] : memref<1x128xf32, #tpu.memory_space<vmem>>, vector<1x128xf32>
    %64 = vector.broadcast %63 : vector<1x128xf32> to vector<72x128xf32>
    %65 = arith.addf %62, %64 : vector<72x128xf32>
    %cst_66 = arith.constant 5.000000e-01 : f32
    %66 = vector.broadcast %cst_66 : f32 to vector<72x128xf32>
    %67 = arith.mulf %66, %65 : vector<72x128xf32>
    %cst_67 = arith.constant 0.707106769 : f32
    %68 = vector.broadcast %cst_67 : f32 to vector<72x128xf32>
    %69 = arith.mulf %65, %68 : vector<72x128xf32>
    %70 = math.erf %69 : vector<72x128xf32>
    %cst_68 = arith.constant 1.000000e+00 : f32
    %71 = vector.broadcast %cst_68 : f32 to vector<72x128xf32>
    %72 = arith.addf %71, %70 : vector<72x128xf32>
    %73 = arith.mulf %67, %72 : vector<72x128xf32>
    %c0_69 = arith.constant 0 : index
    %c0_70 = arith.constant 0 : index
    %c0_71 = arith.constant 0 : index
    %74 = vector.load %arg4[%c0_69, %c0_70, %c0_71] : memref<9x32x72xf32, #tpu.memory_space<vmem>>, vector<1x32x72xf32>
    %75 = vector.shape_cast %74 : vector<1x32x72xf32> to vector<32x72xf32>
    %cst_72 = arith.constant dense<0.000000e+00> : vector<32x128xf32>
    %76 = tpu.matmul %75, %73, %cst_72 {dimension_numbers = #tpu.dot_dimension_numbers<[1], [0], [0], [1], [0, 0, 1, 1], [], []>} : vector<32x72xf32>, vector<72x128xf32>, vector<32x128xf32> -> vector<32x128xf32>
    %c0_73 = arith.constant 0 : index
    %c0_74 = arith.constant 0 : index
    %c0_75 = arith.constant 0 : index
    %77 = vector.load %arg5[%c0_73, %c0_74, %c0_75] : memref<9x128x128xf32, #tpu.memory_space<vmem>>, vector<1x128x128xf32>
    %78 = vector.shape_cast %77 : vector<1x128x128xf32> to vector<128x128xf32>
    %cst_76 = arith.constant dense<0.000000e+00> : vector<32x128xf32>
    %79 = tpu.matmul %76, %78, %cst_76 {dimension_numbers = #tpu.dot_dimension_numbers<[1], [0], [0], [1], [0, 0, 1, 1], [], []>} : vector<32x128xf32>, vector<128x128xf32>, vector<32x128xf32> -> vector<32x128xf32>
    %c1_77 = arith.constant 1 : index
    %c0_78 = arith.constant 0 : index
    %c0_79 = arith.constant 0 : index
    %80 = vector.load %arg4[%c1_77, %c0_78, %c0_79] : memref<9x32x72xf32, #tpu.memory_space<vmem>>, vector<1x32x72xf32>
    %81 = vector.shape_cast %80 : vector<1x32x72xf32> to vector<32x72xf32>
    %cst_80 = arith.constant dense<0.000000e+00> : vector<32x128xf32>
    %82 = tpu.matmul %81, %73, %cst_80 {dimension_numbers = #tpu.dot_dimension_numbers<[1], [0], [0], [1], [0, 0, 1, 1], [], []>} : vector<32x72xf32>, vector<72x128xf32>, vector<32x128xf32> -> vector<32x128xf32>
    %c1_81 = arith.constant 1 : index
    %c0_82 = arith.constant 0 : index
    %c0_83 = arith.constant 0 : index
    %83 = vector.load %arg5[%c1_81, %c0_82, %c0_83] : memref<9x128x128xf32, #tpu.memory_space<vmem>>, vector<1x128x128xf32>
    %84 = vector.shape_cast %83 : vector<1x128x128xf32> to vector<128x128xf32>
    %cst_84 = arith.constant dense<0.000000e+00> : vector<32x128xf32>
    %85 = tpu.matmul %82, %84, %cst_84 {dimension_numbers = #tpu.dot_dimension_numbers<[1], [0], [0], [1], [0, 0, 1, 1], [], []>} : vector<32x128xf32>, vector<128x128xf32>, vector<32x128xf32> -> vector<32x128xf32>
    %86 = arith.addf %79, %85 : vector<32x128xf32>
    %c2_85 = arith.constant 2 : index
    %c0_86 = arith.constant 0 : index
    %c0_87 = arith.constant 0 : index
    %87 = vector.load %arg4[%c2_85, %c0_86, %c0_87] : memref<9x32x72xf32, #tpu.memory_space<vmem>>, vector<1x32x72xf32>
    %88 = vector.shape_cast %87 : vector<1x32x72xf32> to vector<32x72xf32>
    %cst_88 = arith.constant dense<0.000000e+00> : vector<32x128xf32>
    %89 = tpu.matmul %88, %73, %cst_88 {dimension_numbers = #tpu.dot_dimension_numbers<[1], [0], [0], [1], [0, 0, 1, 1], [], []>} : vector<32x72xf32>, vector<72x128xf32>, vector<32x128xf32> -> vector<32x128xf32>
    %c2_89 = arith.constant 2 : index
    %c0_90 = arith.constant 0 : index
    %c0_91 = arith.constant 0 : index
    %90 = vector.load %arg5[%c2_89, %c0_90, %c0_91] : memref<9x128x128xf32, #tpu.memory_space<vmem>>, vector<1x128x128xf32>
    %91 = vector.shape_cast %90 : vector<1x128x128xf32> to vector<128x128xf32>
    %cst_92 = arith.constant dense<0.000000e+00> : vector<32x128xf32>
    %92 = tpu.matmul %89, %91, %cst_92 {dimension_numbers = #tpu.dot_dimension_numbers<[1], [0], [0], [1], [0, 0, 1, 1], [], []>} : vector<32x128xf32>, vector<128x128xf32>, vector<32x128xf32> -> vector<32x128xf32>
    %93 = arith.addf %86, %92 : vector<32x128xf32>
    %c3_93 = arith.constant 3 : index
    %c0_94 = arith.constant 0 : index
    %c0_95 = arith.constant 0 : index
    %94 = vector.load %arg4[%c3_93, %c0_94, %c0_95] : memref<9x32x72xf32, #tpu.memory_space<vmem>>, vector<1x32x72xf32>
    %95 = vector.shape_cast %94 : vector<1x32x72xf32> to vector<32x72xf32>
    %cst_96 = arith.constant dense<0.000000e+00> : vector<32x128xf32>
    %96 = tpu.matmul %95, %73, %cst_96 {dimension_numbers = #tpu.dot_dimension_numbers<[1], [0], [0], [1], [0, 0, 1, 1], [], []>} : vector<32x72xf32>, vector<72x128xf32>, vector<32x128xf32> -> vector<32x128xf32>
    %c3_97 = arith.constant 3 : index
    %c0_98 = arith.constant 0 : index
    %c0_99 = arith.constant 0 : index
    %97 = vector.load %arg5[%c3_97, %c0_98, %c0_99] : memref<9x128x128xf32, #tpu.memory_space<vmem>>, vector<1x128x128xf32>
    %98 = vector.shape_cast %97 : vector<1x128x128xf32> to vector<128x128xf32>
    %cst_100 = arith.constant dense<0.000000e+00> : vector<32x128xf32>
    %99 = tpu.matmul %96, %98, %cst_100 {dimension_numbers = #tpu.dot_dimension_numbers<[1], [0], [0], [1], [0, 0, 1, 1], [], []>} : vector<32x128xf32>, vector<128x128xf32>, vector<32x128xf32> -> vector<32x128xf32>
    %100 = arith.addf %93, %99 : vector<32x128xf32>
    %c4_101 = arith.constant 4 : index
    %c0_102 = arith.constant 0 : index
    %c0_103 = arith.constant 0 : index
    %101 = vector.load %arg4[%c4_101, %c0_102, %c0_103] : memref<9x32x72xf32, #tpu.memory_space<vmem>>, vector<1x32x72xf32>
    %102 = vector.shape_cast %101 : vector<1x32x72xf32> to vector<32x72xf32>
    %cst_104 = arith.constant dense<0.000000e+00> : vector<32x128xf32>
    %103 = tpu.matmul %102, %73, %cst_104 {dimension_numbers = #tpu.dot_dimension_numbers<[1], [0], [0], [1], [0, 0, 1, 1], [], []>} : vector<32x72xf32>, vector<72x128xf32>, vector<32x128xf32> -> vector<32x128xf32>
    %c4_105 = arith.constant 4 : index
    %c0_106 = arith.constant 0 : index
    %c0_107 = arith.constant 0 : index
    %104 = vector.load %arg5[%c4_105, %c0_106, %c0_107] : memref<9x128x128xf32, #tpu.memory_space<vmem>>, vector<1x128x128xf32>
    %105 = vector.shape_cast %104 : vector<1x128x128xf32> to vector<128x128xf32>
    %cst_108 = arith.constant dense<0.000000e+00> : vector<32x128xf32>
    %106 = tpu.matmul %103, %105, %cst_108 {dimension_numbers = #tpu.dot_dimension_numbers<[1], [0], [0], [1], [0, 0, 1, 1], [], []>} : vector<32x128xf32>, vector<128x128xf32>, vector<32x128xf32> -> vector<32x128xf32>
    %107 = arith.addf %100, %106 : vector<32x128xf32>
    %c5_109 = arith.constant 5 : index
    %c0_110 = arith.constant 0 : index
    %c0_111 = arith.constant 0 : index
    %108 = vector.load %arg4[%c5_109, %c0_110, %c0_111] : memref<9x32x72xf32, #tpu.memory_space<vmem>>, vector<1x32x72xf32>
    %109 = vector.shape_cast %108 : vector<1x32x72xf32> to vector<32x72xf32>
    %cst_112 = arith.constant dense<0.000000e+00> : vector<32x128xf32>
    %110 = tpu.matmul %109, %73, %cst_112 {dimension_numbers = #tpu.dot_dimension_numbers<[1], [0], [0], [1], [0, 0, 1, 1], [], []>} : vector<32x72xf32>, vector<72x128xf32>, vector<32x128xf32> -> vector<32x128xf32>
    %c5_113 = arith.constant 5 : index
    %c0_114 = arith.constant 0 : index
    %c0_115 = arith.constant 0 : index
    %111 = vector.load %arg5[%c5_113, %c0_114, %c0_115] : memref<9x128x128xf32, #tpu.memory_space<vmem>>, vector<1x128x128xf32>
    %112 = vector.shape_cast %111 : vector<1x128x128xf32> to vector<128x128xf32>
    %cst_116 = arith.constant dense<0.000000e+00> : vector<32x128xf32>
    %113 = tpu.matmul %110, %112, %cst_116 {dimension_numbers = #tpu.dot_dimension_numbers<[1], [0], [0], [1], [0, 0, 1, 1], [], []>} : vector<32x128xf32>, vector<128x128xf32>, vector<32x128xf32> -> vector<32x128xf32>
    %114 = arith.addf %107, %113 : vector<32x128xf32>
    %c6_117 = arith.constant 6 : index
    %c0_118 = arith.constant 0 : index
    %c0_119 = arith.constant 0 : index
    %115 = vector.load %arg4[%c6_117, %c0_118, %c0_119] : memref<9x32x72xf32, #tpu.memory_space<vmem>>, vector<1x32x72xf32>
    %116 = vector.shape_cast %115 : vector<1x32x72xf32> to vector<32x72xf32>
    %cst_120 = arith.constant dense<0.000000e+00> : vector<32x128xf32>
    %117 = tpu.matmul %116, %73, %cst_120 {dimension_numbers = #tpu.dot_dimension_numbers<[1], [0], [0], [1], [0, 0, 1, 1], [], []>} : vector<32x72xf32>, vector<72x128xf32>, vector<32x128xf32> -> vector<32x128xf32>
    %c6_121 = arith.constant 6 : index
    %c0_122 = arith.constant 0 : index
    %c0_123 = arith.constant 0 : index
    %118 = vector.load %arg5[%c6_121, %c0_122, %c0_123] : memref<9x128x128xf32, #tpu.memory_space<vmem>>, vector<1x128x128xf32>
    %119 = vector.shape_cast %118 : vector<1x128x128xf32> to vector<128x128xf32>
    %cst_124 = arith.constant dense<0.000000e+00> : vector<32x128xf32>
    %120 = tpu.matmul %117, %119, %cst_124 {dimension_numbers = #tpu.dot_dimension_numbers<[1], [0], [0], [1], [0, 0, 1, 1], [], []>} : vector<32x128xf32>, vector<128x128xf32>, vector<32x128xf32> -> vector<32x128xf32>
    %121 = arith.addf %114, %120 : vector<32x128xf32>
    %c7_125 = arith.constant 7 : index
    %c0_126 = arith.constant 0 : index
    %c0_127 = arith.constant 0 : index
    %122 = vector.load %arg4[%c7_125, %c0_126, %c0_127] : memref<9x32x72xf32, #tpu.memory_space<vmem>>, vector<1x32x72xf32>
    %123 = vector.shape_cast %122 : vector<1x32x72xf32> to vector<32x72xf32>
    %cst_128 = arith.constant dense<0.000000e+00> : vector<32x128xf32>
    %124 = tpu.matmul %123, %73, %cst_128 {dimension_numbers = #tpu.dot_dimension_numbers<[1], [0], [0], [1], [0, 0, 1, 1], [], []>} : vector<32x72xf32>, vector<72x128xf32>, vector<32x128xf32> -> vector<32x128xf32>
    %c7_129 = arith.constant 7 : index
    %c0_130 = arith.constant 0 : index
    %c0_131 = arith.constant 0 : index
    %125 = vector.load %arg5[%c7_129, %c0_130, %c0_131] : memref<9x128x128xf32, #tpu.memory_space<vmem>>, vector<1x128x128xf32>
    %126 = vector.shape_cast %125 : vector<1x128x128xf32> to vector<128x128xf32>
    %cst_132 = arith.constant dense<0.000000e+00> : vector<32x128xf32>
    %127 = tpu.matmul %124, %126, %cst_132 {dimension_numbers = #tpu.dot_dimension_numbers<[1], [0], [0], [1], [0, 0, 1, 1], [], []>} : vector<32x128xf32>, vector<128x128xf32>, vector<32x128xf32> -> vector<32x128xf32>
    %128 = arith.addf %121, %127 : vector<32x128xf32>
    %c8_133 = arith.constant 8 : index
    %c0_134 = arith.constant 0 : index
    %c0_135 = arith.constant 0 : index
    %129 = vector.load %arg4[%c8_133, %c0_134, %c0_135] : memref<9x32x72xf32, #tpu.memory_space<vmem>>, vector<1x32x72xf32>
    %130 = vector.shape_cast %129 : vector<1x32x72xf32> to vector<32x72xf32>
    %cst_136 = arith.constant dense<0.000000e+00> : vector<32x128xf32>
    %131 = tpu.matmul %130, %73, %cst_136 {dimension_numbers = #tpu.dot_dimension_numbers<[1], [0], [0], [1], [0, 0, 1, 1], [], []>} : vector<32x72xf32>, vector<72x128xf32>, vector<32x128xf32> -> vector<32x128xf32>
    %c8_137 = arith.constant 8 : index
    %c0_138 = arith.constant 0 : index
    %c0_139 = arith.constant 0 : index
    %132 = vector.load %arg5[%c8_137, %c0_138, %c0_139] : memref<9x128x128xf32, #tpu.memory_space<vmem>>, vector<1x128x128xf32>
    %133 = vector.shape_cast %132 : vector<1x128x128xf32> to vector<128x128xf32>
    %cst_140 = arith.constant dense<0.000000e+00> : vector<32x128xf32>
    %134 = tpu.matmul %131, %133, %cst_140 {dimension_numbers = #tpu.dot_dimension_numbers<[1], [0], [0], [1], [0, 0, 1, 1], [], []>} : vector<32x128xf32>, vector<128x128xf32>, vector<32x128xf32> -> vector<32x128xf32>
    %135 = arith.addf %128, %134 : vector<32x128xf32>
    %c0_141 = arith.constant 0 : index
    %c0_142 = arith.constant 0 : index
    %136 = vector.load %arg6[%c0_141, %c0_142] : memref<1x128xf32, #tpu.memory_space<vmem>>, vector<1x128xf32>
    %137 = vector.broadcast %136 : vector<1x128xf32> to vector<32x128xf32>
    %138 = arith.addf %135, %137 : vector<32x128xf32>
    %cst_143 = arith.constant 5.000000e-01 : f32
    %139 = vector.broadcast %cst_143 : f32 to vector<32x128xf32>
    %140 = arith.mulf %139, %138 : vector<32x128xf32>
    %cst_144 = arith.constant 0.707106769 : f32
    %141 = vector.broadcast %cst_144 : f32 to vector<32x128xf32>
    %142 = arith.mulf %138, %141 : vector<32x128xf32>
    %143 = math.erf %142 : vector<32x128xf32>
    %cst_145 = arith.constant 1.000000e+00 : f32
    %144 = vector.broadcast %cst_145 : f32 to vector<32x128xf32>
    %145 = arith.addf %144, %143 : vector<32x128xf32>
    %146 = arith.mulf %140, %145 : vector<32x128xf32>
    %c0_146 = arith.constant 0 : index
    %c0_147 = arith.constant 0 : index
    %c0_148 = arith.constant 0 : index
    %147 = vector.load %arg7[%c0_146, %c0_147, %c0_148] : memref<9x8x32xf32, #tpu.memory_space<vmem>>, vector<1x8x32xf32>
    %148 = vector.shape_cast %147 : vector<1x8x32xf32> to vector<8x32xf32>
    %cst_149 = arith.constant dense<0.000000e+00> : vector<8x128xf32>
    %149 = tpu.matmul %148, %146, %cst_149 {dimension_numbers = #tpu.dot_dimension_numbers<[1], [0], [0], [1], [0, 0, 1, 1], [], []>} : vector<8x32xf32>, vector<32x128xf32>, vector<8x128xf32> -> vector<8x128xf32>
    %c0_150 = arith.constant 0 : index
    %c0_151 = arith.constant 0 : index
    %c0_152 = arith.constant 0 : index
    %150 = vector.load %arg8[%c0_150, %c0_151, %c0_152] : memref<9x128x128xf32, #tpu.memory_space<vmem>>, vector<1x128x128xf32>
    %151 = vector.shape_cast %150 : vector<1x128x128xf32> to vector<128x128xf32>
    %cst_153 = arith.constant dense<0.000000e+00> : vector<8x128xf32>
    %152 = tpu.matmul %149, %151, %cst_153 {dimension_numbers = #tpu.dot_dimension_numbers<[1], [0], [0], [1], [0, 0, 1, 1], [], []>} : vector<8x128xf32>, vector<128x128xf32>, vector<8x128xf32> -> vector<8x128xf32>
    %c1_154 = arith.constant 1 : index
    %c0_155 = arith.constant 0 : index
    %c0_156 = arith.constant 0 : index
    %153 = vector.load %arg7[%c1_154, %c0_155, %c0_156] : memref<9x8x32xf32, #tpu.memory_space<vmem>>, vector<1x8x32xf32>
    %154 = vector.shape_cast %153 : vector<1x8x32xf32> to vector<8x32xf32>
    %cst_157 = arith.constant dense<0.000000e+00> : vector<8x128xf32>
    %155 = tpu.matmul %154, %146, %cst_157 {dimension_numbers = #tpu.dot_dimension_numbers<[1], [0], [0], [1], [0, 0, 1, 1], [], []>} : vector<8x32xf32>, vector<32x128xf32>, vector<8x128xf32> -> vector<8x128xf32>
    %c1_158 = arith.constant 1 : index
    %c0_159 = arith.constant 0 : index
    %c0_160 = arith.constant 0 : index
    %156 = vector.load %arg8[%c1_158, %c0_159, %c0_160] : memref<9x128x128xf32, #tpu.memory_space<vmem>>, vector<1x128x128xf32>
    %157 = vector.shape_cast %156 : vector<1x128x128xf32> to vector<128x128xf32>
    %cst_161 = arith.constant dense<0.000000e+00> : vector<8x128xf32>
    %158 = tpu.matmul %155, %157, %cst_161 {dimension_numbers = #tpu.dot_dimension_numbers<[1], [0], [0], [1], [0, 0, 1, 1], [], []>} : vector<8x128xf32>, vector<128x128xf32>, vector<8x128xf32> -> vector<8x128xf32>
    %159 = arith.addf %152, %158 : vector<8x128xf32>
    %c2_162 = arith.constant 2 : index
    %c0_163 = arith.constant 0 : index
    %c0_164 = arith.constant 0 : index
    %160 = vector.load %arg7[%c2_162, %c0_163, %c0_164] : memref<9x8x32xf32, #tpu.memory_space<vmem>>, vector<1x8x32xf32>
    %161 = vector.shape_cast %160 : vector<1x8x32xf32> to vector<8x32xf32>
    %cst_165 = arith.constant dense<0.000000e+00> : vector<8x128xf32>
    %162 = tpu.matmul %161, %146, %cst_165 {dimension_numbers = #tpu.dot_dimension_numbers<[1], [0], [0], [1], [0, 0, 1, 1], [], []>} : vector<8x32xf32>, vector<32x128xf32>, vector<8x128xf32> -> vector<8x128xf32>
    %c2_166 = arith.constant 2 : index
    %c0_167 = arith.constant 0 : index
    %c0_168 = arith.constant 0 : index
    %163 = vector.load %arg8[%c2_166, %c0_167, %c0_168] : memref<9x128x128xf32, #tpu.memory_space<vmem>>, vector<1x128x128xf32>
    %164 = vector.shape_cast %163 : vector<1x128x128xf32> to vector<128x128xf32>
    %cst_169 = arith.constant dense<0.000000e+00> : vector<8x128xf32>
    %165 = tpu.matmul %162, %164, %cst_169 {dimension_numbers = #tpu.dot_dimension_numbers<[1], [0], [0], [1], [0, 0, 1, 1], [], []>} : vector<8x128xf32>, vector<128x128xf32>, vector<8x128xf32> -> vector<8x128xf32>
    %166 = arith.addf %159, %165 : vector<8x128xf32>
    %c3_170 = arith.constant 3 : index
    %c0_171 = arith.constant 0 : index
    %c0_172 = arith.constant 0 : index
    %167 = vector.load %arg7[%c3_170, %c0_171, %c0_172] : memref<9x8x32xf32, #tpu.memory_space<vmem>>, vector<1x8x32xf32>
    %168 = vector.shape_cast %167 : vector<1x8x32xf32> to vector<8x32xf32>
    %cst_173 = arith.constant dense<0.000000e+00> : vector<8x128xf32>
    %169 = tpu.matmul %168, %146, %cst_173 {dimension_numbers = #tpu.dot_dimension_numbers<[1], [0], [0], [1], [0, 0, 1, 1], [], []>} : vector<8x32xf32>, vector<32x128xf32>, vector<8x128xf32> -> vector<8x128xf32>
    %c3_174 = arith.constant 3 : index
    %c0_175 = arith.constant 0 : index
    %c0_176 = arith.constant 0 : index
    %170 = vector.load %arg8[%c3_174, %c0_175, %c0_176] : memref<9x128x128xf32, #tpu.memory_space<vmem>>, vector<1x128x128xf32>
    %171 = vector.shape_cast %170 : vector<1x128x128xf32> to vector<128x128xf32>
    %cst_177 = arith.constant dense<0.000000e+00> : vector<8x128xf32>
    %172 = tpu.matmul %169, %171, %cst_177 {dimension_numbers = #tpu.dot_dimension_numbers<[1], [0], [0], [1], [0, 0, 1, 1], [], []>} : vector<8x128xf32>, vector<128x128xf32>, vector<8x128xf32> -> vector<8x128xf32>
    %173 = arith.addf %166, %172 : vector<8x128xf32>
    %c4_178 = arith.constant 4 : index
    %c0_179 = arith.constant 0 : index
    %c0_180 = arith.constant 0 : index
    %174 = vector.load %arg7[%c4_178, %c0_179, %c0_180] : memref<9x8x32xf32, #tpu.memory_space<vmem>>, vector<1x8x32xf32>
    %175 = vector.shape_cast %174 : vector<1x8x32xf32> to vector<8x32xf32>
    %cst_181 = arith.constant dense<0.000000e+00> : vector<8x128xf32>
    %176 = tpu.matmul %175, %146, %cst_181 {dimension_numbers = #tpu.dot_dimension_numbers<[1], [0], [0], [1], [0, 0, 1, 1], [], []>} : vector<8x32xf32>, vector<32x128xf32>, vector<8x128xf32> -> vector<8x128xf32>
    %c4_182 = arith.constant 4 : index
    %c0_183 = arith.constant 0 : index
    %c0_184 = arith.constant 0 : index
    %177 = vector.load %arg8[%c4_182, %c0_183, %c0_184] : memref<9x128x128xf32, #tpu.memory_space<vmem>>, vector<1x128x128xf32>
    %178 = vector.shape_cast %177 : vector<1x128x128xf32> to vector<128x128xf32>
    %cst_185 = arith.constant dense<0.000000e+00> : vector<8x128xf32>
    %179 = tpu.matmul %176, %178, %cst_185 {dimension_numbers = #tpu.dot_dimension_numbers<[1], [0], [0], [1], [0, 0, 1, 1], [], []>} : vector<8x128xf32>, vector<128x128xf32>, vector<8x128xf32> -> vector<8x128xf32>
    %180 = arith.addf %173, %179 : vector<8x128xf32>
    %c5_186 = arith.constant 5 : index
    %c0_187 = arith.constant 0 : index
    %c0_188 = arith.constant 0 : index
    %181 = vector.load %arg7[%c5_186, %c0_187, %c0_188] : memref<9x8x32xf32, #tpu.memory_space<vmem>>, vector<1x8x32xf32>
    %182 = vector.shape_cast %181 : vector<1x8x32xf32> to vector<8x32xf32>
    %cst_189 = arith.constant dense<0.000000e+00> : vector<8x128xf32>
    %183 = tpu.matmul %182, %146, %cst_189 {dimension_numbers = #tpu.dot_dimension_numbers<[1], [0], [0], [1], [0, 0, 1, 1], [], []>} : vector<8x32xf32>, vector<32x128xf32>, vector<8x128xf32> -> vector<8x128xf32>
    %c5_190 = arith.constant 5 : index
    %c0_191 = arith.constant 0 : index
    %c0_192 = arith.constant 0 : index
    %184 = vector.load %arg8[%c5_190, %c0_191, %c0_192] : memref<9x128x128xf32, #tpu.memory_space<vmem>>, vector<1x128x128xf32>
    %185 = vector.shape_cast %184 : vector<1x128x128xf32> to vector<128x128xf32>
    %cst_193 = arith.constant dense<0.000000e+00> : vector<8x128xf32>
    %186 = tpu.matmul %183, %185, %cst_193 {dimension_numbers = #tpu.dot_dimension_numbers<[1], [0], [0], [1], [0, 0, 1, 1], [], []>} : vector<8x128xf32>, vector<128x128xf32>, vector<8x128xf32> -> vector<8x128xf32>
    %187 = arith.addf %180, %186 : vector<8x128xf32>
    %c6_194 = arith.constant 6 : index
    %c0_195 = arith.constant 0 : index
    %c0_196 = arith.constant 0 : index
    %188 = vector.load %arg7[%c6_194, %c0_195, %c0_196] : memref<9x8x32xf32, #tpu.memory_space<vmem>>, vector<1x8x32xf32>
    %189 = vector.shape_cast %188 : vector<1x8x32xf32> to vector<8x32xf32>
    %cst_197 = arith.constant dense<0.000000e+00> : vector<8x128xf32>
    %190 = tpu.matmul %189, %146, %cst_197 {dimension_numbers = #tpu.dot_dimension_numbers<[1], [0], [0], [1], [0, 0, 1, 1], [], []>} : vector<8x32xf32>, vector<32x128xf32>, vector<8x128xf32> -> vector<8x128xf32>
    %c6_198 = arith.constant 6 : index
    %c0_199 = arith.constant 0 : index
    %c0_200 = arith.constant 0 : index
    %191 = vector.load %arg8[%c6_198, %c0_199, %c0_200] : memref<9x128x128xf32, #tpu.memory_space<vmem>>, vector<1x128x128xf32>
    %192 = vector.shape_cast %191 : vector<1x128x128xf32> to vector<128x128xf32>
    %cst_201 = arith.constant dense<0.000000e+00> : vector<8x128xf32>
    %193 = tpu.matmul %190, %192, %cst_201 {dimension_numbers = #tpu.dot_dimension_numbers<[1], [0], [0], [1], [0, 0, 1, 1], [], []>} : vector<8x128xf32>, vector<128x128xf32>, vector<8x128xf32> -> vector<8x128xf32>
    %194 = arith.addf %187, %193 : vector<8x128xf32>
    %c7_202 = arith.constant 7 : index
    %c0_203 = arith.constant 0 : index
    %c0_204 = arith.constant 0 : index
    %195 = vector.load %arg7[%c7_202, %c0_203, %c0_204] : memref<9x8x32xf32, #tpu.memory_space<vmem>>, vector<1x8x32xf32>
    %196 = vector.shape_cast %195 : vector<1x8x32xf32> to vector<8x32xf32>
    %cst_205 = arith.constant dense<0.000000e+00> : vector<8x128xf32>
    %197 = tpu.matmul %196, %146, %cst_205 {dimension_numbers = #tpu.dot_dimension_numbers<[1], [0], [0], [1], [0, 0, 1, 1], [], []>} : vector<8x32xf32>, vector<32x128xf32>, vector<8x128xf32> -> vector<8x128xf32>
    %c7_206 = arith.constant 7 : index
    %c0_207 = arith.constant 0 : index
    %c0_208 = arith.constant 0 : index
    %198 = vector.load %arg8[%c7_206, %c0_207, %c0_208] : memref<9x128x128xf32, #tpu.memory_space<vmem>>, vector<1x128x128xf32>
    %199 = vector.shape_cast %198 : vector<1x128x128xf32> to vector<128x128xf32>
    %cst_209 = arith.constant dense<0.000000e+00> : vector<8x128xf32>
    %200 = tpu.matmul %197, %199, %cst_209 {dimension_numbers = #tpu.dot_dimension_numbers<[1], [0], [0], [1], [0, 0, 1, 1], [], []>} : vector<8x128xf32>, vector<128x128xf32>, vector<8x128xf32> -> vector<8x128xf32>
    %201 = arith.addf %194, %200 : vector<8x128xf32>
    %c8_210 = arith.constant 8 : index
    %c0_211 = arith.constant 0 : index
    %c0_212 = arith.constant 0 : index
    %202 = vector.load %arg7[%c8_210, %c0_211, %c0_212] : memref<9x8x32xf32, #tpu.memory_space<vmem>>, vector<1x8x32xf32>
    %203 = vector.shape_cast %202 : vector<1x8x32xf32> to vector<8x32xf32>
    %cst_213 = arith.constant dense<0.000000e+00> : vector<8x128xf32>
    %204 = tpu.matmul %203, %146, %cst_213 {dimension_numbers = #tpu.dot_dimension_numbers<[1], [0], [0], [1], [0, 0, 1, 1], [], []>} : vector<8x32xf32>, vector<32x128xf32>, vector<8x128xf32> -> vector<8x128xf32>
    %c8_214 = arith.constant 8 : index
    %c0_215 = arith.constant 0 : index
    %c0_216 = arith.constant 0 : index
    %205 = vector.load %arg8[%c8_214, %c0_215, %c0_216] : memref<9x128x128xf32, #tpu.memory_space<vmem>>, vector<1x128x128xf32>
    %206 = vector.shape_cast %205 : vector<1x128x128xf32> to vector<128x128xf32>
    %cst_217 = arith.constant dense<0.000000e+00> : vector<8x128xf32>
    %207 = tpu.matmul %204, %206, %cst_217 {dimension_numbers = #tpu.dot_dimension_numbers<[1], [0], [0], [1], [0, 0, 1, 1], [], []>} : vector<8x128xf32>, vector<128x128xf32>, vector<8x128xf32> -> vector<8x128xf32>
    %208 = arith.addf %201, %207 : vector<8x128xf32>
    %c0_218 = arith.constant 0 : index
    %c0_219 = arith.constant 0 : index
    %209 = vector.load %arg9[%c0_218, %c0_219] : memref<1x128xf32, #tpu.memory_space<vmem>>, vector<1x128xf32>
    %210 = vector.broadcast %209 : vector<1x128xf32> to vector<8x128xf32>
    %211 = arith.addf %208, %210 : vector<8x128xf32>
    %cst_220 = arith.constant 5.000000e-01 : f32
    %212 = vector.broadcast %cst_220 : f32 to vector<8x128xf32>
    %213 = arith.mulf %212, %211 : vector<8x128xf32>
    %cst_221 = arith.constant 0.707106769 : f32
    %214 = vector.broadcast %cst_221 : f32 to vector<8x128xf32>
    %215 = arith.mulf %211, %214 : vector<8x128xf32>
    %216 = math.erf %215 : vector<8x128xf32>
    %cst_222 = arith.constant 1.000000e+00 : f32
    %217 = vector.broadcast %cst_222 : f32 to vector<8x128xf32>
    %218 = arith.addf %217, %216 : vector<8x128xf32>
    %219 = arith.mulf %213, %218 : vector<8x128xf32>
    %c0_223 = arith.constant 0 : index
    %c0_224 = arith.constant 0 : index
    %220 = vector.load %arg10[%c0_223, %c0_224] : memref<72x32xf32, #tpu.memory_space<vmem>>, vector<72x32xf32>
    %cst_225 = arith.constant dense<0.000000e+00> : vector<72x128xf32>
    %221 = tpu.matmul %220, %146, %cst_225 {dimension_numbers = #tpu.dot_dimension_numbers<[1], [0], [0], [1], [0, 0, 1, 1], [], []>} : vector<72x32xf32>, vector<32x128xf32>, vector<72x128xf32> -> vector<72x128xf32>
    %222 = arith.addf %221, %73 : vector<72x128xf32>
    %c0_226 = arith.constant 0 : index
    %c0_227 = arith.constant 0 : index
    %223 = vector.load %arg11[%c0_226, %c0_227] : memref<72x8xf32, #tpu.memory_space<vmem>>, vector<72x8xf32>
    %cst_228 = arith.constant dense<0.000000e+00> : vector<72x128xf32>
    %224 = tpu.matmul %223, %219, %cst_228 {dimension_numbers = #tpu.dot_dimension_numbers<[1], [0], [0], [1], [0, 0, 1, 1], [], []>} : vector<72x8xf32>, vector<8x128xf32>, vector<72x128xf32> -> vector<72x128xf32>
    %225 = arith.addf %224, %222 : vector<72x128xf32>
    %c0_229 = arith.constant 0 : index
    %c0_230 = arith.constant 0 : index
    %226 = vector.load %arg12[%c0_229, %c0_230] : memref<2x72xf32, #tpu.memory_space<vmem>>, vector<2x72xf32>
    %cst_231 = arith.constant dense<0.000000e+00> : vector<2x128xf32>
    %227 = tpu.matmul %226, %225, %cst_231 {dimension_numbers = #tpu.dot_dimension_numbers<[1], [0], [0], [1], [0, 0, 1, 1], [], []>} : vector<2x72xf32>, vector<72x128xf32>, vector<2x128xf32> -> vector<2x128xf32>
    %c0_232 = arith.constant 0 : index
    %c0_233 = arith.constant 0 : index
    %228 = vector.load %arg13[%c0_232, %c0_233] : memref<128x8xf32, #tpu.memory_space<vmem>>, vector<128x8xf32>
    %cst_234 = arith.constant dense<0.000000e+00> : vector<2x8xf32>
    %229 = tpu.matmul %227, %228, %cst_234 {dimension_numbers = #tpu.dot_dimension_numbers<[1], [0], [0], [1], [0, 0, 1, 1], [], []>} : vector<2x128xf32>, vector<128x8xf32>, vector<2x8xf32> -> vector<2x8xf32>
    %cst_235 = arith.constant 0.000000e+00 : f32
    %230 = vector.broadcast %cst_235 : f32 to vector<2x8xf32>
    %231 = arith.maximumf %229, %230 : vector<2x8xf32>
    %c0_236 = arith.constant 0 : index
    %c0_237 = arith.constant 0 : index
    %232 = vector.load %arg14[%c0_236, %c0_237] : memref<8x128xf32, #tpu.memory_space<vmem>>, vector<8x128xf32>
    %cst_238 = arith.constant dense<0.000000e+00> : vector<2x128xf32>
    %233 = tpu.matmul %231, %232, %cst_238 {dimension_numbers = #tpu.dot_dimension_numbers<[1], [0], [0], [1], [0, 0, 1, 1], [], []>} : vector<2x8xf32>, vector<8x128xf32>, vector<2x128xf32> -> vector<2x128xf32>
    %cst_239 = arith.constant 0.000000e+00 : f32
    %234 = vector.broadcast %cst_239 : f32 to vector<2x128xf32>
    %235 = arith.subf %234, %233 : vector<2x128xf32>
    %236 = math.exp %235 : vector<2x128xf32>
    %cst_240 = arith.constant 1.000000e+00 : f32
    %237 = vector.broadcast %cst_240 : f32 to vector<2x128xf32>
    %238 = arith.addf %237, %236 : vector<2x128xf32>
    %cst_241 = arith.constant 1.000000e+00 : f32
    %239 = vector.broadcast %cst_241 : f32 to vector<2x128xf32>
    %240 = arith.divf %239, %238 : vector<2x128xf32>
    %c0_242 = arith.constant 0 : index
    %c0_243 = arith.constant 0 : index
    %241 = vector.load %arg15[%c0_242, %c0_243] : memref<72x2xf32, #tpu.memory_space<vmem>>, vector<72x2xf32>
    %cst_244 = arith.constant dense<0.000000e+00> : vector<72x128xf32>
    %242 = tpu.matmul %241, %240, %cst_244 {dimension_numbers = #tpu.dot_dimension_numbers<[1], [0], [0], [1], [0, 0, 1, 1], [], []>} : vector<72x2xf32>, vector<2x128xf32>, vector<72x128xf32> -> vector<72x128xf32>
    %243 = arith.mulf %225, %242 : vector<72x128xf32>
    %c0_245 = arith.constant 0 : index
    %c0_246 = arith.constant 0 : index
    %244 = vector.load %arg16[%c0_245, %c0_246] : memref<128x64xf32, #tpu.memory_space<vmem>>, vector<128x64xf32>
    %cst_247 = arith.constant dense<0.000000e+00> : vector<72x64xf32>
    %245 = tpu.matmul %243, %244, %cst_247 {dimension_numbers = #tpu.dot_dimension_numbers<[1], [0], [0], [1], [0, 0, 1, 1], [], []>} : vector<72x128xf32>, vector<128x64xf32>, vector<72x64xf32> -> vector<72x64xf32>
    %246 = vector.extract_strided_slice %245 {offsets = [0, 0], sizes = [2, 64], strides = [1, 1]} : vector<72x64xf32> to vector<2x64xf32>
    %c0_248 = arith.constant 0 : index
    %c0_249 = arith.constant 0 : index
    %c0_250 = arith.constant 0 : index
    %247 = vector.load %arg17[%c0_248, %c0_249, %c0_250] : memref<36x64x256xf32, #tpu.memory_space<vmem>>, vector<1x64x256xf32>
    %248 = vector.shape_cast %247 : vector<1x64x256xf32> to vector<64x256xf32>
    %cst_251 = arith.constant dense<0.000000e+00> : vector<2x256xf32>
    %249 = tpu.matmul %246, %248, %cst_251 {dimension_numbers = #tpu.dot_dimension_numbers<[1], [0], [0], [1], [0, 0, 1, 1], [], []>} : vector<2x64xf32>, vector<64x256xf32>, vector<2x256xf32> -> vector<2x256xf32>
    %250 = vector.extract_strided_slice %245 {offsets = [2, 0], sizes = [2, 64], strides = [1, 1]} : vector<72x64xf32> to vector<2x64xf32>
    %c1_252 = arith.constant 1 : index
    %c0_253 = arith.constant 0 : index
    %c0_254 = arith.constant 0 : index
    %251 = vector.load %arg17[%c1_252, %c0_253, %c0_254] : memref<36x64x256xf32, #tpu.memory_space<vmem>>, vector<1x64x256xf32>
    %252 = vector.shape_cast %251 : vector<1x64x256xf32> to vector<64x256xf32>
    %cst_255 = arith.constant dense<0.000000e+00> : vector<2x256xf32>
    %253 = tpu.matmul %250, %252, %cst_255 {dimension_numbers = #tpu.dot_dimension_numbers<[1], [0], [0], [1], [0, 0, 1, 1], [], []>} : vector<2x64xf32>, vector<64x256xf32>, vector<2x256xf32> -> vector<2x256xf32>
    %254 = arith.addf %249, %253 : vector<2x256xf32>
    %255 = vector.extract_strided_slice %245 {offsets = [4, 0], sizes = [2, 64], strides = [1, 1]} : vector<72x64xf32> to vector<2x64xf32>
    %c2_256 = arith.constant 2 : index
    %c0_257 = arith.constant 0 : index
    %c0_258 = arith.constant 0 : index
    %256 = vector.load %arg17[%c2_256, %c0_257, %c0_258] : memref<36x64x256xf32, #tpu.memory_space<vmem>>, vector<1x64x256xf32>
    %257 = vector.shape_cast %256 : vector<1x64x256xf32> to vector<64x256xf32>
    %cst_259 = arith.constant dense<0.000000e+00> : vector<2x256xf32>
    %258 = tpu.matmul %255, %257, %cst_259 {dimension_numbers = #tpu.dot_dimension_numbers<[1], [0], [0], [1], [0, 0, 1, 1], [], []>} : vector<2x64xf32>, vector<64x256xf32>, vector<2x256xf32> -> vector<2x256xf32>
    %259 = arith.addf %254, %258 : vector<2x256xf32>
    %260 = vector.extract_strided_slice %245 {offsets = [6, 0], sizes = [2, 64], strides = [1, 1]} : vector<72x64xf32> to vector<2x64xf32>
    %c3_260 = arith.constant 3 : index
    %c0_261 = arith.constant 0 : index
    %c0_262 = arith.constant 0 : index
    %261 = vector.load %arg17[%c3_260, %c0_261, %c0_262] : memref<36x64x256xf32, #tpu.memory_space<vmem>>, vector<1x64x256xf32>
    %262 = vector.shape_cast %261 : vector<1x64x256xf32> to vector<64x256xf32>
    %cst_263 = arith.constant dense<0.000000e+00> : vector<2x256xf32>
    %263 = tpu.matmul %260, %262, %cst_263 {dimension_numbers = #tpu.dot_dimension_numbers<[1], [0], [0], [1], [0, 0, 1, 1], [], []>} : vector<2x64xf32>, vector<64x256xf32>, vector<2x256xf32> -> vector<2x256xf32>
    %264 = arith.addf %259, %263 : vector<2x256xf32>
    %265 = vector.extract_strided_slice %245 {offsets = [8, 0], sizes = [2, 64], strides = [1, 1]} : vector<72x64xf32> to vector<2x64xf32>
    %c4_264 = arith.constant 4 : index
    %c0_265 = arith.constant 0 : index
    %c0_266 = arith.constant 0 : index
    %266 = vector.load %arg17[%c4_264, %c0_265, %c0_266] : memref<36x64x256xf32, #tpu.memory_space<vmem>>, vector<1x64x256xf32>
    %267 = vector.shape_cast %266 : vector<1x64x256xf32> to vector<64x256xf32>
    %cst_267 = arith.constant dense<0.000000e+00> : vector<2x256xf32>
    %268 = tpu.matmul %265, %267, %cst_267 {dimension_numbers = #tpu.dot_dimension_numbers<[1], [0], [0], [1], [0, 0, 1, 1], [], []>} : vector<2x64xf32>, vector<64x256xf32>, vector<2x256xf32> -> vector<2x256xf32>
    %269 = arith.addf %264, %268 : vector<2x256xf32>
    %270 = vector.extract_strided_slice %245 {offsets = [10, 0], sizes = [2, 64], strides = [1, 1]} : vector<72x64xf32> to vector<2x64xf32>
    %c5_268 = arith.constant 5 : index
    %c0_269 = arith.constant 0 : index
    %c0_270 = arith.constant 0 : index
    %271 = vector.load %arg17[%c5_268, %c0_269, %c0_270] : memref<36x64x256xf32, #tpu.memory_space<vmem>>, vector<1x64x256xf32>
    %272 = vector.shape_cast %271 : vector<1x64x256xf32> to vector<64x256xf32>
    %cst_271 = arith.constant dense<0.000000e+00> : vector<2x256xf32>
    %273 = tpu.matmul %270, %272, %cst_271 {dimension_numbers = #tpu.dot_dimension_numbers<[1], [0], [0], [1], [0, 0, 1, 1], [], []>} : vector<2x64xf32>, vector<64x256xf32>, vector<2x256xf32> -> vector<2x256xf32>
    %274 = arith.addf %269, %273 : vector<2x256xf32>
    %275 = vector.extract_strided_slice %245 {offsets = [12, 0], sizes = [2, 64], strides = [1, 1]} : vector<72x64xf32> to vector<2x64xf32>
    %c6_272 = arith.constant 6 : index
    %c0_273 = arith.constant 0 : index
    %c0_274 = arith.constant 0 : index
    %276 = vector.load %arg17[%c6_272, %c0_273, %c0_274] : memref<36x64x256xf32, #tpu.memory_space<vmem>>, vector<1x64x256xf32>
    %277 = vector.shape_cast %276 : vector<1x64x256xf32> to vector<64x256xf32>
    %cst_275 = arith.constant dense<0.000000e+00> : vector<2x256xf32>
    %278 = tpu.matmul %275, %277, %cst_275 {dimension_numbers = #tpu.dot_dimension_numbers<[1], [0], [0], [1], [0, 0, 1, 1], [], []>} : vector<2x64xf32>, vector<64x256xf32>, vector<2x256xf32> -> vector<2x256xf32>
    %279 = arith.addf %274, %278 : vector<2x256xf32>
    %280 = vector.extract_strided_slice %245 {offsets = [14, 0], sizes = [2, 64], strides = [1, 1]} : vector<72x64xf32> to vector<2x64xf32>
    %c7_276 = arith.constant 7 : index
    %c0_277 = arith.constant 0 : index
    %c0_278 = arith.constant 0 : index
    %281 = vector.load %arg17[%c7_276, %c0_277, %c0_278] : memref<36x64x256xf32, #tpu.memory_space<vmem>>, vector<1x64x256xf32>
    %282 = vector.shape_cast %281 : vector<1x64x256xf32> to vector<64x256xf32>
    %cst_279 = arith.constant dense<0.000000e+00> : vector<2x256xf32>
    %283 = tpu.matmul %280, %282, %cst_279 {dimension_numbers = #tpu.dot_dimension_numbers<[1], [0], [0], [1], [0, 0, 1, 1], [], []>} : vector<2x64xf32>, vector<64x256xf32>, vector<2x256xf32> -> vector<2x256xf32>
    %284 = arith.addf %279, %283 : vector<2x256xf32>
    %285 = vector.extract_strided_slice %245 {offsets = [16, 0], sizes = [2, 64], strides = [1, 1]} : vector<72x64xf32> to vector<2x64xf32>
    %c8_280 = arith.constant 8 : index
    %c0_281 = arith.constant 0 : index
    %c0_282 = arith.constant 0 : index
    %286 = vector.load %arg17[%c8_280, %c0_281, %c0_282] : memref<36x64x256xf32, #tpu.memory_space<vmem>>, vector<1x64x256xf32>
    %287 = vector.shape_cast %286 : vector<1x64x256xf32> to vector<64x256xf32>
    %cst_283 = arith.constant dense<0.000000e+00> : vector<2x256xf32>
    %288 = tpu.matmul %285, %287, %cst_283 {dimension_numbers = #tpu.dot_dimension_numbers<[1], [0], [0], [1], [0, 0, 1, 1], [], []>} : vector<2x64xf32>, vector<64x256xf32>, vector<2x256xf32> -> vector<2x256xf32>
    %289 = arith.addf %284, %288 : vector<2x256xf32>
    %290 = vector.extract_strided_slice %245 {offsets = [18, 0], sizes = [2, 64], strides = [1, 1]} : vector<72x64xf32> to vector<2x64xf32>
    %c9 = arith.constant 9 : index
    %c0_284 = arith.constant 0 : index
    %c0_285 = arith.constant 0 : index
    %291 = vector.load %arg17[%c9, %c0_284, %c0_285] : memref<36x64x256xf32, #tpu.memory_space<vmem>>, vector<1x64x256xf32>
    %292 = vector.shape_cast %291 : vector<1x64x256xf32> to vector<64x256xf32>
    %cst_286 = arith.constant dense<0.000000e+00> : vector<2x256xf32>
    %293 = tpu.matmul %290, %292, %cst_286 {dimension_numbers = #tpu.dot_dimension_numbers<[1], [0], [0], [1], [0, 0, 1, 1], [], []>} : vector<2x64xf32>, vector<64x256xf32>, vector<2x256xf32> -> vector<2x256xf32>
    %294 = arith.addf %289, %293 : vector<2x256xf32>
    %295 = vector.extract_strided_slice %245 {offsets = [20, 0], sizes = [2, 64], strides = [1, 1]} : vector<72x64xf32> to vector<2x64xf32>
    %c10 = arith.constant 10 : index
    %c0_287 = arith.constant 0 : index
    %c0_288 = arith.constant 0 : index
    %296 = vector.load %arg17[%c10, %c0_287, %c0_288] : memref<36x64x256xf32, #tpu.memory_space<vmem>>, vector<1x64x256xf32>
    %297 = vector.shape_cast %296 : vector<1x64x256xf32> to vector<64x256xf32>
    %cst_289 = arith.constant dense<0.000000e+00> : vector<2x256xf32>
    %298 = tpu.matmul %295, %297, %cst_289 {dimension_numbers = #tpu.dot_dimension_numbers<[1], [0], [0], [1], [0, 0, 1, 1], [], []>} : vector<2x64xf32>, vector<64x256xf32>, vector<2x256xf32> -> vector<2x256xf32>
    %299 = arith.addf %294, %298 : vector<2x256xf32>
    %300 = vector.extract_strided_slice %245 {offsets = [22, 0], sizes = [2, 64], strides = [1, 1]} : vector<72x64xf32> to vector<2x64xf32>
    %c11 = arith.constant 11 : index
    %c0_290 = arith.constant 0 : index
    %c0_291 = arith.constant 0 : index
    %301 = vector.load %arg17[%c11, %c0_290, %c0_291] : memref<36x64x256xf32, #tpu.memory_space<vmem>>, vector<1x64x256xf32>
    %302 = vector.shape_cast %301 : vector<1x64x256xf32> to vector<64x256xf32>
    %cst_292 = arith.constant dense<0.000000e+00> : vector<2x256xf32>
    %303 = tpu.matmul %300, %302, %cst_292 {dimension_numbers = #tpu.dot_dimension_numbers<[1], [0], [0], [1], [0, 0, 1, 1], [], []>} : vector<2x64xf32>, vector<64x256xf32>, vector<2x256xf32> -> vector<2x256xf32>
    %304 = arith.addf %299, %303 : vector<2x256xf32>
    %305 = vector.extract_strided_slice %245 {offsets = [24, 0], sizes = [2, 64], strides = [1, 1]} : vector<72x64xf32> to vector<2x64xf32>
    %c12 = arith.constant 12 : index
    %c0_293 = arith.constant 0 : index
    %c0_294 = arith.constant 0 : index
    %306 = vector.load %arg17[%c12, %c0_293, %c0_294] : memref<36x64x256xf32, #tpu.memory_space<vmem>>, vector<1x64x256xf32>
    %307 = vector.shape_cast %306 : vector<1x64x256xf32> to vector<64x256xf32>
    %cst_295 = arith.constant dense<0.000000e+00> : vector<2x256xf32>
    %308 = tpu.matmul %305, %307, %cst_295 {dimension_numbers = #tpu.dot_dimension_numbers<[1], [0], [0], [1], [0, 0, 1, 1], [], []>} : vector<2x64xf32>, vector<64x256xf32>, vector<2x256xf32> -> vector<2x256xf32>
    %309 = arith.addf %304, %308 : vector<2x256xf32>
    %310 = vector.extract_strided_slice %245 {offsets = [26, 0], sizes = [2, 64], strides = [1, 1]} : vector<72x64xf32> to vector<2x64xf32>
    %c13 = arith.constant 13 : index
    %c0_296 = arith.constant 0 : index
    %c0_297 = arith.constant 0 : index
    %311 = vector.load %arg17[%c13, %c0_296, %c0_297] : memref<36x64x256xf32, #tpu.memory_space<vmem>>, vector<1x64x256xf32>
    %312 = vector.shape_cast %311 : vector<1x64x256xf32> to vector<64x256xf32>
    %cst_298 = arith.constant dense<0.000000e+00> : vector<2x256xf32>
    %313 = tpu.matmul %310, %312, %cst_298 {dimension_numbers = #tpu.dot_dimension_numbers<[1], [0], [0], [1], [0, 0, 1, 1], [], []>} : vector<2x64xf32>, vector<64x256xf32>, vector<2x256xf32> -> vector<2x256xf32>
    %314 = arith.addf %309, %313 : vector<2x256xf32>
    %315 = vector.extract_strided_slice %245 {offsets = [28, 0], sizes = [2, 64], strides = [1, 1]} : vector<72x64xf32> to vector<2x64xf32>
    %c14 = arith.constant 14 : index
    %c0_299 = arith.constant 0 : index
    %c0_300 = arith.constant 0 : index
    %316 = vector.load %arg17[%c14, %c0_299, %c0_300] : memref<36x64x256xf32, #tpu.memory_space<vmem>>, vector<1x64x256xf32>
    %317 = vector.shape_cast %316 : vector<1x64x256xf32> to vector<64x256xf32>
    %cst_301 = arith.constant dense<0.000000e+00> : vector<2x256xf32>
    %318 = tpu.matmul %315, %317, %cst_301 {dimension_numbers = #tpu.dot_dimension_numbers<[1], [0], [0], [1], [0, 0, 1, 1], [], []>} : vector<2x64xf32>, vector<64x256xf32>, vector<2x256xf32> -> vector<2x256xf32>
    %319 = arith.addf %314, %318 : vector<2x256xf32>
    %320 = vector.extract_strided_slice %245 {offsets = [30, 0], sizes = [2, 64], strides = [1, 1]} : vector<72x64xf32> to vector<2x64xf32>
    %c15 = arith.constant 15 : index
    %c0_302 = arith.constant 0 : index
    %c0_303 = arith.constant 0 : index
    %321 = vector.load %arg17[%c15, %c0_302, %c0_303] : memref<36x64x256xf32, #tpu.memory_space<vmem>>, vector<1x64x256xf32>
    %322 = vector.shape_cast %321 : vector<1x64x256xf32> to vector<64x256xf32>
    %cst_304 = arith.constant dense<0.000000e+00> : vector<2x256xf32>
    %323 = tpu.matmul %320, %322, %cst_304 {dimension_numbers = #tpu.dot_dimension_numbers<[1], [0], [0], [1], [0, 0, 1, 1], [], []>} : vector<2x64xf32>, vector<64x256xf32>, vector<2x256xf32> -> vector<2x256xf32>
    %324 = arith.addf %319, %323 : vector<2x256xf32>
    %325 = vector.extract_strided_slice %245 {offsets = [32, 0], sizes = [2, 64], strides = [1, 1]} : vector<72x64xf32> to vector<2x64xf32>
    %c16 = arith.constant 16 : index
    %c0_305 = arith.constant 0 : index
    %c0_306 = arith.constant 0 : index
    %326 = vector.load %arg17[%c16, %c0_305, %c0_306] : memref<36x64x256xf32, #tpu.memory_space<vmem>>, vector<1x64x256xf32>
    %327 = vector.shape_cast %326 : vector<1x64x256xf32> to vector<64x256xf32>
    %cst_307 = arith.constant dense<0.000000e+00> : vector<2x256xf32>
    %328 = tpu.matmul %325, %327, %cst_307 {dimension_numbers = #tpu.dot_dimension_numbers<[1], [0], [0], [1], [0, 0, 1, 1], [], []>} : vector<2x64xf32>, vector<64x256xf32>, vector<2x256xf32> -> vector<2x256xf32>
    %329 = arith.addf %324, %328 : vector<2x256xf32>
    %330 = vector.extract_strided_slice %245 {offsets = [34, 0], sizes = [2, 64], strides = [1, 1]} : vector<72x64xf32> to vector<2x64xf32>
    %c17 = arith.constant 17 : index
    %c0_308 = arith.constant 0 : index
    %c0_309 = arith.constant 0 : index
    %331 = vector.load %arg17[%c17, %c0_308, %c0_309] : memref<36x64x256xf32, #tpu.memory_space<vmem>>, vector<1x64x256xf32>
    %332 = vector.shape_cast %331 : vector<1x64x256xf32> to vector<64x256xf32>
    %cst_310 = arith.constant dense<0.000000e+00> : vector<2x256xf32>
    %333 = tpu.matmul %330, %332, %cst_310 {dimension_numbers = #tpu.dot_dimension_numbers<[1], [0], [0], [1], [0, 0, 1, 1], [], []>} : vector<2x64xf32>, vector<64x256xf32>, vector<2x256xf32> -> vector<2x256xf32>
    %334 = arith.addf %329, %333 : vector<2x256xf32>
    %335 = vector.extract_strided_slice %245 {offsets = [36, 0], sizes = [2, 64], strides = [1, 1]} : vector<72x64xf32> to vector<2x64xf32>
    %c18 = arith.constant 18 : index
    %c0_311 = arith.constant 0 : index
    %c0_312 = arith.constant 0 : index
    %336 = vector.load %arg17[%c18, %c0_311, %c0_312] : memref<36x64x256xf32, #tpu.memory_space<vmem>>, vector<1x64x256xf32>
    %337 = vector.shape_cast %336 : vector<1x64x256xf32> to vector<64x256xf32>
    %cst_313 = arith.constant dense<0.000000e+00> : vector<2x256xf32>
    %338 = tpu.matmul %335, %337, %cst_313 {dimension_numbers = #tpu.dot_dimension_numbers<[1], [0], [0], [1], [0, 0, 1, 1], [], []>} : vector<2x64xf32>, vector<64x256xf32>, vector<2x256xf32> -> vector<2x256xf32>
    %339 = arith.addf %334, %338 : vector<2x256xf32>
    %340 = vector.extract_strided_slice %245 {offsets = [38, 0], sizes = [2, 64], strides = [1, 1]} : vector<72x64xf32> to vector<2x64xf32>
    %c19 = arith.constant 19 : index
    %c0_314 = arith.constant 0 : index
    %c0_315 = arith.constant 0 : index
    %341 = vector.load %arg17[%c19, %c0_314, %c0_315] : memref<36x64x256xf32, #tpu.memory_space<vmem>>, vector<1x64x256xf32>
    %342 = vector.shape_cast %341 : vector<1x64x256xf32> to vector<64x256xf32>
    %cst_316 = arith.constant dense<0.000000e+00> : vector<2x256xf32>
    %343 = tpu.matmul %340, %342, %cst_316 {dimension_numbers = #tpu.dot_dimension_numbers<[1], [0], [0], [1], [0, 0, 1, 1], [], []>} : vector<2x64xf32>, vector<64x256xf32>, vector<2x256xf32> -> vector<2x256xf32>
    %344 = arith.addf %339, %343 : vector<2x256xf32>
    %345 = vector.extract_strided_slice %245 {offsets = [40, 0], sizes = [2, 64], strides = [1, 1]} : vector<72x64xf32> to vector<2x64xf32>
    %c20 = arith.constant 20 : index
    %c0_317 = arith.constant 0 : index
    %c0_318 = arith.constant 0 : index
    %346 = vector.load %arg17[%c20, %c0_317, %c0_318] : memref<36x64x256xf32, #tpu.memory_space<vmem>>, vector<1x64x256xf32>
    %347 = vector.shape_cast %346 : vector<1x64x256xf32> to vector<64x256xf32>
    %cst_319 = arith.constant dense<0.000000e+00> : vector<2x256xf32>
    %348 = tpu.matmul %345, %347, %cst_319 {dimension_numbers = #tpu.dot_dimension_numbers<[1], [0], [0], [1], [0, 0, 1, 1], [], []>} : vector<2x64xf32>, vector<64x256xf32>, vector<2x256xf32> -> vector<2x256xf32>
    %349 = arith.addf %344, %348 : vector<2x256xf32>
    %350 = vector.extract_strided_slice %245 {offsets = [42, 0], sizes = [2, 64], strides = [1, 1]} : vector<72x64xf32> to vector<2x64xf32>
    %c21 = arith.constant 21 : index
    %c0_320 = arith.constant 0 : index
    %c0_321 = arith.constant 0 : index
    %351 = vector.load %arg17[%c21, %c0_320, %c0_321] : memref<36x64x256xf32, #tpu.memory_space<vmem>>, vector<1x64x256xf32>
    %352 = vector.shape_cast %351 : vector<1x64x256xf32> to vector<64x256xf32>
    %cst_322 = arith.constant dense<0.000000e+00> : vector<2x256xf32>
    %353 = tpu.matmul %350, %352, %cst_322 {dimension_numbers = #tpu.dot_dimension_numbers<[1], [0], [0], [1], [0, 0, 1, 1], [], []>} : vector<2x64xf32>, vector<64x256xf32>, vector<2x256xf32> -> vector<2x256xf32>
    %354 = arith.addf %349, %353 : vector<2x256xf32>
    %355 = vector.extract_strided_slice %245 {offsets = [44, 0], sizes = [2, 64], strides = [1, 1]} : vector<72x64xf32> to vector<2x64xf32>
    %c22 = arith.constant 22 : index
    %c0_323 = arith.constant 0 : index
    %c0_324 = arith.constant 0 : index
    %356 = vector.load %arg17[%c22, %c0_323, %c0_324] : memref<36x64x256xf32, #tpu.memory_space<vmem>>, vector<1x64x256xf32>
    %357 = vector.shape_cast %356 : vector<1x64x256xf32> to vector<64x256xf32>
    %cst_325 = arith.constant dense<0.000000e+00> : vector<2x256xf32>
    %358 = tpu.matmul %355, %357, %cst_325 {dimension_numbers = #tpu.dot_dimension_numbers<[1], [0], [0], [1], [0, 0, 1, 1], [], []>} : vector<2x64xf32>, vector<64x256xf32>, vector<2x256xf32> -> vector<2x256xf32>
    %359 = arith.addf %354, %358 : vector<2x256xf32>
    %360 = vector.extract_strided_slice %245 {offsets = [46, 0], sizes = [2, 64], strides = [1, 1]} : vector<72x64xf32> to vector<2x64xf32>
    %c23 = arith.constant 23 : index
    %c0_326 = arith.constant 0 : index
    %c0_327 = arith.constant 0 : index
    %361 = vector.load %arg17[%c23, %c0_326, %c0_327] : memref<36x64x256xf32, #tpu.memory_space<vmem>>, vector<1x64x256xf32>
    %362 = vector.shape_cast %361 : vector<1x64x256xf32> to vector<64x256xf32>
    %cst_328 = arith.constant dense<0.000000e+00> : vector<2x256xf32>
    %363 = tpu.matmul %360, %362, %cst_328 {dimension_numbers = #tpu.dot_dimension_numbers<[1], [0], [0], [1], [0, 0, 1, 1], [], []>} : vector<2x64xf32>, vector<64x256xf32>, vector<2x256xf32> -> vector<2x256xf32>
    %364 = arith.addf %359, %363 : vector<2x256xf32>
    %365 = vector.extract_strided_slice %245 {offsets = [48, 0], sizes = [2, 64], strides = [1, 1]} : vector<72x64xf32> to vector<2x64xf32>
    %c24 = arith.constant 24 : index
    %c0_329 = arith.constant 0 : index
    %c0_330 = arith.constant 0 : index
    %366 = vector.load %arg17[%c24, %c0_329, %c0_330] : memref<36x64x256xf32, #tpu.memory_space<vmem>>, vector<1x64x256xf32>
    %367 = vector.shape_cast %366 : vector<1x64x256xf32> to vector<64x256xf32>
    %cst_331 = arith.constant dense<0.000000e+00> : vector<2x256xf32>
    %368 = tpu.matmul %365, %367, %cst_331 {dimension_numbers = #tpu.dot_dimension_numbers<[1], [0], [0], [1], [0, 0, 1, 1], [], []>} : vector<2x64xf32>, vector<64x256xf32>, vector<2x256xf32> -> vector<2x256xf32>
    %369 = arith.addf %364, %368 : vector<2x256xf32>
    %370 = vector.extract_strided_slice %245 {offsets = [50, 0], sizes = [2, 64], strides = [1, 1]} : vector<72x64xf32> to vector<2x64xf32>
    %c25 = arith.constant 25 : index
    %c0_332 = arith.constant 0 : index
    %c0_333 = arith.constant 0 : index
    %371 = vector.load %arg17[%c25, %c0_332, %c0_333] : memref<36x64x256xf32, #tpu.memory_space<vmem>>, vector<1x64x256xf32>
    %372 = vector.shape_cast %371 : vector<1x64x256xf32> to vector<64x256xf32>
    %cst_334 = arith.constant dense<0.000000e+00> : vector<2x256xf32>
    %373 = tpu.matmul %370, %372, %cst_334 {dimension_numbers = #tpu.dot_dimension_numbers<[1], [0], [0], [1], [0, 0, 1, 1], [], []>} : vector<2x64xf32>, vector<64x256xf32>, vector<2x256xf32> -> vector<2x256xf32>
    %374 = arith.addf %369, %373 : vector<2x256xf32>
    %375 = vector.extract_strided_slice %245 {offsets = [52, 0], sizes = [2, 64], strides = [1, 1]} : vector<72x64xf32> to vector<2x64xf32>
    %c26 = arith.constant 26 : index
    %c0_335 = arith.constant 0 : index
    %c0_336 = arith.constant 0 : index
    %376 = vector.load %arg17[%c26, %c0_335, %c0_336] : memref<36x64x256xf32, #tpu.memory_space<vmem>>, vector<1x64x256xf32>
    %377 = vector.shape_cast %376 : vector<1x64x256xf32> to vector<64x256xf32>
    %cst_337 = arith.constant dense<0.000000e+00> : vector<2x256xf32>
    %378 = tpu.matmul %375, %377, %cst_337 {dimension_numbers = #tpu.dot_dimension_numbers<[1], [0], [0], [1], [0, 0, 1, 1], [], []>} : vector<2x64xf32>, vector<64x256xf32>, vector<2x256xf32> -> vector<2x256xf32>
    %379 = arith.addf %374, %378 : vector<2x256xf32>
    %380 = vector.extract_strided_slice %245 {offsets = [54, 0], sizes = [2, 64], strides = [1, 1]} : vector<72x64xf32> to vector<2x64xf32>
    %c27 = arith.constant 27 : index
    %c0_338 = arith.constant 0 : index
    %c0_339 = arith.constant 0 : index
    %381 = vector.load %arg17[%c27, %c0_338, %c0_339] : memref<36x64x256xf32, #tpu.memory_space<vmem>>, vector<1x64x256xf32>
    %382 = vector.shape_cast %381 : vector<1x64x256xf32> to vector<64x256xf32>
    %cst_340 = arith.constant dense<0.000000e+00> : vector<2x256xf32>
    %383 = tpu.matmul %380, %382, %cst_340 {dimension_numbers = #tpu.dot_dimension_numbers<[1], [0], [0], [1], [0, 0, 1, 1], [], []>} : vector<2x64xf32>, vector<64x256xf32>, vector<2x256xf32> -> vector<2x256xf32>
    %384 = arith.addf %379, %383 : vector<2x256xf32>
    %385 = vector.extract_strided_slice %245 {offsets = [56, 0], sizes = [2, 64], strides = [1, 1]} : vector<72x64xf32> to vector<2x64xf32>
    %c28 = arith.constant 28 : index
    %c0_341 = arith.constant 0 : index
    %c0_342 = arith.constant 0 : index
    %386 = vector.load %arg17[%c28, %c0_341, %c0_342] : memref<36x64x256xf32, #tpu.memory_space<vmem>>, vector<1x64x256xf32>
    %387 = vector.shape_cast %386 : vector<1x64x256xf32> to vector<64x256xf32>
    %cst_343 = arith.constant dense<0.000000e+00> : vector<2x256xf32>
    %388 = tpu.matmul %385, %387, %cst_343 {dimension_numbers = #tpu.dot_dimension_numbers<[1], [0], [0], [1], [0, 0, 1, 1], [], []>} : vector<2x64xf32>, vector<64x256xf32>, vector<2x256xf32> -> vector<2x256xf32>
    %389 = arith.addf %384, %388 : vector<2x256xf32>
    %390 = vector.extract_strided_slice %245 {offsets = [58, 0], sizes = [2, 64], strides = [1, 1]} : vector<72x64xf32> to vector<2x64xf32>
    %c29 = arith.constant 29 : index
    %c0_344 = arith.constant 0 : index
    %c0_345 = arith.constant 0 : index
    %391 = vector.load %arg17[%c29, %c0_344, %c0_345] : memref<36x64x256xf32, #tpu.memory_space<vmem>>, vector<1x64x256xf32>
    %392 = vector.shape_cast %391 : vector<1x64x256xf32> to vector<64x256xf32>
    %cst_346 = arith.constant dense<0.000000e+00> : vector<2x256xf32>
    %393 = tpu.matmul %390, %392, %cst_346 {dimension_numbers = #tpu.dot_dimension_numbers<[1], [0], [0], [1], [0, 0, 1, 1], [], []>} : vector<2x64xf32>, vector<64x256xf32>, vector<2x256xf32> -> vector<2x256xf32>
    %394 = arith.addf %389, %393 : vector<2x256xf32>
    %395 = vector.extract_strided_slice %245 {offsets = [60, 0], sizes = [2, 64], strides = [1, 1]} : vector<72x64xf32> to vector<2x64xf32>
    %c30 = arith.constant 30 : index
    %c0_347 = arith.constant 0 : index
    %c0_348 = arith.constant 0 : index
    %396 = vector.load %arg17[%c30, %c0_347, %c0_348] : memref<36x64x256xf32, #tpu.memory_space<vmem>>, vector<1x64x256xf32>
    %397 = vector.shape_cast %396 : vector<1x64x256xf32> to vector<64x256xf32>
    %cst_349 = arith.constant dense<0.000000e+00> : vector<2x256xf32>
    %398 = tpu.matmul %395, %397, %cst_349 {dimension_numbers = #tpu.dot_dimension_numbers<[1], [0], [0], [1], [0, 0, 1, 1], [], []>} : vector<2x64xf32>, vector<64x256xf32>, vector<2x256xf32> -> vector<2x256xf32>
    %399 = arith.addf %394, %398 : vector<2x256xf32>
    %400 = vector.extract_strided_slice %245 {offsets = [62, 0], sizes = [2, 64], strides = [1, 1]} : vector<72x64xf32> to vector<2x64xf32>
    %c31 = arith.constant 31 : index
    %c0_350 = arith.constant 0 : index
    %c0_351 = arith.constant 0 : index
    %401 = vector.load %arg17[%c31, %c0_350, %c0_351] : memref<36x64x256xf32, #tpu.memory_space<vmem>>, vector<1x64x256xf32>
    %402 = vector.shape_cast %401 : vector<1x64x256xf32> to vector<64x256xf32>
    %cst_352 = arith.constant dense<0.000000e+00> : vector<2x256xf32>
    %403 = tpu.matmul %400, %402, %cst_352 {dimension_numbers = #tpu.dot_dimension_numbers<[1], [0], [0], [1], [0, 0, 1, 1], [], []>} : vector<2x64xf32>, vector<64x256xf32>, vector<2x256xf32> -> vector<2x256xf32>
    %404 = arith.addf %399, %403 : vector<2x256xf32>
    %405 = vector.extract_strided_slice %245 {offsets = [64, 0], sizes = [2, 64], strides = [1, 1]} : vector<72x64xf32> to vector<2x64xf32>
    %c32 = arith.constant 32 : index
    %c0_353 = arith.constant 0 : index
    %c0_354 = arith.constant 0 : index
    %406 = vector.load %arg17[%c32, %c0_353, %c0_354] : memref<36x64x256xf32, #tpu.memory_space<vmem>>, vector<1x64x256xf32>
    %407 = vector.shape_cast %406 : vector<1x64x256xf32> to vector<64x256xf32>
    %cst_355 = arith.constant dense<0.000000e+00> : vector<2x256xf32>
    %408 = tpu.matmul %405, %407, %cst_355 {dimension_numbers = #tpu.dot_dimension_numbers<[1], [0], [0], [1], [0, 0, 1, 1], [], []>} : vector<2x64xf32>, vector<64x256xf32>, vector<2x256xf32> -> vector<2x256xf32>
    %409 = arith.addf %404, %408 : vector<2x256xf32>
    %410 = vector.extract_strided_slice %245 {offsets = [66, 0], sizes = [2, 64], strides = [1, 1]} : vector<72x64xf32> to vector<2x64xf32>
    %c33 = arith.constant 33 : index
    %c0_356 = arith.constant 0 : index
    %c0_357 = arith.constant 0 : index
    %411 = vector.load %arg17[%c33, %c0_356, %c0_357] : memref<36x64x256xf32, #tpu.memory_space<vmem>>, vector<1x64x256xf32>
    %412 = vector.shape_cast %411 : vector<1x64x256xf32> to vector<64x256xf32>
    %cst_358 = arith.constant dense<0.000000e+00> : vector<2x256xf32>
    %413 = tpu.matmul %410, %412, %cst_358 {dimension_numbers = #tpu.dot_dimension_numbers<[1], [0], [0], [1], [0, 0, 1, 1], [], []>} : vector<2x64xf32>, vector<64x256xf32>, vector<2x256xf32> -> vector<2x256xf32>
    %414 = arith.addf %409, %413 : vector<2x256xf32>
    %415 = vector.extract_strided_slice %245 {offsets = [68, 0], sizes = [2, 64], strides = [1, 1]} : vector<72x64xf32> to vector<2x64xf32>
    %c34 = arith.constant 34 : index
    %c0_359 = arith.constant 0 : index
    %c0_360 = arith.constant 0 : index
    %416 = vector.load %arg17[%c34, %c0_359, %c0_360] : memref<36x64x256xf32, #tpu.memory_space<vmem>>, vector<1x64x256xf32>
    %417 = vector.shape_cast %416 : vector<1x64x256xf32> to vector<64x256xf32>
    %cst_361 = arith.constant dense<0.000000e+00> : vector<2x256xf32>
    %418 = tpu.matmul %415, %417, %cst_361 {dimension_numbers = #tpu.dot_dimension_numbers<[1], [0], [0], [1], [0, 0, 1, 1], [], []>} : vector<2x64xf32>, vector<64x256xf32>, vector<2x256xf32> -> vector<2x256xf32>
    %419 = arith.addf %414, %418 : vector<2x256xf32>
    %420 = vector.extract_strided_slice %245 {offsets = [70, 0], sizes = [2, 64], strides = [1, 1]} : vector<72x64xf32> to vector<2x64xf32>
    %c35 = arith.constant 35 : index
    %c0_362 = arith.constant 0 : index
    %c0_363 = arith.constant 0 : index
    %421 = vector.load %arg17[%c35, %c0_362, %c0_363] : memref<36x64x256xf32, #tpu.memory_space<vmem>>, vector<1x64x256xf32>
    %422 = vector.shape_cast %421 : vector<1x64x256xf32> to vector<64x256xf32>
    %cst_364 = arith.constant dense<0.000000e+00> : vector<2x256xf32>
    %423 = tpu.matmul %420, %422, %cst_364 {dimension_numbers = #tpu.dot_dimension_numbers<[1], [0], [0], [1], [0, 0, 1, 1], [], []>} : vector<2x64xf32>, vector<64x256xf32>, vector<2x256xf32> -> vector<2x256xf32>
    %424 = arith.addf %419, %423 : vector<2x256xf32>
    %c0_365 = arith.constant 0 : index
    %c0_366 = arith.constant 0 : index
    %425 = vector.load %arg18[%c0_365, %c0_366] : memref<1x256xf32, #tpu.memory_space<vmem>>, vector<1x256xf32>
    %426 = vector.broadcast %425 : vector<1x256xf32> to vector<2x256xf32>
    %427 = arith.addf %424, %426 : vector<2x256xf32>
    %cst_367 = arith.constant 0.000000e+00 : f32
    %428 = vector.broadcast %cst_367 : f32 to vector<2x256xf32>
    %429 = arith.subf %428, %427 : vector<2x256xf32>
    %430 = math.exp %429 : vector<2x256xf32>
    %cst_368 = arith.constant 1.000000e+00 : f32
    %431 = vector.broadcast %cst_368 : f32 to vector<2x256xf32>
    %432 = arith.addf %431, %430 : vector<2x256xf32>
    %cst_369 = arith.constant 1.000000e+00 : f32
    %433 = vector.broadcast %cst_369 : f32 to vector<2x256xf32>
    %434 = arith.divf %433, %432 : vector<2x256xf32>
    %c0_370 = arith.constant 0 : index
    %c0_371 = arith.constant 0 : index
    %435 = vector.load %arg19[%c0_370, %c0_371] : memref<256x64xf32, #tpu.memory_space<vmem>>, vector<256x64xf32>
    %cst_372 = arith.constant dense<0.000000e+00> : vector<2x64xf32>
    %436 = tpu.matmul %434, %435, %cst_372 {dimension_numbers = #tpu.dot_dimension_numbers<[1], [0], [0], [1], [0, 0, 1, 1], [], []>} : vector<2x256xf32>, vector<256x64xf32>, vector<2x64xf32> -> vector<2x64xf32>
    %c0_373 = arith.constant 0 : index
    %c0_374 = arith.constant 0 : index
    %437 = vector.load %arg20[%c0_373, %c0_374] : memref<1x64xf32, #tpu.memory_space<vmem>>, vector<1x64xf32>
    %438 = vector.broadcast %437 : vector<1x64xf32> to vector<2x64xf32>
    %439 = arith.addf %436, %438 : vector<2x64xf32>
    %cst_375 = arith.constant 0.000000e+00 : f32
    %440 = vector.broadcast %cst_375 : f32 to vector<2x64xf32>
    %441 = arith.subf %440, %439 : vector<2x64xf32>
    %442 = math.exp %441 : vector<2x64xf32>
    %cst_376 = arith.constant 1.000000e+00 : f32
    %443 = vector.broadcast %cst_376 : f32 to vector<2x64xf32>
    %444 = arith.addf %443, %442 : vector<2x64xf32>
    %cst_377 = arith.constant 1.000000e+00 : f32
    %445 = vector.broadcast %cst_377 : f32 to vector<2x64xf32>
    %446 = arith.divf %445, %444 : vector<2x64xf32>
    %c0_378 = arith.constant 0 : index
    %c0_379 = arith.constant 0 : index
    %447 = vector.load %arg21[%c0_378, %c0_379] : memref<2x64xf32, #tpu.memory_space<vmem>>, vector<2x64xf32>
    tpu.vector_store %arg21[%c0_378, %c0_379], %446 {strides = array<i32>} : memref<2x64xf32, #tpu.memory_space<vmem>>, vector<2x64xf32>,
    return
  }
}

</mosaic_0001>

<bundles_post_ra>
// kernel: qqq_forward.1
= control target key start
LH: loop header
LB: loop body
LE: loop exit
PB: predicated region body
PF: predicated region fallthrough
CT: control target
= control target key end

     0   :  { %s16298_s0 = inlined_call_operand.vmem [shape: f32[128,4], index: 0, kind: input, shape index: {}]   ;;  %s16299_s1 = inlined_call_operand.hbm [shape: f32[9,72,128], index: 1, kind: input, shape index: {}]   ;;  %s16300_s2 = inlined_call_operand.hbm [shape: f32[9,4,128], index: 2, kind: input, shape index: {}]   ;;  %s16301_s3 = inlined_call_operand.hbm [shape: f32[1,128], index: 3, kind: input, shape index: {}]   ;;  %s16302_s4 = inlined_call_operand.hbm [shape: f32[9,32,72], index: 4, kind: input, shape index: {}]   ;;  %s16303_s5 = inlined_call_operand.hbm [shape: f32[9,128,128], index: 5, kind: input, shape index: {}]   ;;  %s16304_s6 = inlined_call_operand.hbm [shape: f32[1,128], index: 6, kind: input, shape index: {}]   ;;  %s16305_s7 = inlined_call_operand.hbm [shape: f32[9,8,32], index: 7, kind: input, shape index: {}]   ;;  %s16306_s8 = inlined_call_operand.hbm [shape: f32[9,128,128], index: 8, kind: input, shape index: {}]   ;;  %s16307_s9 = inlined_call_operand.hbm [shape: f32[1,128], index: 9, kind: input, shape index: {}]   ;;  %s16308_s10 = inlined_call_operand.vmem [shape: f32[72,32], index: 10, kind: input, shape index: {}]   ;;  %s16309_s11 = inlined_call_operand.vmem [shape: f32[72,8], index: 11, kind: input, shape index: {}]   ;;  %s16310_s12 = inlined_call_operand.hbm [shape: f32[2,72], index: 12, kind: input, shape index: {}]   ;;  %s16311_s13 = inlined_call_operand.vmem [shape: f32[128,8], index: 13, kind: input, shape index: {}]   ;;  %s16312_s14 = inlined_call_operand.hbm [shape: f32[8,128], index: 14, kind: input, shape index: {}]   ;;  %s16313_s15 = inlined_call_operand.vmem [shape: f32[72,2], index: 15, kind: input, shape index: {}]   ;;  %s16314_s16 = inlined_call_operand.vmem [shape: f32[128,64], index: 16, kind: input, shape index: {}]   ;;  %s16315_s17 = inlined_call_operand.hbm [shape: f32[36,64,256], index: 17, kind: input, shape index: {}]   ;;  %s16316_s18 = inlined_call_operand.hbm [shape: f32[1,256], index: 18, kind: input, shape index: {}]   ;;  %s16317_s19 = inlined_call_operand.vmem [shape: f32[256,64], index: 19, kind: input, shape index: {}]   ;;  %s16318_s20 = inlined_call_operand.hbm [shape: f32[1,64], index: 20, kind: input, shape index: {}]   ;;  %s16319_s21 = inlined_call_operand.hbm [shape: f32[2,64], index: 21, kind: output, shape index: {}]  }
   0x1   :  { %16321 = sst [smem:[#allocation35_spill]] %s16298_s0 }
   0x2   :  { %16322 = sst [smem:[#allocation36_spill]] %s16299_s1 }
   0x3   :  { %16323 = sst [smem:[#allocation37_spill]] %s16300_s2 }
   0x4   :  { %16324 = sst [smem:[#allocation38_spill]] %s16301_s3 }
   0x5   :  { %16325 = sst [smem:[#allocation39_spill]] %s16302_s4 }
   0x6   :  { %16326 = sst [smem:[#allocation40_spill]] %s16303_s5 }
   0x7   :  { %26 = vsyncpa [#allocation3], 0 }
   0x8   :  { %27 = vsyncpa [#allocation6], 0 }
   0x9   :  { %28 = vsyncpa [#allocation9], 0 }
   0xa   :  { %29 = vsyncpa [#allocation12], 0 }
   0xb   :  { %30 = vsyncpa [#allocation15], 0 }
   0xc   :  { %31 = vsyncpa [#allocation18], 0 }
   0xd   :  { %32 = vsyncpa [#allocation21], 0 }
   0xe   :  { %33 = vsyncpa [#allocation24], 0 }
   0xf   :  { %34 = vsyncpa [#allocation4], 0  ;;  %s13990_s2 = smov [#allocation5]  }
  0x10   :  { %s54_s25 = sshll.u32 %s13990_s2, 4  ;;  %s55_s25 = int_to_ptr.vmem [resolvable:$true] %s54_s25 }
  0x11   :  { %s13680_s26 = scalar_lea.vmem %s55_s25, 576  ;;  %p13685_p1 = scmp.lt.s32.totalorder %s55_s25, %s55_s25 }
  0x12   :  { %p13681_p0 = scmp.ne.s32.totalorder %s55_s25, %s13680_s26  ;;  %p13686_p2 = scmp.lt.s32.totalorder %s13680_s26, %s13680_s26 }
  0x14   :  { %p13687_p3 = por %p13686_p2, %p13685_p1 }
  0x16   :  { %p13688_p4 = pnand %p13687_p3, %p13681_p0 }
  0x18   :  { %13691 = shalt.err (!%p13688_p4)
}
  0x19   :  { %s13991_s27 = smov 64   ;;  %s13992_s3 = smov 4  }
  0x1a   :  { %s16327_s0 = sld [smem:[#allocation37_spill]]  ;;  %s13993_s4 = smov [#allocation8]  }
  0x1b   :  { %s76_s30 = sshll.u32 %s13993_s4, 4  ;;  %s13994_s5 = smov [#allocation11]   ;;  %s77_s30 = int_to_ptr.vmem [resolvable:$true] %s76_s30 }
  0x1c   :  { %s101_s22 = sshll.u32 %s13994_s5, 4  ;;  %s13700_s23 = scalar_lea.vmem %s77_s30, 4608  ;;  %s102_s22 = int_to_ptr.vmem [resolvable:$true] %s101_s22 }
  0x1d   :  { %p13701_p5 = scmp.ne.s32.totalorder %s77_s30, %s13700_s23  ;;  %p13705_p6 = scmp.lt.s32.totalorder %s77_s30, %s77_s30 }
  0x1e   :  { %p13706_p7 = scmp.lt.s32.totalorder %s13700_s23, %s13700_s23 }
  0x20   :  { %60 = dma.hbm_to_vmem [thread:$0]  %s16327_s0, 576, %s55_s25, [#allocation6], %s13991_s27, %s13991_s27, %s13992_s3  }
  0x21   :  { %p13707_p8 = por %p13706_p7, %p13705_p6 }
  0x23   :  { %p13708_p9 = pnand %p13707_p8, %p13701_p5 }
  0x25   :  { %13711 = shalt.err (!%p13708_p9)
}
  0x26   :  { %s13995_s1 = smov 128   ;;  %s13996_s24 = smov 8  }
  0x27   :  { %s16328_s25 = sld [smem:[#allocation39_spill]]  ;;  %s13720_s27 = scalar_lea.vmem %s102_s22, 16 }
  0x28   :  { %p13721_p10 = scmp.ne.s32.totalorder %s102_s22, %s13720_s27  ;;  %s13724_s3 = scalar_lea.vmem %s102_s22, 32 }
  0x29   :  { %p13725_p11 = scmp.lt.s32.totalorder %s102_s22, %s102_s22  ;;  %p13726_p12 = scmp.lt.s32.totalorder %s13724_s3, %s13720_s27 }
  0x2b   :  { %p13727_p13 = por %p13726_p12, %p13725_p11 }
  0x2d   :  { %82 = dma.hbm_to_vmem [thread:$0]  %s16328_s25, 4608, %s77_s30, [#allocation9], %s13995_s1, %s13995_s1, %s13996_s24  }
  0x2e   :  { %p13728_p0 = pnand %p13727_p13, %p13721_p10 }
  0x30   :  { %13731 = shalt.err (!%p13728_p0)
}
  0x31   :  { %104 = dma.hbm_to_vmem [thread:$0]  %s16304_s6, 16, %s102_s22, [#allocation12]  }
  0x32   :  { %s13997_s0 = smov [#allocation14]   ;;  %s13998_s5 = smov [#allocation17]  }
  0x33   :  { %s122_s4 = sshll.u32 %s13997_s0, 4  ;;  %s149_s23 = sshll.u32 %s13998_s5, 4  ;;  %s123_s4 = int_to_ptr.vmem [resolvable:$true] %s122_s4  ;;  %s150_s23 = int_to_ptr.vmem [resolvable:$true] %s149_s23 }
  0x34   :  { %s13740_s2 = scalar_lea.vmem %s123_s4, 18432  ;;  %p13745_p2 = scmp.lt.s32.totalorder %s123_s4, %s123_s4 }
  0x35   :  { %p13741_p1 = scmp.ne.s32.totalorder %s123_s4, %s13740_s2  ;;  %p13746_p3 = scmp.lt.s32.totalorder %s13740_s2, %s13740_s2 }
  0x37   :  { %p13747_p4 = por %p13746_p3, %p13745_p2 }
  0x39   :  { %p13748_p5 = pnand %p13747_p4, %p13741_p1 }
  0x3b   :  { %13751 = shalt.err (!%p13748_p5)
}
  0x3c   :  { %128 = dma.hbm_to_vmem [thread:$0]  %s16306_s8, 18432, %s123_s4, [#allocation15], %s13995_s1, %s13995_s1, %s13996_s24  }
  0x3d   :  { %s13760_s6 = scalar_lea.vmem %s150_s23, 32  ;;  %p13765_p7 = scmp.lt.s32.totalorder %s150_s23, %s150_s23 }
  0x3e   :  { %p13761_p6 = scmp.ne.s32.totalorder %s150_s23, %s13760_s6  ;;  %p13766_p8 = scmp.lt.s32.totalorder %s13760_s6, %s13760_s6 }
  0x40   :  { %p13767_p9 = por %p13766_p8, %p13765_p7 }
  0x42   :  { %p13768_p10 = pnand %p13767_p9, %p13761_p6 }
  0x44   :  { %13771 = shalt.err (!%p13768_p10)
}
  0x45   :  { %152 = dma.hbm_to_vmem [thread:$0]  %s16310_s12, 32, %s150_s23, [#allocation18]  }
  0x46   :  { %s13999_s27 = smov [#allocation20]  }
  0x47   :  { %s174_s3 = sshll.u32 %s13999_s27, 4  ;;  %s175_s3 = int_to_ptr.vmem [resolvable:$true] %s174_s3 }
  0x48   :  { %s13780_s28 = scalar_lea.vmem %s175_s3, 73728  ;;  %p13785_p12 = scmp.lt.s32.totalorder %s175_s3, %s175_s3 }
  0x49   :  { %p13781_p11 = scmp.ne.s32.totalorder %s175_s3, %s13780_s28  ;;  %p13786_p13 = scmp.lt.s32.totalorder %s13780_s28, %s13780_s28 }
  0x4b   :  { %p13787_p0 = por %p13786_p13, %p13785_p12 }
  0x4d   :  { %p13788_p1 = pnand %p13787_p0, %p13781_p11 }
  0x4f   :  { %13791 = shalt.err (!%p13788_p1)
}
  0x50   :  { %s14000_s8 = smov 256   ;;  %s14001_s29 = smov 16  }
  0x51   :  { %180 = dma.hbm_to_vmem [thread:$0]  %s16315_s17, 73728, %s175_s3, [#allocation21], %s14000_s8, %s14000_s8, %s14001_s29  }
  0x52   :  { %s14002_s5 = smov [#allocation2]   ;;  %s14003_s30 = smov [#allocation7]  }
  0x53   :  { %s42_s2 = sshll.u32 %s14002_s5, 4  ;;  %s67_s12 = sshll.u32 %s14003_s30, 4  ;;  %s43_s2 = int_to_ptr.vmem [resolvable:$true] %s42_s2  ;;  %s68_s12 = int_to_ptr.vmem [resolvable:$true] %s67_s12 }
  0x54   :  { %s13800_s23 = scalar_lea.vmem %s43_s2, 10368  ;;  %p13805_p3 = scmp.lt.s32.totalorder %s43_s2, %s43_s2 }
  0x55   :  { %p13801_p2 = scmp.ne.s32.totalorder %s43_s2, %s13800_s23  ;;  %p13806_p4 = scmp.lt.s32.totalorder %s13800_s23, %s13800_s23 }
  0x57   :  { %p13807_p5 = por %p13806_p4, %p13805_p3 }
  0x59   :  { %p13808_p6 = pnand %p13807_p5, %p13801_p2 }
  0x5b   :  { %13811 = shalt.err (!%p13808_p6)
}
  0x5c   :  { %s16329_s22 = sld [smem:[#allocation36_spill]]  ;;  %s13820_s17 = scalar_lea.vmem %s68_s12, 16 }
  0x5d   :  { %p13821_p7 = scmp.ne.s32.totalorder %s68_s12, %s13820_s17  ;;  %s13824_s25 = scalar_lea.vmem %s68_s12, 32 }
  0x5e   :  { %p13825_p8 = scmp.lt.s32.totalorder %s68_s12, %s68_s12  ;;  %p13826_p9 = scmp.lt.s32.totalorder %s13824_s25, %s13820_s17 }
  0x60   :  { %p13827_p10 = por %p13826_p9, %p13825_p8 }
  0x62   :  { %48 = dma.hbm_to_vmem [thread:$0]  %s16329_s22, 10368, %s43_s2, [#allocation3], %s13995_s1, %s13995_s1, %s13996_s24  }
  0x63   :  { %p13828_p11 = pnand %p13827_p10, %p13821_p7 }
  0x65   :  { %13831 = shalt.err (!%p13828_p11)
}
  0x66   :  { %s16330_s28 = sld [smem:[#allocation38_spill]]  ;;  %s14004_s8 = smov [#allocation10]  }
  0x67   :  { %s88_s29 = sshll.u32 %s14004_s8, 4  ;;  %s14005_s0 = smov [#allocation13]   ;;  %s89_s29 = int_to_ptr.vmem [resolvable:$true] %s88_s29 }
  0x68   :  { %s110_s4 = sshll.u32 %s14005_s0, 4  ;;  %s13840_s5 = scalar_lea.vmem %s89_s29, 18432  ;;  %s111_s4 = int_to_ptr.vmem [resolvable:$true] %s110_s4 }
  0x69   :  { %p13841_p12 = scmp.ne.s32.totalorder %s89_s29, %s13840_s5  ;;  %p13845_p13 = scmp.lt.s32.totalorder %s89_s29, %s89_s29 }
  0x6a   :  { %p13846_p0 = scmp.lt.s32.totalorder %s13840_s5, %s13840_s5 }
  0x6c   :  { %70 = dma.hbm_to_vmem [thread:$0]  %s16330_s28, 16, %s68_s12, [#allocation6]  }
  0x6d   :  { %p13847_p1 = por %p13846_p0, %p13845_p13 }
  0x6f   :  { %p13848_p2 = pnand %p13847_p1, %p13841_p12 }
  0x71   :  { %13851 = shalt.err (!%p13848_p2)
}
  0x72   :  { %s16331_s23 = sld [smem:[#allocation40_spill]]  ;;  %s13860_s12 = scalar_lea.vmem %s111_s4, 1152 }
  0x73   :  { %p13861_p3 = scmp.ne.s32.totalorder %s111_s4, %s13860_s12  ;;  %p13865_p4 = scmp.lt.s32.totalorder %s111_s4, %s111_s4 }
  0x74   :  { %p13866_p5 = scmp.lt.s32.totalorder %s13860_s12, %s13860_s12 }
  0x76   :  { %p13867_p6 = por %p13866_p5, %p13865_p4 }
  0x78   :  { %94 = dma.hbm_to_vmem [thread:$0]  %s16331_s23, 18432, %s89_s29, [#allocation9], %s13995_s1, %s13995_s1, %s13996_s24  }
  0x79   :  { %p13868_p7 = pnand %p13867_p6, %p13861_p3 }
  0x7b   :  { %13871 = shalt.err (!%p13868_p7)
}
  0x7c   :  { %116 = dma.hbm_to_vmem [thread:$0]  %s16305_s7, 1152, %s111_s4, [#allocation12], %s13995_s1, %s13995_s1, %s13996_s24  }
  0x7d   :  { %s14006_s22 = smov [#allocation16]   ;;  %s14007_s25 = smov [#allocation19]  }
  0x7e   :  { %s135_s17 = sshll.u32 %s14006_s22, 4  ;;  %s161_s27 = sshll.u32 %s14007_s25, 4  ;;  %s136_s17 = int_to_ptr.vmem [resolvable:$true] %s135_s17  ;;  %s162_s27 = int_to_ptr.vmem [resolvable:$true] %s161_s27 }
  0x7f   :  { %s13880_s3 = scalar_lea.vmem %s136_s17, 16  ;;  %s13884_s28 = scalar_lea.vmem %s136_s17, 32 }
  0x80   :  { %p13881_p8 = scmp.ne.s32.totalorder %s136_s17, %s13880_s3  ;;  %p13885_p9 = scmp.lt.s32.totalorder %s136_s17, %s136_s17 }
  0x81   :  { %p13886_p10 = scmp.lt.s32.totalorder %s13884_s28, %s13880_s3 }
  0x83   :  { %p13887_p11 = por %p13886_p10, %p13885_p9 }
  0x85   :  { %p13888_p12 = pnand %p13887_p11, %p13881_p8 }
  0x87   :  { %13891 = shalt.err (!%p13888_p12)
}
  0x88   :  { %138 = dma.hbm_to_vmem [thread:$0]  %s16307_s9, 16, %s136_s17, [#allocation15]  }
  0x89   :  { %s13900_s0 = scalar_lea.vmem %s162_s27, 128  ;;  %p13905_p0 = scmp.lt.s32.totalorder %s162_s27, %s162_s27 }
  0x8a   :  { %p13901_p13 = scmp.ne.s32.totalorder %s162_s27, %s13900_s0  ;;  %p13906_p1 = scmp.lt.s32.totalorder %s13900_s0, %s13900_s0 }
  0x8c   :  { %p13907_p2 = por %p13906_p1, %p13905_p0 }
  0x8e   :  { %p13908_p3 = pnand %p13907_p2, %p13901_p13 }
  0x90   :  { %13911 = shalt.err (!%p13908_p3)
}
  0x91   :  { %164 = dma.hbm_to_vmem [thread:$0]  %s16312_s14, 128, %s162_s27, [#allocation18]  }
  0x92   :  { %s14008_s24 = smov [#allocation22]   ;;  %s14009_s5 = smov [#allocation23]  }
  0x93   :  { %s187_s4 = sshll.u32 %s14008_s24, 4  ;;  %s199_s2 = sshll.u32 %s14009_s5, 4  ;;  %s188_s4 = int_to_ptr.vmem [resolvable:$true] %s187_s4  ;;  %s200_s2 = int_to_ptr.vmem [resolvable:$true] %s199_s2 }
  0x94   :  { %s13920_s30 = scalar_lea.vmem %s188_s4, 32  ;;  %p13925_p5 = scmp.lt.s32.totalorder %s188_s4, %s188_s4 }
  0x95   :  { %p13921_p4 = scmp.ne.s32.totalorder %s188_s4, %s13920_s30  ;;  %p13926_p6 = scmp.lt.s32.totalorder %s13920_s30, %s13920_s30 }
  0x97   :  { %p13927_p7 = por %p13926_p6, %p13925_p5 }
  0x99   :  { %p13928_p8 = pnand %p13927_p7, %p13921_p4 }
  0x9b   :  { %13931 = shalt.err (!%p13928_p8)
}
  0x9c   :  { %190 = dma.hbm_to_vmem [thread:$0]  %s16316_s18, 32, %s188_s4, [#allocation21]  }
  0x9d   :  { %s13940_s12 = scalar_lea.vmem %s200_s2, 16  ;;  %s13944_s14 = scalar_lea.vmem %s200_s2, 32 }
  0x9e   :  { %p13941_p9 = scmp.ne.s32.totalorder %s200_s2, %s13940_s12  ;;  %p13945_p10 = scmp.lt.s32.totalorder %s200_s2, %s200_s2 }
  0x9f   :  { %p13946_p11 = scmp.lt.s32.totalorder %s13944_s14, %s13940_s12 }
  0xa1   :  { %p13947_p12 = por %p13946_p11, %p13945_p10 }
  0xa3   :  { %p13948_p13 = pnand %p13947_p12, %p13941_p9 }
  0xa5   :  { %13951 = shalt.err (!%p13948_p13)
}
  0xa6   :  { %202 = dma.hbm_to_vmem [thread:$0]  %s16318_s20, 16, %s200_s2, [#allocation24]  }
  0xa7   :  { %13972 = dma.done.wait [#allocation3], 10368  }
  0xa8   :  { %13973 = vsyncadd [#allocation3], 4294956928 }
  0xa9   :  { %13974 = dma.done.wait [#allocation6], 592  }
  0xaa   :  { %13975 = vsyncadd [#allocation6], 4294966704 }
  0xab   :  { %13976 = dma.done.wait [#allocation9], 23040  }
  0xac   :  { %13977 = vsyncadd [#allocation9], 4294944256 }
  0xad   :  { %13978 = dma.done.wait [#allocation12], 1168  }
  0xae   :  { %13979 = vsyncadd [#allocation12], 4294966128 }
  0xaf   :  { %13980 = dma.done.wait [#allocation15], 18448  }
  0xb0   :  { %13981 = vsyncadd [#allocation15], 4294948848 }
  0xb1   :  { %13982 = dma.done.wait [#allocation18], 160  }
  0xb2   :  { %13983 = vsyncadd [#allocation18], 4294967136 }
  0xb3   :  { %13984 = dma.done.wait [#allocation21], 73760  }
  0xb4   :  { %13985 = vsyncadd [#allocation21], 4294893536 }
  0xb5   :  { %13986 = dma.done.wait [#allocation24], 16  }
  0xb6   :  { %13987 = vsyncadd [#allocation24], 4294967280  ;;  %v14010_v0 = vmov 0.0   ;;  %vm14011_vm0 = vmmov 0   ;;  %s16332_s22 = sld [smem:[#allocation35_spill]]  ;;  %v261_v17 = vld [vmem:[#allocation2] sm:$0xff] }
  0xb7   :  { %11580 = vmatprep.subr.mxu0 %v14010_v0  ;;  %11639 = vmatprep.subr.mxu1 %v14010_v0  ;;  %v382_v18 = vld [vmem:[#allocation2 + $0x48] sm:$0xff]  ;;  %vm531_vm1 = vcmask 1043456   ;;  %v383_v21 = vld [vmem:[#allocation2 + $0x50] sm:$0xff]  ;;  %v384_v23 = vld [vmem:[#allocation2 + $0x58] sm:$0xff]  ;;  %vm503_vm2 = vcmask 31744   ;;  %vm2747_vm3 = vcmask 588800  }
  0xb8   :  { %11612 = vmatprep.mubr.msk.f32.mxu0 %vm14011_vm0, %v14010_v0  ;;  %11671 = vmatprep.mubr.msk.f32.mxu1 %vm14011_vm0, %v14010_v0  ;;  %v502_v19 = vld [vmem:[#allocation5 + $0x4] sm:$0xf]  ;;  %v263_v22 = vld [vmem:[#allocation2 + $0x10] sm:$0xff]  ;;  %v264_v24 = vld [vmem:[#allocation2 + $0x18] sm:$0xff]  ;;  %vm4638_vm4 = vcmask 261120   ;;  %vm6269_vm5 = vcmask 64512  }
  0xb9   :  { %v262_v20 = vld [vmem:[#allocation2 + $0x8] sm:$0xff]  ;;  %v385_v25 = vld [vmem:[#allocation2 + $0x60] sm:$0xff]  ;;  %v387_v29 = vld [vmem:[#allocation2 + $0x70] sm:$0xff]  ;;  %vm6685_vm6 = vcmask 1041408   ;;  %vm6657_vm7 = vcmask 15360   ;;  %vm6969_vm8 = vcmask 523264  }
  0xba   :  { %v265_v26 = vld [vmem:[#allocation2 + $0x20] sm:$0xff]  ;;  %v386_v27 = vld [vmem:[#allocation2 + $0x68] sm:$0xff]  ;;  %v267_v30 = vld [vmem:[#allocation2 + $0x30] sm:$0xff]  ;;  %vm10419_vm9 = vcmask 517120  }
  0xbb   :  { %v266_v28 = vld [vmem:[#allocation2 + $0x28] sm:$0xff]  ;;  %v388_v31 = vld [vmem:[#allocation2 + $0x78] sm:$0xff]  ;;  %v389_v33 = vld [vmem:[#allocation2 + $0x80] sm:$0xff] }
  0xbc   :  { %v14189_v1 = vld [vmem:[%s16332_s22 + $0x78] sm:$0xff]  ;;  %v14194_v2 = vld [vmem:[%s16332_s22 + $0x70] sm:$0xff]  ;;  %v14203_v3 = vld [vmem:[%s16332_s22 + $0x68] sm:$0xff] }
  0xbd   :  { %11581 = vmatpush3.msra.mxu0 %v14189_v1  ;;  %11640 = vmatpush3.msra.mxu1 %v14189_v1  ;;  %v14212_v4 = vld [vmem:[%s16332_s22 + $0x60] sm:$0xff]  ;;  %v14221_v5 = vld [vmem:[%s16332_s22 + $0x58] sm:$0xff]  ;;  %v14230_v6 = vld [vmem:[%s16332_s22 + $0x50] sm:$0xff] }
  0xbe   :  { %11582 = vmatprep.subr.mxu0 %v14010_v0  ;;  %11641 = vmatprep.subr.mxu1 %v14010_v0  ;;  %v14239_v7 = vld [vmem:[%s16332_s22 + $0x48] sm:$0xff]  ;;  %v14248_v8 = vld [vmem:[%s16332_s22 + $0x40] sm:$0xff]  ;;  %v14257_v9 = vld [vmem:[%s16332_s22 + $0x38] sm:$0xff] }
  0xbf   :  { %11583 = vmatpush3.msra.mxu0 %v14194_v2  ;;  %11642 = vmatpush3.msra.mxu1 %v14194_v2  ;;  %v14266_v10 = vld [vmem:[%s16332_s22 + $0x30] sm:$0xff]  ;;  %v14275_v11 = vld [vmem:[%s16332_s22 + $0x28] sm:$0xff]  ;;  %v14284_v12 = vld [vmem:[%s16332_s22 + $0x20] sm:$0xff] }
  0xc0   :  { %11584 = vmatprep.subr.mxu0 %v14010_v0  ;;  %11643 = vmatprep.subr.mxu1 %v14010_v0  ;;  %v14293_v13 = vld [vmem:[%s16332_s22 + $0x18] sm:$0xff]  ;;  %v14302_v14 = vld [vmem:[%s16332_s22 + $0x10] sm:$0xff]  ;;  %v14311_v15 = vld [vmem:[%s16332_s22 + $0x8] sm:$0xff] }
  0xc1   :  { %11585 = vmatpush3.msra.mxu0 %v14203_v3  ;;  %11644 = vmatpush3.msra.mxu1 %v14203_v3  ;;  %v14320_v16 = vld [vmem:[%s16332_s22] sm:$0xff]  ;;  %v268_v32 = vld [vmem:[#allocation2 + $0x38] sm:$0xff]  ;;  %v390_v35 = vld [vmem:[#allocation2 + $0x88] sm:$0xff] }
  0xc2   :  { %11586 = vmatprep.subr.mxu0 %v14010_v0  ;;  %11645 = vmatprep.subr.mxu1 %v14010_v0  ;;  %v269_v34 = vld [vmem:[#allocation2 + $0x40] sm:$0xff]  ;;  %v380_v36 = vld [vmem:[#allocation5] sm:$0xf] }
  0xc3   :  { %11587 = vmatpush3.msra.mxu0 %v14212_v4  ;;  %11646 = vmatpush3.msra.mxu1 %v14212_v4 }
  0xc4   :  { %11588 = vmatprep.subr.mxu0 %v14010_v0  ;;  %11647 = vmatprep.subr.mxu1 %v14010_v0 }
  0xc5   :  { %11589 = vmatpush3.msra.mxu0 %v14221_v5  ;;  %11648 = vmatpush3.msra.mxu1 %v14221_v5 }
  0xc6   :  { %11590 = vmatprep.subr.mxu0 %v14010_v0  ;;  %11649 = vmatprep.subr.mxu1 %v14010_v0 }
  0xc7   :  { %11591 = vmatpush3.msra.mxu0 %v14230_v6  ;;  %11650 = vmatpush3.msra.mxu1 %v14230_v6 }
  0xc8   :  { %11592 = vmatprep.subr.mxu0 %v14010_v0  ;;  %11651 = vmatprep.subr.mxu1 %v14010_v0 }
  0xc9   :  { %11593 = vmatpush3.msra.mxu0 %v14239_v7  ;;  %11652 = vmatpush3.msra.mxu1 %v14239_v7 }
  0xca   :  { %11594 = vmatprep.subr.mxu0 %v14010_v0  ;;  %11653 = vmatprep.subr.mxu1 %v14010_v0 }
  0xcb   :  { %11595 = vmatpush3.msra.mxu0 %v14248_v8  ;;  %11654 = vmatpush3.msra.mxu1 %v14248_v8 }
  0xcc   :  { %11596 = vmatprep.subr.mxu0 %v14010_v0  ;;  %11655 = vmatprep.subr.mxu1 %v14010_v0 }
  0xcd   :  { %11597 = vmatpush3.msra.mxu0 %v14257_v9  ;;  %11656 = vmatpush3.msra.mxu1 %v14257_v9 }
  0xce   :  { %11598 = vmatprep.subr.mxu0 %v14010_v0  ;;  %11657 = vmatprep.subr.mxu1 %v14010_v0 }
  0xcf   :  { %11599 = vmatpush3.msra.mxu0 %v14266_v10  ;;  %11658 = vmatpush3.msra.mxu1 %v14266_v10 }
  0xd0   :  { %11600 = vmatprep.subr.mxu0 %v14010_v0  ;;  %11659 = vmatprep.subr.mxu1 %v14010_v0 }
  0xd1   :  { %11601 = vmatpush3.msra.mxu0 %v14275_v11  ;;  %11660 = vmatpush3.msra.mxu1 %v14275_v11 }
  0xd2   :  { %11602 = vmatprep.subr.mxu0 %v14010_v0  ;;  %11661 = vmatprep.subr.mxu1 %v14010_v0 }
  0xd3   :  { %11603 = vmatpush3.msra.mxu0 %v14284_v12  ;;  %11662 = vmatpush3.msra.mxu1 %v14284_v12 }
  0xd4   :  { %11604 = vmatprep.subr.mxu0 %v14010_v0  ;;  %11663 = vmatprep.subr.mxu1 %v14010_v0 }
  0xd5   :  { %11605 = vmatpush3.msra.mxu0 %v14293_v13  ;;  %11664 = vmatpush3.msra.mxu1 %v14293_v13 }
  0xd6   :  { %11606 = vmatprep.subr.mxu0 %v14010_v0  ;;  %11665 = vmatprep.subr.mxu1 %v14010_v0 }
  0xd7   :  { %11607 = vmatpush3.msra.mxu0 %v14302_v14  ;;  %11666 = vmatpush3.msra.mxu1 %v14302_v14 }
  0xd8   :  { %11608 = vmatprep.subr.mxu0 %v14010_v0  ;;  %11667 = vmatprep.subr.mxu1 %v14010_v0 }
  0xd9   :  { %11609 = vmatpush3.msra.mxu0 %v14311_v15  ;;  %11668 = vmatpush3.msra.mxu1 %v14311_v15 }
  0xda   :  { %11610 = vmatprep.subr.mxu0 %v14010_v0  ;;  %11669 = vmatprep.subr.mxu1 %v14010_v0 }
  0xdb   :  { %11611 = vmatpush3.msra.mxu0 %v14320_v16  ;;  %11670 = vmatpush3.msra.mxu1 %v14320_v16 }
  0xdc   :  { %11613 = vmatmul.mubr.f32.vlgmr.msra.gmra.mxu0 %v261_v17  ;;  %11672 = vmatmul.mubr.f32.vlgmr.msra.gmra.mxu1 %v382_v18 }
  0xdd   :  { %11615 = vmatprep.mubr.msk.f32.mxu0 %vm14011_vm0, %v14010_v0  ;;  %11674 = vmatprep.mubr.msk.f32.mxu1 %vm14011_vm0, %v14010_v0 }
  0xde   :  { %11698 = vmatprep.subr.mxu0 %v14010_v0  ;;  %11727 = vmatprep.subr.mxu1 %v14010_v0 }
  0xdf   :  { %11699 = vmatpush3.msk.msra.mxu0 %vm531_vm1, %v502_v19  ;;  %11728 = vmatpush3.msk.msra.mxu1 %vm531_vm1, %v380_v36  ;;  %v1058_v36 = vld [vmem:[#allocation2 + $0xe0] sm:$0xff] }
  0xe0   :  { %11616 = vmatmul.mubr.f32.gmra.mxu0 %v262_v20  ;;  %11675 = vmatmul.mubr.f32.gmra.mxu1 %v383_v21 }
  0xe1   :  { %11618 = vmatprep.mubr.msk.f32.mxu0 %vm14011_vm0, %v14010_v0  ;;  %11677 = vmatprep.mubr.msk.f32.mxu1 %vm14011_vm0, %v14010_v0 }
  0xe2   :  { %11756 = vmatprep.subr.mxu0 %v14010_v0  ;;  %11815 = vmatprep.subr.mxu1 %v14010_v0 }
  0xe4   :  { %11619 = vmatmul.mubr.f32.gmra.mxu0 %v263_v22  ;;  %11678 = vmatmul.mubr.f32.gmra.mxu1 %v384_v23 }
  0xe5   :  { %11621 = vmatprep.mubr.msk.f32.mxu0 %vm14011_vm0, %v14010_v0  ;;  %11680 = vmatprep.mubr.msk.f32.mxu1 %vm14011_vm0, %v14010_v0 }
  0xe8   :  { %11622 = vmatmul.mubr.f32.gmra.mxu0 %v264_v24  ;;  %11681 = vmatmul.mubr.f32.gmra.mxu1 %v385_v25 }
  0xe9   :  { %11624 = vmatprep.mubr.msk.f32.mxu0 %vm14011_vm0, %v14010_v0  ;;  %11683 = vmatprep.mubr.msk.f32.mxu1 %vm14011_vm0, %v14010_v0 }
  0xec   :  { %11625 = vmatmul.mubr.f32.gmra.mxu0 %v265_v26  ;;  %11684 = vmatmul.mubr.f32.gmra.mxu1 %v386_v27  ;;  %v786_v26 = vld [vmem:[#allocation2 + $0x90] sm:$0xff]  ;;  %v787_v27 = vld [vmem:[#allocation2 + $0x98] sm:$0xff] }
  0xed   :  { %11627 = vmatprep.mubr.msk.f32.mxu0 %vm14011_vm0, %v14010_v0  ;;  %11686 = vmatprep.mubr.msk.f32.mxu1 %vm14011_vm0, %v14010_v0 }
  0xf0   :  { %11628 = vmatmul.mubr.f32.gmra.mxu0 %v266_v28  ;;  %11687 = vmatmul.mubr.f32.gmra.mxu1 %v387_v29  ;;  %v788_v28 = vld [vmem:[#allocation2 + $0xa0] sm:$0xff]  ;;  %v789_v29 = vld [vmem:[#allocation2 + $0xa8] sm:$0xff] }
  0xf1   :  { %11630 = vmatprep.mubr.msk.f32.mxu0 %vm14011_vm0, %v14010_v0  ;;  %11689 = vmatprep.mubr.msk.f32.mxu1 %vm14011_vm0, %v14010_v0 }
  0xf4   :  { %11631 = vmatmul.mubr.f32.gmra.mxu0 %v267_v30  ;;  %11690 = vmatmul.mubr.f32.gmra.mxu1 %v388_v31  ;;  %v790_v30 = vld [vmem:[#allocation2 + $0xb0] sm:$0xff]  ;;  %v791_v31 = vld [vmem:[#allocation2 + $0xb8] sm:$0xff] }
  0xf5   :  { %11633 = vmatprep.mubr.msk.f32.mxu0 %vm14011_vm0, %v14010_v0  ;;  %11692 = vmatprep.mubr.msk.f32.mxu1 %vm14011_vm0, %v14010_v0 }
  0xf8   :  { %11634 = vmatmul.mubr.f32.gmra.mxu0 %v268_v32  ;;  %11693 = vmatmul.mubr.f32.gmra.mxu1 %v389_v33  ;;  %v792_v32 = vld [vmem:[#allocation2 + $0xc0] sm:$0xff]  ;;  %v793_v33 = vld [vmem:[#allocation2 + $0xc8] sm:$0xff] }
  0xf9   :  { %11636 = vmatprep.mubr.msk.f32.mxu0 %vm14011_vm0, %v14010_v0  ;;  %11695 = vmatprep.mubr.msk.f32.mxu1 %vm14011_vm0, %v14010_v0 }
  0xfc   :  { %11637 = vmatmul.mubr.f32.gmra.mxu0 %v269_v34  ;;  %11696 = vmatmul.mubr.f32.gmra.mxu1 %v390_v35  ;;  %v794_v34 = vld [vmem:[#allocation2 + $0xd0] sm:$0xff]  ;;  %v1057_v35 = vld [vmem:[#allocation2 + $0xd8] sm:$0xff] }
  0xfd   :  { %11700 = vmatprep.mubr.msk.f32.mxu0 %vm14011_vm0, %v14010_v0  ;;  %11729 = vmatprep.mubr.msk.f32.mxu1 %vm14011_vm0, %v14010_v0 }
 0x19c   :  { %v336_v37 = vpop.f32.mrf.mxu0  ;;  %v457_v38 = vpop.f32.mrf.mxu1 }
 0x19d   :  { %11701 = vmatmul.mubr.msk.f32.vlgmr.msra.gmra.mxu0 %vm503_vm2, %v457_v38  ;;  %11730 = vmatmul.mubr.msk.f32.vlgmr.msra.gmra.mxu1 %vm503_vm2, %v336_v37  ;;  %v1059_v37 = vld [vmem:[#allocation2 + $0xe8] sm:$0xff]  ;;  %v1060_v38 = vld [vmem:[#allocation2 + $0xf0] sm:$0xff] }
 0x19e   :  { %v11614_v39 = vpop.f32.mrf.mxu0  ;;  %v11673_v40 = vpop.f32.mrf.mxu1  ;;  %11703 = vmatprep.mubr.msk.f32.mxu0 %vm14011_vm0, %v14010_v0  ;;  %11732 = vmatprep.mubr.msk.f32.mxu1 %vm14011_vm0, %v14010_v0 }
 0x19f   :  { %11757 = vmatpush3.msra.mxu0 %v14189_v1  ;;  %v1061_v39 = vld [vmem:[#allocation2 + $0xf8] sm:$0xff]  ;;  %v906_v40 = vld [vmem:[#allocation5 + $0x8] sm:$0xf] }
 0x1a0   :  { %v341_v41 = vpop.f32.mrf.mxu0  ;;  %v462_v42 = vpop.f32.mrf.mxu1  ;;  %11758 = vmatprep.subr.mxu0 %v14010_v0  ;;  %11816 = vmatpush3.msk.msra.mxu1 %vm531_vm1, %v906_v40  ;;  %v2141_v40 = vld [vmem:[#allocation2 + $0x1f8] sm:$0xff] }
 0x1a1   :  { %11704 = vmatmul.mubr.msk.f32.gmra.mxu0 %vm503_vm2, %v462_v42  ;;  %11733 = vmatmul.mubr.msk.f32.gmra.mxu1 %vm503_vm2, %v341_v41  ;;  %v1062_v41 = vld [vmem:[#allocation2 + $0x100] sm:$0xff]  ;;  %v1063_v42 = vld [vmem:[#allocation2 + $0x108] sm:$0xff] }
 0x1a2   :  { %v11617_v43 = vpop.f32.mrf.mxu0  ;;  %v11676_v44 = vpop.f32.mrf.mxu1  ;;  %11706 = vmatprep.mubr.msk.f32.mxu0 %vm14011_vm0, %v14010_v0  ;;  %11735 = vmatprep.mubr.msk.f32.mxu1 %vm14011_vm0, %v14010_v0 }
 0x1a3   :  { %11759 = vmatpush3.msra.mxu0 %v14194_v2  ;;  %11903 = vmatprep.subr.mxu1 %v14010_v0  ;;  %v1064_v43 = vld [vmem:[#allocation2 + $0x110] sm:$0xff]  ;;  %v1065_v44 = vld [vmem:[#allocation2 + $0x118] sm:$0xff] }
 0x1a4   :  { %v346_v45 = vpop.f32.mrf.mxu0  ;;  %v467_v46 = vpop.f32.mrf.mxu1  ;;  %11760 = vmatprep.subr.mxu0 %v14010_v0 }
 0x1a5   :  { %11707 = vmatmul.mubr.msk.f32.gmra.mxu0 %vm503_vm2, %v467_v46  ;;  %11736 = vmatmul.mubr.msk.f32.gmra.mxu1 %vm503_vm2, %v346_v45  ;;  %v1328_v45 = vld [vmem:[#allocation2 + $0x120] sm:$0xff]  ;;  %v1329_v46 = vld [vmem:[#allocation2 + $0x128] sm:$0xff] }
 0x1a6   :  { %v11620_v47 = vpop.f32.mrf.mxu0  ;;  %v11679_v48 = vpop.f32.mrf.mxu1  ;;  %11761 = vmatpush3.msra.mxu0 %v14203_v3  ;;  %11709 = vmatprep.mubr.msk.f32.mxu0 %vm14011_vm0, %v14010_v0 }
 0x1a7   :  { %11762 = vmatprep.subr.mxu0 %v14010_v0  ;;  %11738 = vmatprep.mubr.msk.f32.mxu1 %vm14011_vm0, %v14010_v0  ;;  %v1330_v47 = vld [vmem:[#allocation2 + $0x130] sm:$0xff]  ;;  %v1331_v48 = vld [vmem:[#allocation2 + $0x138] sm:$0xff] }
 0x1a8   :  { %v351_v49 = vpop.f32.mrf.mxu0  ;;  %v472_v50 = vpop.f32.mrf.mxu1  ;;  %11763 = vmatpush3.msra.mxu0 %v14212_v4 }
 0x1a9   :  { %11710 = vmatmul.mubr.msk.f32.gmra.mxu0 %vm503_vm2, %v472_v50  ;;  %11739 = vmatmul.mubr.msk.f32.gmra.mxu1 %vm503_vm2, %v351_v49  ;;  %v1332_v49 = vld [vmem:[#allocation2 + $0x140] sm:$0xff]  ;;  %v1333_v50 = vld [vmem:[#allocation2 + $0x148] sm:$0xff] }
 0x1aa   :  { %11764 = vmatprep.subr.mxu0 %v14010_v0  ;;  %v11623_v51 = vpop.f32.mrf.mxu0  ;;  %v11682_v52 = vpop.f32.mrf.mxu1  ;;  %11712 = vmatprep.mubr.msk.f32.mxu0 %vm14011_vm0, %v14010_v0 }
 0x1ab   :  { %11765 = vmatpush3.msra.mxu0 %v14221_v5  ;;  %11741 = vmatprep.mubr.msk.f32.mxu1 %vm14011_vm0, %v14010_v0  ;;  %v1334_v51 = vld [vmem:[#allocation2 + $0x150] sm:$0xff]  ;;  %v1335_v52 = vld [vmem:[#allocation2 + $0x158] sm:$0xff] }
 0x1ac   :  { %11766 = vmatprep.subr.mxu0 %v14010_v0  ;;  %v356_v53 = vpop.f32.mrf.mxu0  ;;  %v477_v54 = vpop.f32.mrf.mxu1 }
 0x1ad   :  { %11767 = vmatpush3.msra.mxu0 %v14230_v6  ;;  %11742 = vmatmul.mubr.msk.f32.gmra.mxu1 %vm503_vm2, %v356_v53  ;;  %v1336_v53 = vld [vmem:[#allocation2 + $0x160] sm:$0xff] }
 0x1ae   :  { %11713 = vmatmul.mubr.msk.f32.gmra.mxu0 %vm503_vm2, %v477_v54  ;;  %11768 = vmatprep.subr.mxu0 %v14010_v0  ;;  %v11626_v55 = vpop.f32.mrf.mxu0  ;;  %v11685_v56 = vpop.f32.mrf.mxu1  ;;  %v1599_v54 = vld [vmem:[#allocation2 + $0x168] sm:$0xff] }
 0x1af   :  { %11769 = vmatpush3.msra.mxu0 %v14239_v7  ;;  %11715 = vmatprep.mubr.msk.f32.mxu0 %vm14011_vm0, %v14010_v0  ;;  %v1600_v55 = vld [vmem:[#allocation2 + $0x170] sm:$0xff]  ;;  %v1601_v56 = vld [vmem:[#allocation2 + $0x178] sm:$0xff] }
 0x1b0   :  { %11770 = vmatprep.subr.mxu0 %v14010_v0  ;;  %v361_v57 = vpop.f32.mrf.mxu0  ;;  %v482_v58 = vpop.f32.mrf.mxu1  ;;  %11744 = vmatprep.mubr.msk.f32.mxu1 %vm14011_vm0, %v14010_v0 }
 0x1b1   :  { %11771 = vmatpush3.msra.mxu0 %v14248_v8  ;;  %11745 = vmatmul.mubr.msk.f32.gmra.mxu1 %vm503_vm2, %v361_v57  ;;  %v1602_v57 = vld [vmem:[#allocation2 + $0x180] sm:$0xff] }
 0x1b2   :  { %11716 = vmatmul.mubr.msk.f32.gmra.mxu0 %vm503_vm2, %v482_v58  ;;  %11772 = vmatprep.subr.mxu0 %v14010_v0  ;;  %v11629_v59 = vpop.f32.mrf.mxu0  ;;  %v11688_v60 = vpop.f32.mrf.mxu1  ;;  %v1603_v58 = vld [vmem:[#allocation2 + $0x188] sm:$0xff] }
 0x1b3   :  { %11773 = vmatpush3.msra.mxu0 %v14257_v9  ;;  %11718 = vmatprep.mubr.msk.f32.mxu0 %vm14011_vm0, %v14010_v0  ;;  %v1604_v59 = vld [vmem:[#allocation2 + $0x190] sm:$0xff]  ;;  %v1605_v60 = vld [vmem:[#allocation2 + $0x198] sm:$0xff] }
 0x1b4   :  { %11774 = vmatprep.subr.mxu0 %v14010_v0  ;;  %v366_v61 = vpop.f32.mrf.mxu0  ;;  %v487_v62 = vpop.f32.mrf.mxu1  ;;  %11747 = vmatprep.mubr.msk.f32.mxu1 %vm14011_vm0, %v14010_v0 }
 0x1b5   :  { %11775 = vmatpush3.msra.mxu0 %v14266_v10  ;;  %11748 = vmatmul.mubr.msk.f32.gmra.mxu1 %vm503_vm2, %v366_v61  ;;  %v1606_v61 = vld [vmem:[#allocation2 + $0x1a0] sm:$0xff] }
 0x1b6   :  { %11719 = vmatmul.mubr.msk.f32.gmra.mxu0 %vm503_vm2, %v487_v62  ;;  %11776 = vmatprep.subr.mxu0 %v14010_v0  ;;  %v11632_v63 = vpop.f32.mrf.mxu0  ;;  %v11691_v17 = vpop.f32.mrf.mxu1  ;;  %v1607_v62 = vld [vmem:[#allocation2 + $0x1a8] sm:$0xff] }
 0x1b7   :  { %11777 = vmatpush3.msra.mxu0 %v14275_v11  ;;  %11721 = vmatprep.mubr.msk.f32.mxu0 %vm14011_vm0, %v14010_v0  ;;  %v1870_v63 = vld [vmem:[#allocation2 + $0x1b0] sm:$0xff]  ;;  %v1871_v17 = vld [vmem:[#allocation2 + $0x1b8] sm:$0xff] }
 0x1b8   :  { %11778 = vmatprep.subr.mxu0 %v14010_v0  ;;  %v371_v18 = vpop.f32.mrf.mxu0  ;;  %v492_v19 = vpop.f32.mrf.mxu1  ;;  %11750 = vmatprep.mubr.msk.f32.mxu1 %vm14011_vm0, %v14010_v0 }
 0x1b9   :  { %11779 = vmatpush3.msra.mxu0 %v14284_v12  ;;  %11751 = vmatmul.mubr.msk.f32.gmra.mxu1 %vm503_vm2, %v371_v18  ;;  %v1872_v18 = vld [vmem:[#allocation2 + $0x1c0] sm:$0xff] }
 0x1ba   :  { %11722 = vmatmul.mubr.msk.f32.gmra.mxu0 %vm503_vm2, %v492_v19  ;;  %11780 = vmatprep.subr.mxu0 %v14010_v0  ;;  %v11635_v20 = vpop.f32.mrf.mxu0  ;;  %v11694_v21 = vpop.f32.mrf.mxu1 }
 0x1bb   :  { %11781 = vmatpush3.msra.mxu0 %v14293_v13  ;;  %11724 = vmatprep.mubr.msk.f32.mxu0 %vm14011_vm0, %v14010_v0  ;;  %v1874_v21 = vld [vmem:[#allocation2 + $0x1d0] sm:$0xff] }
 0x1bc   :  { %11782 = vmatprep.subr.mxu0 %v14010_v0  ;;  %v376_v22 = vpop.f32.mrf.mxu0  ;;  %v497_v23 = vpop.f32.mrf.mxu1  ;;  %11753 = vmatprep.mubr.msk.f32.mxu1 %vm14011_vm0, %v14010_v0 }
 0x1bd   :  { %11783 = vmatpush3.msra.mxu0 %v14302_v14  ;;  %11754 = vmatmul.mubr.msk.f32.gmra.mxu1 %vm503_vm2, %v376_v22 }
 0x1be   :  { %11725 = vmatmul.mubr.msk.f32.gmra.mxu0 %vm503_vm2, %v497_v23  ;;  %11784 = vmatprep.subr.mxu0 %v14010_v0  ;;  %v11697_v24 = vpop.f32.mrf.mxu1  ;;  %v11638_v25 = vpop.f32.mrf.mxu0 }
 0x1bf   :  { %11785 = vmatpush3.msra.mxu0 %v14311_v15  ;;  %11788 = vmatprep.mubr.msk.f32.mxu0 %vm14011_vm0, %v14010_v0  ;;  %v1875_v25 = vld [vmem:[#allocation2 + $0x1d8] sm:$0xff] }
 0x1c0   :  { %11786 = vmatprep.subr.mxu0 %v14010_v0  ;;  %11817 = vmatprep.mubr.msk.f32.mxu1 %vm14011_vm0, %v14010_v0 }
 0x1c1   :  { %11787 = vmatpush3.msra.mxu0 %v14320_v16 }
 0x1c2   :  { %11789 = vmatmul.mubr.f32.vlgmr.msra.gmra.mxu0 %v786_v26  ;;  %11844 = vmatprep.subr.mxu0 %v14010_v0 }
 0x1c3   :  { %11791 = vmatprep.mubr.msk.f32.mxu0 %vm14011_vm0, %v14010_v0  ;;  %11845 = vmatpush3.msra.mxu0 %v14189_v1 }
 0x1c4   :  { %11846 = vmatprep.subr.mxu0 %v14010_v0 }
 0x1c5   :  { %11847 = vmatpush3.msra.mxu0 %v14194_v2 }
 0x1c6   :  { %11792 = vmatmul.mubr.f32.gmra.mxu0 %v787_v27  ;;  %11848 = vmatprep.subr.mxu0 %v14010_v0 }
 0x1c7   :  { %11794 = vmatprep.mubr.msk.f32.mxu0 %vm14011_vm0, %v14010_v0  ;;  %11849 = vmatpush3.msra.mxu0 %v14203_v3 }
 0x1c8   :  { %11850 = vmatprep.subr.mxu0 %v14010_v0 }
 0x1c9   :  { %11851 = vmatpush3.msra.mxu0 %v14212_v4 }
 0x1ca   :  { %11795 = vmatmul.mubr.f32.gmra.mxu0 %v788_v28  ;;  %11852 = vmatprep.subr.mxu0 %v14010_v0 }
 0x1cb   :  { %11797 = vmatprep.mubr.msk.f32.mxu0 %vm14011_vm0, %v14010_v0  ;;  %11853 = vmatpush3.msra.mxu0 %v14221_v5 }
 0x1cc   :  { %11854 = vmatprep.subr.mxu0 %v14010_v0 }
 0x1cd   :  { %11855 = vmatpush3.msra.mxu0 %v14230_v6 }
 0x1ce   :  { %11798 = vmatmul.mubr.f32.gmra.mxu0 %v789_v29  ;;  %11856 = vmatprep.subr.mxu0 %v14010_v0  ;;  %v1876_v29 = vld [vmem:[#allocation2 + $0x1e0] sm:$0xff] }
 0x1cf   :  { %11800 = vmatprep.mubr.msk.f32.mxu0 %vm14011_vm0, %v14010_v0  ;;  %11857 = vmatpush3.msra.mxu0 %v14239_v7 }
 0x1d0   :  { %11858 = vmatprep.subr.mxu0 %v14010_v0 }
 0x1d1   :  { %11859 = vmatpush3.msra.mxu0 %v14248_v8 }
 0x1d2   :  { %11801 = vmatmul.mubr.f32.gmra.mxu0 %v790_v30  ;;  %11860 = vmatprep.subr.mxu0 %v14010_v0 }
 0x1d3   :  { %11803 = vmatprep.mubr.msk.f32.mxu0 %vm14011_vm0, %v14010_v0  ;;  %11861 = vmatpush3.msra.mxu0 %v14257_v9 }
 0x1d4   :  { %11862 = vmatprep.subr.mxu0 %v14010_v0 }
 0x1d5   :  { %11863 = vmatpush3.msra.mxu0 %v14266_v10 }
 0x1d6   :  { %11804 = vmatmul.mubr.f32.gmra.mxu0 %v791_v31  ;;  %11864 = vmatprep.subr.mxu0 %v14010_v0 }
 0x1d7   :  { %11806 = vmatprep.mubr.msk.f32.mxu0 %vm14011_vm0, %v14010_v0  ;;  %11865 = vmatpush3.msra.mxu0 %v14275_v11 }
 0x1d8   :  { %11866 = vmatprep.subr.mxu0 %v14010_v0 }
 0x1d9   :  { %11867 = vmatpush3.msra.mxu0 %v14284_v12 }
 0x1da   :  { %11807 = vmatmul.mubr.f32.gmra.mxu0 %v792_v32  ;;  %11868 = vmatprep.subr.mxu0 %v14010_v0 }
 0x1db   :  { %11809 = vmatprep.mubr.msk.f32.mxu0 %vm14011_vm0, %v14010_v0  ;;  %11869 = vmatpush3.msra.mxu0 %v14293_v13 }
 0x1dc   :  { %11870 = vmatprep.subr.mxu0 %v14010_v0 }
 0x1dd   :  { %11871 = vmatpush3.msra.mxu0 %v14302_v14 }
 0x1de   :  { %11810 = vmatmul.mubr.f32.gmra.mxu0 %v793_v33  ;;  %11872 = vmatprep.subr.mxu0 %v14010_v0  ;;  %v1877_v33 = vld [vmem:[#allocation2 + $0x1e8] sm:$0xff] }
 0x1df   :  { %11812 = vmatprep.mubr.msk.f32.mxu0 %vm14011_vm0, %v14010_v0  ;;  %11873 = vmatpush3.msra.mxu0 %v14311_v15 }
 0x1e0   :  { %11874 = vmatprep.subr.mxu0 %v14010_v0 }
 0x1e1   :  { %11875 = vmatpush3.msra.mxu0 %v14320_v16 }
 0x1e2   :  { %11813 = vmatmul.mubr.f32.gmra.mxu0 %v794_v34  ;;  %11932 = vmatprep.subr.mxu0 %v14010_v0 }
 0x1e3   :  { %11876 = vmatprep.mubr.msk.f32.mxu0 %vm14011_vm0, %v14010_v0 }
 0x1e6   :  { %11877 = vmatmul.mubr.f32.vlgmr.msra.gmra.mxu0 %v1057_v35 }
 0x1e7   :  { %11879 = vmatprep.mubr.msk.f32.mxu0 %vm14011_vm0, %v14010_v0  ;;  %11933 = vmatpush3.msra.mxu0 %v14189_v1 }
 0x1e8   :  { %11934 = vmatprep.subr.mxu0 %v14010_v0 }
 0x1e9   :  { %11935 = vmatpush3.msra.mxu0 %v14194_v2 }
 0x1ea   :  { %11880 = vmatmul.mubr.f32.gmra.mxu0 %v1058_v36  ;;  %11936 = vmatprep.subr.mxu0 %v14010_v0  ;;  %v1878_v36 = vld [vmem:[#allocation2 + $0x1f0] sm:$0xff] }
 0x1eb   :  { %11882 = vmatprep.mubr.msk.f32.mxu0 %vm14011_vm0, %v14010_v0  ;;  %11937 = vmatpush3.msra.mxu0 %v14203_v3 }
 0x1ec   :  { %11938 = vmatprep.subr.mxu0 %v14010_v0 }
 0x1ed   :  { %11939 = vmatpush3.msra.mxu0 %v14212_v4 }
 0x1ee   :  { %11883 = vmatmul.mubr.f32.gmra.mxu0 %v1059_v37  ;;  %11940 = vmatprep.subr.mxu0 %v14010_v0 }
 0x1ef   :  { %11885 = vmatprep.mubr.msk.f32.mxu0 %vm14011_vm0, %v14010_v0  ;;  %11941 = vmatpush3.msra.mxu0 %v14221_v5 }
 0x1f0   :  { %11942 = vmatprep.subr.mxu0 %v14010_v0 }
 0x1f1   :  { %11943 = vmatpush3.msra.mxu0 %v14230_v6 }
 0x1f2   :  { %11886 = vmatmul.mubr.f32.gmra.mxu0 %v1060_v38  ;;  %11944 = vmatprep.subr.mxu0 %v14010_v0 }
 0x1f3   :  { %11888 = vmatprep.mubr.msk.f32.mxu0 %vm14011_vm0, %v14010_v0  ;;  %11945 = vmatpush3.msra.mxu0 %v14239_v7 }
 0x1f4   :  { %11946 = vmatprep.subr.mxu0 %v14010_v0 }
 0x1f5   :  { %11947 = vmatpush3.msra.mxu0 %v14248_v8 }
 0x1f6   :  { %11889 = vmatmul.mubr.f32.gmra.mxu0 %v1061_v39  ;;  %11948 = vmatprep.subr.mxu0 %v14010_v0 }
 0x1f7   :  { %11891 = vmatprep.mubr.msk.f32.mxu0 %vm14011_vm0, %v14010_v0  ;;  %11949 = vmatpush3.msra.mxu0 %v14257_v9 }
 0x1f8   :  { %11950 = vmatprep.subr.mxu0 %v14010_v0 }
 0x1f9   :  { %11951 = vmatpush3.msra.mxu0 %v14266_v10 }
 0x1fa   :  { %11892 = vmatmul.mubr.f32.gmra.mxu0 %v1062_v41  ;;  %11952 = vmatprep.subr.mxu0 %v14010_v0 }
 0x1fb   :  { %11894 = vmatprep.mubr.msk.f32.mxu0 %vm14011_vm0, %v14010_v0  ;;  %11953 = vmatpush3.msra.mxu0 %v14275_v11 }
 0x1fc   :  { %11954 = vmatprep.subr.mxu0 %v14010_v0 }
 0x1fd   :  { %11955 = vmatpush3.msra.mxu0 %v14284_v12 }
 0x1fe   :  { %11895 = vmatmul.mubr.f32.gmra.mxu0 %v1063_v42  ;;  %11956 = vmatprep.subr.mxu0 %v14010_v0 }
 0x1ff   :  { %11897 = vmatprep.mubr.msk.f32.mxu0 %vm14011_vm0, %v14010_v0  ;;  %11957 = vmatpush3.msra.mxu0 %v14293_v13 }
 0x200   :  { %11958 = vmatprep.subr.mxu0 %v14010_v0 }
 0x201   :  { %11959 = vmatpush3.msra.mxu0 %v14302_v14 }
 0x202   :  { %11898 = vmatmul.mubr.f32.gmra.mxu0 %v1064_v43  ;;  %11960 = vmatprep.subr.mxu0 %v14010_v0 }
 0x203   :  { %11900 = vmatprep.mubr.msk.f32.mxu0 %vm14011_vm0, %v14010_v0  ;;  %11961 = vmatpush3.msra.mxu0 %v14311_v15 }
 0x204   :  { %11962 = vmatprep.subr.mxu0 %v14010_v0 }
 0x205   :  { %11963 = vmatpush3.msra.mxu0 %v14320_v16 }
 0x206   :  { %11901 = vmatmul.mubr.f32.gmra.mxu0 %v1065_v44  ;;  %12020 = vmatprep.subr.mxu0 %v14010_v0 }
 0x207   :  { %11964 = vmatprep.mubr.msk.f32.mxu0 %vm14011_vm0, %v14010_v0 }
 0x20a   :  { %11965 = vmatmul.mubr.f32.vlgmr.msra.gmra.mxu0 %v1328_v45  ;;  %v14727_v45 = vld [vmem:[%s16332_s22 + $0x78] sm:$0xff] }
 0x20b   :  { %11967 = vmatprep.mubr.msk.f32.mxu0 %vm14011_vm0, %v14010_v0  ;;  %12021 = vmatpush3.msra.mxu0 %v14189_v1 }
 0x20c   :  { %12022 = vmatprep.subr.mxu0 %v14010_v0 }
 0x20d   :  { %12023 = vmatpush3.msra.mxu0 %v14194_v2 }
 0x20e   :  { %11968 = vmatmul.mubr.f32.gmra.mxu0 %v1329_v46  ;;  %12024 = vmatprep.subr.mxu0 %v14010_v0 }
 0x20f   :  { %11970 = vmatprep.mubr.msk.f32.mxu0 %vm14011_vm0, %v14010_v0  ;;  %12025 = vmatpush3.msra.mxu0 %v14203_v3 }
 0x210   :  { %12026 = vmatprep.subr.mxu0 %v14010_v0 }
 0x211   :  { %12027 = vmatpush3.msra.mxu0 %v14212_v4 }
 0x212   :  { %11971 = vmatmul.mubr.f32.gmra.mxu0 %v1330_v47  ;;  %12028 = vmatprep.subr.mxu0 %v14010_v0 }
 0x213   :  { %11973 = vmatprep.mubr.msk.f32.mxu0 %vm14011_vm0, %v14010_v0  ;;  %12029 = vmatpush3.msra.mxu0 %v14221_v5 }
 0x214   :  { %12030 = vmatprep.subr.mxu0 %v14010_v0 }
 0x215   :  { %12031 = vmatpush3.msra.mxu0 %v14230_v6 }
 0x216   :  { %11974 = vmatmul.mubr.f32.gmra.mxu0 %v1331_v48  ;;  %12032 = vmatprep.subr.mxu0 %v14010_v0  ;;  %v14734_v48 = vld [vmem:[%s16332_s22 + $0x70] sm:$0xff] }
 0x217   :  { %11976 = vmatprep.mubr.msk.f32.mxu0 %vm14011_vm0, %v14010_v0  ;;  %12033 = vmatpush3.msra.mxu0 %v14239_v7 }
 0x218   :  { %12034 = vmatprep.subr.mxu0 %v14010_v0 }
 0x219   :  { %12035 = vmatpush3.msra.mxu0 %v14248_v8 }
 0x21a   :  { %11977 = vmatmul.mubr.f32.gmra.mxu0 %v1332_v49  ;;  %12036 = vmatprep.subr.mxu0 %v14010_v0 }
 0x21b   :  { %11979 = vmatprep.mubr.msk.f32.mxu0 %vm14011_vm0, %v14010_v0  ;;  %12037 = vmatpush3.msra.mxu0 %v14257_v9 }
 0x21c   :  { %12038 = vmatprep.subr.mxu0 %v14010_v0 }
 0x21d   :  { %12039 = vmatpush3.msra.mxu0 %v14266_v10 }
 0x21e   :  { %11980 = vmatmul.mubr.f32.gmra.mxu0 %v1333_v50  ;;  %12040 = vmatprep.subr.mxu0 %v14010_v0 }
 0x21f   :  { %11982 = vmatprep.mubr.msk.f32.mxu0 %vm14011_vm0, %v14010_v0  ;;  %12041 = vmatpush3.msra.mxu0 %v14275_v11 }
 0x220   :  { %12042 = vmatprep.subr.mxu0 %v14010_v0 }
 0x221   :  { %12043 = vmatpush3.msra.mxu0 %v14284_v12 }
 0x222   :  { %11983 = vmatmul.mubr.f32.gmra.mxu0 %v1334_v51  ;;  %12044 = vmatprep.subr.mxu0 %v14010_v0 }
 0x223   :  { %11985 = vmatprep.mubr.msk.f32.mxu0 %vm14011_vm0, %v14010_v0  ;;  %12045 = vmatpush3.msra.mxu0 %v14293_v13 }
 0x224   :  { %12046 = vmatprep.subr.mxu0 %v14010_v0 }
 0x225   :  { %12047 = vmatpush3.msra.mxu0 %v14302_v14 }
 0x226   :  { %11986 = vmatmul.mubr.f32.gmra.mxu0 %v1335_v52  ;;  %12048 = vmatprep.subr.mxu0 %v14010_v0  ;;  %v2143_v52 = vld [vmem:[#allocation2 + $0x208] sm:$0xff] }
 0x227   :  { %11988 = vmatprep.mubr.msk.f32.mxu0 %vm14011_vm0, %v14010_v0  ;;  %12049 = vmatpush3.msra.mxu0 %v14311_v15 }
 0x228   :  { %12050 = vmatprep.subr.mxu0 %v14010_v0 }
 0x229   :  { %12051 = vmatpush3.msra.mxu0 %v14320_v16 }
 0x22a   :  { %11989 = vmatmul.mubr.f32.gmra.mxu0 %v1336_v53  ;;  %12108 = vmatprep.subr.mxu0 %v14010_v0  ;;  %v14745_v53 = vld [vmem:[%s16332_s22 + $0x68] sm:$0xff] }
 0x22b   :  { %12052 = vmatprep.mubr.msk.f32.mxu0 %vm14011_vm0, %v14010_v0 }
 0x22e   :  { %12053 = vmatmul.mubr.f32.vlgmr.msra.gmra.mxu0 %v1599_v54 }
 0x22f   :  { %12055 = vmatprep.mubr.msk.f32.mxu0 %vm14011_vm0, %v14010_v0  ;;  %12109 = vmatpush3.msra.mxu0 %v14189_v1 }
 0x230   :  { %12110 = vmatprep.subr.mxu0 %v14010_v0 }
 0x231   :  { %12111 = vmatpush3.msra.mxu0 %v14194_v2 }
 0x232   :  { %12056 = vmatmul.mubr.f32.gmra.mxu0 %v1600_v55  ;;  %12112 = vmatprep.subr.mxu0 %v14010_v0 }
 0x233   :  { %12058 = vmatprep.mubr.msk.f32.mxu0 %vm14011_vm0, %v14010_v0  ;;  %12113 = vmatpush3.msra.mxu0 %v14203_v3 }
 0x234   :  { %12114 = vmatprep.subr.mxu0 %v14010_v0 }
 0x235   :  { %12115 = vmatpush3.msra.mxu0 %v14212_v4 }
 0x236   :  { %12059 = vmatmul.mubr.f32.gmra.mxu0 %v1601_v56  ;;  %12116 = vmatprep.subr.mxu0 %v14010_v0  ;;  %v14752_v56 = vld [vmem:[%s16332_s22 + $0x60] sm:$0xff] }
 0x237   :  { %12061 = vmatprep.mubr.msk.f32.mxu0 %vm14011_vm0, %v14010_v0  ;;  %12117 = vmatpush3.msra.mxu0 %v14221_v5 }
 0x238   :  { %12118 = vmatprep.subr.mxu0 %v14010_v0 }
 0x239   :  { %12119 = vmatpush3.msra.mxu0 %v14230_v6 }
 0x23a   :  { %12062 = vmatmul.mubr.f32.gmra.mxu0 %v1602_v57  ;;  %12120 = vmatprep.subr.mxu0 %v14010_v0 }
 0x23b   :  { %12064 = vmatprep.mubr.msk.f32.mxu0 %vm14011_vm0, %v14010_v0  ;;  %12121 = vmatpush3.msra.mxu0 %v14239_v7 }
 0x23c   :  { %12122 = vmatprep.subr.mxu0 %v14010_v0 }
 0x23d   :  { %12123 = vmatpush3.msra.mxu0 %v14248_v8 }
 0x23e   :  { %12065 = vmatmul.mubr.f32.gmra.mxu0 %v1603_v58  ;;  %12124 = vmatprep.subr.mxu0 %v14010_v0 }
 0x23f   :  { %12067 = vmatprep.mubr.msk.f32.mxu0 %vm14011_vm0, %v14010_v0  ;;  %12125 = vmatpush3.msra.mxu0 %v14257_v9 }
 0x240   :  { %12126 = vmatprep.subr.mxu0 %v14010_v0 }
 0x241   :  { %12127 = vmatpush3.msra.mxu0 %v14266_v10 }
 0x242   :  { %12068 = vmatmul.mubr.f32.gmra.mxu0 %v1604_v59  ;;  %12128 = vmatprep.subr.mxu0 %v14010_v0  ;;  %v2144_v59 = vld [vmem:[#allocation2 + $0x210] sm:$0xff] }
 0x243   :  { %12070 = vmatprep.mubr.msk.f32.mxu0 %vm14011_vm0, %v14010_v0  ;;  %12129 = vmatpush3.msra.mxu0 %v14275_v11 }
 0x244   :  { %12130 = vmatprep.subr.mxu0 %v14010_v0 }
 0x245   :  { %12131 = vmatpush3.msra.mxu0 %v14284_v12 }
 0x246   :  { %12071 = vmatmul.mubr.f32.gmra.mxu0 %v1605_v60  ;;  %12132 = vmatprep.subr.mxu0 %v14010_v0  ;;  %v14763_v60 = vld [vmem:[%s16332_s22 + $0x58] sm:$0xff] }
 0x247   :  { %12073 = vmatprep.mubr.msk.f32.mxu0 %vm14011_vm0, %v14010_v0  ;;  %12133 = vmatpush3.msra.mxu0 %v14293_v13 }
 0x248   :  { %12134 = vmatprep.subr.mxu0 %v14010_v0 }
 0x249   :  { %12135 = vmatpush3.msra.mxu0 %v14302_v14 }
 0x24a   :  { %12074 = vmatmul.mubr.f32.gmra.mxu0 %v1606_v61  ;;  %12136 = vmatprep.subr.mxu0 %v14010_v0 }
 0x24b   :  { %12076 = vmatprep.mubr.msk.f32.mxu0 %vm14011_vm0, %v14010_v0  ;;  %12137 = vmatpush3.msra.mxu0 %v14311_v15 }
 0x24c   :  { %12138 = vmatprep.subr.mxu0 %v14010_v0 }
 0x24d   :  { %12139 = vmatpush3.msra.mxu0 %v14320_v16 }
 0x24e   :  { %12077 = vmatmul.mubr.f32.gmra.mxu0 %v1607_v62  ;;  %12196 = vmatprep.subr.mxu0 %v14010_v0 }
 0x24f   :  { %12140 = vmatprep.mubr.msk.f32.mxu0 %vm14011_vm0, %v14010_v0 }
 0x252   :  { %12141 = vmatmul.mubr.f32.vlgmr.msra.gmra.mxu0 %v1870_v63  ;;  %v14770_v63 = vld [vmem:[%s16332_s22 + $0x50] sm:$0xff] }
 0x253   :  { %12143 = vmatprep.mubr.msk.f32.mxu0 %vm14011_vm0, %v14010_v0  ;;  %12197 = vmatpush3.msra.mxu0 %v14189_v1  ;;  %v1873_v1 = vld [vmem:[#allocation2 + $0x1c8] sm:$0xff] }
 0x254   :  { %12198 = vmatprep.subr.mxu0 %v14010_v0 }
 0x255   :  { %12199 = vmatpush3.msra.mxu0 %v14194_v2 }
 0x256   :  { %12144 = vmatmul.mubr.f32.gmra.mxu0 %v1871_v17  ;;  %12200 = vmatprep.subr.mxu0 %v14010_v0 }
 0x257   :  { %12146 = vmatprep.mubr.msk.f32.mxu0 %vm14011_vm0, %v14010_v0  ;;  %12201 = vmatpush3.msra.mxu0 %v14203_v3 }
 0x258   :  { %12202 = vmatprep.subr.mxu0 %v14010_v0 }
 0x259   :  { %12203 = vmatpush3.msra.mxu0 %v14212_v4 }
 0x25a   :  { %12147 = vmatmul.mubr.f32.gmra.mxu0 %v1872_v18  ;;  %12204 = vmatprep.subr.mxu0 %v14010_v0  ;;  %v1177_v18 = vld [vmem:[#allocation5 + $0xc] sm:$0xf] }
 0x25b   :  { %12149 = vmatprep.mubr.msk.f32.mxu0 %vm14011_vm0, %v14010_v0  ;;  %12205 = vmatpush3.msra.mxu0 %v14221_v5 }
 0x25c   :  { %12206 = vmatprep.subr.mxu0 %v14010_v0 }
 0x25d   :  { %v601_v2 = vpop.f32.mrf.mxu0  ;;  %v741_v19 = vpop.f32.mrf.mxu1  ;;  %12207 = vmatpush3.msra.mxu0 %v14230_v6 }
 0x25e   :  { %v14675_v3 = vadd.f32 %v741_v19, %v601_v2  ;;  %12150 = vmatmul.mubr.f32.gmra.mxu0 %v1873_v1  ;;  %12208 = vmatprep.subr.mxu0 %v14010_v0  ;;  %v2145_v1 = vld [vmem:[#allocation2 + $0x218] sm:$0xff]  ;;  %v14782_v19 = vld [vmem:[%s16332_s22 + $0x48] sm:$0xff] }
 0x25f   :  { %v11702_v4 = vpop.f32.mrf.mxu0  ;;  %v11731_v20 = vpop.f32.mrf.mxu1  ;;  %12152 = vmatprep.mubr.msk.f32.mxu0 %vm14011_vm0, %v14010_v0  ;;  %12209 = vmatpush3.msra.mxu0 %v14239_v7 }
 0x260   :  { %12210 = vmatprep.subr.mxu0 %v14010_v0  ;;  %v2146_v20 = vld [vmem:[#allocation2 + $0x220] sm:$0xff] }
 0x261   :  { %v606_v5 = vpop.f32.mrf.mxu0  ;;  %v746_v22 = vpop.f32.mrf.mxu1  ;;  %12211 = vmatpush3.msra.mxu0 %v14248_v8 }
 0x262   :  { %v14683_v6 = vadd.f32 %v746_v22, %v606_v5  ;;  %12153 = vmatmul.mubr.f32.gmra.mxu0 %v1874_v21  ;;  %12212 = vmatprep.subr.mxu0 %v14010_v0  ;;  %v14796_v5 = vld [vmem:[%s16332_s22 + $0x40] sm:$0xff] }
 0x263   :  { %v11705_v23 = vpop.f32.mrf.mxu0  ;;  %v11734_v24 = vpop.f32.mrf.mxu1  ;;  %12155 = vmatprep.mubr.msk.f32.mxu0 %vm14011_vm0, %v14010_v0  ;;  %12213 = vmatpush3.msra.mxu0 %v14257_v9 }
 0x264   :  { %12214 = vmatprep.subr.mxu0 %v14010_v0  ;;  %v2147_v23 = vld [vmem:[#allocation2 + $0x228] sm:$0xff] }
 0x265   :  { %v611_v7 = vpop.f32.mrf.mxu0  ;;  %v751_v26 = vpop.f32.mrf.mxu1  ;;  %12215 = vmatpush3.msra.mxu0 %v14266_v10 }
 0x266   :  { %v14691_v8 = vadd.f32 %v751_v26, %v611_v7  ;;  %12156 = vmatmul.mubr.f32.gmra.mxu0 %v1875_v25  ;;  %12216 = vmatprep.subr.mxu0 %v14010_v0  ;;  %v14808_v25 = vld [vmem:[%s16332_s22 + $0x38] sm:$0xff]  ;;  %v2148_v26 = vld [vmem:[#allocation2 + $0x230] sm:$0xff] }
 0x267   :  { %v11708_v27 = vpop.f32.mrf.mxu0  ;;  %v11737_v28 = vpop.f32.mrf.mxu1  ;;  %12158 = vmatprep.mubr.msk.f32.mxu0 %vm14011_vm0, %v14010_v0  ;;  %12217 = vmatpush3.msra.mxu0 %v14275_v11 }
 0x268   :  { %12218 = vmatprep.subr.mxu0 %v14010_v0  ;;  %v14820_v28 = vld [vmem:[%s16332_s22 + $0x30] sm:$0xff] }
 0x269   :  { %v616_v9 = vpop.f32.mrf.mxu0  ;;  %v756_v30 = vpop.f32.mrf.mxu1  ;;  %12219 = vmatpush3.msra.mxu0 %v14284_v12 }
 0x26a   :  { %v14699_v10 = vadd.f32 %v756_v30, %v616_v9  ;;  %12159 = vmatmul.mubr.f32.gmra.mxu0 %v1876_v29  ;;  %12220 = vmatprep.subr.mxu0 %v14010_v0  ;;  %v2149_v9 = vld [vmem:[#allocation2 + $0x238] sm:$0xff] }
 0x26b   :  { %v11711_v31 = vpop.f32.mrf.mxu0  ;;  %v11740_v32 = vpop.f32.mrf.mxu1  ;;  %12161 = vmatprep.mubr.msk.f32.mxu0 %vm14011_vm0, %v14010_v0  ;;  %12221 = vmatpush3.msra.mxu0 %v14293_v13 }
 0x26c   :  { %12222 = vmatprep.subr.mxu0 %v14010_v0  ;;  %v14832_v31 = vld [vmem:[%s16332_s22 + $0x28] sm:$0xff] }
 0x26d   :  { %v761_v11 = vpop.f32.mrf.mxu1  ;;  %12223 = vmatpush3.msra.mxu0 %v14302_v14 }
 0x26e   :  { %v621_v34 = vpop.f32.mrf.mxu0  ;;  %12162 = vmatmul.mubr.f32.gmra.mxu0 %v1877_v33  ;;  %12224 = vmatprep.subr.mxu0 %v14010_v0  ;;  %v14840_v33 = vld [vmem:[%s16332_s22 + $0x20] sm:$0xff] }
 0x26f   :  { %v14708_v12 = vadd.f32 %v761_v11, %v621_v34  ;;  %v11743_v35 = vpop.f32.mrf.mxu1  ;;  %12164 = vmatprep.mubr.msk.f32.mxu0 %vm14011_vm0, %v14010_v0  ;;  %12225 = vmatpush3.msra.mxu0 %v14311_v15  ;;  %v14849_v34 = vld [vmem:[%s16332_s22 + $0x18] sm:$0xff] }
 0x270   :  { %v11714_v37 = vpop.f32.mrf.mxu0  ;;  %12226 = vmatprep.subr.mxu0 %v14010_v0 }
 0x271   :  { %v766_v13 = vpop.f32.mrf.mxu1  ;;  %12227 = vmatpush3.msra.mxu0 %v14320_v16  ;;  %v2142_v16 = vld [vmem:[#allocation2 + $0x200] sm:$0xff] }
 0x272   :  { %v626_v14 = vpop.f32.mrf.mxu0  ;;  %12165 = vmatmul.mubr.f32.gmra.mxu0 %v1878_v36  ;;  %12284 = vmatprep.subr.mxu0 %v14010_v0  ;;  %v14859_v36 = vld [vmem:[%s16332_s22 + $0x10] sm:$0xff] }
 0x273   :  { %v14716_v38 = vadd.f32 %v766_v13, %v626_v14  ;;  %v11746_v39 = vpop.f32.mrf.mxu1  ;;  %12228 = vmatprep.mubr.msk.f32.mxu0 %vm14011_vm0, %v14010_v0  ;;  %v14868_v13 = vld [vmem:[%s16332_s22 + $0x8] sm:$0xff]  ;;  %v2412_v14 = vld [vmem:[#allocation2 + $0x240] sm:$0xff] }
 0x274   :  { %v11717_v41 = vpop.f32.mrf.mxu0 }
 0x275   :  { %v771_v42 = vpop.f32.mrf.mxu1 }
 0x276   :  { %v631_v15 = vpop.f32.mrf.mxu0  ;;  %12229 = vmatmul.mubr.f32.vlgmr.msra.gmra.mxu0 %v2141_v40  ;;  %v14876_v40 = vld [vmem:[%s16332_s22] sm:$0xff] }
 0x277   :  { %v14720_v43 = vadd.f32 %v771_v42, %v631_v15  ;;  %v11749_v44 = vpop.f32.mrf.mxu1  ;;  %12231 = vmatprep.mubr.msk.f32.mxu0 %vm14011_vm0, %v14010_v0  ;;  %12285 = vmatpush3.msra.mxu0 %v14727_v45  ;;  %v2413_v42 = vld [vmem:[#allocation2 + $0x248] sm:$0xff] }
 0x278   :  { %v11720_v46 = vpop.f32.mrf.mxu0  ;;  %12286 = vmatprep.subr.mxu0 %v14010_v0 }
 0x279   :  { %v776_v47 = vpop.f32.mrf.mxu1  ;;  %12287 = vmatpush3.msra.mxu0 %v14734_v48 }
 0x27a   :  { %v636_v49 = vpop.f32.mrf.mxu0  ;;  %12232 = vmatmul.mubr.f32.gmra.mxu0 %v2142_v16  ;;  %12288 = vmatprep.subr.mxu0 %v14010_v0  ;;  %v2414_v16 = vld [vmem:[#allocation2 + $0x250] sm:$0xff] }
 0x27b   :  { %v14738_v50 = vadd.f32 %v776_v47, %v636_v49  ;;  %v11752_v51 = vpop.f32.mrf.mxu1  ;;  %12234 = vmatprep.mubr.msk.f32.mxu0 %vm14011_vm0, %v14010_v0  ;;  %12289 = vmatpush3.msra.mxu0 %v14745_v53  ;;  %v1448_v47 = vld [vmem:[#allocation5 + $0x10] sm:$0xf] }
 0x27c   :  { %v11723_v54 = vpop.f32.mrf.mxu0  ;;  %12290 = vmatprep.subr.mxu0 %v14010_v0  ;;  %v2415_v51 = vld [vmem:[#allocation2 + $0x258] sm:$0xff] }
 0x27d   :  { %v781_v55 = vpop.f32.mrf.mxu1  ;;  %12291 = vmatpush3.msra.mxu0 %v14752_v56 }
 0x27e   :  { %v641_v57 = vpop.f32.mrf.mxu0  ;;  %12235 = vmatmul.mubr.f32.gmra.mxu0 %v2143_v52  ;;  %12292 = vmatprep.subr.mxu0 %v14010_v0 }
 0x27f   :  { %v14756_v58 = vadd.f32 %v781_v55, %v641_v57  ;;  %12237 = vmatprep.mubr.msk.f32.mxu0 %vm14011_vm0, %v14010_v0  ;;  %12293 = vmatpush3.msra.mxu0 %v14763_v60  ;;  %v11755_v61 = vpop.f32.mrf.mxu1  ;;  %v2416_v55 = vld [vmem:[#allocation2 + $0x260] sm:$0xff] }
 0x280   :  { %v11726_v62 = vpop.f32.mrf.mxu0  ;;  %12294 = vmatprep.subr.mxu0 %v14010_v0  ;;  %v2417_v61 = vld [vmem:[#allocation2 + $0x268] sm:$0xff] }
 0x281   :  { %12295 = vmatpush3.msra.mxu0 %v14770_v63 }
 0x282   :  { %v861_v17 = vpop.f32.mrf.mxu0  ;;  %12238 = vmatmul.mubr.f32.gmra.mxu0 %v2144_v59  ;;  %12296 = vmatprep.subr.mxu0 %v14010_v0 }
 0x283   :  { %11818 = vmatmul.mubr.msk.f32.vlgmr.msra.gmra.mxu1 %vm503_vm2, %v861_v17  ;;  %12240 = vmatprep.mubr.msk.f32.mxu0 %vm14011_vm0, %v14010_v0 }
 0x284   :  { %v11790_v2 = vpop.f32.mrf.mxu0  ;;  %11820 = vmatprep.mubr.msk.f32.mxu1 %vm14011_vm0, %v14010_v0  ;;  %12297 = vmatpush3.msra.mxu0 %v14782_v19 }
 0x285   :  { %12298 = vmatprep.subr.mxu0 %v14010_v0  ;;  %11904 = vmatpush3.msk.msra.mxu1 %vm531_vm1, %v1177_v18 }
 0x286   :  { %v866_v4 = vpop.f32.mrf.mxu0  ;;  %12241 = vmatmul.mubr.f32.gmra.mxu0 %v2145_v1  ;;  %11991 = vmatprep.subr.mxu1 %v14010_v0 }
 0x287   :  { %11821 = vmatmul.mubr.msk.f32.gmra.mxu1 %vm503_vm2, %v866_v4  ;;  %12243 = vmatprep.mubr.msk.f32.mxu0 %vm14011_vm0, %v14010_v0 }
 0x288   :  { %v11793_v21 = vpop.f32.mrf.mxu0  ;;  %11823 = vmatprep.mubr.msk.f32.mxu1 %vm14011_vm0, %v14010_v0  ;;  %12299 = vmatpush3.msra.mxu0 %v14796_v5 }
 0x289   :  { %12300 = vmatprep.subr.mxu0 %v14010_v0 }
 0x28a   :  { %v871_v22 = vpop.f32.mrf.mxu0  ;;  %12244 = vmatmul.mubr.f32.gmra.mxu0 %v2146_v20 }
 0x28b   :  { %11824 = vmatmul.mubr.msk.f32.gmra.mxu1 %vm503_vm2, %v871_v22  ;;  %12246 = vmatprep.mubr.msk.f32.mxu0 %vm14011_vm0, %v14010_v0 }
 0x28c   :  { %v11796_v24 = vpop.f32.mrf.mxu0  ;;  %11826 = vmatprep.mubr.msk.f32.mxu1 %vm14011_vm0, %v14010_v0  ;;  %12301 = vmatpush3.msra.mxu0 %v14808_v25 }
 0x28d   :  { %12302 = vmatprep.subr.mxu0 %v14010_v0 }
 0x28e   :  { %v876_v7 = vpop.f32.mrf.mxu0  ;;  %12247 = vmatmul.mubr.f32.gmra.mxu0 %v2147_v23 }
 0x28f   :  { %11827 = vmatmul.mubr.msk.f32.gmra.mxu1 %vm503_vm2, %v876_v7  ;;  %12249 = vmatprep.mubr.msk.f32.mxu0 %vm14011_vm0, %v14010_v0 }
 0x290   :  { %v11799_v27 = vpop.f32.mrf.mxu0  ;;  %11829 = vmatprep.mubr.msk.f32.mxu1 %vm14011_vm0, %v14010_v0  ;;  %12303 = vmatpush3.msra.mxu0 %v14820_v28 }
 0x291   :  { %12304 = vmatprep.subr.mxu0 %v14010_v0 }
 0x292   :  { %v881_v29 = vpop.f32.mrf.mxu0  ;;  %12250 = vmatmul.mubr.f32.gmra.mxu0 %v2148_v26  ;;  %v1719_v26 = vld [vmem:[#allocation5 + $0x14] sm:$0xf] }
 0x293   :  { %11830 = vmatmul.mubr.msk.f32.gmra.mxu1 %vm503_vm2, %v881_v29  ;;  %12252 = vmatprep.mubr.msk.f32.mxu0 %vm14011_vm0, %v14010_v0 }
 0x294   :  { %v11802_v30 = vpop.f32.mrf.mxu0  ;;  %11832 = vmatprep.mubr.msk.f32.mxu1 %vm14011_vm0, %v14010_v0  ;;  %12305 = vmatpush3.msra.mxu0 %v14832_v31 }
 0x295   :  { %12306 = vmatprep.subr.mxu0 %v14010_v0 }
 0x296   :  { %v886_v32 = vpop.f32.mrf.mxu0  ;;  %12253 = vmatmul.mubr.f32.gmra.mxu0 %v2149_v9 }
 0x297   :  { %11833 = vmatmul.mubr.msk.f32.gmra.mxu1 %vm503_vm2, %v886_v32  ;;  %12307 = vmatpush3.msra.mxu0 %v14840_v33 }
 0x298   :  { %v11805_v11 = vpop.f32.mrf.mxu0  ;;  %11835 = vmatprep.mubr.msk.f32.mxu1 %vm14011_vm0, %v14010_v0  ;;  %12308 = vmatprep.subr.mxu0 %v14010_v0 }
 0x299   :  { %12309 = vmatpush3.msra.mxu0 %v14849_v34  ;;  %12316 = vmatprep.mubr.msk.f32.mxu0 %vm14011_vm0, %v14010_v0 }
 0x29a   :  { %v891_v35 = vpop.f32.mrf.mxu0  ;;  %12310 = vmatprep.subr.mxu0 %v14010_v0 }
 0x29b   :  { %11836 = vmatmul.mubr.msk.f32.gmra.mxu1 %vm503_vm2, %v891_v35  ;;  %12311 = vmatpush3.msra.mxu0 %v14859_v36 }
 0x29c   :  { %v11808_v37 = vpop.f32.mrf.mxu0  ;;  %11838 = vmatprep.mubr.msk.f32.mxu1 %vm14011_vm0, %v14010_v0  ;;  %12312 = vmatprep.subr.mxu0 %v14010_v0 }
 0x29d   :  { %12313 = vmatpush3.msra.mxu0 %v14868_v13 }
 0x29e   :  { %v896_v39 = vpop.f32.mrf.mxu0  ;;  %12314 = vmatprep.subr.mxu0 %v14010_v0 }
 0x29f   :  { %11839 = vmatmul.mubr.msk.f32.gmra.mxu1 %vm503_vm2, %v896_v39  ;;  %12315 = vmatpush3.msra.mxu0 %v14876_v40 }
 0x2a0   :  { %v11811_v41 = vpop.f32.mrf.mxu0  ;;  %11841 = vmatprep.mubr.msk.f32.mxu1 %vm14011_vm0, %v14010_v0  ;;  %12317 = vmatmul.mubr.f32.vlgmr.msra.gmra.mxu0 %v2412_v14 }
 0x2a1   :  { %12319 = vmatprep.mubr.msk.f32.mxu0 %vm14011_vm0, %v14010_v0 }
 0x2a2   :  { %v901_v15 = vpop.f32.mrf.mxu0 }
 0x2a3   :  { %11842 = vmatmul.mubr.msk.f32.gmra.mxu1 %vm503_vm2, %v901_v15 }
 0x2a4   :  { %v11814_v44 = vpop.f32.mrf.mxu0  ;;  %11905 = vmatprep.mubr.msk.f32.mxu1 %vm14011_vm0, %v14010_v0  ;;  %12320 = vmatmul.mubr.f32.gmra.mxu0 %v2413_v42 }
 0x2a5   :  { %12322 = vmatprep.mubr.msk.f32.mxu0 %vm14011_vm0, %v14010_v0 }
 0x2a6   :  { %v1132_v46 = vpop.f32.mrf.mxu0 }
 0x2a7   :  { %11906 = vmatmul.mubr.msk.f32.vlgmr.msra.gmra.mxu1 %vm503_vm2, %v1132_v46 }
 0x2a8   :  { %v11878_v49 = vpop.f32.mrf.mxu0  ;;  %11908 = vmatprep.mubr.msk.f32.mxu1 %vm14011_vm0, %v14010_v0  ;;  %12323 = vmatmul.mubr.f32.gmra.mxu0 %v2414_v16 }
 0x2a9   :  { %12325 = vmatprep.mubr.msk.f32.mxu0 %vm14011_vm0, %v14010_v0  ;;  %11992 = vmatpush3.msk.msra.mxu1 %vm531_vm1, %v1448_v47 }
 0x2aa   :  { %v1137_v52 = vpop.f32.mrf.mxu0  ;;  %12079 = vmatprep.subr.mxu1 %v14010_v0 }
 0x2ab   :  { %11909 = vmatmul.mubr.msk.f32.gmra.mxu1 %vm503_vm2, %v1137_v52 }
 0x2ac   :  { %v11881_v54 = vpop.f32.mrf.mxu0  ;;  %11911 = vmatprep.mubr.msk.f32.mxu1 %vm14011_vm0, %v14010_v0  ;;  %12326 = vmatmul.mubr.f32.gmra.mxu0 %v2415_v51  ;;  %v1990_v51 = vld [vmem:[#allocation5 + $0x18] sm:$0xf] }
 0x2ad   :  { %12328 = vmatprep.mubr.msk.f32.mxu0 %vm14011_vm0, %v14010_v0 }
 0x2ae   :  { %v1142_v57 = vpop.f32.mrf.mxu0 }
 0x2af   :  { %11912 = vmatmul.mubr.msk.f32.gmra.mxu1 %vm503_vm2, %v1142_v57 }
 0x2b0   :  { %v11884_v59 = vpop.f32.mrf.mxu0  ;;  %11914 = vmatprep.mubr.msk.f32.mxu1 %vm14011_vm0, %v14010_v0  ;;  %12329 = vmatmul.mubr.f32.gmra.mxu0 %v2416_v55 }
 0x2b1   :  { %12331 = vmatprep.mubr.msk.f32.mxu0 %vm14011_vm0, %v14010_v0 }
 0x2b2   :  { %v1147_v62 = vpop.f32.mrf.mxu0 }
 0x2b3   :  { %11915 = vmatmul.mubr.msk.f32.gmra.mxu1 %vm503_vm2, %v1147_v62 }
 0x2b4   :  { %v11887_v17 = vpop.f32.mrf.mxu0  ;;  %11917 = vmatprep.mubr.msk.f32.mxu1 %vm14011_vm0, %v14010_v0  ;;  %12332 = vmatmul.mubr.f32.gmra.mxu0 %v2417_v61 }
 0x2b6   :  { %v1152_v18 = vpop.f32.mrf.mxu0 }
 0x2b7   :  { %11918 = vmatmul.mubr.msk.f32.gmra.mxu1 %vm503_vm2, %v1152_v18 }
 0x2b8   :  { %v11890_v1 = vpop.f32.mrf.mxu0  ;;  %11920 = vmatprep.mubr.msk.f32.mxu1 %vm14011_vm0, %v14010_v0 }
 0x2ba   :  { %v1157_v2 = vpop.f32.mrf.mxu0 }
 0x2bb   :  { %11921 = vmatmul.mubr.msk.f32.gmra.mxu1 %vm503_vm2, %v1157_v2 }
 0x2bc   :  { %v11893_v4 = vpop.f32.mrf.mxu0  ;;  %11923 = vmatprep.mubr.msk.f32.mxu1 %vm14011_vm0, %v14010_v0 }
 0x2be   :  { %v1162_v20 = vpop.f32.mrf.mxu0 }
 0x2bf   :  { %11924 = vmatmul.mubr.msk.f32.gmra.mxu1 %vm503_vm2, %v1162_v20 }
 0x2c0   :  { %v11896_v21 = vpop.f32.mrf.mxu0  ;;  %11926 = vmatprep.mubr.msk.f32.mxu1 %vm14011_vm0, %v14010_v0 }
 0x2c2   :  { %v1167_v22 = vpop.f32.mrf.mxu0 }
 0x2c3   :  { %11927 = vmatmul.mubr.msk.f32.gmra.mxu1 %vm503_vm2, %v1167_v22 }
 0x2c4   :  { %v11899_v23 = vpop.f32.mrf.mxu0  ;;  %11929 = vmatprep.mubr.msk.f32.mxu1 %vm14011_vm0, %v14010_v0 }
 0x2c6   :  { %v1172_v24 = vpop.f32.mrf.mxu0 }
 0x2c7   :  { %11930 = vmatmul.mubr.msk.f32.gmra.mxu1 %vm503_vm2, %v1172_v24 }
 0x2c8   :  { %v11902_v7 = vpop.f32.mrf.mxu0  ;;  %11993 = vmatprep.mubr.msk.f32.mxu1 %vm14011_vm0, %v14010_v0 }
 0x2ca   :  { %v1403_v27 = vpop.f32.mrf.mxu0 }
 0x2cb   :  { %11994 = vmatmul.mubr.msk.f32.vlgmr.msra.gmra.mxu1 %vm503_vm2, %v1403_v27 }
 0x2cc   :  { %v11966_v29 = vpop.f32.mrf.mxu0  ;;  %11996 = vmatprep.mubr.msk.f32.mxu1 %vm14011_vm0, %v14010_v0  ;;  %12080 = vmatpush3.msk.msra.mxu1 %vm531_vm1, %v1719_v26  ;;  %v2261_v26 = vld [vmem:[#allocation5 + $0x1c] sm:$0xf] }
 0x2cd   :  { %12167 = vmatprep.subr.mxu1 %v14010_v0 }
 0x2ce   :  { %v1408_v9 = vpop.f32.mrf.mxu0 }
 0x2cf   :  { %11997 = vmatmul.mubr.msk.f32.gmra.mxu1 %vm503_vm2, %v1408_v9 }
 0x2d0   :  { %v11969_v30 = vpop.f32.mrf.mxu0  ;;  %11999 = vmatprep.mubr.msk.f32.mxu1 %vm14011_vm0, %v14010_v0 }
 0x2d2   :  { %v1413_v32 = vpop.f32.mrf.mxu0 }
 0x2d3   :  { %12000 = vmatmul.mubr.msk.f32.gmra.mxu1 %vm503_vm2, %v1413_v32 }
 0x2d4   :  { %v11972_v11 = vpop.f32.mrf.mxu0  ;;  %12002 = vmatprep.mubr.msk.f32.mxu1 %vm14011_vm0, %v14010_v0 }
 0x2d6   :  { %v1418_v35 = vpop.f32.mrf.mxu0 }
 0x2d7   :  { %12003 = vmatmul.mubr.msk.f32.gmra.mxu1 %vm503_vm2, %v1418_v35 }
 0x2d8   :  { %v11975_v37 = vpop.f32.mrf.mxu0  ;;  %12005 = vmatprep.mubr.msk.f32.mxu1 %vm14011_vm0, %v14010_v0 }
 0x2da   :  { %v1423_v14 = vpop.f32.mrf.mxu0 }
 0x2db   :  { %12006 = vmatmul.mubr.msk.f32.gmra.mxu1 %vm503_vm2, %v1423_v14 }
 0x2dc   :  { %v11978_v39 = vpop.f32.mrf.mxu0  ;;  %12008 = vmatprep.mubr.msk.f32.mxu1 %vm14011_vm0, %v14010_v0 }
 0x2de   :  { %v1428_v41 = vpop.f32.mrf.mxu0 }
 0x2df   :  { %12009 = vmatmul.mubr.msk.f32.gmra.mxu1 %vm503_vm2, %v1428_v41 }
 0x2e0   :  { %v11981_v42 = vpop.f32.mrf.mxu0  ;;  %12011 = vmatprep.mubr.msk.f32.mxu1 %vm14011_vm0, %v14010_v0 }
 0x2e2   :  { %v1433_v15 = vpop.f32.mrf.mxu0 }
 0x2e3   :  { %12012 = vmatmul.mubr.msk.f32.gmra.mxu1 %vm503_vm2, %v1433_v15 }
 0x2e4   :  { %v11984_v44 = vpop.f32.mrf.mxu0  ;;  %12014 = vmatprep.mubr.msk.f32.mxu1 %vm14011_vm0, %v14010_v0 }
 0x2e6   :  { %v1438_v16 = vpop.f32.mrf.mxu0 }
 0x2e7   :  { %12015 = vmatmul.mubr.msk.f32.gmra.mxu1 %vm503_vm2, %v1438_v16 }
 0x2e8   :  { %v11987_v46 = vpop.f32.mrf.mxu0  ;;  %12017 = vmatprep.mubr.msk.f32.mxu1 %vm14011_vm0, %v14010_v0 }
 0x2ea   :  { %v1443_v47 = vpop.f32.mrf.mxu0 }
 0x2eb   :  { %12018 = vmatmul.mubr.msk.f32.gmra.mxu1 %vm503_vm2, %v1443_v47 }
 0x2ec   :  { %v11990_v49 = vpop.f32.mrf.mxu0  ;;  %12081 = vmatprep.mubr.msk.f32.mxu1 %vm14011_vm0, %v14010_v0 }
 0x2ee   :  { %v1674_v52 = vpop.f32.mrf.mxu0 }
 0x2ef   :  { %12082 = vmatmul.mubr.msk.f32.vlgmr.msra.gmra.mxu1 %vm503_vm2, %v1674_v52 }
 0x2f0   :  { %v12054_v54 = vpop.f32.mrf.mxu0  ;;  %12084 = vmatprep.mubr.msk.f32.mxu1 %vm14011_vm0, %v14010_v0  ;;  %12168 = vmatpush3.msk.msra.mxu1 %vm531_vm1, %v1990_v51 }
 0x2f1   :  { %12255 = vmatprep.subr.mxu1 %v14010_v0 }
 0x2f2   :  { %v1679_v55 = vpop.f32.mrf.mxu0 }
 0x2f3   :  { %12085 = vmatmul.mubr.msk.f32.gmra.mxu1 %vm503_vm2, %v1679_v55 }
 0x2f4   :  { %v12057_v57 = vpop.f32.mrf.mxu0  ;;  %12087 = vmatprep.mubr.msk.f32.mxu1 %vm14011_vm0, %v14010_v0 }
 0x2f6   :  { %v1684_v59 = vpop.f32.mrf.mxu0 }
 0x2f7   :  { %12088 = vmatmul.mubr.msk.f32.gmra.mxu1 %vm503_vm2, %v1684_v59 }
 0x2f8   :  { %v12060_v61 = vpop.f32.mrf.mxu0  ;;  %12090 = vmatprep.mubr.msk.f32.mxu1 %vm14011_vm0, %v14010_v0 }
 0x2fa   :  { %v1689_v62 = vpop.f32.mrf.mxu0 }
 0x2fb   :  { %12091 = vmatmul.mubr.msk.f32.gmra.mxu1 %vm503_vm2, %v1689_v62 }
 0x2fc   :  { %v12063_v17 = vpop.f32.mrf.mxu0  ;;  %12093 = vmatprep.mubr.msk.f32.mxu1 %vm14011_vm0, %v14010_v0 }
 0x2fe   :  { %v1694_v18 = vpop.f32.mrf.mxu0 }
 0x2ff   :  { %12094 = vmatmul.mubr.msk.f32.gmra.mxu1 %vm503_vm2, %v1694_v18 }
 0x300   :  { %v12066_v1 = vpop.f32.mrf.mxu0  ;;  %12096 = vmatprep.mubr.msk.f32.mxu1 %vm14011_vm0, %v14010_v0 }
 0x302   :  { %v1699_v2 = vpop.f32.mrf.mxu0 }
 0x303   :  { %12097 = vmatmul.mubr.msk.f32.gmra.mxu1 %vm503_vm2, %v1699_v2 }
 0x304   :  { %v12069_v4 = vpop.f32.mrf.mxu0  ;;  %12099 = vmatprep.mubr.msk.f32.mxu1 %vm14011_vm0, %v14010_v0 }
 0x306   :  { %v1704_v20 = vpop.f32.mrf.mxu0 }
 0x307   :  { %12100 = vmatmul.mubr.msk.f32.gmra.mxu1 %vm503_vm2, %v1704_v20 }
 0x308   :  { %v12072_v21 = vpop.f32.mrf.mxu0  ;;  %12102 = vmatprep.mubr.msk.f32.mxu1 %vm14011_vm0, %v14010_v0 }
 0x30a   :  { %v1709_v22 = vpop.f32.mrf.mxu0 }
 0x30b   :  { %12103 = vmatmul.mubr.msk.f32.gmra.mxu1 %vm503_vm2, %v1709_v22 }
 0x30c   :  { %v12075_v23 = vpop.f32.mrf.mxu0  ;;  %12105 = vmatprep.mubr.msk.f32.mxu1 %vm14011_vm0, %v14010_v0 }
 0x30d   :  { %v2418_v23 = vld [vmem:[#allocation2 + $0x270] sm:$0xff] }
 0x30e   :  { %v1714_v24 = vpop.f32.mrf.mxu0 }
 0x30f   :  { %12106 = vmatmul.mubr.msk.f32.gmra.mxu1 %vm503_vm2, %v1714_v24  ;;  %v2532_v24 = vld [vmem:[#allocation5 + $0x20] sm:$0xf] }
 0x310   :  { %v12078_v7 = vpop.f32.mrf.mxu0  ;;  %12169 = vmatprep.mubr.msk.f32.mxu1 %vm14011_vm0, %v14010_v0 }
 0x312   :  { %v1945_v27 = vpop.f32.mrf.mxu0 }
 0x313   :  { %12170 = vmatmul.mubr.msk.f32.vlgmr.msra.gmra.mxu1 %vm503_vm2, %v1945_v27 }
 0x314   :  { %v12142_v29 = vpop.f32.mrf.mxu0  ;;  %12172 = vmatprep.mubr.msk.f32.mxu1 %vm14011_vm0, %v14010_v0  ;;  %12256 = vmatpush3.msk.msra.mxu1 %vm531_vm1, %v2261_v26 }
 0x315   :  { %13557 = vmatprep.subr.mxu1 %v14010_v0 }
 0x316   :  { %v1950_v9 = vpop.f32.mrf.mxu0 }
 0x317   :  { %12173 = vmatmul.mubr.msk.f32.gmra.mxu1 %vm503_vm2, %v1950_v9  ;;  %v2420_v9 = vld [vmem:[#allocation2 + $0x280] sm:$0xff] }
 0x318   :  { %v12145_v30 = vpop.f32.mrf.mxu0  ;;  %12175 = vmatprep.mubr.msk.f32.mxu1 %vm14011_vm0, %v14010_v0 }
 0x31a   :  { %v1955_v32 = vpop.f32.mrf.mxu0 }
 0x31b   :  { %12176 = vmatmul.mubr.msk.f32.gmra.mxu1 %vm503_vm2, %v1955_v32 }
 0x31c   :  { %v12148_v11 = vpop.f32.mrf.mxu0  ;;  %12178 = vmatprep.mubr.msk.f32.mxu1 %vm14011_vm0, %v14010_v0 }
 0x31e   :  { %v1960_v35 = vpop.f32.mrf.mxu0 }
 0x31f   :  { %12179 = vmatmul.mubr.msk.f32.gmra.mxu1 %vm503_vm2, %v1960_v35 }
 0x320   :  { %v12151_v37 = vpop.f32.mrf.mxu0  ;;  %12181 = vmatprep.mubr.msk.f32.mxu1 %vm14011_vm0, %v14010_v0 }
 0x322   :  { %v1965_v14 = vpop.f32.mrf.mxu0 }
 0x323   :  { %12182 = vmatmul.mubr.msk.f32.gmra.mxu1 %vm503_vm2, %v1965_v14 }
 0x324   :  { %v12154_v39 = vpop.f32.mrf.mxu0  ;;  %12184 = vmatprep.mubr.msk.f32.mxu1 %vm14011_vm0, %v14010_v0 }
 0x326   :  { %v1970_v41 = vpop.f32.mrf.mxu0 }
 0x327   :  { %12185 = vmatmul.mubr.msk.f32.gmra.mxu1 %vm503_vm2, %v1970_v41 }
 0x328   :  { %v12157_v42 = vpop.f32.mrf.mxu0  ;;  %12187 = vmatprep.mubr.msk.f32.mxu1 %vm14011_vm0, %v14010_v0 }
 0x32a   :  { %v1975_v15 = vpop.f32.mrf.mxu0 }
 0x32b   :  { %12188 = vmatmul.mubr.msk.f32.gmra.mxu1 %vm503_vm2, %v1975_v15 }
 0x32c   :  { %v12160_v44 = vpop.f32.mrf.mxu0  ;;  %12190 = vmatprep.mubr.msk.f32.mxu1 %vm14011_vm0, %v14010_v0 }
 0x32e   :  { %v1980_v16 = vpop.f32.mrf.mxu0 }
 0x32f   :  { %12191 = vmatmul.mubr.msk.f32.gmra.mxu1 %vm503_vm2, %v1980_v16 }
 0x330   :  { %v12163_v46 = vpop.f32.mrf.mxu0  ;;  %12193 = vmatprep.mubr.msk.f32.mxu1 %vm14011_vm0, %v14010_v0 }
 0x332   :  { %v1985_v47 = vpop.f32.mrf.mxu0 }
 0x333   :  { %12194 = vmatmul.mubr.msk.f32.gmra.mxu1 %vm503_vm2, %v1985_v47 }
 0x334   :  { %v12166_v49 = vpop.f32.mrf.mxu0  ;;  %12257 = vmatprep.mubr.msk.f32.mxu1 %vm14011_vm0, %v14010_v0 }
 0x336   :  { %v2216_v51 = vpop.f32.mrf.mxu0 }
 0x337   :  { %12258 = vmatmul.mubr.msk.f32.vlgmr.msra.gmra.mxu1 %vm503_vm2, %v2216_v51 }
 0x338   :  { %v12230_v52 = vpop.f32.mrf.mxu0  ;;  %12260 = vmatprep.mubr.msk.f32.mxu1 %vm14011_vm0, %v14010_v0  ;;  %13573 = vmatpush3.msra.mxu1 %v14727_v45 }
 0x339   :  { %13558 = vmatprep.subr.mxu1 %v14010_v0 }
 0x33a   :  { %v2221_v54 = vpop.f32.mrf.mxu0  ;;  %13574 = vmatpush3.msra.mxu1 %v14734_v48 }
 0x33b   :  { %12261 = vmatmul.mubr.msk.f32.gmra.mxu1 %vm503_vm2, %v2221_v54  ;;  %13559 = vmatprep.subr.mxu1 %v14010_v0 }
 0x33c   :  { %v12233_v55 = vpop.f32.mrf.mxu0  ;;  %12263 = vmatprep.mubr.msk.f32.mxu1 %vm14011_vm0, %v14010_v0  ;;  %13575 = vmatpush3.msra.mxu1 %v14745_v53 }
 0x33d   :  { %13560 = vmatprep.subr.mxu1 %v14010_v0 }
 0x33e   :  { %v2226_v57 = vpop.f32.mrf.mxu0  ;;  %13576 = vmatpush3.msra.mxu1 %v14752_v56 }
 0x33f   :  { %12264 = vmatmul.mubr.msk.f32.gmra.mxu1 %vm503_vm2, %v2226_v57  ;;  %13561 = vmatprep.subr.mxu1 %v14010_v0 }
 0x340   :  { %v12236_v45 = vpop.f32.mrf.mxu0  ;;  %12266 = vmatprep.mubr.msk.f32.mxu1 %vm14011_vm0, %v14010_v0  ;;  %13577 = vmatpush3.msra.mxu1 %v14763_v60 }
 0x341   :  { %13562 = vmatprep.subr.mxu1 %v14010_v0 }
 0x342   :  { %v2231_v48 = vpop.f32.mrf.mxu0  ;;  %13578 = vmatpush3.msra.mxu1 %v14770_v63 }
 0x343   :  { %v1003_v53 = vpop.f32.mrf.mxu1  ;;  %12267 = vmatmul.mubr.msk.f32.gmra.mxu1 %vm503_vm2, %v2231_v48  ;;  %13563 = vmatprep.subr.mxu1 %v14010_v0 }
 0x344   :  { %v15033_v56 = vadd.f32 %v1003_v53, %v14675_v3  ;;  %v12239_v59 = vpop.f32.mrf.mxu0  ;;  %12269 = vmatprep.mubr.msk.f32.mxu1 %vm14011_vm0, %v14010_v0  ;;  %13579 = vmatpush3.msra.mxu1 %v14782_v19 }
 0x345   :  { %v11819_v60 = vpop.f32.mrf.mxu1  ;;  %13564 = vmatprep.subr.mxu1 %v14010_v0 }
 0x346   :  { %v2236_v61 = vpop.f32.mrf.mxu0  ;;  %13580 = vmatpush3.msra.mxu1 %v14796_v5 }
 0x347   :  { %v1008_v63 = vpop.f32.mrf.mxu1  ;;  %12270 = vmatmul.mubr.msk.f32.gmra.mxu1 %vm503_vm2, %v2236_v61  ;;  %13565 = vmatprep.subr.mxu1 %v14010_v0 }
 0x348   :  { %v15043_v3 = vadd.f32 %v1008_v63, %v14683_v6  ;;  %v12242_v62 = vpop.f32.mrf.mxu0  ;;  %12272 = vmatprep.mubr.msk.f32.mxu1 %vm14011_vm0, %v14010_v0  ;;  %13581 = vmatpush3.msra.mxu1 %v14808_v25 }
 0x349   :  { %v11822_v19 = vpop.f32.mrf.mxu1  ;;  %13566 = vmatprep.subr.mxu1 %v14010_v0 }
 0x34a   :  { %v2241_v17 = vpop.f32.mrf.mxu0  ;;  %13582 = vmatpush3.msra.mxu1 %v14820_v28 }
 0x34b   :  { %v1013_v5 = vpop.f32.mrf.mxu1  ;;  %12273 = vmatmul.mubr.msk.f32.gmra.mxu1 %vm503_vm2, %v2241_v17  ;;  %13567 = vmatprep.subr.mxu1 %v14010_v0 }
 0x34c   :  { %v15053_v6 = vadd.f32 %v1013_v5, %v14691_v8  ;;  %v12245_v18 = vpop.f32.mrf.mxu0  ;;  %12275 = vmatprep.mubr.msk.f32.mxu1 %vm14011_vm0, %v14010_v0  ;;  %13583 = vmatpush3.msra.mxu1 %v14832_v31 }
 0x34d   :  { %v11825_v25 = vpop.f32.mrf.mxu1  ;;  %13568 = vmatprep.subr.mxu1 %v14010_v0 }
 0x34e   :  { %v2246_v1 = vpop.f32.mrf.mxu0  ;;  %13584 = vmatpush3.msra.mxu1 %v14840_v33 }
 0x34f   :  { %v1018_v28 = vpop.f32.mrf.mxu1  ;;  %12276 = vmatmul.mubr.msk.f32.gmra.mxu1 %vm503_vm2, %v2246_v1  ;;  %13569 = vmatprep.subr.mxu1 %v14010_v0 }
 0x350   :  { %v15063_v8 = vadd.f32 %v1018_v28, %v14699_v10  ;;  %v12248_v2 = vpop.f32.mrf.mxu0  ;;  %12278 = vmatprep.mubr.msk.f32.mxu1 %vm14011_vm0, %v14010_v0  ;;  %13585 = vmatpush3.msra.mxu1 %v14849_v34 }
 0x351   :  { %v11828_v31 = vpop.f32.mrf.mxu1  ;;  %13570 = vmatprep.subr.mxu1 %v14010_v0 }
 0x352   :  { %v2251_v4 = vpop.f32.mrf.mxu0  ;;  %13586 = vmatpush3.msra.mxu1 %v14859_v36 }
 0x353   :  { %v1023_v33 = vpop.f32.mrf.mxu1  ;;  %12279 = vmatmul.mubr.msk.f32.gmra.mxu1 %vm503_vm2, %v2251_v4  ;;  %13571 = vmatprep.subr.mxu1 %v14010_v0 }
 0x354   :  { %v15073_v10 = vadd.f32 %v1023_v33, %v14708_v12  ;;  %v12251_v20 = vpop.f32.mrf.mxu0  ;;  %12281 = vmatprep.mubr.msk.f32.mxu1 %vm14011_vm0, %v14010_v0  ;;  %13587 = vmatpush3.msra.mxu1 %v14868_v13 }
 0x355   :  { %v11831_v34 = vpop.f32.mrf.mxu1  ;;  %13572 = vmatprep.subr.mxu1 %v14010_v0 }
 0x356   :  { %v2256_v21 = vpop.f32.mrf.mxu0  ;;  %13588 = vmatpush3.msra.mxu1 %v14876_v40  ;;  %v2419_v40 = vld [vmem:[#allocation2 + $0x278] sm:$0xff] }
 0x357   :  { %v1028_v36 = vpop.f32.mrf.mxu1  ;;  %12282 = vmatmul.mubr.msk.f32.gmra.mxu1 %vm503_vm2, %v2256_v21  ;;  %12343 = vmatprep.subr.mxu1 %v14010_v0 }
 0x358   :  { %v15083_v12 = vadd.f32 %v1028_v36, %v14716_v38  ;;  %v12254_v22 = vpop.f32.mrf.mxu0  ;;  %12334 = vmatprep.mubr.msk.f32.mxu1 %vm14011_vm0, %v14010_v0 }
 0x359   :  { %v11834_v13 = vpop.f32.mrf.mxu1 }
 0x35b   :  { %v1033_v7 = vpop.f32.mrf.mxu1  ;;  %12335 = vmatmul.mubr.f32.vlgmr.msra.gmra.mxu1 %v2418_v23 }
 0x35c   :  { %v1053_v26 = vadd.f32 %v1033_v7, %v14720_v43  ;;  %12337 = vmatprep.mubr.msk.f32.mxu1 %vm14011_vm0, %v14010_v0  ;;  %12344 = vmatpush3.msk.msra.mxu1 %vm531_vm1, %v2532_v24 }
 0x35d   :  { %v11837_v27 = vpop.f32.mrf.mxu1 }
 0x35f   :  { %v1038_v38 = vpop.f32.mrf.mxu1  ;;  %12338 = vmatmul.mubr.f32.gmra.mxu1 %v2419_v40 }
 0x360   :  { %v1054_v29 = vadd.f32 %v1038_v38, %v14738_v50  ;;  %12340 = vmatprep.mubr.msk.f32.mxu1 %vm14011_vm0, %v14010_v0  ;;  %v2487_v30 = vpop.f32.mrf.mxu0 }
 0x361   :  { %v11840_v32 = vpop.f32.mrf.mxu1 }
 0x362   :  { %v12318_v11 = vpop.f32.mrf.mxu0 }
 0x363   :  { %v1043_v35 = vpop.f32.mrf.mxu1  ;;  %12341 = vmatmul.mubr.f32.gmra.mxu1 %v2420_v9 }
 0x364   :  { %v1055_v43 = vadd.f32 %v1043_v35, %v14756_v58  ;;  %12345 = vmatprep.mubr.msk.f32.mxu1 %vm14011_vm0, %v14010_v0  ;;  %v2492_v37 = vpop.f32.mrf.mxu0 }
 0x365   :  { %v11843_v14 = vpop.f32.mrf.mxu1 }
 0x366   :  { %v12321_v39 = vpop.f32.mrf.mxu0 }
 0x367   :  { %v1274_v41 = vpop.f32.mrf.mxu1  ;;  %12346 = vmatmul.mubr.msk.f32.vlgmr.msra.gmra.mxu1 %vm503_vm2, %v2487_v30 }
 0x368   :  { %v1318_v50 = vadd.f32 %v1274_v41, %v15033_v56  ;;  %12348 = vmatprep.mubr.msk.f32.mxu1 %vm14011_vm0, %v14010_v0  ;;  %v2497_v42 = vpop.f32.mrf.mxu0 }
 0x369   :  { %v11907_v15 = vpop.f32.mrf.mxu1 }
 0x36a   :  { %v12324_v44 = vpop.f32.mrf.mxu0 }
 0x36b   :  { %v1279_v16 = vpop.f32.mrf.mxu1  ;;  %12349 = vmatmul.mubr.msk.f32.gmra.mxu1 %vm503_vm2, %v2492_v37 }
 0x36c   :  { %v1319_v58 = vadd.f32 %v1279_v16, %v15043_v3  ;;  %12351 = vmatprep.mubr.msk.f32.mxu1 %vm14011_vm0, %v14010_v0  ;;  %v2502_v46 = vpop.f32.mrf.mxu0 }
 0x36d   :  { %v11910_v47 = vpop.f32.mrf.mxu1 }
 0x36e   :  { %v12327_v49 = vpop.f32.mrf.mxu0 }
 0x36f   :  { %v1284_v51 = vpop.f32.mrf.mxu1  ;;  %12352 = vmatmul.mubr.msk.f32.gmra.mxu1 %vm503_vm2, %v2497_v42 }
 0x370   :  { %v1320_v52 = vadd.f32 %v1284_v51, %v15053_v6  ;;  %12354 = vmatprep.mubr.msk.f32.mxu1 %vm14011_vm0, %v14010_v0  ;;  %v2507_v54 = vpop.f32.mrf.mxu0 }
 0x371   :  { %v11913_v55 = vpop.f32.mrf.mxu1 }
 0x372   :  { %v12330_v57 = vpop.f32.mrf.mxu0 }
 0x373   :  { %v1289_v45 = vpop.f32.mrf.mxu1  ;;  %12355 = vmatmul.mubr.msk.f32.gmra.mxu1 %vm503_vm2, %v2502_v46 }
 0x374   :  { %v1321_v48 = vadd.f32 %v1289_v45, %v15063_v8  ;;  %12357 = vmatprep.mubr.msk.f32.mxu1 %vm14011_vm0, %v14010_v0  ;;  %v2512_v53 = vpop.f32.mrf.mxu0 }
 0x375   :  { %v11916_v56 = vpop.f32.mrf.mxu1 }
 0x376   :  { %v12333_v59 = vpop.f32.mrf.mxu0 }
 0x377   :  { %v1294_v60 = vpop.f32.mrf.mxu1  ;;  %12358 = vmatmul.mubr.msk.f32.gmra.mxu1 %vm503_vm2, %v2507_v54 }
 0x378   :  { %v1322_v61 = vadd.f32 %v1294_v60, %v15073_v10  ;;  %12360 = vmatprep.mubr.msk.f32.mxu1 %vm14011_vm0, %v14010_v0 }
 0x379   :  { %v11919_v63 = vpop.f32.mrf.mxu1 }
 0x37b   :  { %v1299_v3 = vpop.f32.mrf.mxu1  ;;  %12361 = vmatmul.mubr.msk.f32.gmra.mxu1 %vm503_vm2, %v2512_v53 }
 0x37c   :  { %v1323_v62 = vadd.f32 %v1299_v3, %v15083_v12  ;;  %12363 = vmatprep.mubr.msk.f32.mxu1 %vm14011_vm0, %v14010_v0 }
 0x37d   :  { %v11922_v19 = vpop.f32.mrf.mxu1 }
 0x37f   :  { %v1304_v17 = vpop.f32.mrf.mxu1 }
 0x380   :  { %v1324_v5 = vadd.f32 %v1304_v17, %v1053_v26 }
 0x381   :  { %v11925_v6 = vpop.f32.mrf.mxu1 }
 0x383   :  { %v1309_v18 = vpop.f32.mrf.mxu1 }
 0x384   :  { %v1325_v25 = vadd.f32 %v1309_v18, %v1054_v29 }
 0x385   :  { %v11928_v1 = vpop.f32.mrf.mxu1 }
 0x387   :  { %v1314_v28 = vpop.f32.mrf.mxu1 }
 0x388   :  { %v1326_v8 = vadd.f32 %v1314_v28, %v1055_v43 }
 0x389   :  { %v11931_v2 = vpop.f32.mrf.mxu1 }
 0x38b   :  { %v1545_v31 = vpop.f32.mrf.mxu1 }
 0x38c   :  { %v1589_v4 = vadd.f32 %v1545_v31, %v1318_v50 }
 0x38d   :  { %v11995_v33 = vpop.f32.mrf.mxu1 }
 0x38f   :  { %v1550_v10 = vpop.f32.mrf.mxu1 }
 0x390   :  { %v1590_v20 = vadd.f32 %v1550_v10, %v1319_v58 }
 0x391   :  { %v11998_v34 = vpop.f32.mrf.mxu1 }
 0x393   :  { %v1555_v21 = vpop.f32.mrf.mxu1 }
 0x394   :  { %v1591_v36 = vadd.f32 %v1555_v21, %v1320_v52 }
 0x395   :  { %v12001_v12 = vpop.f32.mrf.mxu1 }
 0x397   :  { %v1560_v22 = vpop.f32.mrf.mxu1 }
 0x398   :  { %v1592_v23 = vadd.f32 %v1560_v22, %v1321_v48 }
 0x399   :  { %v12004_v13 = vpop.f32.mrf.mxu1 }
 0x39b   :  { %v1565_v24 = vpop.f32.mrf.mxu1 }
 0x39c   :  { %v1593_v7 = vadd.f32 %v1565_v24, %v1322_v61 }
 0x39d   :  { %v12007_v26 = vpop.f32.mrf.mxu1 }
 0x39f   :  { %v1570_v40 = vpop.f32.mrf.mxu1 }
 0x3a0   :  { %v1594_v27 = vadd.f32 %v1570_v40, %v1323_v62 }
 0x3a1   :  { %v12010_v38 = vpop.f32.mrf.mxu1 }
 0x3a3   :  { %v1575_v29 = vpop.f32.mrf.mxu1 }
 0x3a4   :  { %v1595_v9 = vadd.f32 %v1575_v29, %v1324_v5 }
 0x3a5   :  { %v12013_v30 = vpop.f32.mrf.mxu1 }
 0x3a7   :  { %v1580_v32 = vpop.f32.mrf.mxu1 }
 0x3a8   :  { %v1596_v11 = vadd.f32 %v1580_v32, %v1325_v25 }
 0x3a9   :  { %v12016_v35 = vpop.f32.mrf.mxu1 }
 0x3ab   :  { %v1585_v43 = vpop.f32.mrf.mxu1 }
 0x3ac   :  { %v1597_v37 = vadd.f32 %v1585_v43, %v1326_v8 }
 0x3ad   :  { %v12019_v14 = vpop.f32.mrf.mxu1 }
 0x3af   :  { %v1816_v39 = vpop.f32.mrf.mxu1 }
 0x3b0   :  { %v1860_v41 = vadd.f32 %v1816_v39, %v1589_v4 }
 0x3b1   :  { %v12083_v50 = vpop.f32.mrf.mxu1 }
 0x3b3   :  { %v1821_v42 = vpop.f32.mrf.mxu1 }
 0x3b4   :  { %v1861_v15 = vadd.f32 %v1821_v42, %v1590_v20 }
 0x3b5   :  { %v12086_v44 = vpop.f32.mrf.mxu1 }
 0x3b7   :  { %v1826_v16 = vpop.f32.mrf.mxu1 }
 0x3b8   :  { %v1862_v58 = vadd.f32 %v1826_v16, %v1591_v36 }
 0x3b9   :  { %v12089_v46 = vpop.f32.mrf.mxu1 }
 0x3bb   :  { %v1831_v47 = vpop.f32.mrf.mxu1 }
 0x3bc   :  { %v1863_v49 = vadd.f32 %v1831_v47, %v1592_v23 }
 0x3bd   :  { %v12092_v51 = vpop.f32.mrf.mxu1 }
 0x3bf   :  { %v1836_v52 = vpop.f32.mrf.mxu1 }
 0x3c0   :  { %v1864_v54 = vadd.f32 %v1836_v52, %v1593_v7 }
 0x3c1   :  { %v12095_v55 = vpop.f32.mrf.mxu1 }
 0x3c3   :  { %v1841_v57 = vpop.f32.mrf.mxu1 }
 0x3c4   :  { %v1865_v45 = vadd.f32 %v1841_v57, %v1594_v27 }
 0x3c5   :  { %v12098_v48 = vpop.f32.mrf.mxu1 }
 0x3c7   :  { %v1846_v53 = vpop.f32.mrf.mxu1 }
 0x3c8   :  { %v1866_v56 = vadd.f32 %v1846_v53, %v1595_v9 }
 0x3c9   :  { %v12101_v59 = vpop.f32.mrf.mxu1 }
 0x3cb   :  { %v1851_v60 = vpop.f32.mrf.mxu1 }
 0x3cc   :  { %v1867_v61 = vadd.f32 %v1851_v60, %v1596_v11 }
 0x3cd   :  { %v12104_v63 = vpop.f32.mrf.mxu1 }
 0x3cf   :  { %v1856_v3 = vpop.f32.mrf.mxu1 }
 0x3d0   :  { %v1868_v62 = vadd.f32 %v1856_v3, %v1597_v37 }
 0x3d1   :  { %v12107_v19 = vpop.f32.mrf.mxu1 }
 0x3d3   :  { %v2087_v17 = vpop.f32.mrf.mxu1 }
 0x3d4   :  { %v2131_v5 = vadd.f32 %v2087_v17, %v1860_v41 }
 0x3d5   :  { %v12171_v6 = vpop.f32.mrf.mxu1 }
 0x3d7   :  { %v2092_v18 = vpop.f32.mrf.mxu1 }
 0x3d8   :  { %v2132_v25 = vadd.f32 %v2092_v18, %v1861_v15 }
 0x3d9   :  { %v12174_v1 = vpop.f32.mrf.mxu1 }
 0x3db   :  { %v2097_v28 = vpop.f32.mrf.mxu1 }
 0x3dc   :  { %v2133_v8 = vadd.f32 %v2097_v28, %v1862_v58 }
 0x3dd   :  { %v12177_v2 = vpop.f32.mrf.mxu1 }
 0x3df   :  { %v2102_v31 = vpop.f32.mrf.mxu1 }
 0x3e0   :  { %v2134_v4 = vadd.f32 %v2102_v31, %v1863_v49 }
 0x3e1   :  { %v12180_v33 = vpop.f32.mrf.mxu1 }
 0x3e3   :  { %v2107_v10 = vpop.f32.mrf.mxu1 }
 0x3e4   :  { %v2135_v20 = vadd.f32 %v2107_v10, %v1864_v54 }
 0x3e5   :  { %v12183_v34 = vpop.f32.mrf.mxu1 }
 0x3e7   :  { %v2112_v21 = vpop.f32.mrf.mxu1 }
 0x3e8   :  { %v2136_v36 = vadd.f32 %v2112_v21, %v1865_v45  ;;  %v2743_v21 = vld [vmem:[#allocation8] sm:$0xff] }
 0x3e9   :  { %v12186_v12 = vpop.f32.mrf.mxu1  ;;  %12390 = vmatprep.mubr.msk.f32.mxu0 %vm2747_vm3, %v2743_v21 }
 0x3eb   :  { %v2117_v22 = vpop.f32.mrf.mxu1 }
 0x3ec   :  { %v2137_v23 = vadd.f32 %v2117_v22, %v1866_v56 }
 0x3ed   :  { %v12189_v13 = vpop.f32.mrf.mxu1 }
 0x3ef   :  { %v2122_v24 = vpop.f32.mrf.mxu1 }
 0x3f0   :  { %v2138_v7 = vadd.f32 %v2122_v24, %v1867_v61  ;;  %v10533_v24 = vld [vmem:[#allocation7] ss:$0 sm:$0xff] }
 0x3f1   :  { %v12192_v26 = vpop.f32.mrf.mxu1 }
 0x3f3   :  { %v2127_v40 = vpop.f32.mrf.mxu1 }
 0x3f4   :  { %v2139_v27 = vadd.f32 %v2127_v40, %v1868_v62 }
 0x3f5   :  { %v12195_v38 = vpop.f32.mrf.mxu1 }
 0x3f7   :  { %v2358_v29 = vpop.f32.mrf.mxu1 }
 0x3f8   :  { %v2402_v9 = vadd.f32 %v2358_v29, %v2131_v5 }
 0x3f9   :  { %v12259_v30 = vpop.f32.mrf.mxu1 }
 0x3fb   :  { %v2363_v32 = vpop.f32.mrf.mxu1 }
 0x3fc   :  { %v2403_v11 = vadd.f32 %v2363_v32, %v2132_v25 }
 0x3fd   :  { %v12262_v35 = vpop.f32.mrf.mxu1 }
 0x3ff   :  { %v2368_v43 = vpop.f32.mrf.mxu1 }
 0x400   :  { %v2404_v37 = vadd.f32 %v2368_v43, %v2133_v8 }
 0x401   :  { %v12265_v14 = vpop.f32.mrf.mxu1 }
 0x403   :  { %v2373_v39 = vpop.f32.mrf.mxu1 }
 0x404   :  { %v2405_v41 = vadd.f32 %v2373_v39, %v2134_v4 }
 0x405   :  { %v12268_v50 = vpop.f32.mrf.mxu1 }
 0x407   :  { %v2378_v42 = vpop.f32.mrf.mxu1 }
 0x408   :  { %v2406_v15 = vadd.f32 %v2378_v42, %v2135_v20 }
 0x409   :  { %v12271_v44 = vpop.f32.mrf.mxu1 }
 0x40b   :  { %v2383_v16 = vpop.f32.mrf.mxu1 }
 0x40c   :  { %v2407_v58 = vadd.f32 %v2383_v16, %v2136_v36  ;;  %v2862_v36 = vld [vmem:[#allocation8 + $0x20] sm:$0xff] }
 0x40d   :  { %v12274_v46 = vpop.f32.mrf.mxu1 }
 0x40f   :  { %v2388_v47 = vpop.f32.mrf.mxu1 }
 0x410   :  { %v2408_v49 = vadd.f32 %v2388_v47, %v2137_v23 }
 0x411   :  { %v12277_v51 = vpop.f32.mrf.mxu1 }
 0x413   :  { %v2393_v52 = vpop.f32.mrf.mxu1 }
 0x414   :  { %v2409_v54 = vadd.f32 %v2393_v52, %v2138_v7 }
 0x415   :  { %v12280_v55 = vpop.f32.mrf.mxu1 }
 0x417   :  { %v2398_v57 = vpop.f32.mrf.mxu1 }
 0x418   :  { %v2410_v45 = vadd.f32 %v2398_v57, %v2139_v27 }
 0x419   :  { %v12283_v48 = vpop.f32.mrf.mxu1 }
 0x41b   :  { %v2517_v53 = vpop.f32.mrf.mxu1 }
 0x41c   :  { %12364 = vmatmul.mubr.msk.f32.gmra.mxu1 %vm503_vm2, %v2517_v53 }
 0x41d   :  { %v12336_v56 = vpop.f32.mrf.mxu1  ;;  %12366 = vmatprep.mubr.msk.f32.mxu1 %vm14011_vm0, %v14010_v0 }
 0x41f   :  { %v2522_v59 = vpop.f32.mrf.mxu1 }
 0x420   :  { %12367 = vmatmul.mubr.msk.f32.gmra.mxu1 %vm503_vm2, %v2522_v59 }
 0x421   :  { %v12339_v60 = vpop.f32.mrf.mxu1  ;;  %12369 = vmatprep.mubr.msk.f32.mxu1 %vm14011_vm0, %v14010_v0 }
 0x423   :  { %v2527_v61 = vpop.f32.mrf.mxu1 }
 0x424   :  { %12370 = vmatmul.mubr.msk.f32.gmra.mxu1 %vm503_vm2, %v2527_v61 }
 0x425   :  { %v12342_v63 = vpop.f32.mrf.mxu1  ;;  %12414 = vmatprep.mubr.msk.f32.mxu1 %vm2747_vm3, %v2862_v36 }
 0x427   :  { %v2629_v3 = vpop.f32.mrf.mxu1 }
 0x428   :  { %v2673_v62 = vadd.f32 %v2629_v3, %v2402_v9 }
 0x429   :  { %v12347_v19 = vpop.f32.mrf.mxu1 }
 0x42a   :  { %v15130_v44 = vadd.f32 %v10533_v24, %v2673_v62 }
 0x42b   :  { %v2634_v17 = vpop.f32.mrf.mxu1 }
 0x42c   :  { %v2674_v5 = vadd.f32 %v2634_v17, %v2403_v11  ;;  %v2707_v46 = vmul.f32 0.70710677, %v15130_v44  ;;  %v2698_v21 = vmul.f32 0.5, %v15130_v44  ;;  %v2853_v44 = vld [vmem:[#allocation10 + $0x40] sm:$0xff] }
 0x42d   :  { %v12350_v6 = vpop.f32.mrf.mxu1 }
 0x42e   :  { %v2690_v42 = vadd.f32 %v10533_v24, %v2674_v5 }
 0x42f   :  { %v2639_v18 = vpop.f32.mrf.mxu1 }
 0x430   :  { %v2675_v25 = vadd.f32 %v2639_v18, %v2404_v37 }
 0x431   :  { %v12353_v1 = vpop.f32.mrf.mxu1 }
 0x433   :  { %v2644_v28 = vpop.f32.mrf.mxu1 }
 0x434   :  { %v2676_v8 = vadd.f32 %v2644_v28, %v2405_v41  ;;  %v2691_v41 = vadd.f32 %v10533_v24, %v2675_v25 }
 0x435   :  { %v12356_v2 = vpop.f32.mrf.mxu1 }
 0x436   :  { %v2692_v37 = vadd.f32 %v10533_v24, %v2676_v8  ;;  %v2709_v16 = vmul.f32 0.70710677, %v2691_v41 }
 0x437   :  { %v2649_v31 = vpop.f32.mrf.mxu1 }
 0x438   :  { %v2677_v4 = vadd.f32 %v2649_v31, %v2406_v15  ;;  %v2710_v15 = vmul.f32 0.70710677, %v2692_v37  ;;  %v2701_v28 = vmul.f32 0.5, %v2692_v37  ;;  %v2973_v37 = vld [vmem:[#allocation10 + $0xc8] sm:$0xff] }
 0x439   :  { %v12359_v33 = vpop.f32.mrf.mxu1 }
 0x43a   :  { %v2693_v35 = vadd.f32 %v10533_v24, %v2677_v4  ;;  %v2700_v4 = vmul.f32 0.5, %v2691_v41  ;;  %v2855_v41 = vld [vmem:[#allocation10 + $0x50] sm:$0xff] }
 0x43b   :  { %v2654_v10 = vpop.f32.mrf.mxu1 }
 0x43c   :  { %v2678_v20 = vadd.f32 %v2654_v10, %v2407_v58  ;;  %v2711_v50 = vmul.f32 0.70710677, %v2693_v35  ;;  %v2708_v58 = vmul.f32 0.70710677, %v2690_v42  ;;  %v2702_v6 = vmul.f32 0.5, %v2693_v35  ;;  %v2974_v35 = vld [vmem:[#allocation10 + $0xd0] sm:$0xff] }
 0x43d   :  { %v12362_v34 = vpop.f32.mrf.mxu1 }
 0x43e   :  { %v2694_v29 = vadd.f32 %v10533_v24, %v2678_v20  ;;  %v2699_v20 = vmul.f32 0.5, %v2690_v42  ;;  %v2854_v42 = vld [vmem:[#allocation10 + $0x48] sm:$0xff] }
 0x440   :  { %v2712_v14 = vmul.f32 0.70710677, %v2694_v29  ;;  %v2703_v62 = vmul.f32 0.5, %v2694_v29  ;;  %v2746_v29 = vld [vmem:[#allocation8 + $0x18] sm:$0xff] }
 0x4dc   :  { %v2659_v12 = vpop.f32.mrf.mxu1 }
 0x4dd   :  { %v2679_v22 = vadd.f32 %v2659_v12, %v2408_v49 }
 0x4de   :  { %v12365_v23 = vpop.f32.mrf.mxu1 }
 0x4df   :  { %v2695_v26 = vadd.f32 %v10533_v24, %v2679_v22  ;;  %v2744_v22 = vld [vmem:[#allocation8 + $0x8] sm:$0xff] }
 0x4e0   :  { %v2664_v13 = vpop.f32.mrf.mxu1  ;;  %v2863_v23 = vld [vmem:[#allocation8 + $0x28] sm:$0xff] }
 0x4e1   :  { %v2680_v7 = vadd.f32 %v2664_v13, %v2409_v54  ;;  %v2713_v32 = vmul.f32 0.70710677, %v2695_v26  ;;  %v2704_v60 = vmul.f32 0.5, %v2695_v26  ;;  %v2979_v13 = vld [vmem:[#allocation10 + $0xf8] sm:$0xff]  ;;  %v2978_v26 = vld [vmem:[#allocation10 + $0xf0] sm:$0xff] }
 0x4e2   :  { %v12368_v40 = vpop.f32.mrf.mxu1 }
 0x4e3   :  { %v2696_v27 = vadd.f32 %v10533_v24, %v2680_v7  ;;  %v2864_v7 = vld [vmem:[#allocation8 + $0x30] sm:$0xff]  ;;  %v2860_v40 = vld [vmem:[#allocation10 + $0x78] sm:$0xff] }
 0x4e4   :  { %v2669_v38 = vpop.f32.mrf.mxu1 }
 0x4e5   :  { %v2714_v9 = vmul.f32 0.70710677, %v2696_v27  ;;  %v2681_v30 = vadd.f32 %v2669_v38, %v2410_v45  ;;  %v2705_v48 = vmul.f32 0.5, %v2696_v27  ;;  %v2865_v27 = vld [vmem:[#allocation8 + $0x38] sm:$0xff]  ;;  %v2977_v38 = vld [vmem:[#allocation10 + $0xe8] sm:$0xff] }
 0x4e6   :  { %v12371_v11 = vpop.f32.mrf.mxu1 }
 0x4e7   :  { %v2697_v43 = vadd.f32 %v10533_v24, %v2681_v30  ;;  %13612 = verf.f32 %v2714_v9  ;;  %v2745_v24 = vld [vmem:[#allocation8 + $0x10] sm:$0xff]  ;;  %v2976_v9 = vld [vmem:[#allocation10 + $0xe0] sm:$0xff]  ;;  %v2858_v11 = vld [vmem:[#allocation10 + $0x68] sm:$0xff] }
 0x4e8   :  { %13614 = verf.f32 %v2713_v32  ;;  %v2859_v30 = vld [vmem:[#allocation10 + $0x70] sm:$0xff]  ;;  %v2975_v32 = vld [vmem:[#allocation10 + $0xd8] sm:$0xff] }
 0x4e9   :  { %v2715_v39 = vmul.f32 0.70710677, %v2697_v43  ;;  %v2706_v54 = vmul.f32 0.5, %v2697_v43  ;;  %v2857_v43 = vld [vmem:[#allocation10 + $0x60] sm:$0xff] }
 0x4eb   :  { %13616 = verf.f32 %v2715_v39  ;;  %v2972_v39 = vld [vmem:[#allocation10 + $0xc0] sm:$0xff] }
 0x4ec   :  { %13618 = verf.f32 %v2712_v14  ;;  %v2856_v14 = vld [vmem:[#allocation10 + $0x58] sm:$0xff] }
 0x4ed   :  { %13620 = verf.f32 %v2711_v50  ;;  %v2971_v50 = vld [vmem:[#allocation10 + $0xb8] sm:$0xff] }
 0x4ee   :  { %13622 = verf.f32 %v2710_v15  ;;  %v2970_v15 = vld [vmem:[#allocation10 + $0xb0] sm:$0xff] }
 0x4ef   :  { %13624 = verf.f32 %v2709_v16  ;;  %v2969_v16 = vld [vmem:[#allocation10 + $0xa8] sm:$0xff] }
 0x4f0   :  { %13626 = verf.f32 %v2708_v58  ;;  %v2852_v58 = vld [vmem:[#allocation10 + $0x38] sm:$0xff] }
 0x4f1   :  { %13628 = verf.f32 %v2707_v46  ;;  %v2968_v46 = vld [vmem:[#allocation10 + $0xa0] sm:$0xff] }
 0x4f4   :  { %v13613_v47 = vpop.eup %13612 }
 0x4f5   :  { %v13615_v49 = vpop.eup %13614  ;;  %v2732_v52 = vadd.f32 1.0, %v13613_v47  ;;  %v2851_v47 = vld [vmem:[#allocation10 + $0x30] sm:$0xff] }
 0x4f6   :  { %v2731_v45 = vadd.f32 1.0, %v13615_v49  ;;  %v2967_v49 = vld [vmem:[#allocation10 + $0x98] sm:$0xff] }
 0x4f7   :  { %v15135_v61 = vmul.f32 %v2732_v52, %v2705_v48  ;;  %v2966_v52 = vld [vmem:[#allocation10 + $0x90] sm:$0xff] }
 0x4f8   :  { %v13617_v51 = vpop.eup %13616  ;;  %v15141_v19 = vmul.f32 %v2731_v45, %v2704_v60  ;;  %v2964_v45 = vld [vmem:[#allocation10 + $0x80] sm:$0xff]  ;;  %v2847_v48 = vld [vmem:[#allocation10 + $0x10] sm:$0xff]  ;;  %v3268_v60 = vld [vmem:[#allocation10 + $0x178] sm:$0xff] }
 0x4f9   :  { %v2733_v55 = vadd.f32 1.0, %v13617_v51  ;;  %v13619_v57 = vpop.eup %13618  ;;  %v2850_v51 = vld [vmem:[#allocation10 + $0x28] sm:$0xff] }
 0x4fa   :  { %v13621_v56 = vpop.eup %13620  ;;  %v2730_v59 = vadd.f32 1.0, %v13619_v57  ;;  %v2848_v57 = vld [vmem:[#allocation10 + $0x18] sm:$0xff] }
 0x4fb   :  { %v15133_v53 = vmul.f32 %v2733_v55, %v2706_v54  ;;  %v13623_v63 = vpop.eup %13622  ;;  %v2729_v3 = vadd.f32 1.0, %v13621_v56  ;;  %v2849_v54 = vld [vmem:[#allocation10 + $0x20] sm:$0xff]  ;;  %v2965_v55 = vld [vmem:[#allocation10 + $0x88] sm:$0xff] }
 0x4fc   :  { %v13625_v17 = vpop.eup %13624  ;;  %v2728_v5 = vadd.f32 1.0, %v13623_v63  ;;  %v15147_v18 = vmul.f32 %v2730_v59, %v2703_v62  ;;  %v2846_v56 = vld [vmem:[#allocation10 + $0x8] sm:$0xff]  ;;  %v2845_v59 = vld [vmem:[#allocation10] sm:$0xff] }
 0x4fd   :  { %12372 = vmatprep.subr.mxu0 %v15133_v53  ;;  %12396 = vmatprep.subr.mxu1 %v15133_v53  ;;  %v13627_v25 = vpop.eup %13626  ;;  %v2727_v1 = vadd.f32 1.0, %v13625_v17  ;;  %v15153_v8 = vmul.f32 %v2729_v3, %v2702_v6 }
 0x4fe   :  { %12373 = vmatpush3.msra.mxu0 %v15133_v53  ;;  %12397 = vmatpush3.msra.mxu1 %v15133_v53  ;;  %v13629_v2 = vpop.eup %13628  ;;  %v2726_v31 = vadd.f32 1.0, %v13627_v25  ;;  %v15159_v33 = vmul.f32 %v2728_v5, %v2701_v28  ;;  %v3267_v5 = vld [vmem:[#allocation10 + $0x170] sm:$0xff] }
 0x4ff   :  { %12374 = vmatprep.subr.mxu0 %v15135_v61  ;;  %12398 = vmatprep.subr.mxu1 %v15135_v61  ;;  %v2725_v10 = vadd.f32 1.0, %v13629_v2  ;;  %v15165_v34 = vmul.f32 %v2727_v1, %v2700_v4  ;;  %v3151_v2 = vld [vmem:[#allocation8 + $0x40] sm:$0xff] }
 0x500   :  { %12375 = vmatpush3.msra.mxu0 %v15135_v61  ;;  %12399 = vmatpush3.msra.mxu1 %v15135_v61  ;;  %v15172_v36 = vmul.f32 %v2726_v31, %v2699_v20  ;;  %v3266_v31 = vld [vmem:[#allocation10 + $0x168] sm:$0xff]  ;;  %v3265_v4 = vld [vmem:[#allocation10 + $0x160] sm:$0xff]  ;;  %v3263_v20 = vld [vmem:[#allocation10 + $0x150] sm:$0xff] }
 0x501   :  { %12376 = vmatprep.subr.mxu0 %v15141_v19  ;;  %12400 = vmatprep.subr.mxu1 %v15141_v19  ;;  %v15178_v12 = vmul.f32 %v2725_v10, %v2698_v21  ;;  %v3264_v10 = vld [vmem:[#allocation10 + $0x158] sm:$0xff]  ;;  %v3152_v21 = vld [vmem:[#allocation8 + $0x48] sm:$0xff] }
 0x502   :  { %12377 = vmatpush3.msra.mxu0 %v15141_v19  ;;  %12401 = vmatpush3.msra.mxu1 %v15141_v19 }
 0x503   :  { %12378 = vmatprep.subr.mxu0 %v15147_v18  ;;  %12402 = vmatprep.subr.mxu1 %v15147_v18 }
 0x504   :  { %12379 = vmatpush3.msra.mxu0 %v15147_v18  ;;  %12403 = vmatpush3.msra.mxu1 %v15147_v18 }
 0x505   :  { %12380 = vmatprep.subr.mxu0 %v15153_v8  ;;  %12404 = vmatprep.subr.mxu1 %v15153_v8 }
 0x506   :  { %12381 = vmatpush3.msra.mxu0 %v15153_v8  ;;  %12405 = vmatpush3.msra.mxu1 %v15153_v8 }
 0x507   :  { %12382 = vmatprep.subr.mxu0 %v15159_v33  ;;  %12406 = vmatprep.subr.mxu1 %v15159_v33 }
 0x508   :  { %12383 = vmatpush3.msra.mxu0 %v15159_v33  ;;  %12407 = vmatpush3.msra.mxu1 %v15159_v33 }
 0x509   :  { %12384 = vmatprep.subr.mxu0 %v15165_v34  ;;  %12408 = vmatprep.subr.mxu1 %v15165_v34 }
 0x50a   :  { %12385 = vmatpush3.msra.mxu0 %v15165_v34  ;;  %12409 = vmatpush3.msra.mxu1 %v15165_v34 }
 0x50b   :  { %12386 = vmatprep.subr.mxu0 %v15172_v36  ;;  %12410 = vmatprep.subr.mxu1 %v15172_v36 }
 0x50c   :  { %12387 = vmatpush3.msra.mxu0 %v15172_v36  ;;  %12411 = vmatpush3.msra.mxu1 %v15172_v36 }
 0x50d   :  { %12388 = vmatprep.subr.mxu0 %v15178_v12  ;;  %12412 = vmatprep.subr.mxu1 %v15178_v12 }
 0x50e   :  { %12389 = vmatpush3.msra.mxu0 %v15178_v12  ;;  %12413 = vmatpush3.msra.mxu1 %v15178_v12 }
 0x50f   :  { %12391 = vmatmul.mubr.msk.f32.vlgmr.msra.gmra.mxu0 %vm2747_vm3, %v2744_v22  ;;  %12415 = vmatmul.mubr.msk.f32.vlgmr.msra.gmra.mxu1 %vm2747_vm3, %v2863_v23  ;;  %v3153_v22 = vld [vmem:[#allocation8 + $0x50] sm:$0xff]  ;;  %v3154_v23 = vld [vmem:[#allocation8 + $0x58] sm:$0xff] }
 0x510   :  { %12420 = vmatprep.subr.mxu0 %v2979_v13  ;;  %12393 = vmatprep.mubr.msk.f32.mxu0 %vm2747_vm3, %v2745_v24  ;;  %v3360_v24 = vld [vmem:[#allocation8 + $0x68] sm:$0xff] }
 0x511   :  { %12421 = vmatpush3.msra.mxu0 %v2979_v13  ;;  %12417 = vmatprep.mubr.msk.f32.mxu1 %vm2747_vm3, %v2864_v7  ;;  %v3359_v13 = vld [vmem:[#allocation8 + $0x60] sm:$0xff]  ;;  %v3361_v7 = vld [vmem:[#allocation8 + $0x70] sm:$0xff] }
 0x512   :  { %12422 = vmatprep.subr.mxu0 %v2978_v26  ;;  %12458 = vmatprep.subr.mxu1 %v2860_v40 }
 0x513   :  { %12423 = vmatpush3.msra.mxu0 %v2978_v26  ;;  %12418 = vmatmul.mubr.msk.f32.gmra.mxu1 %vm2747_vm3, %v2865_v27  ;;  %v3362_v26 = vld [vmem:[#allocation8 + $0x78] sm:$0xff]  ;;  %v3568_v27 = vld [vmem:[#allocation8 + $0x88] sm:$0xff] }
 0x514   :  { %12424 = vmatprep.subr.mxu0 %v2977_v38  ;;  %12394 = vmatmul.mubr.msk.f32.gmra.mxu0 %vm2747_vm3, %v2746_v29  ;;  %v3569_v29 = vld [vmem:[#allocation8 + $0x90] sm:$0xff] }
 0x515   :  { %12425 = vmatpush3.msra.mxu0 %v2977_v38  ;;  %12459 = vmatpush3.msra.mxu1 %v2860_v40  ;;  %v3567_v40 = vld [vmem:[#allocation8 + $0x80] sm:$0xff]  ;;  %v3684_v38 = vld [vmem:[#allocation10 + $0x278] sm:$0xff] }
 0x516   :  { %12426 = vmatprep.subr.mxu0 %v2976_v9  ;;  %12460 = vmatprep.subr.mxu1 %v2859_v30 }
 0x517   :  { %12427 = vmatpush3.msra.mxu0 %v2976_v9  ;;  %12461 = vmatpush3.msra.mxu1 %v2859_v30  ;;  %v3683_v9 = vld [vmem:[#allocation10 + $0x270] sm:$0xff]  ;;  %v3570_v30 = vld [vmem:[#allocation8 + $0x98] sm:$0xff] }
 0x518   :  { %12428 = vmatprep.subr.mxu0 %v2975_v32  ;;  %12462 = vmatprep.subr.mxu1 %v2858_v11 }
 0x519   :  { %12429 = vmatpush3.msra.mxu0 %v2975_v32  ;;  %12463 = vmatpush3.msra.mxu1 %v2858_v11  ;;  %v3682_v32 = vld [vmem:[#allocation10 + $0x268] sm:$0xff]  ;;  %v3681_v11 = vld [vmem:[#allocation10 + $0x260] sm:$0xff] }
 0x51a   :  { %12430 = vmatprep.subr.mxu0 %v2974_v35  ;;  %12464 = vmatprep.subr.mxu1 %v2857_v43 }
 0x51b   :  { %12431 = vmatpush3.msra.mxu0 %v2974_v35  ;;  %12465 = vmatpush3.msra.mxu1 %v2857_v43  ;;  %v3680_v35 = vld [vmem:[#allocation10 + $0x258] sm:$0xff]  ;;  %v3679_v43 = vld [vmem:[#allocation10 + $0x250] sm:$0xff] }
 0x51c   :  { %12432 = vmatprep.subr.mxu0 %v2973_v37  ;;  %12466 = vmatprep.subr.mxu1 %v2856_v14 }
 0x51d   :  { %12433 = vmatpush3.msra.mxu0 %v2973_v37  ;;  %12467 = vmatpush3.msra.mxu1 %v2856_v14  ;;  %v3678_v37 = vld [vmem:[#allocation10 + $0x248] sm:$0xff] }
 0x51e   :  { %12434 = vmatprep.subr.mxu0 %v2972_v39  ;;  %12468 = vmatprep.subr.mxu1 %v2855_v41  ;;  %v3262_v14 = vld [vmem:[#allocation10 + $0x148] sm:$0xff] }
 0x51f   :  { %12435 = vmatpush3.msra.mxu0 %v2972_v39  ;;  %12469 = vmatpush3.msra.mxu1 %v2855_v41  ;;  %v3677_v39 = vld [vmem:[#allocation10 + $0x240] sm:$0xff] }
 0x520   :  { %12436 = vmatprep.subr.mxu0 %v2971_v50  ;;  %12470 = vmatprep.subr.mxu1 %v2854_v42  ;;  %v3261_v41 = vld [vmem:[#allocation10 + $0x140] sm:$0xff] }
 0x521   :  { %12437 = vmatpush3.msra.mxu0 %v2971_v50  ;;  %12471 = vmatpush3.msra.mxu1 %v2854_v42  ;;  %v3676_v50 = vld [vmem:[#allocation10 + $0x238] sm:$0xff] }
 0x522   :  { %12438 = vmatprep.subr.mxu0 %v2970_v15  ;;  %12472 = vmatprep.subr.mxu1 %v2853_v44  ;;  %v3260_v42 = vld [vmem:[#allocation10 + $0x138] sm:$0xff] }
 0x523   :  { %12439 = vmatpush3.msra.mxu0 %v2970_v15  ;;  %12473 = vmatpush3.msra.mxu1 %v2853_v44  ;;  %v3259_v15 = vld [vmem:[#allocation10 + $0x130] sm:$0xff] }
 0x524   :  { %12440 = vmatprep.subr.mxu0 %v2969_v16  ;;  %12474 = vmatprep.subr.mxu1 %v2852_v58  ;;  %v3675_v44 = vld [vmem:[#allocation10 + $0x230] sm:$0xff] }
 0x525   :  { %12441 = vmatpush3.msra.mxu0 %v2969_v16  ;;  %12475 = vmatpush3.msra.mxu1 %v2852_v58  ;;  %v3258_v16 = vld [vmem:[#allocation10 + $0x128] sm:$0xff] }
 0x526   :  { %12442 = vmatprep.subr.mxu0 %v2968_v46  ;;  %12476 = vmatprep.subr.mxu1 %v2851_v47  ;;  %v3674_v58 = vld [vmem:[#allocation10 + $0x228] sm:$0xff] }
 0x527   :  { %12443 = vmatpush3.msra.mxu0 %v2968_v46  ;;  %12477 = vmatpush3.msra.mxu1 %v2851_v47  ;;  %v3257_v46 = vld [vmem:[#allocation10 + $0x120] sm:$0xff] }
 0x528   :  { %12444 = vmatprep.subr.mxu0 %v2967_v49  ;;  %12478 = vmatprep.subr.mxu1 %v2850_v51  ;;  %v3673_v47 = vld [vmem:[#allocation10 + $0x220] sm:$0xff] }
 0x529   :  { %12445 = vmatpush3.msra.mxu0 %v2967_v49  ;;  %12479 = vmatpush3.msra.mxu1 %v2850_v51  ;;  %v3256_v49 = vld [vmem:[#allocation10 + $0x118] sm:$0xff] }
 0x52a   :  { %12446 = vmatprep.subr.mxu0 %v2966_v52  ;;  %12480 = vmatprep.subr.mxu1 %v2849_v54  ;;  %v3672_v51 = vld [vmem:[#allocation10 + $0x218] sm:$0xff] }
 0x52b   :  { %12447 = vmatpush3.msra.mxu0 %v2966_v52  ;;  %12481 = vmatpush3.msra.mxu1 %v2849_v54  ;;  %v3255_v52 = vld [vmem:[#allocation10 + $0x110] sm:$0xff] }
 0x52c   :  { %12448 = vmatprep.subr.mxu0 %v2965_v55  ;;  %12482 = vmatprep.subr.mxu1 %v2848_v57  ;;  %v3671_v54 = vld [vmem:[#allocation10 + $0x210] sm:$0xff] }
 0x52d   :  { %12449 = vmatpush3.msra.mxu0 %v2965_v55  ;;  %12483 = vmatpush3.msra.mxu1 %v2848_v57  ;;  %v3254_v55 = vld [vmem:[#allocation10 + $0x108] sm:$0xff] }
 0x52e   :  { %12450 = vmatprep.subr.mxu0 %v2964_v45  ;;  %12484 = vmatprep.subr.mxu1 %v2847_v48  ;;  %v3670_v57 = vld [vmem:[#allocation10 + $0x208] sm:$0xff] }
 0x52f   :  { %12451 = vmatpush3.msra.mxu0 %v2964_v45  ;;  %12485 = vmatpush3.msra.mxu1 %v2847_v48  ;;  %v3669_v45 = vld [vmem:[#allocation10 + $0x200] sm:$0xff] }
 0x530   :  { %12496 = vmatprep.subr.mxu0 %v15133_v53  ;;  %12486 = vmatprep.subr.mxu1 %v2846_v56  ;;  %v3253_v48 = vld [vmem:[#allocation10 + $0x100] sm:$0xff] }
 0x531   :  { %12487 = vmatpush3.msra.mxu1 %v2846_v56  ;;  %v3476_v56 = vld [vmem:[#allocation10 + $0x1f8] sm:$0xff] }
 0x532   :  { %12488 = vmatprep.subr.mxu1 %v2845_v59 }
 0x533   :  { %12489 = vmatpush3.msra.mxu1 %v2845_v59 }
 0x534   :  { %12520 = vmatprep.subr.mxu1 %v3268_v60 }
 0x5cf   :  { %v12392_v63 = vpop.f32.mrf.mxu0  ;;  %v12416_v3 = vpop.f32.mrf.mxu1 }
 0x5d1   :  { %v2826_v62 = vpop.f32.mrf.mxu0  ;;  %v2944_v17 = vpop.f32.mrf.mxu1 }
 0x5d2   :  { %12452 = vmatprep.mubr.f32.mxu0 %v2944_v17  ;;  %12490 = vmatprep.mubr.f32.mxu1 %v2826_v62 }
 0x5d3   :  { %12453 = vmatmul.mubr.f32.vlgmr.msra.gmra.mxu0 %v12416_v3  ;;  %12491 = vmatmul.mubr.f32.vlgmr.msra.gmra.mxu1 %v12392_v63  ;;  %v12419_v6 = vpop.f32.mrf.mxu1 }
 0x5d4   :  { %12497 = vmatpush3.msra.mxu0 %v15133_v53  ;;  %v12395_v25 = vpop.f32.mrf.mxu0  ;;  %12521 = vmatpush3.msra.mxu1 %v3268_v60 }
 0x5d5   :  { %12498 = vmatprep.subr.mxu0 %v15135_v61  ;;  %v2954_v1 = vpop.f32.mrf.mxu1  ;;  %12522 = vmatprep.subr.mxu1 %v3267_v5 }
 0x5d6   :  { %12499 = vmatpush3.msra.mxu0 %v15135_v61  ;;  %v2836_v28 = vpop.f32.mrf.mxu0  ;;  %12455 = vmatprep.mubr.f32.mxu0 %v2954_v1 }
 0x5d7   :  { %12500 = vmatprep.subr.mxu0 %v15141_v19  ;;  %12493 = vmatprep.mubr.f32.mxu1 %v2836_v28 }
 0x5d8   :  { %12501 = vmatpush3.msra.mxu0 %v15141_v19  ;;  %12494 = vmatmul.mubr.f32.gmra.mxu1 %v12395_v25 }
 0x5d9   :  { %12502 = vmatprep.subr.mxu0 %v15147_v18  ;;  %12456 = vmatmul.mubr.f32.gmra.mxu0 %v12419_v6 }
 0x5da   :  { %12503 = vmatpush3.msra.mxu0 %v15147_v18  ;;  %12514 = vmatprep.mubr.msk.f32.mxu0 %vm2747_vm3, %v3151_v2  ;;  %v3475_v2 = vld [vmem:[#allocation10 + $0x1f0] sm:$0xff] }
 0x5db   :  { %12504 = vmatprep.subr.mxu0 %v15153_v8  ;;  %12523 = vmatpush3.msra.mxu1 %v3267_v5 }
 0x5dc   :  { %12505 = vmatpush3.msra.mxu0 %v15153_v8  ;;  %12524 = vmatprep.subr.mxu1 %v3266_v31 }
 0x5dd   :  { %12506 = vmatprep.subr.mxu0 %v15159_v33  ;;  %12525 = vmatpush3.msra.mxu1 %v3266_v31 }
 0x5de   :  { %12507 = vmatpush3.msra.mxu0 %v15159_v33  ;;  %12526 = vmatprep.subr.mxu1 %v3265_v4 }
 0x5df   :  { %12508 = vmatprep.subr.mxu0 %v15165_v34  ;;  %12527 = vmatpush3.msra.mxu1 %v3265_v4  ;;  %v3474_v4 = vld [vmem:[#allocation10 + $0x1e8] sm:$0xff] }
 0x5e0   :  { %12509 = vmatpush3.msra.mxu0 %v15165_v34  ;;  %12528 = vmatprep.subr.mxu1 %v3264_v10 }
 0x5e1   :  { %12510 = vmatprep.subr.mxu0 %v15172_v36  ;;  %12529 = vmatpush3.msra.mxu1 %v3264_v10 }
 0x5e2   :  { %12511 = vmatpush3.msra.mxu0 %v15172_v36  ;;  %12530 = vmatprep.subr.mxu1 %v3263_v20 }
 0x5e3   :  { %12512 = vmatprep.subr.mxu0 %v15178_v12  ;;  %12531 = vmatpush3.msra.mxu1 %v3263_v20  ;;  %v3473_v20 = vld [vmem:[#allocation10 + $0x1e0] sm:$0xff] }
 0x5e4   :  { %12513 = vmatpush3.msra.mxu0 %v15178_v12  ;;  %12532 = vmatprep.subr.mxu1 %v3262_v14 }
 0x5e5   :  { %12515 = vmatmul.mubr.msk.f32.vlgmr.msra.gmra.mxu0 %vm2747_vm3, %v3152_v21  ;;  %12558 = vmatprep.subr.mxu0 %v15133_v53  ;;  %v3472_v21 = vld [vmem:[#allocation10 + $0x1d8] sm:$0xff] }
 0x5e6   :  { %12559 = vmatpush3.msra.mxu0 %v15133_v53  ;;  %12517 = vmatprep.mubr.msk.f32.mxu0 %vm2747_vm3, %v3153_v22  ;;  %v3471_v22 = vld [vmem:[#allocation10 + $0x1d0] sm:$0xff] }
 0x5e7   :  { %12560 = vmatprep.subr.mxu0 %v15135_v61  ;;  %12533 = vmatpush3.msra.mxu1 %v3262_v14 }
 0x5e8   :  { %12561 = vmatpush3.msra.mxu0 %v15135_v61  ;;  %12534 = vmatprep.subr.mxu1 %v3261_v41 }
 0x5e9   :  { %12518 = vmatmul.mubr.msk.f32.gmra.mxu0 %vm2747_vm3, %v3154_v23  ;;  %12562 = vmatprep.subr.mxu0 %v15141_v19  ;;  %v3470_v23 = vld [vmem:[#allocation10 + $0x1c8] sm:$0xff] }
 0x5ea   :  { %12563 = vmatpush3.msra.mxu0 %v15141_v19  ;;  %12576 = vmatprep.mubr.msk.f32.mxu0 %vm2747_vm3, %v3359_v13  ;;  %v3469_v13 = vld [vmem:[#allocation10 + $0x1c0] sm:$0xff] }
 0x5eb   :  { %12564 = vmatprep.subr.mxu0 %v15147_v18  ;;  %12535 = vmatpush3.msra.mxu1 %v3261_v41  ;;  %v3775_v41 = vld [vmem:[#allocation8 + $0xa0] sm:$0xff] }
 0x5ec   :  { %12565 = vmatpush3.msra.mxu0 %v15147_v18  ;;  %12536 = vmatprep.subr.mxu1 %v3260_v42 }
 0x5ed   :  { %12566 = vmatprep.subr.mxu0 %v15153_v8  ;;  %12537 = vmatpush3.msra.mxu1 %v3260_v42  ;;  %v3892_v42 = vld [vmem:[#allocation10 + $0x2f8] sm:$0xff] }
 0x5ee   :  { %12567 = vmatpush3.msra.mxu0 %v15153_v8  ;;  %12538 = vmatprep.subr.mxu1 %v3259_v15 }
 0x5ef   :  { %12568 = vmatprep.subr.mxu0 %v15159_v33  ;;  %12539 = vmatpush3.msra.mxu1 %v3259_v15  ;;  %v3891_v15 = vld [vmem:[#allocation10 + $0x2f0] sm:$0xff] }
 0x5f0   :  { %12569 = vmatpush3.msra.mxu0 %v15159_v33  ;;  %12540 = vmatprep.subr.mxu1 %v3258_v16 }
 0x5f1   :  { %12570 = vmatprep.subr.mxu0 %v15165_v34  ;;  %12541 = vmatpush3.msra.mxu1 %v3258_v16  ;;  %v3983_v16 = vld [vmem:[#allocation8 + $0xc0] sm:$0xff] }
 0x5f2   :  { %12571 = vmatpush3.msra.mxu0 %v15165_v34  ;;  %12542 = vmatprep.subr.mxu1 %v3257_v46 }
 0x5f3   :  { %12572 = vmatprep.subr.mxu0 %v15172_v36  ;;  %12543 = vmatpush3.msra.mxu1 %v3257_v46  ;;  %v3890_v46 = vld [vmem:[#allocation10 + $0x2e8] sm:$0xff] }
 0x5f4   :  { %12573 = vmatpush3.msra.mxu0 %v15172_v36  ;;  %12544 = vmatprep.subr.mxu1 %v3256_v49 }
 0x5f5   :  { %12574 = vmatprep.subr.mxu0 %v15178_v12  ;;  %12545 = vmatpush3.msra.mxu1 %v3256_v49  ;;  %v4100_v49 = vld [vmem:[#allocation10 + $0x378] sm:$0xff] }
 0x5f6   :  { %12575 = vmatpush3.msra.mxu0 %v15178_v12  ;;  %12546 = vmatprep.subr.mxu1 %v3255_v52 }
 0x5f7   :  { %12577 = vmatmul.mubr.msk.f32.vlgmr.msra.gmra.mxu0 %vm2747_vm3, %v3360_v24  ;;  %12620 = vmatprep.subr.mxu0 %v15133_v53  ;;  %v3468_v24 = vld [vmem:[#allocation10 + $0x1b8] sm:$0xff] }
 0x5f8   :  { %12621 = vmatpush3.msra.mxu0 %v15133_v53  ;;  %12579 = vmatprep.mubr.msk.f32.mxu0 %vm2747_vm3, %v3361_v7 }
 0x5f9   :  { %12622 = vmatprep.subr.mxu0 %v15135_v61  ;;  %12547 = vmatpush3.msra.mxu1 %v3255_v52  ;;  %v4099_v52 = vld [vmem:[#allocation10 + $0x370] sm:$0xff] }
 0x5fa   :  { %12623 = vmatpush3.msra.mxu0 %v15135_v61  ;;  %12548 = vmatprep.subr.mxu1 %v3254_v55 }
 0x5fb   :  { %12624 = vmatprep.subr.mxu0 %v15141_v19  ;;  %12580 = vmatmul.mubr.msk.f32.gmra.mxu0 %vm2747_vm3, %v3362_v26  ;;  %v3467_v26 = vld [vmem:[#allocation10 + $0x1b0] sm:$0xff] }
 0x5fc   :  { %12625 = vmatpush3.msra.mxu0 %v15141_v19  ;;  %12638 = vmatprep.mubr.msk.f32.mxu0 %vm2747_vm3, %v3567_v40 }
 0x5fd   :  { %12626 = vmatprep.subr.mxu0 %v15147_v18  ;;  %12549 = vmatpush3.msra.mxu1 %v3254_v55  ;;  %v3888_v55 = vld [vmem:[#allocation10 + $0x2d8] sm:$0xff] }
 0x5fe   :  { %12627 = vmatpush3.msra.mxu0 %v15147_v18  ;;  %12550 = vmatprep.subr.mxu1 %v3253_v48 }
 0x5ff   :  { %12628 = vmatprep.subr.mxu0 %v15153_v8  ;;  %12551 = vmatpush3.msra.mxu1 %v3253_v48  ;;  %v3887_v48 = vld [vmem:[#allocation10 + $0x2d0] sm:$0xff] }
 0x600   :  { %12629 = vmatpush3.msra.mxu0 %v15153_v8  ;;  %12582 = vmatprep.subr.mxu1 %v3476_v56 }
 0x601   :  { %12630 = vmatprep.subr.mxu0 %v15159_v33 }
 0x602   :  { %12631 = vmatpush3.msra.mxu0 %v15159_v33 }
 0x603   :  { %12632 = vmatprep.subr.mxu0 %v15165_v34 }
 0x604   :  { %12633 = vmatpush3.msra.mxu0 %v15165_v34 }
 0x605   :  { %12634 = vmatprep.subr.mxu0 %v15172_v36 }
 0x606   :  { %12635 = vmatpush3.msra.mxu0 %v15172_v36 }
 0x607   :  { %12636 = vmatprep.subr.mxu0 %v15178_v12 }
 0x608   :  { %12637 = vmatpush3.msra.mxu0 %v15178_v12 }
 0x609   :  { %12639 = vmatmul.mubr.msk.f32.vlgmr.msra.gmra.mxu0 %vm2747_vm3, %v3568_v27  ;;  %12644 = vmatprep.subr.mxu0 %v3684_v38  ;;  %v3466_v27 = vld [vmem:[#allocation10 + $0x1a8] sm:$0xff] }
 0x60a   :  { %12645 = vmatpush3.msra.mxu0 %v3684_v38  ;;  %12641 = vmatprep.mubr.msk.f32.mxu0 %vm2747_vm3, %v3569_v29  ;;  %v3465_v38 = vld [vmem:[#allocation10 + $0x1a0] sm:$0xff]  ;;  %v3464_v29 = vld [vmem:[#allocation10 + $0x198] sm:$0xff] }
 0x60b   :  { %12646 = vmatprep.subr.mxu0 %v3683_v9 }
 0x60c   :  { %12647 = vmatpush3.msra.mxu0 %v3683_v9  ;;  %v3463_v9 = vld [vmem:[#allocation10 + $0x190] sm:$0xff] }
 0x60d   :  { %12642 = vmatmul.mubr.msk.f32.gmra.mxu0 %vm2747_vm3, %v3570_v30  ;;  %12648 = vmatprep.subr.mxu0 %v3682_v32  ;;  %v3462_v30 = vld [vmem:[#allocation10 + $0x188] sm:$0xff] }
 0x60e   :  { %12649 = vmatpush3.msra.mxu0 %v3682_v32 }
 0x60f   :  { %12650 = vmatprep.subr.mxu0 %v3681_v11 }
 0x610   :  { %12651 = vmatpush3.msra.mxu0 %v3681_v11  ;;  %v3461_v11 = vld [vmem:[#allocation10 + $0x180] sm:$0xff] }
 0x611   :  { %12652 = vmatprep.subr.mxu0 %v3680_v35 }
 0x612   :  { %12653 = vmatpush3.msra.mxu0 %v3680_v35 }
 0x613   :  { %12654 = vmatprep.subr.mxu0 %v3679_v43 }
 0x614   :  { %12655 = vmatpush3.msra.mxu0 %v3679_v43 }
 0x615   :  { %12656 = vmatprep.subr.mxu0 %v3678_v37 }
 0x616   :  { %12657 = vmatpush3.msra.mxu0 %v3678_v37 }
 0x617   :  { %12658 = vmatprep.subr.mxu0 %v3677_v39 }
 0x618   :  { %12659 = vmatpush3.msra.mxu0 %v3677_v39 }
 0x619   :  { %12660 = vmatprep.subr.mxu0 %v3676_v50 }
 0x61a   :  { %12661 = vmatpush3.msra.mxu0 %v3676_v50  ;;  %v3776_v50 = vld [vmem:[#allocation8 + $0xa8] sm:$0xff] }
 0x61b   :  { %12662 = vmatprep.subr.mxu0 %v3675_v44 }
 0x61c   :  { %12663 = vmatpush3.msra.mxu0 %v3675_v44  ;;  %v3777_v44 = vld [vmem:[#allocation8 + $0xb0] sm:$0xff] }
 0x61d   :  { %12664 = vmatprep.subr.mxu0 %v3674_v58 }
 0x61e   :  { %12665 = vmatpush3.msra.mxu0 %v3674_v58  ;;  %v3778_v58 = vld [vmem:[#allocation8 + $0xb8] sm:$0xff] }
 0x61f   :  { %12666 = vmatprep.subr.mxu0 %v3673_v47 }
 0x620   :  { %12667 = vmatpush3.msra.mxu0 %v3673_v47  ;;  %v3984_v47 = vld [vmem:[#allocation8 + $0xc8] sm:$0xff] }
 0x621   :  { %12668 = vmatprep.subr.mxu0 %v3672_v51 }
 0x622   :  { %12669 = vmatpush3.msra.mxu0 %v3672_v51  ;;  %v3889_v51 = vld [vmem:[#allocation10 + $0x2e0] sm:$0xff] }
 0x623   :  { %12670 = vmatprep.subr.mxu0 %v3671_v54 }
 0x624   :  { %12671 = vmatpush3.msra.mxu0 %v3671_v54  ;;  %v3985_v54 = vld [vmem:[#allocation8 + $0xd0] sm:$0xff] }
 0x625   :  { %12672 = vmatprep.subr.mxu0 %v3670_v57 }
 0x626   :  { %12673 = vmatpush3.msra.mxu0 %v3670_v57  ;;  %v3986_v57 = vld [vmem:[#allocation8 + $0xd8] sm:$0xff] }
 0x627   :  { %12674 = vmatprep.subr.mxu0 %v3669_v45 }
 0x628   :  { %12675 = vmatpush3.msra.mxu0 %v3669_v45  ;;  %v4098_v45 = vld [vmem:[#allocation10 + $0x368] sm:$0xff] }
 0x629   :  { %12744 = vmatprep.subr.mxu0 %v15133_v53 }
 0x693   :  { %v12454_v59 = vpop.f32.mrf.mxu0  ;;  %v12492_v60 = vpop.f32.mrf.mxu1 }
 0x694   :  { %v15261_v63 = vadd.f32 %v12492_v60, %v12454_v59  ;;  %v3886_v59 = vld [vmem:[#allocation10 + $0x2c8] sm:$0xff]  ;;  %v4096_v60 = vld [vmem:[#allocation10 + $0x358] sm:$0xff] }
 0x695   :  { %v15263_v3 = vpop.f32.mrf.mxu0  ;;  %v15265_v62 = vpop.f32.mrf.mxu1 }
 0x698   :  { %v12495_v5 = vpop.f32.mrf.mxu1 }
 0x699   :  { %v12457_v17 = vpop.f32.mrf.mxu0 }
 0x69a   :  { %v15267_v6 = vadd.f32 %v12495_v5, %v12457_v17  ;;  %v3885_v17 = vld [vmem:[#allocation10 + $0x2c0] sm:$0xff]  ;;  %v4095_v5 = vld [vmem:[#allocation10 + $0x350] sm:$0xff] }
 0x69b   :  { %v15269_v25 = vpop.f32.mrf.mxu0 }
 0x6a5   :  { %v12516_v1 = vpop.f32.mrf.mxu0 }
 0x6a7   :  { %v3233_v28 = vpop.f32.mrf.mxu0 }
 0x6a8   :  { %12552 = vmatprep.mubr.f32.mxu1 %v3233_v28  ;;  %v4094_v28 = vld [vmem:[#allocation10 + $0x348] sm:$0xff] }
 0x6a9   :  { %v12519_v31 = vpop.f32.mrf.mxu0  ;;  %12553 = vmatmul.mubr.f32.vlgmr.msra.gmra.mxu1 %v12516_v1  ;;  %v3884_v1 = vld [vmem:[#allocation10 + $0x2b8] sm:$0xff] }
 0x6aa   :  { %12583 = vmatpush3.msra.mxu1 %v3476_v56  ;;  %v4097_v56 = vld [vmem:[#allocation10 + $0x360] sm:$0xff] }
 0x6ab   :  { %12584 = vmatprep.subr.mxu1 %v3475_v2  ;;  %v3243_v10 = vpop.f32.mrf.mxu0 }
 0x6ac   :  { %12585 = vmatpush3.msra.mxu1 %v3475_v2  ;;  %12555 = vmatprep.mubr.f32.mxu1 %v3243_v10  ;;  %v3883_v2 = vld [vmem:[#allocation10 + $0x2b0] sm:$0xff]  ;;  %v4092_v10 = vld [vmem:[#allocation10 + $0x338] sm:$0xff] }
 0x6ad   :  { %12586 = vmatprep.subr.mxu1 %v3474_v4  ;;  %12556 = vmatmul.mubr.f32.gmra.mxu1 %v12519_v31  ;;  %v4093_v31 = vld [vmem:[#allocation10 + $0x340] sm:$0xff] }
 0x6ae   :  { %12587 = vmatpush3.msra.mxu1 %v3474_v4  ;;  %v3882_v4 = vld [vmem:[#allocation10 + $0x2a8] sm:$0xff] }
 0x6af   :  { %12588 = vmatprep.subr.mxu1 %v3473_v20 }
 0x6b0   :  { %12589 = vmatpush3.msra.mxu1 %v3473_v20  ;;  %v3881_v20 = vld [vmem:[#allocation10 + $0x2a0] sm:$0xff] }
 0x6b1   :  { %12590 = vmatprep.subr.mxu1 %v3472_v21 }
 0x6b2   :  { %12591 = vmatpush3.msra.mxu1 %v3472_v21  ;;  %v4091_v21 = vld [vmem:[#allocation10 + $0x330] sm:$0xff] }
 0x6b3   :  { %12592 = vmatprep.subr.mxu1 %v3471_v22 }
 0x6b4   :  { %12593 = vmatpush3.msra.mxu1 %v3471_v22  ;;  %v3880_v22 = vld [vmem:[#allocation10 + $0x298] sm:$0xff] }
 0x6b5   :  { %12594 = vmatprep.subr.mxu1 %v3470_v23 }
 0x6b6   :  { %12595 = vmatpush3.msra.mxu1 %v3470_v23  ;;  %v4090_v23 = vld [vmem:[#allocation10 + $0x328] sm:$0xff] }
 0x6b7   :  { %12596 = vmatprep.subr.mxu1 %v3469_v13  ;;  %v12578_v7 = vpop.f32.mrf.mxu0 }
 0x6b8   :  { %12597 = vmatpush3.msra.mxu1 %v3469_v13  ;;  %v3879_v13 = vld [vmem:[#allocation10 + $0x290] sm:$0xff] }
 0x6b9   :  { %12598 = vmatprep.subr.mxu1 %v3468_v24  ;;  %v3441_v40 = vpop.f32.mrf.mxu0 }
 0x6ba   :  { %12599 = vmatpush3.msra.mxu1 %v3468_v24  ;;  %12614 = vmatprep.mubr.f32.mxu1 %v3441_v40  ;;  %v4089_v24 = vld [vmem:[#allocation10 + $0x320] sm:$0xff] }
 0x6bb   :  { %12600 = vmatprep.subr.mxu1 %v3467_v26  ;;  %v12581_v32 = vpop.f32.mrf.mxu0  ;;  %v3877_v40 = vld [vmem:[#allocation10 + $0x280] sm:$0xff] }
 0x6bc   :  { %12601 = vmatpush3.msra.mxu1 %v3467_v26  ;;  %v4088_v26 = vld [vmem:[#allocation10 + $0x318] sm:$0xff] }
 0x6bd   :  { %12602 = vmatprep.subr.mxu1 %v3466_v27  ;;  %v3451_v35 = vpop.f32.mrf.mxu0 }
 0x6be   :  { %12603 = vmatpush3.msra.mxu1 %v3466_v27  ;;  %v4087_v27 = vld [vmem:[#allocation10 + $0x310] sm:$0xff] }
 0x6bf   :  { %12604 = vmatprep.subr.mxu1 %v3465_v38 }
 0x6c0   :  { %12605 = vmatpush3.msra.mxu1 %v3465_v38  ;;  %v4086_v38 = vld [vmem:[#allocation10 + $0x308] sm:$0xff] }
 0x6c1   :  { %12606 = vmatprep.subr.mxu1 %v3464_v29 }
 0x6c2   :  { %12607 = vmatpush3.msra.mxu1 %v3464_v29  ;;  %v4085_v29 = vld [vmem:[#allocation10 + $0x300] sm:$0xff] }
 0x6c3   :  { %12608 = vmatprep.subr.mxu1 %v3463_v9 }
 0x6c4   :  { %12609 = vmatpush3.msra.mxu1 %v3463_v9  ;;  %v3141_v9 = vpop.f32.mrf.mxu1 }
 0x6c5   :  { %12610 = vmatprep.subr.mxu1 %v3462_v30 }
 0x6c6   :  { %12611 = vmatpush3.msra.mxu1 %v3462_v30 }
 0x6c7   :  { %12612 = vmatprep.subr.mxu1 %v3461_v11 }
 0x6c8   :  { %12613 = vmatpush3.msra.mxu1 %v3461_v11 }
 0x6c9   :  { %12615 = vmatmul.mubr.f32.vlgmr.msra.gmra.mxu1 %v12578_v7  ;;  %12682 = vmatprep.subr.mxu1 %v15133_v53  ;;  %v12640_v43 = vpop.f32.mrf.mxu0  ;;  %v3878_v7 = vld [vmem:[#allocation10 + $0x288] sm:$0xff] }
 0x6ca   :  { %12617 = vmatprep.mubr.f32.mxu1 %v3451_v35  ;;  %12683 = vmatpush3.msra.mxu1 %v15133_v53 }
 0x6cb   :  { %12684 = vmatprep.subr.mxu1 %v15135_v61  ;;  %v3649_v37 = vpop.f32.mrf.mxu0 }
 0x6cc   :  { %12685 = vmatpush3.msra.mxu1 %v15135_v61  ;;  %12676 = vmatprep.mubr.f32.mxu0 %v3649_v37 }
 0x6cd   :  { %12618 = vmatmul.mubr.f32.gmra.mxu1 %v12581_v32  ;;  %12686 = vmatprep.subr.mxu1 %v15141_v19  ;;  %v12643_v14 = vpop.f32.mrf.mxu0 }
 0x6ce   :  { %12677 = vmatmul.mubr.f32.vlgmr.msra.gmra.mxu0 %v12640_v43  ;;  %12687 = vmatpush3.msra.mxu1 %v15141_v19 }
 0x6cf   :  { %12745 = vmatpush3.msra.mxu0 %v15133_v53  ;;  %12688 = vmatprep.subr.mxu1 %v15147_v18  ;;  %v3659_v39 = vpop.f32.mrf.mxu0 }
 0x6d0   :  { %12746 = vmatprep.subr.mxu0 %v15135_v61  ;;  %12689 = vmatpush3.msra.mxu1 %v15147_v18 }
 0x6d1   :  { %12747 = vmatpush3.msra.mxu0 %v15135_v61  ;;  %12679 = vmatprep.mubr.f32.mxu0 %v3659_v39 }
 0x6d2   :  { %12690 = vmatprep.subr.mxu1 %v15153_v8  ;;  %12748 = vmatprep.subr.mxu0 %v15141_v19 }
 0x6d3   :  { %12680 = vmatmul.mubr.f32.gmra.mxu0 %v12643_v14  ;;  %12691 = vmatpush3.msra.mxu1 %v15153_v8 }
 0x6d4   :  { %12749 = vmatpush3.msra.mxu0 %v15141_v19  ;;  %12692 = vmatprep.subr.mxu1 %v15159_v33 }
 0x6d5   :  { %12750 = vmatprep.subr.mxu0 %v15147_v18  ;;  %12693 = vmatpush3.msra.mxu1 %v15159_v33 }
 0x6d6   :  { %12751 = vmatpush3.msra.mxu0 %v15147_v18  ;;  %12694 = vmatprep.subr.mxu1 %v15165_v34 }
 0x6d7   :  { %12752 = vmatprep.subr.mxu0 %v15153_v8  ;;  %12695 = vmatpush3.msra.mxu1 %v15165_v34 }
 0x6d8   :  { %12753 = vmatpush3.msra.mxu0 %v15153_v8  ;;  %12696 = vmatprep.subr.mxu1 %v15172_v36 }
 0x6d9   :  { %12754 = vmatprep.subr.mxu0 %v15159_v33  ;;  %12697 = vmatpush3.msra.mxu1 %v15172_v36 }
 0x6da   :  { %12755 = vmatpush3.msra.mxu0 %v15159_v33  ;;  %12698 = vmatprep.subr.mxu1 %v15178_v12 }
 0x6db   :  { %12756 = vmatprep.subr.mxu0 %v15165_v34  ;;  %12699 = vmatpush3.msra.mxu1 %v15178_v12 }
 0x6dc   :  { %12700 = vmatprep.mubr.msk.f32.mxu1 %vm2747_vm3, %v3775_v41  ;;  %12757 = vmatpush3.msra.mxu0 %v15165_v34  ;;  %v3132_v41 = vadd.f32 %v15265_v62, %v15263_v3 }
 0x6dd   :  { %12701 = vmatmul.mubr.msk.f32.vlgmr.msra.gmra.mxu1 %vm2747_vm3, %v3776_v50  ;;  %12706 = vmatprep.subr.mxu1 %v3892_v42 }
 0x6de   :  { %12758 = vmatprep.subr.mxu0 %v15172_v36  ;;  %12707 = vmatpush3.msra.mxu1 %v3892_v42 }
 0x6df   :  { %12759 = vmatpush3.msra.mxu0 %v15172_v36  ;;  %12708 = vmatprep.subr.mxu1 %v3891_v15 }
 0x6e0   :  { %12760 = vmatprep.subr.mxu0 %v15178_v12  ;;  %12703 = vmatprep.mubr.msk.f32.mxu1 %vm2747_vm3, %v3777_v44 }
 0x6e1   :  { %12709 = vmatpush3.msra.mxu1 %v3891_v15  ;;  %12761 = vmatpush3.msra.mxu0 %v15178_v12 }
 0x6e2   :  { %12762 = vmatprep.mubr.msk.f32.mxu0 %vm2747_vm3, %v3983_v16  ;;  %12704 = vmatmul.mubr.msk.f32.gmra.mxu1 %vm2747_vm3, %v3778_v58 }
 0x6e3   :  { %12710 = vmatprep.subr.mxu1 %v3890_v46  ;;  %12763 = vmatmul.mubr.msk.f32.vlgmr.msra.gmra.mxu0 %vm2747_vm3, %v3984_v47 }
 0x6e4   :  { %12768 = vmatprep.subr.mxu0 %v4100_v49  ;;  %12711 = vmatpush3.msra.mxu1 %v3890_v46 }
 0x6e5   :  { %12769 = vmatpush3.msra.mxu0 %v4100_v49  ;;  %12712 = vmatprep.subr.mxu1 %v3889_v51 }
 0x6e6   :  { %12770 = vmatprep.subr.mxu0 %v4099_v52  ;;  %12713 = vmatpush3.msra.mxu1 %v3889_v51 }
 0x6e7   :  { %12765 = vmatprep.mubr.msk.f32.mxu0 %vm2747_vm3, %v3985_v54  ;;  %12771 = vmatpush3.msra.mxu0 %v4099_v52 }
 0x6e8   :  { %12714 = vmatprep.subr.mxu1 %v3888_v55  ;;  %12766 = vmatmul.mubr.msk.f32.gmra.mxu0 %vm2747_vm3, %v3986_v57 }
 0x6e9   :  { %12772 = vmatprep.subr.mxu0 %v4098_v45  ;;  %12715 = vmatpush3.msra.mxu1 %v3888_v55 }
 0x6ea   :  { %12773 = vmatpush3.msra.mxu0 %v4098_v45  ;;  %12716 = vmatprep.subr.mxu1 %v3887_v48 }
 0x6eb   :  { %12774 = vmatprep.subr.mxu0 %v4097_v56  ;;  %12717 = vmatpush3.msra.mxu1 %v3887_v48 }
 0x6ec   :  { %12775 = vmatpush3.msra.mxu0 %v4097_v56  ;;  %12718 = vmatprep.subr.mxu1 %v3886_v59 }
 0x6ed   :  { %12776 = vmatprep.subr.mxu0 %v4096_v60  ;;  %12719 = vmatpush3.msra.mxu1 %v3886_v59 }
 0x6ee   :  { %12777 = vmatpush3.msra.mxu0 %v4096_v60  ;;  %12720 = vmatprep.subr.mxu1 %v3885_v17 }
 0x6ef   :  { %12778 = vmatprep.subr.mxu0 %v4095_v5  ;;  %12721 = vmatpush3.msra.mxu1 %v3885_v17 }
 0x6f0   :  { %12779 = vmatpush3.msra.mxu0 %v4095_v5  ;;  %12722 = vmatprep.subr.mxu1 %v3884_v1  ;;  %v4191_v5 = vld [vmem:[#allocation8 + $0xe0] sm:$0xff] }
 0x6f1   :  { %12780 = vmatprep.subr.mxu0 %v4094_v28  ;;  %12723 = vmatpush3.msra.mxu1 %v3884_v1  ;;  %v4192_v1 = vld [vmem:[#allocation8 + $0xe8] sm:$0xff] }
 0x6f2   :  { %12781 = vmatpush3.msra.mxu0 %v4094_v28  ;;  %12724 = vmatprep.subr.mxu1 %v3883_v2  ;;  %v4193_v28 = vld [vmem:[#allocation8 + $0xf0] sm:$0xff] }
 0x6f3   :  { %12782 = vmatprep.subr.mxu0 %v4093_v31  ;;  %12725 = vmatpush3.msra.mxu1 %v3883_v2  ;;  %v4399_v2 = vld [vmem:[#allocation8 + $0x100] sm:$0xff] }
 0x6f4   :  { %12783 = vmatpush3.msra.mxu0 %v4093_v31  ;;  %12726 = vmatprep.subr.mxu1 %v3882_v4  ;;  %v4308_v31 = vld [vmem:[#allocation10 + $0x3f8] sm:$0xff] }
 0x6f5   :  { %12784 = vmatprep.subr.mxu0 %v4092_v10  ;;  %12727 = vmatpush3.msra.mxu1 %v3882_v4  ;;  %v4194_v4 = vld [vmem:[#allocation8 + $0xf8] sm:$0xff] }
 0x6f6   :  { %12785 = vmatpush3.msra.mxu0 %v4092_v10  ;;  %12728 = vmatprep.subr.mxu1 %v3881_v20  ;;  %v4400_v10 = vld [vmem:[#allocation8 + $0x108] sm:$0xff] }
 0x6f7   :  { %12786 = vmatprep.subr.mxu0 %v4091_v21  ;;  %12729 = vmatpush3.msra.mxu1 %v3881_v20  ;;  %v4401_v20 = vld [vmem:[#allocation8 + $0x110] sm:$0xff] }
 0x6f8   :  { %12787 = vmatpush3.msra.mxu0 %v4091_v21  ;;  %12730 = vmatprep.subr.mxu1 %v3880_v22  ;;  %v4307_v21 = vld [vmem:[#allocation10 + $0x3f0] sm:$0xff] }
 0x6f9   :  { %12788 = vmatprep.subr.mxu0 %v4090_v23  ;;  %12731 = vmatpush3.msra.mxu1 %v3880_v22  ;;  %v4516_v22 = vld [vmem:[#allocation10 + $0x478] sm:$0xff] }
 0x6fa   :  { %12789 = vmatpush3.msra.mxu0 %v4090_v23  ;;  %12732 = vmatprep.subr.mxu1 %v3879_v13  ;;  %v4402_v23 = vld [vmem:[#allocation8 + $0x118] sm:$0xff] }
 0x6fb   :  { %12790 = vmatprep.subr.mxu0 %v4089_v24  ;;  %12733 = vmatpush3.msra.mxu1 %v3879_v13  ;;  %v4306_v13 = vld [vmem:[#allocation10 + $0x3e8] sm:$0xff] }
 0x6fc   :  { %12791 = vmatpush3.msra.mxu0 %v4089_v24  ;;  %12734 = vmatprep.subr.mxu1 %v3878_v7  ;;  %v4515_v24 = vld [vmem:[#allocation10 + $0x470] sm:$0xff] }
 0x6fd   :  { %12792 = vmatprep.subr.mxu0 %v4088_v26  ;;  %12735 = vmatpush3.msra.mxu1 %v3878_v7  ;;  %v4305_v7 = vld [vmem:[#allocation10 + $0x3e0] sm:$0xff] }
 0x6fe   :  { %12793 = vmatpush3.msra.mxu0 %v4088_v26  ;;  %12736 = vmatprep.subr.mxu1 %v3877_v40  ;;  %v4514_v26 = vld [vmem:[#allocation10 + $0x468] sm:$0xff] }
 0x6ff   :  { %12794 = vmatprep.subr.mxu0 %v4087_v27  ;;  %12737 = vmatpush3.msra.mxu1 %v3877_v40  ;;  %v4304_v40 = vld [vmem:[#allocation10 + $0x3d8] sm:$0xff] }
 0x700   :  { %12795 = vmatpush3.msra.mxu0 %v4087_v27  ;;  %12806 = vmatprep.subr.mxu1 %v15133_v53  ;;  %v4513_v27 = vld [vmem:[#allocation10 + $0x460] sm:$0xff] }
 0x701   :  { %12796 = vmatprep.subr.mxu0 %v4086_v38 }
 0x702   :  { %12797 = vmatpush3.msra.mxu0 %v4086_v38  ;;  %v4303_v38 = vld [vmem:[#allocation10 + $0x3d0] sm:$0xff] }
 0x703   :  { %12798 = vmatprep.subr.mxu0 %v4085_v29 }
 0x704   :  { %12799 = vmatpush3.msra.mxu0 %v4085_v29  ;;  %v4302_v29 = vld [vmem:[#allocation10 + $0x3c8] sm:$0xff] }
 0x705   :  { %12868 = vmatprep.subr.mxu0 %v15133_v53 }
 0x769   :  { %v12554_v30 = vpop.f32.mrf.mxu1 }
 0x76a   :  { %v3355_v32 = vadd.f32 %v12554_v30, %v15261_v63  ;;  %v3142_v63 = vadd.f32 %v3141_v9, %v15269_v25  ;;  %v4512_v9 = vld [vmem:[#allocation10 + $0x458] sm:$0xff]  ;;  %v4301_v30 = vld [vmem:[#allocation10 + $0x3c0] sm:$0xff] }
 0x76b   :  { %v3335_v11 = vpop.f32.mrf.mxu1 }
 0x76c   :  { %v3354_v42 = vadd.f32 %v3335_v11, %v3132_v41  ;;  %v4300_v11 = vld [vmem:[#allocation10 + $0x3b8] sm:$0xff]  ;;  %v4297_v41 = vld [vmem:[#allocation10 + $0x3a0] sm:$0xff] }
 0x76d   :  { %v12557_v35 = vpop.f32.mrf.mxu1 }
 0x76e   :  { %v3357_v43 = vadd.f32 %v12557_v35, %v15267_v6  ;;  %v4510_v35 = vld [vmem:[#allocation10 + $0x448] sm:$0xff] }
 0x76f   :  { %v3345_v37 = vpop.f32.mrf.mxu1 }
 0x770   :  { %v3356_v6 = vadd.f32 %v3345_v37, %v3142_v63  ;;  %v4509_v37 = vld [vmem:[#allocation10 + $0x440] sm:$0xff]  ;;  %v4504_v63 = vld [vmem:[#allocation10 + $0x418] sm:$0xff] }
 0x789   :  { %v12616_v14 = vpop.f32.mrf.mxu1 }
 0x78a   :  { %v3563_v39 = vadd.f32 %v12616_v14, %v3355_v32  ;;  %v4511_v32 = vld [vmem:[#allocation10 + $0x450] sm:$0xff]  ;;  %v4298_v14 = vld [vmem:[#allocation10 + $0x3a8] sm:$0xff] }
 0x78b   :  { %v3543_v50 = vpop.f32.mrf.mxu1 }
 0x78c   :  { %v3562_v58 = vadd.f32 %v3543_v50, %v3354_v42  ;;  %v4507_v50 = vld [vmem:[#allocation10 + $0x430] sm:$0xff]  ;;  %v4296_v42 = vld [vmem:[#allocation10 + $0x398] sm:$0xff] }
 0x78d   :  { %v12619_v15 = vpop.f32.mrf.mxu1 }
 0x78e   :  { %v3565_v44 = vadd.f32 %v12619_v15, %v3357_v43  ;;  %v12678_v16 = vpop.f32.mrf.mxu0  ;;  %v4299_v43 = vld [vmem:[#allocation10 + $0x3b0] sm:$0xff]  ;;  %v4506_v15 = vld [vmem:[#allocation10 + $0x428] sm:$0xff] }
 0x78f   :  { %v15320_v46 = vadd.f32 %v12678_v16, %v3563_v39  ;;  %v3553_v49 = vpop.f32.mrf.mxu1  ;;  %v4508_v39 = vld [vmem:[#allocation10 + $0x438] sm:$0xff]  ;;  %v4505_v16 = vld [vmem:[#allocation10 + $0x420] sm:$0xff] }
 0x790   :  { %v3751_v47 = vpop.f32.mrf.mxu0  ;;  %v3564_v54 = vadd.f32 %v3553_v49, %v3356_v6  ;;  %v4503_v49 = vld [vmem:[#allocation10 + $0x410] sm:$0xff]  ;;  %v4502_v6 = vld [vmem:[#allocation10 + $0x408] sm:$0xff] }
 0x791   :  { %v15323_v51 = vadd.f32 %v3751_v47, %v3562_v58  ;;  %v4294_v58 = vld [vmem:[#allocation10 + $0x388] sm:$0xff]  ;;  %v4293_v47 = vld [vmem:[#allocation10 + $0x380] sm:$0xff] }
 0x793   :  { %v12681_v52 = vpop.f32.mrf.mxu0 }
 0x794   :  { %v15325_v55 = vadd.f32 %v12681_v52, %v3565_v44  ;;  %v4295_v44 = vld [vmem:[#allocation10 + $0x390] sm:$0xff]  ;;  %v4501_v52 = vld [vmem:[#allocation10 + $0x400] sm:$0xff] }
 0x795   :  { %v3761_v3 = vpop.f32.mrf.mxu0 }
 0x796   :  { %v15327_v62 = vadd.f32 %v3761_v3, %v3564_v54 }
 0x79d   :  { %v12702_v57 = vpop.f32.mrf.mxu1 }
 0x79f   :  { %v3857_v45 = vpop.f32.mrf.mxu1 }
 0x7a0   :  { %12738 = vmatprep.mubr.f32.mxu1 %v3857_v45 }
 0x7a1   :  { %12739 = vmatmul.mubr.f32.vlgmr.msra.gmra.mxu1 %v12702_v57 }
 0x7a2   :  { %v12705_v48 = vpop.f32.mrf.mxu1  ;;  %12807 = vmatpush3.msra.mxu1 %v15133_v53 }
 0x7a3   :  { %v12764_v25 = vpop.f32.mrf.mxu0  ;;  %12808 = vmatprep.subr.mxu1 %v15135_v61 }
 0x7a4   :  { %v3867_v56 = vpop.f32.mrf.mxu1  ;;  %12809 = vmatpush3.msra.mxu1 %v15135_v61 }
 0x7a5   :  { %v4065_v59 = vpop.f32.mrf.mxu0  ;;  %12741 = vmatprep.mubr.f32.mxu1 %v3867_v56  ;;  %12810 = vmatprep.subr.mxu1 %v15141_v19 }
 0x7a6   :  { %12800 = vmatprep.mubr.f32.mxu0 %v4065_v59  ;;  %12742 = vmatmul.mubr.f32.gmra.mxu1 %v12705_v48 }
 0x7a7   :  { %12801 = vmatmul.mubr.f32.vlgmr.msra.gmra.mxu0 %v12764_v25  ;;  %12811 = vmatpush3.msra.mxu1 %v15141_v19 }
 0x7a8   :  { %v12767_v60 = vpop.f32.mrf.mxu0  ;;  %12869 = vmatpush3.msra.mxu0 %v15133_v53  ;;  %12812 = vmatprep.subr.mxu1 %v15147_v18 }
 0x7a9   :  { %12870 = vmatprep.subr.mxu0 %v15135_v61  ;;  %12813 = vmatpush3.msra.mxu1 %v15147_v18 }
 0x7aa   :  { %v4075_v17 = vpop.f32.mrf.mxu0  ;;  %12871 = vmatpush3.msra.mxu0 %v15135_v61  ;;  %12814 = vmatprep.subr.mxu1 %v15153_v8 }
 0x7ab   :  { %12803 = vmatprep.mubr.f32.mxu0 %v4075_v17  ;;  %12872 = vmatprep.subr.mxu0 %v15141_v19 }
 0x7ac   :  { %12804 = vmatmul.mubr.f32.gmra.mxu0 %v12767_v60  ;;  %12815 = vmatpush3.msra.mxu1 %v15153_v8 }
 0x7ad   :  { %12873 = vmatpush3.msra.mxu0 %v15141_v19  ;;  %12816 = vmatprep.subr.mxu1 %v15159_v33 }
 0x7ae   :  { %12874 = vmatprep.subr.mxu0 %v15147_v18  ;;  %12817 = vmatpush3.msra.mxu1 %v15159_v33 }
 0x7af   :  { %12875 = vmatpush3.msra.mxu0 %v15147_v18  ;;  %12818 = vmatprep.subr.mxu1 %v15165_v34 }
 0x7b0   :  { %12876 = vmatprep.subr.mxu0 %v15153_v8  ;;  %12819 = vmatpush3.msra.mxu1 %v15165_v34 }
 0x7b1   :  { %12877 = vmatpush3.msra.mxu0 %v15153_v8  ;;  %12820 = vmatprep.subr.mxu1 %v15172_v36 }
 0x7b2   :  { %12878 = vmatprep.subr.mxu0 %v15159_v33  ;;  %12821 = vmatpush3.msra.mxu1 %v15172_v36 }
 0x7b3   :  { %12879 = vmatpush3.msra.mxu0 %v15159_v33  ;;  %12822 = vmatprep.subr.mxu1 %v15178_v12 }
 0x7b4   :  { %12880 = vmatprep.subr.mxu0 %v15165_v34  ;;  %12823 = vmatpush3.msra.mxu1 %v15178_v12 }
 0x7b5   :  { %12824 = vmatprep.mubr.msk.f32.mxu1 %vm2747_vm3, %v4191_v5  ;;  %12881 = vmatpush3.msra.mxu0 %v15165_v34 }
 0x7b6   :  { %12825 = vmatmul.mubr.msk.f32.vlgmr.msra.gmra.mxu1 %vm2747_vm3, %v4192_v1  ;;  %12882 = vmatprep.subr.mxu0 %v15172_v36 }
 0x7b7   :  { %12883 = vmatpush3.msra.mxu0 %v15172_v36  ;;  %12827 = vmatprep.mubr.msk.f32.mxu1 %vm2747_vm3, %v4193_v28 }
 0x7b8   :  { %12884 = vmatprep.subr.mxu0 %v15178_v12  ;;  %12886 = vmatprep.mubr.msk.f32.mxu0 %vm2747_vm3, %v4399_v2 }
 0x7b9   :  { %12885 = vmatpush3.msra.mxu0 %v15178_v12  ;;  %12830 = vmatprep.subr.mxu1 %v4308_v31 }
 0x7ba   :  { %12828 = vmatmul.mubr.msk.f32.gmra.mxu1 %vm2747_vm3, %v4194_v4  ;;  %12887 = vmatmul.mubr.msk.f32.vlgmr.msra.gmra.mxu0 %vm2747_vm3, %v4400_v10 }
 0x7bb   :  { %12889 = vmatprep.mubr.msk.f32.mxu0 %vm2747_vm3, %v4401_v20  ;;  %12831 = vmatpush3.msra.mxu1 %v4308_v31 }
 0x7bc   :  { %12832 = vmatprep.subr.mxu1 %v4307_v21  ;;  %12892 = vmatprep.subr.mxu0 %v4516_v22 }
 0x7bd   :  { %12833 = vmatpush3.msra.mxu1 %v4307_v21  ;;  %12893 = vmatpush3.msra.mxu0 %v4516_v22 }
 0x7be   :  { %12890 = vmatmul.mubr.msk.f32.gmra.mxu0 %vm2747_vm3, %v4402_v23  ;;  %12834 = vmatprep.subr.mxu1 %v4306_v13  ;;  %v4727_v23 = vld [vmem:[#allocation14 + $0x78] sm:$0xff] }
 0x7bf   :  { %12835 = vmatpush3.msra.mxu1 %v4306_v13  ;;  %12894 = vmatprep.subr.mxu0 %v4515_v24  ;;  %v4726_v13 = vld [vmem:[#allocation14 + $0x70] sm:$0xff] }
 0x7c0   :  { %12836 = vmatprep.subr.mxu1 %v4305_v7  ;;  %12895 = vmatpush3.msra.mxu0 %v4515_v24  ;;  %v4725_v24 = vld [vmem:[#allocation14 + $0x68] sm:$0xff] }
 0x7c1   :  { %12837 = vmatpush3.msra.mxu1 %v4305_v7  ;;  %12896 = vmatprep.subr.mxu0 %v4514_v26  ;;  %v4724_v7 = vld [vmem:[#allocation14 + $0x60] sm:$0xff] }
 0x7c2   :  { %12838 = vmatprep.subr.mxu1 %v4304_v40  ;;  %12897 = vmatpush3.msra.mxu0 %v4514_v26  ;;  %v4723_v26 = vld [vmem:[#allocation14 + $0x58] sm:$0xff] }
 0x7c3   :  { %12839 = vmatpush3.msra.mxu1 %v4304_v40  ;;  %12898 = vmatprep.subr.mxu0 %v4513_v27  ;;  %v4722_v40 = vld [vmem:[#allocation14 + $0x50] sm:$0xff] }
 0x7c4   :  { %12840 = vmatprep.subr.mxu1 %v4303_v38  ;;  %12899 = vmatpush3.msra.mxu0 %v4513_v27  ;;  %v4721_v27 = vld [vmem:[#allocation14 + $0x48] sm:$0xff] }
 0x7c5   :  { %12841 = vmatpush3.msra.mxu1 %v4303_v38  ;;  %12900 = vmatprep.subr.mxu0 %v4512_v9  ;;  %v4720_v38 = vld [vmem:[#allocation14 + $0x40] sm:$0xff] }
 0x7c6   :  { %12842 = vmatprep.subr.mxu1 %v4302_v29  ;;  %12901 = vmatpush3.msra.mxu0 %v4512_v9  ;;  %v4718_v9 = vld [vmem:[#allocation14 + $0x30] sm:$0xff] }
 0x7c7   :  { %12843 = vmatpush3.msra.mxu1 %v4302_v29  ;;  %12902 = vmatprep.subr.mxu0 %v4511_v32  ;;  %v4719_v29 = vld [vmem:[#allocation14 + $0x38] sm:$0xff] }
 0x7c8   :  { %12844 = vmatprep.subr.mxu1 %v4301_v30  ;;  %12903 = vmatpush3.msra.mxu0 %v4511_v32  ;;  %v4716_v32 = vld [vmem:[#allocation14 + $0x20] sm:$0xff] }
 0x7c9   :  { %12845 = vmatpush3.msra.mxu1 %v4301_v30  ;;  %12904 = vmatprep.subr.mxu0 %v4510_v35  ;;  %v4717_v30 = vld [vmem:[#allocation14 + $0x28] sm:$0xff] }
 0x7ca   :  { %12846 = vmatprep.subr.mxu1 %v4300_v11  ;;  %12905 = vmatpush3.msra.mxu0 %v4510_v35  ;;  %v4714_v35 = vld [vmem:[#allocation14 + $0x10] sm:$0xff] }
 0x7cb   :  { %12847 = vmatpush3.msra.mxu1 %v4300_v11  ;;  %12906 = vmatprep.subr.mxu0 %v4509_v37  ;;  %v4715_v11 = vld [vmem:[#allocation14 + $0x18] sm:$0xff] }
 0x7cc   :  { %12848 = vmatprep.subr.mxu1 %v4299_v43  ;;  %12907 = vmatpush3.msra.mxu0 %v4509_v37 }
 0x7cd   :  { %12849 = vmatpush3.msra.mxu1 %v4299_v43  ;;  %12908 = vmatprep.subr.mxu0 %v4508_v39  ;;  %v4713_v43 = vld [vmem:[#allocation14 + $0x8] sm:$0xff] }
 0x7ce   :  { %12850 = vmatprep.subr.mxu1 %v4298_v14  ;;  %12909 = vmatpush3.msra.mxu0 %v4508_v39 }
 0x7cf   :  { %12851 = vmatpush3.msra.mxu1 %v4298_v14  ;;  %12910 = vmatprep.subr.mxu0 %v4507_v50 }
 0x7d0   :  { %12852 = vmatprep.subr.mxu1 %v4297_v41  ;;  %12911 = vmatpush3.msra.mxu0 %v4507_v50 }
 0x7d1   :  { %12853 = vmatpush3.msra.mxu1 %v4297_v41  ;;  %12912 = vmatprep.subr.mxu0 %v4506_v15 }
 0x7d2   :  { %12854 = vmatprep.subr.mxu1 %v4296_v42  ;;  %12913 = vmatpush3.msra.mxu0 %v4506_v15 }
 0x7d3   :  { %12855 = vmatpush3.msra.mxu1 %v4296_v42  ;;  %12914 = vmatprep.subr.mxu0 %v4505_v16 }
 0x7d4   :  { %12856 = vmatprep.subr.mxu1 %v4295_v44  ;;  %12915 = vmatpush3.msra.mxu0 %v4505_v16 }
 0x7d5   :  { %12857 = vmatpush3.msra.mxu1 %v4295_v44  ;;  %12916 = vmatprep.subr.mxu0 %v4504_v63  ;;  %v10570_v44 = vld [vmem:[#allocation11] ss:$0 sm:$0xff] }
 0x7d6   :  { %12858 = vmatprep.subr.mxu1 %v4294_v58  ;;  %12917 = vmatpush3.msra.mxu0 %v4504_v63 }
 0x7d7   :  { %12859 = vmatpush3.msra.mxu1 %v4294_v58  ;;  %12918 = vmatprep.subr.mxu0 %v4503_v49 }
 0x7d8   :  { %12860 = vmatprep.subr.mxu1 %v4293_v47  ;;  %12919 = vmatpush3.msra.mxu0 %v4503_v49 }
 0x7d9   :  { %12861 = vmatpush3.msra.mxu1 %v4293_v47  ;;  %12920 = vmatprep.subr.mxu0 %v4502_v6 }
 0x7da   :  { %12930 = vmatprep.subr.mxu1 %v14010_v0  ;;  %12921 = vmatpush3.msra.mxu0 %v4502_v6 }
 0x7db   :  { %12922 = vmatprep.subr.mxu0 %v4501_v52 }
 0x7dc   :  { %12923 = vmatpush3.msra.mxu0 %v4501_v52 }
 0x7dd   :  { %12987 = vmatprep.subr.mxu0 %v14010_v0 }
 0x861   :  { %v12740_v54 = vpop.f32.mrf.mxu1 }
 0x862   :  { %v3979_v3 = vadd.f32 %v12740_v54, %v15320_v46 }
 0x863   :  { %v3959_v57 = vpop.f32.mrf.mxu1 }
 0x864   :  { %v3978_v56 = vadd.f32 %v3959_v57, %v15323_v51 }
 0x866   :  { %v12743_v45 = vpop.f32.mrf.mxu1 }
 0x867   :  { %v3981_v48 = vadd.f32 %v12743_v45, %v15325_v55  ;;  %v12802_v25 = vpop.f32.mrf.mxu0 }
 0x868   :  { %v15376_v59 = vadd.f32 %v12802_v25, %v3979_v3  ;;  %v3969_v17 = vpop.f32.mrf.mxu1 }
 0x869   :  { %v4167_v60 = vpop.f32.mrf.mxu0  ;;  %v3980_v28 = vadd.f32 %v3969_v17, %v15327_v62 }
 0x86a   :  { %v15378_v5 = vadd.f32 %v4167_v60, %v3978_v56 }
 0x86c   :  { %v12805_v1 = vpop.f32.mrf.mxu0 }
 0x86d   :  { %v15381_v2 = vadd.f32 %v12805_v1, %v3981_v48 }
 0x86e   :  { %v4177_v31 = vpop.f32.mrf.mxu0 }
 0x86f   :  { %v15383_v46 = vadd.f32 %v4177_v31, %v3980_v28 }
 0x876   :  { %v12826_v4 = vpop.f32.mrf.mxu1 }
 0x878   :  { %v4273_v10 = vpop.f32.mrf.mxu1 }
 0x879   :  { %12862 = vmatprep.mubr.f32.mxu1 %v4273_v10 }
 0x87a   :  { %v12829_v55 = vpop.f32.mrf.mxu1  ;;  %12863 = vmatmul.mubr.f32.vlgmr.msra.gmra.mxu1 %v12826_v4  ;;  %v12888_v51 = vpop.f32.mrf.mxu0 }
 0x87c   :  { %v4283_v20 = vpop.f32.mrf.mxu1  ;;  %v4481_v21 = vpop.f32.mrf.mxu0 }
 0x87d   :  { %12865 = vmatprep.mubr.f32.mxu1 %v4283_v20  ;;  %12924 = vmatprep.mubr.f32.mxu0 %v4481_v21 }
 0x87e   :  { %12866 = vmatmul.mubr.f32.gmra.mxu1 %v12829_v55  ;;  %v12891_v22 = vpop.f32.mrf.mxu0  ;;  %12925 = vmatmul.mubr.f32.vlgmr.msra.gmra.mxu0 %v12888_v51 }
 0x87f   :  { %12938 = vmatprep.mubr.msk.f32.mxu1 %vm14011_vm0, %v14010_v0  ;;  %12988 = vmatpush3.msra.mxu0 %v4727_v23 }
 0x880   :  { %v4491_v62 = vpop.f32.mrf.mxu0  ;;  %12989 = vmatprep.subr.mxu0 %v14010_v0 }
 0x881   :  { %12927 = vmatprep.mubr.f32.mxu0 %v4491_v62  ;;  %12990 = vmatpush3.msra.mxu0 %v4726_v13 }
 0x882   :  { %12928 = vmatmul.mubr.f32.gmra.mxu0 %v12891_v22  ;;  %12991 = vmatprep.subr.mxu0 %v14010_v0 }
 0x883   :  { %13019 = vmatprep.mubr.msk.f32.mxu0 %vm14011_vm0, %v14010_v0  ;;  %12992 = vmatpush3.msra.mxu0 %v4725_v24  ;;  %v4637_v24 = vld [vmem:[#allocation13] sm:$0xff] }
 0x884   :  { %12993 = vmatprep.subr.mxu0 %v14010_v0 }
 0x885   :  { %12994 = vmatpush3.msra.mxu0 %v4724_v7  ;;  %v4729_v7 = vld [vmem:[#allocation13 + $0x8] sm:$0xff] }
 0x886   :  { %12995 = vmatprep.subr.mxu0 %v14010_v0 }
 0x887   :  { %12996 = vmatpush3.msra.mxu0 %v4723_v26  ;;  %v4819_v26 = vld [vmem:[#allocation14 + $0xf8] sm:$0xff] }
 0x888   :  { %12997 = vmatprep.subr.mxu0 %v14010_v0 }
 0x889   :  { %12998 = vmatpush3.msra.mxu0 %v4722_v40  ;;  %v4818_v40 = vld [vmem:[#allocation14 + $0xf0] sm:$0xff] }
 0x88a   :  { %12999 = vmatprep.subr.mxu0 %v14010_v0 }
 0x88b   :  { %13000 = vmatpush3.msra.mxu0 %v4721_v27  ;;  %v4817_v27 = vld [vmem:[#allocation14 + $0xe8] sm:$0xff] }
 0x88c   :  { %13001 = vmatprep.subr.mxu0 %v14010_v0 }
 0x88d   :  { %13002 = vmatpush3.msra.mxu0 %v4720_v38  ;;  %v4816_v38 = vld [vmem:[#allocation14 + $0xe0] sm:$0xff] }
 0x88e   :  { %13003 = vmatprep.subr.mxu0 %v14010_v0 }
 0x88f   :  { %13004 = vmatpush3.msra.mxu0 %v4719_v29  ;;  %v4815_v29 = vld [vmem:[#allocation14 + $0xd8] sm:$0xff] }
 0x890   :  { %13005 = vmatprep.subr.mxu0 %v14010_v0 }
 0x891   :  { %13006 = vmatpush3.msra.mxu0 %v4718_v9  ;;  %v4814_v9 = vld [vmem:[#allocation14 + $0xd0] sm:$0xff] }
 0x892   :  { %13007 = vmatprep.subr.mxu0 %v14010_v0 }
 0x893   :  { %13008 = vmatpush3.msra.mxu0 %v4717_v30  ;;  %v4813_v30 = vld [vmem:[#allocation14 + $0xc8] sm:$0xff] }
 0x894   :  { %13009 = vmatprep.subr.mxu0 %v14010_v0 }
 0x895   :  { %13010 = vmatpush3.msra.mxu0 %v4716_v32  ;;  %v4812_v32 = vld [vmem:[#allocation14 + $0xc0] sm:$0xff] }
 0x896   :  { %13011 = vmatprep.subr.mxu0 %v14010_v0 }
 0x897   :  { %13012 = vmatpush3.msra.mxu0 %v4715_v11  ;;  %v4811_v11 = vld [vmem:[#allocation14 + $0xb8] sm:$0xff] }
 0x898   :  { %13013 = vmatprep.subr.mxu0 %v14010_v0 }
 0x899   :  { %13014 = vmatpush3.msra.mxu0 %v4714_v35  ;;  %v4810_v35 = vld [vmem:[#allocation14 + $0xb0] sm:$0xff] }
 0x89a   :  { %13015 = vmatprep.subr.mxu0 %v14010_v0 }
 0x89b   :  { %13016 = vmatpush3.msra.mxu0 %v4713_v43  ;;  %v4809_v43 = vld [vmem:[#allocation14 + $0xa8] sm:$0xff] }
 0x89c   :  { %13017 = vmatprep.subr.mxu0 %v14010_v0 }
 0x93a   :  { %v12864_v37 = vpop.f32.mrf.mxu1 }
 0x93b   :  { %v4395_v39 = vadd.f32 %v12864_v37, %v15376_v59  ;;  %v4808_v37 = vld [vmem:[#allocation14 + $0xa0] sm:$0xff] }
 0x93c   :  { %v4375_v14 = vpop.f32.mrf.mxu1 }
 0x93d   :  { %v4394_v42 = vadd.f32 %v4375_v14, %v15378_v5  ;;  %v4712_v14 = vld [vmem:[#allocation14] sm:$0xff] }
 0x93e   :  { %v12867_v41 = vpop.f32.mrf.mxu1  ;;  %v12926_v50 = vpop.f32.mrf.mxu0  ;;  %13018 = vmatpush3.msra.mxu0 %v4712_v14  ;;  %v5287_v14 = vld [vmem:[#allocation13 + $0x20] sm:$0xff] }
 0x93f   :  { %v4603_v15 = vadd.f32 %v12926_v50, %v4395_v39  ;;  %v4397_v58 = vadd.f32 %v12867_v41, %v15381_v2  ;;  %v4807_v39 = vld [vmem:[#allocation14 + $0x98] sm:$0xff]  ;;  %13033 = vmatprep.subr.mxu0 %v14010_v0  ;;  %v4806_v41 = vld [vmem:[#allocation14 + $0x90] sm:$0xff]  ;;  %v4805_v50 = vld [vmem:[#allocation14 + $0x88] sm:$0xff] }
 0x940   :  { %v4583_v16 = vpop.f32.mrf.mxu0  ;;  %v4385_v63 = vpop.f32.mrf.mxu1 }
 0x941   :  { %v4602_v47 = vadd.f32 %v4583_v16, %v4394_v42  ;;  %v4614_v49 = vadd.f32 %v10570_v44, %v4603_v15  ;;  %v4396_v3 = vadd.f32 %v4385_v63, %v15383_v46  ;;  %v4804_v42 = vld [vmem:[#allocation14 + $0x80] sm:$0xff]  ;;  %v5051_v15 = vld [vmem:[#allocation14 + $0x178] sm:$0xff]  ;;  %v5050_v16 = vld [vmem:[#allocation14 + $0x170] sm:$0xff] }
 0x942   :  { %v12929_v6 = vpop.f32.mrf.mxu0  ;;  %v5049_v63 = vld [vmem:[#allocation14 + $0x168] sm:$0xff] }
 0x943   :  { %v4613_v52 = vadd.f32 %v10570_v44, %v4602_v47  ;;  %v4605_v54 = vadd.f32 %v12929_v6, %v4397_v58  ;;  %v4622_v48 = vmul.f32 0.70710677, %v4614_v49  ;;  %v4618_v20 = vmul.f32 0.5, %v4614_v49  ;;  %v5048_v47 = vld [vmem:[#allocation14 + $0x160] sm:$0xff]  ;;  %v5047_v6 = vld [vmem:[#allocation14 + $0x158] sm:$0xff] }
 0x944   :  { %v4593_v57 = vpop.f32.mrf.mxu0 }
 0x945   :  { %v4616_v45 = vadd.f32 %v10570_v44, %v4605_v54  ;;  %v4604_v25 = vadd.f32 %v4593_v57, %v4396_v3  ;;  %v4621_v56 = vmul.f32 0.70710677, %v4613_v52  ;;  %v4617_v23 = vmul.f32 0.5, %v4613_v52  ;;  %v5046_v54 = vld [vmem:[#allocation14 + $0x150] sm:$0xff]  ;;  %v5045_v3 = vld [vmem:[#allocation14 + $0x148] sm:$0xff] }
 0x946   :  { %v4961_v57 = vld [vmem:[#allocation13 + $0x10] sm:$0xff] }
 0x947   :  { %v4624_v59 = vmul.f32 0.70710677, %v4616_v45  ;;  %v4615_v60 = vadd.f32 %v10570_v44, %v4604_v25  ;;  %v4620_v28 = vmul.f32 0.5, %v4616_v45  ;;  %v5044_v45 = vld [vmem:[#allocation14 + $0x140] sm:$0xff]  ;;  %v5214_v25 = vld [vmem:[#allocation14 + $0x1f8] sm:$0xff] }
 0x949   :  { %13630 = verf.f32 %v4624_v59  ;;  %v4623_v17 = vmul.f32 0.70710677, %v4615_v60  ;;  %v4619_v55 = vmul.f32 0.5, %v4615_v60  ;;  %v5212_v59 = vld [vmem:[#allocation14 + $0x1e8] sm:$0xff]  ;;  %v5211_v60 = vld [vmem:[#allocation14 + $0x1e0] sm:$0xff] }
 0x94a   :  { %13632 = verf.f32 %v4622_v48  ;;  %v5124_v48 = vld [vmem:[#allocation13 + $0x18] sm:$0xff] }
 0x94b   :  { %13634 = verf.f32 %v4621_v56  ;;  %v5213_v56 = vld [vmem:[#allocation14 + $0x1f0] sm:$0xff] }
 0x94c   :  { %13636 = verf.f32 %v4623_v17  ;;  %v5043_v17 = vld [vmem:[#allocation14 + $0x138] sm:$0xff] }
 0x956   :  { %v13631_v5 = vpop.eup %13630 }
 0x957   :  { %v13633_v1 = vpop.eup %13632  ;;  %v4632_v2 = vadd.f32 1.0, %v13631_v5  ;;  %v5210_v5 = vld [vmem:[#allocation14 + $0x1d8] sm:$0xff] }
 0x958   :  { %v13635_v31 = vpop.eup %13634  ;;  %v4630_v46 = vadd.f32 1.0, %v13633_v1  ;;  %v5042_v1 = vld [vmem:[#allocation14 + $0x130] sm:$0xff] }
 0x959   :  { %v13637_v4 = vpop.eup %13636  ;;  %v15408_v10 = vmul.f32 %v4632_v2, %v4620_v28  ;;  %v4629_v21 = vadd.f32 1.0, %v13635_v31  ;;  %v5209_v28 = vld [vmem:[#allocation14 + $0x1d0] sm:$0xff]  ;;  %v5041_v2 = vld [vmem:[#allocation14 + $0x128] sm:$0xff] }
 0x95a   :  { %v4631_v51 = vadd.f32 1.0, %v13637_v4  ;;  %v15414_v62 = vmul.f32 %v4630_v46, %v4618_v20  ;;  %v5208_v31 = vld [vmem:[#allocation14 + $0x1c8] sm:$0xff]  ;;  %v5040_v4 = vld [vmem:[#allocation14 + $0x120] sm:$0xff]  ;;  %v5038_v20 = vld [vmem:[#allocation14 + $0x110] sm:$0xff] }
 0x95b   :  { %12931 = vmatpush3.msra.mxu1 %v15408_v10  ;;  %v15418_v13 = vmul.f32 %v4629_v21, %v4617_v23  ;;  %v5207_v46 = vld [vmem:[#allocation14 + $0x1c0] sm:$0xff]  ;;  %v5205_v21 = vld [vmem:[#allocation14 + $0x1b0] sm:$0xff]  ;;  %v5037_v23 = vld [vmem:[#allocation14 + $0x108] sm:$0xff] }
 0x95c   :  { %v15411_v22 = vmul.f32 %v4631_v51, %v4619_v55  ;;  %12932 = vmatprep.subr.mxu1 %v14010_v0  ;;  %v5039_v55 = vld [vmem:[#allocation14 + $0x118] sm:$0xff] }
 0x95d   :  { %v5206_v51 = vld [vmem:[#allocation14 + $0x1b8] sm:$0xff] }
 0x95e   :  { %12933 = vmatpush3.msra.mxu1 %v15411_v22 }
 0x95f   :  { %12934 = vmatprep.subr.mxu1 %v14010_v0 }
 0x960   :  { %12935 = vmatpush3.msra.mxu1 %v15414_v62 }
 0x961   :  { %12936 = vmatprep.subr.mxu1 %v14010_v0 }
 0x962   :  { %12937 = vmatpush3.msra.mxu1 %v15418_v13 }
 0x963   :  { %12939 = vmatmul.mubr.msk.f32.vlgmr.msra.gmra.mxu1 %vm4638_vm4, %v4637_v24  ;;  %12941 = vmatprep.subr.mxu1 %v14010_v0  ;;  %v5204_v24 = vld [vmem:[#allocation14 + $0x1a8] sm:$0xff] }
 0x964   :  { %12942 = vmatpush3.msra.mxu1 %v15408_v10  ;;  %12949 = vmatprep.mubr.msk.f32.mxu1 %vm14011_vm0, %v14010_v0 }
 0x965   :  { %12943 = vmatprep.subr.mxu1 %v14010_v0 }
 0x966   :  { %12944 = vmatpush3.msra.mxu1 %v15411_v22 }
 0x967   :  { %12945 = vmatprep.subr.mxu1 %v14010_v0 }
 0x968   :  { %12946 = vmatpush3.msra.mxu1 %v15414_v62 }
 0x969   :  { %12947 = vmatprep.subr.mxu1 %v14010_v0 }
 0x96a   :  { %12948 = vmatpush3.msra.mxu1 %v15418_v13 }
 0x96b   :  { %12950 = vmatmul.mubr.msk.f32.vlgmr.msra.gmra.mxu1 %vm4638_vm4, %v4729_v7  ;;  %12952 = vmatprep.subr.mxu1 %v14010_v0  ;;  %v5036_v7 = vld [vmem:[#allocation14 + $0x100] sm:$0xff] }
 0x96c   :  { %12953 = vmatpush3.msra.mxu1 %v4819_v26  ;;  %12984 = vmatprep.mubr.msk.f32.mxu1 %vm14011_vm0, %v14010_v0  ;;  %v5203_v26 = vld [vmem:[#allocation14 + $0x1a0] sm:$0xff] }
 0x96d   :  { %12954 = vmatprep.subr.mxu1 %v14010_v0 }
 0x96e   :  { %12955 = vmatpush3.msra.mxu1 %v4818_v40  ;;  %v5202_v40 = vld [vmem:[#allocation14 + $0x198] sm:$0xff] }
 0x96f   :  { %12956 = vmatprep.subr.mxu1 %v14010_v0 }
 0x970   :  { %12957 = vmatpush3.msra.mxu1 %v4817_v27  ;;  %v5201_v27 = vld [vmem:[#allocation14 + $0x190] sm:$0xff] }
 0x971   :  { %12958 = vmatprep.subr.mxu1 %v14010_v0 }
 0x972   :  { %12959 = vmatpush3.msra.mxu1 %v4816_v38  ;;  %v5200_v38 = vld [vmem:[#allocation14 + $0x188] sm:$0xff] }
 0x973   :  { %12960 = vmatprep.subr.mxu1 %v14010_v0 }
 0x974   :  { %12961 = vmatpush3.msra.mxu1 %v4815_v29  ;;  %v5199_v29 = vld [vmem:[#allocation14 + $0x180] sm:$0xff] }
 0x975   :  { %12962 = vmatprep.subr.mxu1 %v14010_v0 }
 0x976   :  { %12963 = vmatpush3.msra.mxu1 %v4814_v9 }
 0x977   :  { %12964 = vmatprep.subr.mxu1 %v14010_v0 }
 0x978   :  { %12965 = vmatpush3.msra.mxu1 %v4813_v30 }
 0x979   :  { %12966 = vmatprep.subr.mxu1 %v14010_v0 }
 0x97a   :  { %12967 = vmatpush3.msra.mxu1 %v4812_v32 }
 0x97b   :  { %12968 = vmatprep.subr.mxu1 %v14010_v0 }
 0x97c   :  { %12969 = vmatpush3.msra.mxu1 %v4811_v11 }
 0x97d   :  { %12970 = vmatprep.subr.mxu1 %v14010_v0 }
 0x97e   :  { %12971 = vmatpush3.msra.mxu1 %v4810_v35 }
 0x97f   :  { %12972 = vmatprep.subr.mxu1 %v14010_v0 }
 0x980   :  { %12973 = vmatpush3.msra.mxu1 %v4809_v43 }
 0x981   :  { %12974 = vmatprep.subr.mxu1 %v14010_v0 }
 0x982   :  { %12975 = vmatpush3.msra.mxu1 %v4808_v37 }
 0x983   :  { %12976 = vmatprep.subr.mxu1 %v14010_v0 }
 0x984   :  { %12977 = vmatpush3.msra.mxu1 %v4807_v39 }
 0x985   :  { %12978 = vmatprep.subr.mxu1 %v14010_v0 }
 0x986   :  { %12979 = vmatpush3.msra.mxu1 %v4806_v41  ;;  %v5377_v41 = vld [vmem:[#allocation14 + $0x278] sm:$0xff] }
 0x987   :  { %12980 = vmatprep.subr.mxu1 %v14010_v0 }
 0x988   :  { %12981 = vmatpush3.msra.mxu1 %v4805_v50 }
 0x989   :  { %12982 = vmatprep.subr.mxu1 %v14010_v0 }
 0x98a   :  { %12983 = vmatpush3.msra.mxu1 %v4804_v42  ;;  %v5376_v42 = vld [vmem:[#allocation14 + $0x270] sm:$0xff] }
 0x98b   :  { %13022 = vmatprep.subr.mxu1 %v14010_v0 }
 0xa23   :  { %v4708_v44 = vpop.f32.mrf.mxu1 }
 0xa24   :  { %13020 = vmatmul.mubr.f32.vlgmr.msra.gmra.mxu0 %v4708_v44  ;;  %v5450_v44 = vld [vmem:[#allocation13 + $0x28] sm:$0xff] }
 0xa25   :  { %v12940_v58 = vpop.f32.mrf.mxu1  ;;  %13034 = vmatpush3.msra.mxu0 %v5051_v15  ;;  %13065 = vmatprep.mubr.msk.f32.mxu0 %vm14011_vm0, %v14010_v0  ;;  %v5375_v15 = vld [vmem:[#allocation14 + $0x268] sm:$0xff] }
 0xa26   :  { %13035 = vmatprep.subr.mxu0 %v14010_v0  ;;  %v5540_v58 = vld [vmem:[#allocation14 + $0x2f8] sm:$0xff] }
 0xa27   :  { %13036 = vmatpush3.msra.mxu0 %v5050_v16  ;;  %v5374_v16 = vld [vmem:[#allocation14 + $0x260] sm:$0xff] }
 0xa28   :  { %13037 = vmatprep.subr.mxu0 %v14010_v0 }
 0xa29   :  { %13038 = vmatpush3.msra.mxu0 %v5049_v63  ;;  %v5373_v63 = vld [vmem:[#allocation14 + $0x258] sm:$0xff] }
 0xa2a   :  { %13039 = vmatprep.subr.mxu0 %v14010_v0 }
 0xa2b   :  { %v4799_v49 = vpop.f32.mrf.mxu1  ;;  %13040 = vmatpush3.msra.mxu0 %v5048_v47  ;;  %v5539_v47 = vld [vmem:[#allocation14 + $0x2f0] sm:$0xff] }
 0xa2c   :  { %12985 = vmatmul.mubr.f32.vlgmr.msra.gmra.mxu1 %v4799_v49  ;;  %13041 = vmatprep.subr.mxu0 %v14010_v0  ;;  %v5372_v49 = vld [vmem:[#allocation14 + $0x250] sm:$0xff] }
 0xa2d   :  { %13023 = vmatpush3.msra.mxu1 %v15408_v10  ;;  %v12951_v52 = vpop.f32.mrf.mxu1  ;;  %13030 = vmatprep.mubr.msk.f32.mxu1 %vm14011_vm0, %v14010_v0 }
 0xa2e   :  { %13024 = vmatprep.subr.mxu1 %v14010_v0  ;;  %13042 = vmatpush3.msra.mxu0 %v5047_v6  ;;  %v5538_v6 = vld [vmem:[#allocation14 + $0x2e8] sm:$0xff] }
 0xa2f   :  { %13025 = vmatpush3.msra.mxu1 %v15411_v22  ;;  %13043 = vmatprep.subr.mxu0 %v14010_v0  ;;  %v5371_v52 = vld [vmem:[#allocation14 + $0x248] sm:$0xff] }
 0xa30   :  { %13026 = vmatprep.subr.mxu1 %v14010_v0  ;;  %13044 = vmatpush3.msra.mxu0 %v5046_v54  ;;  %v5537_v54 = vld [vmem:[#allocation14 + $0x2e0] sm:$0xff] }
 0xa31   :  { %13027 = vmatpush3.msra.mxu1 %v15414_v62  ;;  %13045 = vmatprep.subr.mxu0 %v14010_v0 }
 0xa32   :  { %13028 = vmatprep.subr.mxu1 %v14010_v0  ;;  %13046 = vmatpush3.msra.mxu0 %v5045_v3  ;;  %v5370_v3 = vld [vmem:[#allocation14 + $0x240] sm:$0xff] }
 0xa33   :  { %13029 = vmatpush3.msra.mxu1 %v15418_v13  ;;  %13047 = vmatprep.subr.mxu0 %v14010_v0 }
 0xa34   :  { %13031 = vmatmul.mubr.msk.f32.vlgmr.msra.gmra.mxu1 %vm4638_vm4, %v4961_v57  ;;  %13068 = vmatprep.subr.mxu1 %v14010_v0  ;;  %v5536_v57 = vld [vmem:[#allocation14 + $0x2d8] sm:$0xff] }
 0xa35   :  { %13069 = vmatpush3.msra.mxu1 %v15408_v10  ;;  %13076 = vmatprep.mubr.msk.f32.mxu1 %vm14011_vm0, %v14010_v0 }
 0xa36   :  { %13070 = vmatprep.subr.mxu1 %v14010_v0  ;;  %13048 = vmatpush3.msra.mxu0 %v5044_v45  ;;  %v5369_v45 = vld [vmem:[#allocation14 + $0x238] sm:$0xff] }
 0xa37   :  { %13071 = vmatpush3.msra.mxu1 %v15411_v22  ;;  %13049 = vmatprep.subr.mxu0 %v14010_v0 }
 0xa38   :  { %13072 = vmatprep.subr.mxu1 %v14010_v0  ;;  %13050 = vmatpush3.msra.mxu0 %v5043_v17  ;;  %v5366_v17 = vld [vmem:[#allocation14 + $0x220] sm:$0xff] }
 0xa39   :  { %13073 = vmatpush3.msra.mxu1 %v15414_v62  ;;  %13051 = vmatprep.subr.mxu0 %v14010_v0 }
 0xa3a   :  { %13074 = vmatprep.subr.mxu1 %v14010_v0  ;;  %13052 = vmatpush3.msra.mxu0 %v5042_v1  ;;  %v5532_v1 = vld [vmem:[#allocation14 + $0x2b8] sm:$0xff] }
 0xa3b   :  { %13075 = vmatpush3.msra.mxu1 %v15418_v13  ;;  %13053 = vmatprep.subr.mxu0 %v14010_v0 }
 0xa3c   :  { %13077 = vmatmul.mubr.msk.f32.vlgmr.msra.gmra.mxu1 %vm4638_vm4, %v5124_v48  ;;  %13079 = vmatprep.subr.mxu1 %v14010_v0  ;;  %v5535_v48 = vld [vmem:[#allocation14 + $0x2d0] sm:$0xff] }
 0xa3d   :  { %13080 = vmatpush3.msra.mxu1 %v5214_v25  ;;  %13111 = vmatprep.mubr.msk.f32.mxu1 %vm14011_vm0, %v14010_v0  ;;  %v5368_v25 = vld [vmem:[#allocation14 + $0x230] sm:$0xff] }
 0xa3e   :  { %13081 = vmatprep.subr.mxu1 %v14010_v0  ;;  %13054 = vmatpush3.msra.mxu0 %v5041_v2  ;;  %v5531_v2 = vld [vmem:[#allocation14 + $0x2b0] sm:$0xff] }
 0xa3f   :  { %13082 = vmatpush3.msra.mxu1 %v5213_v56  ;;  %13055 = vmatprep.subr.mxu0 %v14010_v0  ;;  %v5534_v56 = vld [vmem:[#allocation14 + $0x2c8] sm:$0xff] }
 0xa40   :  { %13083 = vmatprep.subr.mxu1 %v14010_v0  ;;  %13056 = vmatpush3.msra.mxu0 %v5040_v4  ;;  %v5530_v4 = vld [vmem:[#allocation14 + $0x2a8] sm:$0xff] }
 0xa41   :  { %13084 = vmatpush3.msra.mxu1 %v5212_v59  ;;  %13057 = vmatprep.subr.mxu0 %v14010_v0  ;;  %v5367_v59 = vld [vmem:[#allocation14 + $0x228] sm:$0xff] }
 0xa42   :  { %13085 = vmatprep.subr.mxu1 %v14010_v0  ;;  %13058 = vmatpush3.msra.mxu0 %v5039_v55  ;;  %v5529_v55 = vld [vmem:[#allocation14 + $0x2a0] sm:$0xff] }
 0xa43   :  { %13086 = vmatpush3.msra.mxu1 %v5211_v60  ;;  %13059 = vmatprep.subr.mxu0 %v14010_v0  ;;  %v5533_v60 = vld [vmem:[#allocation14 + $0x2c0] sm:$0xff] }
 0xa44   :  { %13087 = vmatprep.subr.mxu1 %v14010_v0  ;;  %13060 = vmatpush3.msra.mxu0 %v5038_v20  ;;  %v5527_v20 = vld [vmem:[#allocation14 + $0x290] sm:$0xff] }
 0xa45   :  { %13088 = vmatpush3.msra.mxu1 %v5210_v5  ;;  %13061 = vmatprep.subr.mxu0 %v14010_v0  ;;  %v5365_v5 = vld [vmem:[#allocation14 + $0x218] sm:$0xff] }
 0xa46   :  { %13089 = vmatprep.subr.mxu1 %v14010_v0  ;;  %13062 = vmatpush3.msra.mxu0 %v5037_v23  ;;  %v5525_v23 = vld [vmem:[#allocation14 + $0x280] sm:$0xff] }
 0xa47   :  { %13090 = vmatpush3.msra.mxu1 %v5209_v28  ;;  %13063 = vmatprep.subr.mxu0 %v14010_v0  ;;  %v5364_v28 = vld [vmem:[#allocation14 + $0x210] sm:$0xff] }
 0xa48   :  { %13091 = vmatprep.subr.mxu1 %v14010_v0  ;;  %13064 = vmatpush3.msra.mxu0 %v5036_v7 }
 0xa49   :  { %13092 = vmatpush3.msra.mxu1 %v5208_v31  ;;  %13114 = vmatprep.subr.mxu0 %v14010_v0  ;;  %v5363_v31 = vld [vmem:[#allocation14 + $0x208] sm:$0xff] }
 0xa4a   :  { %13093 = vmatprep.subr.mxu1 %v14010_v0 }
 0xa4b   :  { %13094 = vmatpush3.msra.mxu1 %v5207_v46  ;;  %v5362_v46 = vld [vmem:[#allocation14 + $0x200] sm:$0xff] }
 0xa4c   :  { %13095 = vmatprep.subr.mxu1 %v14010_v0 }
 0xa4d   :  { %13096 = vmatpush3.msra.mxu1 %v5206_v51  ;;  %v5528_v51 = vld [vmem:[#allocation14 + $0x298] sm:$0xff] }
 0xa4e   :  { %13097 = vmatprep.subr.mxu1 %v14010_v0 }
 0xa4f   :  { %13098 = vmatpush3.msra.mxu1 %v5205_v21  ;;  %v5526_v21 = vld [vmem:[#allocation14 + $0x288] sm:$0xff] }
 0xa50   :  { %13099 = vmatprep.subr.mxu1 %v14010_v0 }
 0xa51   :  { %13100 = vmatpush3.msra.mxu1 %v5204_v24 }
 0xa52   :  { %13101 = vmatprep.subr.mxu1 %v14010_v0 }
 0xa53   :  { %13102 = vmatpush3.msra.mxu1 %v5203_v26 }
 0xa54   :  { %13103 = vmatprep.subr.mxu1 %v14010_v0 }
 0xa55   :  { %13104 = vmatpush3.msra.mxu1 %v5202_v40 }
 0xa56   :  { %13105 = vmatprep.subr.mxu1 %v14010_v0 }
 0xa57   :  { %13106 = vmatpush3.msra.mxu1 %v5201_v27 }
 0xa58   :  { %13107 = vmatprep.subr.mxu1 %v14010_v0 }
 0xa59   :  { %13108 = vmatpush3.msra.mxu1 %v5200_v38 }
 0xa5a   :  { %13109 = vmatprep.subr.mxu1 %v14010_v0 }
 0xa5b   :  { %13110 = vmatpush3.msra.mxu1 %v5199_v29 }
 0xa5c   :  { %13160 = vmatprep.subr.mxu1 %v14010_v0 }
 0xae4   :  { %v4956_v9 = vpop.f32.mrf.mxu0 }
 0xae6   :  { %v13021_v30 = vpop.f32.mrf.mxu0 }
 0xae7   :  { %v5613_v30 = vld [vmem:[#allocation13 + $0x30] sm:$0xff] }
 0xaec   :  { %v4886_v32 = vpop.f32.mrf.mxu1 }
 0xaed   :  { %v15513_v11 = vadd.f32 %v4956_v9, %v4886_v32 }
 0xaee   :  { %v12986_v35 = vpop.f32.mrf.mxu1 }
 0xaf4   :  { %v5031_v43 = vpop.f32.mrf.mxu1 }
 0xaf5   :  { %13066 = vmatmul.mubr.f32.vlgmr.msra.gmra.mxu0 %v5031_v43  ;;  %v5702_v43 = vld [vmem:[#allocation14 + $0x370] sm:$0xff] }
 0xaf6   :  { %13115 = vmatpush3.msra.mxu0 %v15408_v10  ;;  %v13032_v37 = vpop.f32.mrf.mxu1  ;;  %13122 = vmatprep.mubr.msk.f32.mxu0 %vm14011_vm0, %v14010_v0 }
 0xaf7   :  { %13116 = vmatprep.subr.mxu0 %v14010_v0  ;;  %v5701_v37 = vld [vmem:[#allocation14 + $0x368] sm:$0xff] }
 0xaf8   :  { %13117 = vmatpush3.msra.mxu0 %v15411_v22 }
 0xaf9   :  { %13118 = vmatprep.subr.mxu0 %v14010_v0 }
 0xafa   :  { %13119 = vmatpush3.msra.mxu0 %v15414_v62 }
 0xafb   :  { %13120 = vmatprep.subr.mxu0 %v14010_v0 }
 0xafc   :  { %13121 = vmatpush3.msra.mxu0 %v15418_v13  ;;  %v5194_v39 = vpop.f32.mrf.mxu1 }
 0xafd   :  { %13123 = vmatmul.mubr.msk.f32.vlgmr.msra.gmra.mxu0 %vm4638_vm4, %v5287_v14  ;;  %13112 = vmatmul.mubr.f32.vlgmr.msra.gmra.mxu1 %v5194_v39  ;;  %v5776_v14 = vld [vmem:[#allocation13 + $0x38] sm:$0xff]  ;;  %v5700_v39 = vld [vmem:[#allocation14 + $0x360] sm:$0xff] }
 0xafe   :  { %13161 = vmatpush3.msra.mxu1 %v15408_v10  ;;  %13168 = vmatprep.mubr.msk.f32.mxu1 %vm14011_vm0, %v14010_v0  ;;  %v13078_v50 = vpop.f32.mrf.mxu1 }
 0xaff   :  { %13162 = vmatprep.subr.mxu1 %v14010_v0  ;;  %13125 = vmatprep.subr.mxu0 %v14010_v0  ;;  %v5699_v50 = vld [vmem:[#allocation14 + $0x358] sm:$0xff] }
 0xb00   :  { %13163 = vmatpush3.msra.mxu1 %v15411_v22  ;;  %13126 = vmatpush3.msra.mxu0 %v5377_v41  ;;  %v5866_v41 = vld [vmem:[#allocation14 + $0x3f8] sm:$0xff] }
 0xb01   :  { %13164 = vmatprep.subr.mxu1 %v14010_v0  ;;  %13127 = vmatprep.subr.mxu0 %v14010_v0 }
 0xb02   :  { %13165 = vmatpush3.msra.mxu1 %v15414_v62  ;;  %13128 = vmatpush3.msra.mxu0 %v5376_v42  ;;  %v5865_v42 = vld [vmem:[#allocation14 + $0x3f0] sm:$0xff] }
 0xb03   :  { %13166 = vmatprep.subr.mxu1 %v14010_v0  ;;  %13129 = vmatprep.subr.mxu0 %v14010_v0 }
 0xb04   :  { %13167 = vmatpush3.msra.mxu1 %v15418_v13  ;;  %13130 = vmatpush3.msra.mxu0 %v5375_v15  ;;  %v5698_v15 = vld [vmem:[#allocation14 + $0x350] sm:$0xff] }
 0xb05   :  { %13169 = vmatmul.mubr.msk.f32.vlgmr.msra.gmra.mxu1 %vm4638_vm4, %v5450_v44  ;;  %13131 = vmatprep.subr.mxu0 %v14010_v0  ;;  %v5864_v44 = vld [vmem:[#allocation14 + $0x3e8] sm:$0xff] }
 0xb06   :  { %13132 = vmatpush3.msra.mxu0 %v5374_v16  ;;  %13171 = vmatprep.subr.mxu1 %v14010_v0  ;;  %v5697_v16 = vld [vmem:[#allocation14 + $0x348] sm:$0xff] }
 0xb07   :  { %13133 = vmatprep.subr.mxu0 %v14010_v0  ;;  %13172 = vmatpush3.msra.mxu1 %v5540_v58  ;;  %v5863_v58 = vld [vmem:[#allocation14 + $0x3e0] sm:$0xff] }
 0xb08   :  { %13134 = vmatpush3.msra.mxu0 %v5373_v63  ;;  %13173 = vmatprep.subr.mxu1 %v14010_v0  ;;  %v5696_v63 = vld [vmem:[#allocation14 + $0x340] sm:$0xff] }
 0xb09   :  { %13135 = vmatprep.subr.mxu0 %v14010_v0  ;;  %13174 = vmatpush3.msra.mxu1 %v5539_v47  ;;  %v5862_v47 = vld [vmem:[#allocation14 + $0x3d8] sm:$0xff] }
 0xb0a   :  { %13136 = vmatpush3.msra.mxu0 %v5372_v49  ;;  %13175 = vmatprep.subr.mxu1 %v14010_v0  ;;  %v5695_v49 = vld [vmem:[#allocation14 + $0x338] sm:$0xff] }
 0xb0b   :  { %13137 = vmatprep.subr.mxu0 %v14010_v0  ;;  %13176 = vmatpush3.msra.mxu1 %v5538_v6  ;;  %v5861_v6 = vld [vmem:[#allocation14 + $0x3d0] sm:$0xff] }
 0xb0c   :  { %13138 = vmatpush3.msra.mxu0 %v5371_v52  ;;  %13177 = vmatprep.subr.mxu1 %v14010_v0  ;;  %v5694_v52 = vld [vmem:[#allocation14 + $0x330] sm:$0xff] }
 0xb0d   :  { %13139 = vmatprep.subr.mxu0 %v14010_v0  ;;  %13178 = vmatpush3.msra.mxu1 %v5537_v54  ;;  %v5860_v54 = vld [vmem:[#allocation14 + $0x3c8] sm:$0xff] }
 0xb0e   :  { %13140 = vmatpush3.msra.mxu0 %v5370_v3  ;;  %13179 = vmatprep.subr.mxu1 %v14010_v0  ;;  %v5693_v3 = vld [vmem:[#allocation14 + $0x328] sm:$0xff] }
 0xb0f   :  { %13141 = vmatprep.subr.mxu0 %v14010_v0  ;;  %13180 = vmatpush3.msra.mxu1 %v5536_v57  ;;  %v5859_v57 = vld [vmem:[#allocation14 + $0x3c0] sm:$0xff] }
 0xb10   :  { %13142 = vmatpush3.msra.mxu0 %v5369_v45  ;;  %13181 = vmatprep.subr.mxu1 %v14010_v0  ;;  %v5692_v45 = vld [vmem:[#allocation14 + $0x320] sm:$0xff] }
 0xb11   :  { %13143 = vmatprep.subr.mxu0 %v14010_v0  ;;  %13182 = vmatpush3.msra.mxu1 %v5535_v48  ;;  %v5691_v48 = vld [vmem:[#allocation14 + $0x318] sm:$0xff] }
 0xb12   :  { %13144 = vmatpush3.msra.mxu0 %v5368_v25  ;;  %13183 = vmatprep.subr.mxu1 %v14010_v0  ;;  %v5858_v25 = vld [vmem:[#allocation14 + $0x3b8] sm:$0xff] }
 0xb13   :  { %13145 = vmatprep.subr.mxu0 %v14010_v0  ;;  %13184 = vmatpush3.msra.mxu1 %v5534_v56  ;;  %v5690_v56 = vld [vmem:[#allocation14 + $0x310] sm:$0xff] }
 0xb14   :  { %13146 = vmatpush3.msra.mxu0 %v5367_v59  ;;  %13185 = vmatprep.subr.mxu1 %v14010_v0  ;;  %v5857_v59 = vld [vmem:[#allocation14 + $0x3b0] sm:$0xff] }
 0xb15   :  { %13147 = vmatprep.subr.mxu0 %v14010_v0  ;;  %13186 = vmatpush3.msra.mxu1 %v5533_v60  ;;  %v5689_v60 = vld [vmem:[#allocation14 + $0x308] sm:$0xff] }
 0xb16   :  { %13148 = vmatpush3.msra.mxu0 %v5366_v17  ;;  %13187 = vmatprep.subr.mxu1 %v14010_v0  ;;  %v5856_v17 = vld [vmem:[#allocation14 + $0x3a8] sm:$0xff] }
 0xb17   :  { %13149 = vmatprep.subr.mxu0 %v14010_v0  ;;  %13157 = vmatprep.mubr.msk.f32.mxu0 %vm14011_vm0, %v14010_v0 }
 0xb18   :  { %13203 = vmatprep.mubr.msk.f32.mxu1 %vm14011_vm0, %v14010_v0  ;;  %13150 = vmatpush3.msra.mxu0 %v5365_v5  ;;  %v5688_v5 = vld [vmem:[#allocation14 + $0x300] sm:$0xff] }
 0xb19   :  { %13188 = vmatpush3.msra.mxu1 %v5532_v1  ;;  %13151 = vmatprep.subr.mxu0 %v14010_v0  ;;  %v5855_v1 = vld [vmem:[#allocation14 + $0x3a0] sm:$0xff] }
 0xb1a   :  { %13189 = vmatprep.subr.mxu1 %v14010_v0  ;;  %13152 = vmatpush3.msra.mxu0 %v5364_v28  ;;  %v5854_v28 = vld [vmem:[#allocation14 + $0x398] sm:$0xff] }
 0xb1b   :  { %13190 = vmatpush3.msra.mxu1 %v5531_v2  ;;  %13153 = vmatprep.subr.mxu0 %v14010_v0  ;;  %v5853_v2 = vld [vmem:[#allocation14 + $0x390] sm:$0xff] }
 0xb1c   :  { %13191 = vmatprep.subr.mxu1 %v14010_v0  ;;  %13154 = vmatpush3.msra.mxu0 %v5363_v31  ;;  %v5852_v31 = vld [vmem:[#allocation14 + $0x388] sm:$0xff] }
 0xb1d   :  { %13192 = vmatpush3.msra.mxu1 %v5530_v4  ;;  %13155 = vmatprep.subr.mxu0 %v14010_v0  ;;  %v5851_v4 = vld [vmem:[#allocation14 + $0x380] sm:$0xff] }
 0xb1e   :  { %13193 = vmatprep.subr.mxu1 %v14010_v0  ;;  %13156 = vmatpush3.msra.mxu0 %v5362_v46 }
 0xb1f   :  { %13194 = vmatpush3.msra.mxu1 %v5529_v55  ;;  %13206 = vmatprep.subr.mxu0 %v14010_v0 }
 0xb20   :  { %13195 = vmatprep.subr.mxu1 %v14010_v0 }
 0xb21   :  { %13196 = vmatpush3.msra.mxu1 %v5528_v51 }
 0xb22   :  { %13197 = vmatprep.subr.mxu1 %v14010_v0 }
 0xb23   :  { %13198 = vmatpush3.msra.mxu1 %v5527_v20 }
 0xb24   :  { %13199 = vmatprep.subr.mxu1 %v14010_v0 }
 0xb25   :  { %13200 = vmatpush3.msra.mxu1 %v5526_v21 }
 0xb26   :  { %13201 = vmatprep.subr.mxu1 %v14010_v0 }
 0xb27   :  { %13202 = vmatpush3.msra.mxu1 %v5525_v23 }
 0xb28   :  { %13252 = vmatprep.subr.mxu1 %v14010_v0 }
 0xbb5   :  { %v5118_v24 = vpop.f32.mrf.mxu0 }
 0xbb6   :  { %v5122_v7 = vadd.f32 %v5118_v24, %v15513_v11  ;;  %v5703_v11 = vld [vmem:[#allocation14 + $0x378] sm:$0xff] }
 0xbb7   :  { %v13067_v26 = vpop.f32.mrf.mxu0 }
 0xbb8   :  { %v5939_v26 = vld [vmem:[#allocation13 + $0x40] sm:$0xff] }
 0xbbd   :  { %v5357_v40 = vpop.f32.mrf.mxu0  ;;  %v5281_v27 = vpop.f32.mrf.mxu1 }
 0xbbe   :  { %v15574_v38 = vadd.f32 %v5281_v27, %v5122_v7  ;;  %13158 = vmatmul.mubr.f32.vlgmr.msra.gmra.mxu0 %v5357_v40  ;;  %v6029_v27 = vld [vmem:[#allocation14 + $0x478] sm:$0xff] }
 0xbbf   :  { %13207 = vmatpush3.msra.mxu0 %v15408_v10  ;;  %v13124_v29 = vpop.f32.mrf.mxu0  ;;  %v13113_v9 = vpop.f32.mrf.mxu1  ;;  %13214 = vmatprep.mubr.msk.f32.mxu0 %vm14011_vm0, %v14010_v0 }
 0xbc0   :  { %13208 = vmatprep.subr.mxu0 %v14010_v0  ;;  %v6028_v29 = vld [vmem:[#allocation14 + $0x470] sm:$0xff]  ;;  %v6027_v9 = vld [vmem:[#allocation14 + $0x468] sm:$0xff] }
 0xbc1   :  { %13209 = vmatpush3.msra.mxu0 %v15411_v22 }
 0xbc2   :  { %13210 = vmatprep.subr.mxu0 %v14010_v0 }
 0xbc3   :  { %13211 = vmatpush3.msra.mxu0 %v15414_v62 }
 0xbc4   :  { %13212 = vmatprep.subr.mxu0 %v14010_v0 }
 0xbc5   :  { %13213 = vmatpush3.msra.mxu0 %v15418_v13  ;;  %v5520_v32 = vpop.f32.mrf.mxu1 }
 0xbc6   :  { %13215 = vmatmul.mubr.msk.f32.vlgmr.msra.gmra.mxu0 %vm4638_vm4, %v5613_v30  ;;  %13204 = vmatmul.mubr.f32.vlgmr.msra.gmra.mxu1 %v5520_v32  ;;  %v6026_v30 = vld [vmem:[#allocation14 + $0x460] sm:$0xff]  ;;  %v6024_v32 = vld [vmem:[#allocation14 + $0x450] sm:$0xff] }
 0xbc7   :  { %13253 = vmatpush3.msra.mxu1 %v15408_v10  ;;  %13260 = vmatprep.mubr.msk.f32.mxu1 %vm14011_vm0, %v14010_v0  ;;  %v13170_v35 = vpop.f32.mrf.mxu1 }
 0xbc8   :  { %13254 = vmatprep.subr.mxu1 %v14010_v0  ;;  %13217 = vmatprep.subr.mxu0 %v14010_v0  ;;  %v6022_v35 = vld [vmem:[#allocation14 + $0x440] sm:$0xff] }
 0xbc9   :  { %13255 = vmatpush3.msra.mxu1 %v15411_v22  ;;  %13218 = vmatpush3.msra.mxu0 %v5703_v11  ;;  %v6116_v11 = vld [vmem:[%s16308_s10 + $0x10] sm:$0xff] }
 0xbca   :  { %13256 = vmatprep.subr.mxu1 %v14010_v0  ;;  %13219 = vmatprep.subr.mxu0 %v14010_v0 }
 0xbcb   :  { %13257 = vmatpush3.msra.mxu1 %v15414_v62  ;;  %13220 = vmatpush3.msra.mxu0 %v5702_v43  ;;  %v6021_v43 = vld [vmem:[#allocation14 + $0x438] sm:$0xff] }
 0xbcc   :  { %13258 = vmatprep.subr.mxu1 %v14010_v0  ;;  %13221 = vmatprep.subr.mxu0 %v14010_v0 }
 0xbcd   :  { %13259 = vmatpush3.msra.mxu1 %v15418_v13  ;;  %13222 = vmatpush3.msra.mxu0 %v5701_v37  ;;  %v6117_v37 = vld [vmem:[%s16308_s10 + $0x18] sm:$0xff] }
 0xbce   :  { %13261 = vmatmul.mubr.msk.f32.vlgmr.msra.gmra.mxu1 %vm4638_vm4, %v5776_v14  ;;  %13223 = vmatprep.subr.mxu0 %v14010_v0  ;;  %v6020_v14 = vld [vmem:[#allocation14 + $0x430] sm:$0xff] }
 0xbcf   :  { %13224 = vmatpush3.msra.mxu0 %v5700_v39  ;;  %13263 = vmatprep.subr.mxu1 %v14010_v0  ;;  %v6019_v39 = vld [vmem:[#allocation14 + $0x428] sm:$0xff] }
 0xbd0   :  { %13225 = vmatprep.subr.mxu0 %v14010_v0  ;;  %13264 = vmatpush3.msra.mxu1 %v5866_v41  ;;  %v6118_v41 = vld [vmem:[%s16308_s10 + $0x20] sm:$0xff] }
 0xbd1   :  { %13226 = vmatpush3.msra.mxu0 %v5699_v50  ;;  %13265 = vmatprep.subr.mxu1 %v14010_v0  ;;  %v6018_v50 = vld [vmem:[#allocation14 + $0x420] sm:$0xff] }
 0xbd2   :  { %13227 = vmatprep.subr.mxu0 %v14010_v0  ;;  %13266 = vmatpush3.msra.mxu1 %v5865_v42  ;;  %v6119_v42 = vld [vmem:[%s16308_s10 + $0x28] sm:$0xff] }
 0xbd3   :  { %13228 = vmatpush3.msra.mxu0 %v5698_v15  ;;  %13267 = vmatprep.subr.mxu1 %v14010_v0  ;;  %v6120_v15 = vld [vmem:[%s16308_s10 + $0x30] sm:$0xff] }
 0xbd4   :  { %13229 = vmatprep.subr.mxu0 %v14010_v0  ;;  %13268 = vmatpush3.msra.mxu1 %v5864_v44  ;;  %v6121_v44 = vld [vmem:[%s16308_s10 + $0x38] sm:$0xff] }
 0xbd5   :  { %13230 = vmatpush3.msra.mxu0 %v5697_v16  ;;  %13269 = vmatprep.subr.mxu1 %v14010_v0  ;;  %v6122_v16 = vld [vmem:[%s16308_s10 + $0x40] sm:$0xff] }
 0xbd6   :  { %13231 = vmatprep.subr.mxu0 %v14010_v0  ;;  %13270 = vmatpush3.msra.mxu1 %v5863_v58  ;;  %v6017_v58 = vld [vmem:[#allocation14 + $0x418] sm:$0xff] }
 0xbd7   :  { %13232 = vmatpush3.msra.mxu0 %v5696_v63  ;;  %13271 = vmatprep.subr.mxu1 %v14010_v0  ;;  %v6016_v63 = vld [vmem:[#allocation14 + $0x410] sm:$0xff] }
 0xbd8   :  { %13233 = vmatprep.subr.mxu0 %v14010_v0  ;;  %13272 = vmatpush3.msra.mxu1 %v5862_v47  ;;  %v6015_v47 = vld [vmem:[#allocation14 + $0x408] sm:$0xff] }
 0xbd9   :  { %13234 = vmatpush3.msra.mxu0 %v5695_v49  ;;  %13273 = vmatprep.subr.mxu1 %v14010_v0  ;;  %v6014_v49 = vld [vmem:[#allocation14 + $0x400] sm:$0xff] }
 0xbda   :  { %13235 = vmatprep.subr.mxu0 %v14010_v0  ;;  %13274 = vmatpush3.msra.mxu1 %v5861_v6 }
 0xbdb   :  { %13236 = vmatpush3.msra.mxu0 %v5694_v52  ;;  %13275 = vmatprep.subr.mxu1 %v14010_v0 }
 0xbdc   :  { %13237 = vmatprep.subr.mxu0 %v14010_v0  ;;  %13276 = vmatpush3.msra.mxu1 %v5860_v54 }
 0xbdd   :  { %13238 = vmatpush3.msra.mxu0 %v5693_v3  ;;  %13277 = vmatprep.subr.mxu1 %v14010_v0 }
 0xbde   :  { %13239 = vmatprep.subr.mxu0 %v14010_v0  ;;  %13278 = vmatpush3.msra.mxu1 %v5859_v57 }
 0xbdf   :  { %13240 = vmatpush3.msra.mxu0 %v5692_v45  ;;  %13279 = vmatprep.subr.mxu1 %v14010_v0 }
 0xbe0   :  { %13241 = vmatprep.subr.mxu0 %v14010_v0  ;;  %13249 = vmatprep.mubr.msk.f32.mxu0 %vm14011_vm0, %v14010_v0 }
 0xbe1   :  { %13295 = vmatprep.mubr.msk.f32.mxu1 %vm14011_vm0, %v14010_v0  ;;  %13242 = vmatpush3.msra.mxu0 %v5691_v48 }
 0xbe2   :  { %13280 = vmatpush3.msra.mxu1 %v5858_v25  ;;  %13243 = vmatprep.subr.mxu0 %v14010_v0 }
 0xbe3   :  { %13281 = vmatprep.subr.mxu1 %v14010_v0  ;;  %13244 = vmatpush3.msra.mxu0 %v5690_v56 }
 0xbe4   :  { %13282 = vmatpush3.msra.mxu1 %v5857_v59  ;;  %13245 = vmatprep.subr.mxu0 %v14010_v0 }
 0xbe5   :  { %13283 = vmatprep.subr.mxu1 %v14010_v0  ;;  %13246 = vmatpush3.msra.mxu0 %v5689_v60 }
 0xbe6   :  { %13284 = vmatpush3.msra.mxu1 %v5856_v17  ;;  %13247 = vmatprep.subr.mxu0 %v14010_v0 }
 0xbe7   :  { %13285 = vmatprep.subr.mxu1 %v14010_v0  ;;  %13248 = vmatpush3.msra.mxu0 %v5688_v5 }
 0xbe8   :  { %13286 = vmatpush3.msra.mxu1 %v5855_v1  ;;  %13298 = vmatprep.subr.mxu0 %v14010_v0 }
 0xbe9   :  { %13287 = vmatprep.subr.mxu1 %v14010_v0 }
 0xbea   :  { %13288 = vmatpush3.msra.mxu1 %v5854_v28 }
 0xbeb   :  { %13289 = vmatprep.subr.mxu1 %v14010_v0 }
 0xbec   :  { %13290 = vmatpush3.msra.mxu1 %v5853_v2 }
 0xbed   :  { %13291 = vmatprep.subr.mxu1 %v14010_v0 }
 0xbee   :  { %13292 = vmatpush3.msra.mxu1 %v5852_v31 }
 0xbef   :  { %13293 = vmatprep.subr.mxu1 %v14010_v0 }
 0xbf0   :  { %13294 = vmatpush3.msra.mxu1 %v5851_v4 }
 0xbf1   :  { %13344 = vmatprep.subr.mxu1 %v14010_v0 }
 0xc7e   :  { %v5444_v46 = vpop.f32.mrf.mxu0 }
 0xc7f   :  { %v5448_v55 = vadd.f32 %v5444_v46, %v15574_v38 }
 0xc80   :  { %v13159_v51 = vpop.f32.mrf.mxu0 }
 0xc86   :  { %v5683_v20 = vpop.f32.mrf.mxu0  ;;  %v5607_v21 = vpop.f32.mrf.mxu1 }
 0xc87   :  { %v15635_v23 = vadd.f32 %v5607_v21, %v5448_v55  ;;  %13250 = vmatmul.mubr.f32.vlgmr.msra.gmra.mxu0 %v5683_v20 }
 0xc88   :  { %13299 = vmatpush3.msra.mxu0 %v15408_v10  ;;  %v13216_v24 = vpop.f32.mrf.mxu0  ;;  %v13205_v7 = vpop.f32.mrf.mxu1  ;;  %13306 = vmatprep.mubr.msk.f32.mxu0 %vm14011_vm0, %v14010_v0 }
 0xc89   :  { %13300 = vmatprep.subr.mxu0 %v14010_v0 }
 0xc8a   :  { %13301 = vmatpush3.msra.mxu0 %v15411_v22 }
 0xc8b   :  { %13302 = vmatprep.subr.mxu0 %v14010_v0 }
 0xc8c   :  { %13303 = vmatpush3.msra.mxu0 %v15414_v62 }
 0xc8d   :  { %13304 = vmatprep.subr.mxu0 %v14010_v0 }
 0xc8e   :  { %13305 = vmatpush3.msra.mxu0 %v15418_v13  ;;  %v5846_v40 = vpop.f32.mrf.mxu1 }
 0xc8f   :  { %13307 = vmatmul.mubr.msk.f32.vlgmr.msra.gmra.mxu0 %vm4638_vm4, %v5939_v26  ;;  %13296 = vmatmul.mubr.f32.vlgmr.msra.gmra.mxu1 %v5846_v40  ;;  %v10580_v40 = vld [vmem:[#allocation16] ss:$0 sm:$0xff] }
 0xc90   :  { %13345 = vmatpush3.msra.mxu1 %v15408_v10  ;;  %13352 = vmatprep.mubr.msk.f32.mxu1 %vm14011_vm0, %v14010_v0  ;;  %v13262_v38 = vpop.f32.mrf.mxu1  ;;  %v6114_v10 = vld [vmem:[%s16308_s10] sm:$0xff] }
 0xc91   :  { %13346 = vmatprep.subr.mxu1 %v14010_v0  ;;  %13309 = vmatprep.subr.mxu0 %v14010_v0 }
 0xc92   :  { %13347 = vmatpush3.msra.mxu1 %v15411_v22  ;;  %13310 = vmatpush3.msra.mxu0 %v6029_v27  ;;  %v6025_v22 = vld [vmem:[#allocation14 + $0x458] sm:$0xff] }
 0xc93   :  { %13348 = vmatprep.subr.mxu1 %v14010_v0  ;;  %13311 = vmatprep.subr.mxu0 %v14010_v0 }
 0xc94   :  { %13349 = vmatpush3.msra.mxu1 %v15414_v62  ;;  %13312 = vmatpush3.msra.mxu0 %v6028_v29  ;;  %v6115_v62 = vld [vmem:[%s16308_s10 + $0x8] sm:$0xff] }
 0xc95   :  { %13350 = vmatprep.subr.mxu1 %v14010_v0  ;;  %13313 = vmatprep.subr.mxu0 %v14010_v0 }
 0xc96   :  { %13351 = vmatpush3.msra.mxu1 %v15418_v13  ;;  %13314 = vmatpush3.msra.mxu0 %v6027_v9  ;;  %v6023_v13 = vld [vmem:[#allocation14 + $0x448] sm:$0xff] }
 0xc97   :  { %13353 = vmatmul.mubr.msk.f32.vlgmr.msra.gmra.mxu1 %vm4638_vm4, %v6114_v10  ;;  %13315 = vmatprep.subr.mxu0 %v14010_v0 }
 0xc98   :  { %13355 = vmatprep.mubr.msk.f32.mxu1 %vm14011_vm0, %v14010_v0  ;;  %13316 = vmatpush3.msra.mxu0 %v6026_v30 }
 0xc99   :  { %13317 = vmatprep.subr.mxu0 %v14010_v0  ;;  %13341 = vmatprep.mubr.msk.f32.mxu0 %vm14011_vm0, %v14010_v0 }
 0xc9a   :  { %13318 = vmatpush3.msra.mxu0 %v6025_v22  ;;  %13408 = vmatprep.subr.mxu1 %v14010_v0 }
 0xc9b   :  { %13356 = vmatmul.mubr.msk.f32.gmra.mxu1 %vm4638_vm4, %v6115_v62  ;;  %13319 = vmatprep.subr.mxu0 %v14010_v0 }
 0xc9c   :  { %13358 = vmatprep.mubr.msk.f32.mxu1 %vm14011_vm0, %v14010_v0  ;;  %13320 = vmatpush3.msra.mxu0 %v6024_v32  ;;  %v6260_v32 = vld [vmem:[%s16309_s11] sm:$0xff] }
 0xc9d   :  { %13321 = vmatprep.subr.mxu0 %v14010_v0 }
 0xc9e   :  { %13322 = vmatpush3.msra.mxu0 %v6023_v13  ;;  %v6261_v13 = vld [vmem:[%s16309_s11 + $0x8] sm:$0xff] }
 0xc9f   :  { %13359 = vmatmul.mubr.msk.f32.gmra.mxu1 %vm4638_vm4, %v6116_v11  ;;  %13323 = vmatprep.subr.mxu0 %v14010_v0  ;;  %v6262_v11 = vld [vmem:[%s16309_s11 + $0x10] sm:$0xff] }
 0xca0   :  { %13361 = vmatprep.mubr.msk.f32.mxu1 %vm14011_vm0, %v14010_v0  ;;  %13324 = vmatpush3.msra.mxu0 %v6022_v35  ;;  %v6263_v35 = vld [vmem:[%s16309_s11 + $0x18] sm:$0xff] }
 0xca1   :  { %13325 = vmatprep.subr.mxu0 %v14010_v0 }
 0xca2   :  { %13326 = vmatpush3.msra.mxu0 %v6021_v43  ;;  %v6264_v43 = vld [vmem:[%s16309_s11 + $0x20] sm:$0xff] }
 0xca3   :  { %13362 = vmatmul.mubr.msk.f32.gmra.mxu1 %vm4638_vm4, %v6117_v37  ;;  %13327 = vmatprep.subr.mxu0 %v14010_v0  ;;  %v6265_v37 = vld [vmem:[%s16309_s11 + $0x28] sm:$0xff] }
 0xca4   :  { %13364 = vmatprep.mubr.msk.f32.mxu1 %vm14011_vm0, %v14010_v0  ;;  %13328 = vmatpush3.msra.mxu0 %v6020_v14  ;;  %v6266_v14 = vld [vmem:[%s16309_s11 + $0x30] sm:$0xff] }
 0xca5   :  { %13329 = vmatprep.subr.mxu0 %v14010_v0 }
 0xca6   :  { %13330 = vmatpush3.msra.mxu0 %v6019_v39  ;;  %v6267_v39 = vld [vmem:[%s16309_s11 + $0x38] sm:$0xff] }
 0xca7   :  { %13365 = vmatmul.mubr.msk.f32.gmra.mxu1 %vm4638_vm4, %v6118_v41  ;;  %13331 = vmatprep.subr.mxu0 %v14010_v0  ;;  %v6268_v41 = vld [vmem:[%s16309_s11 + $0x40] sm:$0xff] }
 0xca8   :  { %13367 = vmatprep.mubr.msk.f32.mxu1 %vm14011_vm0, %v14010_v0  ;;  %13332 = vmatpush3.msra.mxu0 %v6018_v50  ;;  %v6496_v50 = vld [vmem:[%s16311_s13 + $0x78] sm:$0xff] }
 0xca9   :  { %13333 = vmatprep.subr.mxu0 %v14010_v0 }
 0xcaa   :  { %13334 = vmatpush3.msra.mxu0 %v6017_v58  ;;  %v6491_v58 = vld [vmem:[%s16311_s13 + $0x50] sm:$0xff] }
 0xcab   :  { %13368 = vmatmul.mubr.msk.f32.gmra.mxu1 %vm4638_vm4, %v6119_v42  ;;  %13335 = vmatprep.subr.mxu0 %v14010_v0  ;;  %v6495_v42 = vld [vmem:[%s16311_s13 + $0x70] sm:$0xff] }
 0xcac   :  { %13370 = vmatprep.mubr.msk.f32.mxu1 %vm14011_vm0, %v14010_v0  ;;  %13336 = vmatpush3.msra.mxu0 %v6016_v63  ;;  %v6490_v63 = vld [vmem:[%s16311_s13 + $0x48] sm:$0xff] }
 0xcad   :  { %13337 = vmatprep.subr.mxu0 %v14010_v0 }
 0xcae   :  { %13338 = vmatpush3.msra.mxu0 %v6015_v47  ;;  %v6489_v47 = vld [vmem:[%s16311_s13 + $0x40] sm:$0xff] }
 0xcaf   :  { %13371 = vmatmul.mubr.msk.f32.gmra.mxu1 %vm4638_vm4, %v6120_v15  ;;  %13339 = vmatprep.subr.mxu0 %v14010_v0  ;;  %v6494_v15 = vld [vmem:[%s16311_s13 + $0x68] sm:$0xff] }
 0xcb0   :  { %13373 = vmatprep.mubr.msk.f32.mxu1 %vm14011_vm0, %v14010_v0  ;;  %13340 = vmatpush3.msra.mxu0 %v6014_v49  ;;  %v6488_v49 = vld [vmem:[%s16311_s13 + $0x38] sm:$0xff] }
 0xcb1   :  { %13379 = vmatprep.subr.mxu0 %v14010_v0 }
 0xcb3   :  { %13374 = vmatmul.mubr.msk.f32.gmra.mxu1 %vm4638_vm4, %v6121_v44  ;;  %v6493_v44 = vld [vmem:[%s16311_s13 + $0x60] sm:$0xff] }
 0xcb4   :  { %13376 = vmatprep.mubr.msk.f32.mxu1 %vm14011_vm0, %v14010_v0 }
 0xcb7   :  { %13377 = vmatmul.mubr.msk.f32.gmra.mxu1 %vm4638_vm4, %v6122_v16  ;;  %v6492_v16 = vld [vmem:[%s16311_s13 + $0x58] sm:$0xff] }
 0xcb8   :  { %13426 = vmatprep.mubr.msk.f32.mxu1 %vm14011_vm0, %v14010_v0 }
 0xd47   :  { %v5770_v6 = vpop.f32.mrf.mxu0 }
 0xd48   :  { %v5774_v52 = vadd.f32 %v5770_v6, %v15635_v23  ;;  %v6487_v6 = vld [vmem:[%s16311_s13 + $0x30] sm:$0xff] }
 0xd49   :  { %v13251_v54 = vpop.f32.mrf.mxu0 }
 0xd4a   :  { %v6485_v54 = vld [vmem:[%s16311_s13 + $0x20] sm:$0xff] }
 0xd4f   :  { %v6009_v3 = vpop.f32.mrf.mxu0  ;;  %v5933_v57 = vpop.f32.mrf.mxu1 }
 0xd50   :  { %v5937_v45 = vadd.f32 %v5933_v57, %v5774_v52  ;;  %13342 = vmatmul.mubr.f32.vlgmr.msra.gmra.mxu0 %v6009_v3  ;;  %v6486_v52 = vld [vmem:[%s16311_s13 + $0x28] sm:$0xff]  ;;  %v6484_v3 = vld [vmem:[%s16311_s13 + $0x18] sm:$0xff]  ;;  %v6483_v57 = vld [vmem:[%s16311_s13 + $0x10] sm:$0xff] }
 0xd51   :  { %v13308_v48 = vpop.f32.mrf.mxu0  ;;  %v13297_v25 = vpop.f32.mrf.mxu1  ;;  %13381 = vmatprep.mubr.msk.f32.mxu0 %vm14011_vm0, %v14010_v0 }
 0xd57   :  { %v15733_v56 = vpop.f32.mrf.mxu1 }
 0xd59   :  { %v13354_v59 = vpop.f32.mrf.mxu1 }
 0xd5b   :  { %v15735_v60 = vpop.f32.mrf.mxu1 }
 0xd5d   :  { %v13357_v17 = vpop.f32.mrf.mxu1 }
 0xd5f   :  { %v15737_v5 = vpop.f32.mrf.mxu1 }
 0xd61   :  { %v13360_v1 = vpop.f32.mrf.mxu1 }
 0xd63   :  { %v15739_v28 = vpop.f32.mrf.mxu1 }
 0xd65   :  { %v13363_v2 = vpop.f32.mrf.mxu1 }
 0xd67   :  { %v15741_v31 = vpop.f32.mrf.mxu1 }
 0xd69   :  { %v13366_v4 = vpop.f32.mrf.mxu1 }
 0xd6b   :  { %v15743_v46 = vpop.f32.mrf.mxu1 }
 0xd6d   :  { %v13369_v55 = vpop.f32.mrf.mxu1 }
 0xd6f   :  { %v15745_v51 = vpop.f32.mrf.mxu1 }
 0xd71   :  { %v13372_v20 = vpop.f32.mrf.mxu1 }
 0xd73   :  { %v15747_v21 = vpop.f32.mrf.mxu1 }
 0xd75   :  { %v13375_v23 = vpop.f32.mrf.mxu1 }
 0xd77   :  { %v15749_v24 = vpop.f32.mrf.mxu1 }
 0xd79   :  { %v13378_v7 = vpop.f32.mrf.mxu1 }
 0xe10   :  { %v6096_v26 = vpop.f32.mrf.mxu0 }
 0xe11   :  { %v6100_v27 = vadd.f32 %v6096_v26, %v5937_v45  ;;  %v6482_v45 = vld [vmem:[%s16311_s13 + $0x8] sm:$0xff] }
 0xe12   :  { %v13343_v38 = vpop.f32.mrf.mxu0 }
 0xe13   :  { %v6108_v29 = vadd.f32 %v10580_v40, %v6100_v27 }
 0xe15   :  { %v6110_v9 = vmul.f32 0.70710677, %v6108_v29  ;;  %v6109_v30 = vmul.f32 0.5, %v6108_v29 }
 0xe17   :  { %13638 = verf.f32 %v6110_v9  ;;  %v6257_v9 = vadd.f32 %v15749_v24, %v15133_v53 }
 0xe24   :  { %v13639_v10 = vpop.eup %13638 }
 0xe25   :  { %v6112_v22 = vadd.f32 1.0, %v13639_v10 }
 0xe27   :  { %v6113_v62 = vmul.f32 %v6112_v22, %v6109_v30  ;;  %v6252_v30 = vadd.f32 %v15747_v21, %v15135_v61  ;;  %v6237_v61 = vadd.f32 %v15741_v31, %v15153_v8  ;;  %v6222_v8 = vadd.f32 %v15735_v60, %v15172_v36  ;;  %v6407_v36 = vld [vmem:[#allocation17] sm:$0x3] }
 0xe29   :  { %13380 = vmatpush3.msra.mxu0 %v6113_v62 }
 0xe2a   :  { %13382 = vmatmul.mubr.msk.f32.vlgmr.msra.gmra.mxu0 %vm6269_vm5, %v6260_v32  ;;  %13429 = vmatprep.subr.mxu0 %v14010_v0  ;;  %v6247_v32 = vadd.f32 %v15745_v51, %v15141_v19  ;;  %v6232_v19 = vadd.f32 %v15739_v28, %v15159_v33  ;;  %v6217_v33 = vadd.f32 %v15733_v56, %v15178_v12  ;;  %v6481_v12 = vld [vmem:[%s16311_s13] sm:$0xff] }
 0xe2b   :  { %13384 = vmatprep.mubr.msk.f32.mxu0 %vm14011_vm0, %v14010_v0  ;;  %13430 = vmatpush3.msra.mxu0 %v6496_v50 }
 0xe2c   :  { %13431 = vmatprep.subr.mxu0 %v14010_v0 }
 0xe2d   :  { %13432 = vmatpush3.msra.mxu0 %v6495_v42 }
 0xe2e   :  { %13385 = vmatmul.mubr.msk.f32.gmra.mxu0 %vm6269_vm5, %v6261_v13  ;;  %13433 = vmatprep.subr.mxu0 %v14010_v0 }
 0xe2f   :  { %13387 = vmatprep.mubr.msk.f32.mxu0 %vm14011_vm0, %v14010_v0  ;;  %13434 = vmatpush3.msra.mxu0 %v6494_v15  ;;  %v6648_v15 = vld [vmem:[%s16313_s15] sm:$0xff] }
 0xe30   :  { %13435 = vmatprep.subr.mxu0 %v14010_v0 }
 0xe31   :  { %13436 = vmatpush3.msra.mxu0 %v6493_v44 }
 0xe32   :  { %13388 = vmatmul.mubr.msk.f32.gmra.mxu0 %vm6269_vm5, %v6262_v11  ;;  %13437 = vmatprep.subr.mxu0 %v14010_v0  ;;  %v6242_v11 = vadd.f32 %v15743_v46, %v15147_v18  ;;  %v6227_v18 = vadd.f32 %v15737_v5, %v15165_v34  ;;  %v6568_v5 = vld [vmem:[#allocation19] sm:$0xff] }
 0xe33   :  { %13390 = vmatprep.mubr.msk.f32.mxu0 %vm14011_vm0, %v14010_v0  ;;  %13438 = vmatpush3.msra.mxu0 %v6492_v16  ;;  %v6823_v16 = vld [vmem:[%s16314_s16 + $0x78] sm:$0xff] }
 0xe34   :  { %13439 = vmatprep.subr.mxu0 %v14010_v0 }
 0xe35   :  { %13440 = vmatpush3.msra.mxu0 %v6491_v58  ;;  %v6822_v58 = vld [vmem:[%s16314_s16 + $0x70] sm:$0xff] }
 0xe36   :  { %13391 = vmatmul.mubr.msk.f32.gmra.mxu0 %vm6269_vm5, %v6263_v35  ;;  %13441 = vmatprep.subr.mxu0 %v14010_v0 }
 0xe37   :  { %13393 = vmatprep.mubr.msk.f32.mxu0 %vm14011_vm0, %v14010_v0  ;;  %13442 = vmatpush3.msra.mxu0 %v6490_v63  ;;  %v6649_v63 = vld [vmem:[%s16313_s15 + $0x8] sm:$0xff] }
 0xe38   :  { %13443 = vmatprep.subr.mxu0 %v14010_v0 }
 0xe39   :  { %13444 = vmatpush3.msra.mxu0 %v6489_v47  ;;  %v6821_v47 = vld [vmem:[%s16314_s16 + $0x68] sm:$0xff] }
 0xe3a   :  { %13394 = vmatmul.mubr.msk.f32.gmra.mxu0 %vm6269_vm5, %v6264_v43  ;;  %13445 = vmatprep.subr.mxu0 %v14010_v0 }
 0xe3b   :  { %13396 = vmatprep.mubr.msk.f32.mxu0 %vm14011_vm0, %v14010_v0  ;;  %13446 = vmatpush3.msra.mxu0 %v6488_v49  ;;  %v6820_v49 = vld [vmem:[%s16314_s16 + $0x60] sm:$0xff] }
 0xe3c   :  { %13447 = vmatprep.subr.mxu0 %v14010_v0 }
 0xe3d   :  { %13448 = vmatpush3.msra.mxu0 %v6487_v6  ;;  %v6650_v6 = vld [vmem:[%s16313_s15 + $0x10] sm:$0xff] }
 0xe3e   :  { %13397 = vmatmul.mubr.msk.f32.gmra.mxu0 %vm6269_vm5, %v6265_v37  ;;  %13449 = vmatprep.subr.mxu0 %v14010_v0 }
 0xe3f   :  { %13399 = vmatprep.mubr.msk.f32.mxu0 %vm14011_vm0, %v14010_v0  ;;  %13450 = vmatpush3.msra.mxu0 %v6486_v52  ;;  %v6819_v52 = vld [vmem:[%s16314_s16 + $0x58] sm:$0xff] }
 0xe40   :  { %13451 = vmatprep.subr.mxu0 %v14010_v0 }
 0xe41   :  { %13452 = vmatpush3.msra.mxu0 %v6485_v54  ;;  %v6818_v54 = vld [vmem:[%s16314_s16 + $0x50] sm:$0xff] }
 0xe42   :  { %13400 = vmatmul.mubr.msk.f32.gmra.mxu0 %vm6269_vm5, %v6266_v14  ;;  %13453 = vmatprep.subr.mxu0 %v14010_v0 }
 0xe43   :  { %13402 = vmatprep.mubr.msk.f32.mxu0 %vm14011_vm0, %v14010_v0  ;;  %13454 = vmatpush3.msra.mxu0 %v6484_v3  ;;  %v6651_v3 = vld [vmem:[%s16313_s15 + $0x18] sm:$0xff] }
 0xe44   :  { %13455 = vmatprep.subr.mxu0 %v14010_v0 }
 0xe45   :  { %13456 = vmatpush3.msra.mxu0 %v6483_v57  ;;  %v6817_v57 = vld [vmem:[%s16314_s16 + $0x48] sm:$0xff] }
 0xe46   :  { %13403 = vmatmul.mubr.msk.f32.gmra.mxu0 %vm6269_vm5, %v6267_v39  ;;  %13457 = vmatprep.subr.mxu0 %v14010_v0 }
 0xe47   :  { %13405 = vmatprep.mubr.msk.f32.mxu0 %vm14011_vm0, %v14010_v0  ;;  %13458 = vmatpush3.msra.mxu0 %v6482_v45  ;;  %v6816_v45 = vld [vmem:[%s16314_s16 + $0x40] sm:$0xff] }
 0xe48   :  { %13459 = vmatprep.subr.mxu0 %v14010_v0 }
 0xe49   :  { %13460 = vmatpush3.msra.mxu0 %v6481_v12 }
 0xe4a   :  { %13406 = vmatmul.mubr.msk.f32.gmra.mxu0 %vm6269_vm5, %v6268_v41 }
 0xe4b   :  { %13461 = vmatprep.mubr.msk.f32.mxu0 %vm14011_vm0, %v14010_v0 }
 0xeea   :  { %v6363_v48 = vpop.f32.mrf.mxu0 }
 0xeeb   :  { %v15914_v34 = vadd.f32 %v6363_v48, %v6217_v33  ;;  %v6652_v48 = vld [vmem:[%s16313_s15 + $0x20] sm:$0xff] }
 0xeec   :  { %v13383_v25 = vpop.f32.mrf.mxu0  ;;  %v6954_v33 = vld [vmem:[#allocation20 + $0x98] sm:$0xff] }
 0xeed   :  { %v6815_v25 = vld [vmem:[%s16314_s16 + $0x38] sm:$0xff] }
 0xeee   :  { %v6368_v59 = vpop.f32.mrf.mxu0 }
 0xeef   :  { %v15910_v28 = vadd.f32 %v6368_v59, %v6222_v8  ;;  %v6814_v59 = vld [vmem:[%s16314_s16 + $0x30] sm:$0xff]  ;;  %v6955_v8 = vld [vmem:[#allocation20 + $0xa0] sm:$0xff] }
 0xef0   :  { %v13386_v17 = vpop.f32.mrf.mxu0 }
 0xef1   :  { %v6653_v17 = vld [vmem:[%s16313_s15 + $0x28] sm:$0xff] }
 0xef2   :  { %v6373_v1 = vpop.f32.mrf.mxu0 }
 0xef3   :  { %v15904_v31 = vadd.f32 %v6373_v1, %v6227_v18  ;;  %v6813_v1 = vld [vmem:[%s16314_s16 + $0x28] sm:$0xff] }
 0xef4   :  { %v13389_v2 = vpop.f32.mrf.mxu0  ;;  %v6956_v18 = vld [vmem:[#allocation20 + $0xa8] sm:$0xff] }
 0xef5   :  { %v6812_v2 = vld [vmem:[%s16314_s16 + $0x20] sm:$0xff] }
 0xef6   :  { %v6378_v4 = vpop.f32.mrf.mxu0 }
 0xef7   :  { %v15898_v46 = vadd.f32 %v6378_v4, %v6232_v19  ;;  %v6654_v4 = vld [vmem:[%s16313_s15 + $0x30] sm:$0xff] }
 0xef8   :  { %v13392_v55 = vpop.f32.mrf.mxu0  ;;  %v6957_v19 = vld [vmem:[#allocation20 + $0xb0] sm:$0xff] }
 0xef9   :  { %v6811_v55 = vld [vmem:[%s16314_s16 + $0x18] sm:$0xff] }
 0xefa   :  { %v6383_v20 = vpop.f32.mrf.mxu0 }
 0xefb   :  { %v15892_v51 = vadd.f32 %v6383_v20, %v6237_v61  ;;  %v6810_v20 = vld [vmem:[%s16314_s16 + $0x10] sm:$0xff]  ;;  %v6958_v61 = vld [vmem:[#allocation20 + $0xb8] sm:$0xff] }
 0xefc   :  { %v13395_v23 = vpop.f32.mrf.mxu0 }
 0xefd   :  { %v6655_v23 = vld [vmem:[%s16313_s15 + $0x38] sm:$0xff] }
 0xefe   :  { %v6388_v7 = vpop.f32.mrf.mxu0 }
 0xeff   :  { %v15886_v21 = vadd.f32 %v6388_v7, %v6242_v11  ;;  %v6656_v7 = vld [vmem:[%s16313_s15 + $0x40] sm:$0xff] }
 0xf00   :  { %v13398_v26 = vpop.f32.mrf.mxu0  ;;  %v6959_v11 = vld [vmem:[#allocation20 + $0xc0] sm:$0xff] }
 0xf01   :  { %v6809_v26 = vld [vmem:[%s16314_s16 + $0x8] sm:$0xff] }
 0xf02   :  { %v6393_v40 = vpop.f32.mrf.mxu0 }
 0xf03   :  { %v15880_v53 = vadd.f32 %v6393_v40, %v6247_v32  ;;  %v6808_v40 = vld [vmem:[%s16314_s16] sm:$0xff]  ;;  %v6960_v32 = vld [vmem:[#allocation20 + $0xc8] sm:$0xff] }
 0xf04   :  { %v13401_v27 = vpop.f32.mrf.mxu0 }
 0xf05   :  { %v6966_v27 = vld [vmem:[#allocation20 + $0xf8] sm:$0xff] }
 0xf06   :  { %v6398_v38 = vpop.f32.mrf.mxu0  ;;  %6988 = vmatprep.subr.mxu0 %v6966_v27 }
 0xf07   :  { %v15874_v13 = vadd.f32 %v6398_v38, %v6252_v30  ;;  %v7225_v38 = vld [vmem:[#allocation20 + $0x1f8] sm:$0xff] }
 0xf08   :  { %v13404_v29 = vpop.f32.mrf.mxu0  ;;  %v6962_v30 = vld [vmem:[#allocation20 + $0xd8] sm:$0xff] }
 0xf09   :  { %v6965_v29 = vld [vmem:[#allocation20 + $0xf0] sm:$0xff] }
 0xf0a   :  { %v6403_v10 = vpop.f32.mrf.mxu0 }
 0xf0b   :  { %v15870_v22 = vadd.f32 %v6403_v10, %v6257_v9  ;;  %v6964_v9 = vld [vmem:[#allocation20 + $0xe8] sm:$0xff]  ;;  %v6963_v10 = vld [vmem:[#allocation20 + $0xe0] sm:$0xff] }
 0xf0c   :  { %v13407_v62 = vpop.f32.mrf.mxu0 }
 0xf0d   :  { %13409 = vmatpush3.msra.mxu1 %v15870_v22  ;;  %v6961_v62 = vld [vmem:[#allocation20 + $0xd0] sm:$0xff] }
 0xf0e   :  { %13410 = vmatprep.subr.mxu1 %v14010_v0 }
 0xf0f   :  { %13411 = vmatpush3.msra.mxu1 %v15874_v13 }
 0xf10   :  { %13412 = vmatprep.subr.mxu1 %v14010_v0 }
 0xf11   :  { %13413 = vmatpush3.msra.mxu1 %v15880_v53 }
 0xf12   :  { %13414 = vmatprep.subr.mxu1 %v14010_v0 }
 0xf13   :  { %13415 = vmatpush3.msra.mxu1 %v15886_v21 }
 0xf14   :  { %13416 = vmatprep.subr.mxu1 %v14010_v0 }
 0xf15   :  { %13417 = vmatpush3.msra.mxu1 %v15892_v51 }
 0xf16   :  { %13418 = vmatprep.subr.mxu1 %v14010_v0 }
 0xf17   :  { %13419 = vmatpush3.msra.mxu1 %v15898_v46 }
 0xf18   :  { %13420 = vmatprep.subr.mxu1 %v14010_v0 }
 0xf19   :  { %13421 = vmatpush3.msra.mxu1 %v15904_v31 }
 0xf1a   :  { %13422 = vmatprep.subr.mxu1 %v14010_v0 }
 0xf1b   :  { %13423 = vmatpush3.msra.mxu1 %v15910_v28 }
 0xf1c   :  { %13424 = vmatprep.subr.mxu1 %v14010_v0 }
 0xf1d   :  { %13425 = vmatpush3.msra.mxu1 %v15914_v34 }
 0xf1e   :  { %13427 = vmatmul.mubr.msk.f32.vlgmr.msra.gmra.mxu1 %vm2747_vm3, %v6407_v36  ;;  %13464 = vmatprep.subr.mxu1 %v14010_v0  ;;  %v6953_v36 = vld [vmem:[#allocation20 + $0x90] sm:$0xff] }
 0xf1f   :  { %13466 = vmatprep.mubr.msk.f32.mxu1 %vm14011_vm0, %v14010_v0  ;;  %13465 = vmatpush3.msra.mxu1 %v6568_v5 }
 0xf20   :  { %13469 = vmatprep.subr.mxu1 %v14010_v0 }
 0xfde   :  { %v6477_v56 = vpop.f32.mrf.mxu1 }
 0xfdf   :  { %13462 = vmatmul.mubr.f32.vlgmr.msra.gmra.mxu0 %v6477_v56 }
 0xfe0   :  { %v13428_v60 = vpop.f32.mrf.mxu1  ;;  %7036 = vmatprep.mubr.f32.mxu0 %v14010_v0  ;;  %6989 = vmatpush1.msra.mxu0 %v6965_v29  ;;  %v7410_v29 = vld [vmem:[#allocation20 + $0x2f0] sm:$0xff] }
 0xfe1   :  { %6990 = vmatprep.subr.mxu0 %v6964_v9  ;;  %v7224_v60 = vld [vmem:[#allocation20 + $0x1f0] sm:$0xff] }
 0xfe2   :  { %6991 = vmatpush1.msra.mxu0 %v6963_v10  ;;  %v6947_v10 = vld [vmem:[#allocation20 + $0x68] sm:$0xff] }
 0xfe3   :  { %6992 = vmatprep.subr.mxu0 %v6962_v30  ;;  %v7409_v30 = vld [vmem:[#allocation20 + $0x2e8] sm:$0xff] }
 0xfe4   :  { %6993 = vmatpush1.msra.mxu0 %v6961_v62  ;;  %v6946_v62 = vld [vmem:[#allocation20 + $0x60] sm:$0xff] }
 0xfe5   :  { %6994 = vmatprep.subr.mxu0 %v6960_v32  ;;  %v7408_v32 = vld [vmem:[#allocation20 + $0x2e0] sm:$0xff] }
 0xfe6   :  { %6995 = vmatpush1.msra.mxu0 %v6959_v11 }
 0xfe7   :  { %6996 = vmatprep.subr.mxu0 %v6958_v61  ;;  %v6945_v61 = vld [vmem:[#allocation20 + $0x58] sm:$0xff] }
 0xfe8   :  { %6997 = vmatpush1.msra.mxu0 %v6957_v19  ;;  %v7407_v19 = vld [vmem:[#allocation20 + $0x2d8] sm:$0xff] }
 0xfe9   :  { %6998 = vmatprep.subr.mxu0 %v6956_v18  ;;  %v6944_v18 = vld [vmem:[#allocation20 + $0x50] sm:$0xff] }
 0xfea   :  { %6999 = vmatpush1.msra.mxu0 %v6955_v8  ;;  %v7406_v8 = vld [vmem:[#allocation20 + $0x2d0] sm:$0xff] }
 0xfeb   :  { %7000 = vmatprep.subr.mxu0 %v6954_v33 }
 0xfec   :  { %7001 = vmatpush1.msra.mxu0 %v6953_v36  ;;  %v6943_v36 = vld [vmem:[#allocation20 + $0x48] sm:$0xff] }
0x109f   :  { %v6563_v24 = vpop.f32.mrf.mxu0 }
0x10a0   :  { %v6567_v35 = vmax.f32 %v6563_v24, 0.0  ;;  %v7223_v24 = vld [vmem:[#allocation20 + $0x1e8] sm:$0xff] }
0x10a1   :  { %v13463_v43 = vpop.f32.mrf.mxu0 }
0x10a2   :  { %13467 = vmatmul.mubr.msk.f32.vlgmr.msra.gmra.mxu1 %vm6269_vm5, %v6567_v35  ;;  %v7222_v35 = vld [vmem:[#allocation20 + $0x1e0] sm:$0xff] }
0x10a3   :  { %13471 = vmatprep.mubr.msk.f32.mxu1 %vm14011_vm0, %v14010_v0 }
0x1162   :  { %v6638_v37 = vpop.f32.mrf.mxu1 }
0x1163   :  { %v6642_v14 = vsub.f32 0.0, %v6638_v37  ;;  %v7221_v37 = vld [vmem:[#allocation20 + $0x1d8] sm:$0xff] }
0x1164   :  { %v13468_v39 = vpop.f32.mrf.mxu1 }
0x1165   :  { %v6643_v41 = vmul.f32 1.442695, %v6642_v14  ;;  %v7220_v39 = vld [vmem:[#allocation20 + $0x1d0] sm:$0xff] }
0x1167   :  { %13640 = vpow2.f32 %v6643_v41 }
0x1174   :  { %v13641_v50 = vpop.eup %13640 }
0x1175   :  { %v6645_v42 = vadd.f32 1.0, %v13641_v50  ;;  %v7219_v50 = vld [vmem:[#allocation20 + $0x1c8] sm:$0xff] }
0x1177   :  { %13642 = vrcp.f32 %v6645_v42 }
0x1184   :  { %v13643_v44 = vpop.eup %13642 }
0x1185   :  { %13470 = vmatpush3.msk.msra.mxu1 %vm6685_vm6, %v13643_v44 }
0x1186   :  { %13472 = vmatmul.mubr.msk.f32.vlgmr.msra.gmra.mxu1 %vm6657_vm7, %v6648_v15  ;;  %13498 = vmatprep.subr.mxu1 %v14010_v0  ;;  %v7217_v15 = vld [vmem:[#allocation20 + $0x1b8] sm:$0xff] }
0x1187   :  { %13474 = vmatprep.mubr.msk.f32.mxu1 %vm14011_vm0, %v14010_v0  ;;  %13499 = vmatpush3.msra.mxu1 %v6823_v16  ;;  %v7216_v16 = vld [vmem:[#allocation20 + $0x1b0] sm:$0xff] }
0x1188   :  { %13500 = vmatprep.subr.mxu1 %v14010_v0 }
0x1189   :  { %13501 = vmatpush3.msra.mxu1 %v6822_v58 }
0x118a   :  { %13475 = vmatmul.mubr.msk.f32.gmra.mxu1 %vm6657_vm7, %v6649_v63  ;;  %13502 = vmatprep.subr.mxu1 %v14010_v0  ;;  %v7214_v63 = vld [vmem:[#allocation20 + $0x1a0] sm:$0xff] }
0x118b   :  { %13477 = vmatprep.mubr.msk.f32.mxu1 %vm14011_vm0, %v14010_v0  ;;  %13503 = vmatpush3.msra.mxu1 %v6821_v47 }
0x118c   :  { %13504 = vmatprep.subr.mxu1 %v14010_v0 }
0x118d   :  { %13505 = vmatpush3.msra.mxu1 %v6820_v49  ;;  %v7213_v49 = vld [vmem:[#allocation20 + $0x198] sm:$0xff] }
0x118e   :  { %13478 = vmatmul.mubr.msk.f32.gmra.mxu1 %vm6657_vm7, %v6650_v6  ;;  %13506 = vmatprep.subr.mxu1 %v14010_v0 }
0x118f   :  { %13480 = vmatprep.mubr.msk.f32.mxu1 %vm14011_vm0, %v14010_v0  ;;  %13507 = vmatpush3.msra.mxu1 %v6819_v52  ;;  %v7212_v52 = vld [vmem:[#allocation20 + $0x190] sm:$0xff] }
0x1190   :  { %13508 = vmatprep.subr.mxu1 %v14010_v0 }
0x1191   :  { %13509 = vmatpush3.msra.mxu1 %v6818_v54 }
0x1192   :  { %13481 = vmatmul.mubr.msk.f32.gmra.mxu1 %vm6657_vm7, %v6651_v3  ;;  %13510 = vmatprep.subr.mxu1 %v14010_v0 }
0x1193   :  { %13483 = vmatprep.mubr.msk.f32.mxu1 %vm14011_vm0, %v14010_v0  ;;  %13511 = vmatpush3.msra.mxu1 %v6817_v57 }
0x1194   :  { %13512 = vmatprep.subr.mxu1 %v14010_v0 }
0x1195   :  { %13513 = vmatpush3.msra.mxu1 %v6816_v45 }
0x1196   :  { %13484 = vmatmul.mubr.msk.f32.gmra.mxu1 %vm6657_vm7, %v6652_v48  ;;  %13514 = vmatprep.subr.mxu1 %v14010_v0 }
0x1197   :  { %13486 = vmatprep.mubr.msk.f32.mxu1 %vm14011_vm0, %v14010_v0  ;;  %13515 = vmatpush3.msra.mxu1 %v6815_v25 }
0x1198   :  { %13516 = vmatprep.subr.mxu1 %v14010_v0 }
0x1199   :  { %13517 = vmatpush3.msra.mxu1 %v6814_v59 }
0x119a   :  { %13487 = vmatmul.mubr.msk.f32.gmra.mxu1 %vm6657_vm7, %v6653_v17  ;;  %13518 = vmatprep.subr.mxu1 %v14010_v0 }
0x119b   :  { %13489 = vmatprep.mubr.msk.f32.mxu1 %vm14011_vm0, %v14010_v0  ;;  %13519 = vmatpush3.msra.mxu1 %v6813_v1 }
0x119c   :  { %13520 = vmatprep.subr.mxu1 %v14010_v0 }
0x119d   :  { %13521 = vmatpush3.msra.mxu1 %v6812_v2 }
0x119e   :  { %13490 = vmatmul.mubr.msk.f32.gmra.mxu1 %vm6657_vm7, %v6654_v4  ;;  %13522 = vmatprep.subr.mxu1 %v14010_v0 }
0x119f   :  { %13492 = vmatprep.mubr.msk.f32.mxu1 %vm14011_vm0, %v14010_v0  ;;  %13523 = vmatpush3.msra.mxu1 %v6811_v55 }
0x11a0   :  { %13524 = vmatprep.subr.mxu1 %v14010_v0 }
0x11a1   :  { %13525 = vmatpush3.msra.mxu1 %v6810_v20  ;;  %v7211_v20 = vld [vmem:[#allocation20 + $0x188] sm:$0xff] }
0x11a2   :  { %13493 = vmatmul.mubr.msk.f32.gmra.mxu1 %vm6657_vm7, %v6655_v23  ;;  %13526 = vmatprep.subr.mxu1 %v14010_v0  ;;  %v6951_v23 = vld [vmem:[#allocation20 + $0x80] sm:$0xff] }
0x11a3   :  { %13495 = vmatprep.mubr.msk.f32.mxu1 %vm14011_vm0, %v14010_v0  ;;  %13527 = vmatpush3.msra.mxu1 %v6809_v26  ;;  %v7411_v26 = vld [vmem:[#allocation20 + $0x2f8] sm:$0xff] }
0x11a4   :  { %13528 = vmatprep.subr.mxu1 %v14010_v0 }
0x11a5   :  { %13529 = vmatpush3.msra.mxu1 %v6808_v40 }
0x11a6   :  { %13496 = vmatmul.mubr.msk.f32.gmra.mxu1 %vm6657_vm7, %v6656_v7  ;;  %7245 = vmatprep.subr.mxu1 %v7225_v38  ;;  %v7210_v7 = vld [vmem:[#allocation20 + $0x180] sm:$0xff]  ;;  %v6948_v38 = vld [vmem:[#allocation20 + $0x70] sm:$0xff] }
0x11a7   :  { %13530 = vmatprep.mubr.msk.f32.mxu1 %vm14011_vm0, %v14010_v0 }
0x1246   :  { %v6755_v12 = vpop.f32.mrf.mxu1 }
0x1247   :  { %v6799_v56 = vmul.f32 %v6755_v12, %v15914_v34  ;;  %v7218_v34 = vld [vmem:[#allocation20 + $0x1c0] sm:$0xff]  ;;  %v7405_v12 = vld [vmem:[#allocation20 + $0x2c8] sm:$0xff] }
0x1248   :  { %v13473_v5 = vpop.f32.mrf.mxu1 }
0x1249   :  { %13531 = vmatmul.mubr.f32.vlgmr.msra.gmra.mxu1 %v6799_v56  ;;  %v6942_v56 = vld [vmem:[#allocation20 + $0x40] sm:$0xff] }
0x124a   :  { %v6760_v43 = vpop.f32.mrf.mxu1  ;;  %13533 = vmatprep.mubr.msk.f32.mxu1 %vm14011_vm0, %v14010_v0  ;;  %7246 = vmatpush1.msra.mxu1 %v7224_v60  ;;  %v7404_v60 = vld [vmem:[#allocation20 + $0x2c0] sm:$0xff] }
0x124b   :  { %v6800_v14 = vmul.f32 %v6760_v43, %v15910_v28  ;;  %7247 = vmatprep.subr.mxu1 %v7223_v24  ;;  %v7215_v28 = vld [vmem:[#allocation20 + $0x1a8] sm:$0xff]  ;;  %v6941_v24 = vld [vmem:[#allocation20 + $0x38] sm:$0xff]  ;;  %v6940_v43 = vld [vmem:[#allocation20 + $0x30] sm:$0xff] }
0x124c   :  { %v13476_v41 = vpop.f32.mrf.mxu1  ;;  %7248 = vmatpush1.msra.mxu1 %v7222_v35  ;;  %v7403_v35 = vld [vmem:[#allocation20 + $0x2b8] sm:$0xff] }
0x124d   :  { %13534 = vmatmul.mubr.f32.gmra.mxu1 %v6800_v14  ;;  %7249 = vmatprep.subr.mxu1 %v7221_v37  ;;  %v7402_v37 = vld [vmem:[#allocation20 + $0x2b0] sm:$0xff]  ;;  %v7401_v41 = vld [vmem:[#allocation20 + $0x2a8] sm:$0xff] }
0x124e   :  { %v6765_v42 = vpop.f32.mrf.mxu1  ;;  %13536 = vmatprep.mubr.msk.f32.mxu1 %vm14011_vm0, %v14010_v0  ;;  %7250 = vmatpush1.msra.mxu1 %v7220_v39  ;;  %v6939_v39 = vld [vmem:[#allocation20 + $0x28] sm:$0xff] }
0x124f   :  { %v6801_v44 = vmul.f32 %v6765_v42, %v15904_v31  ;;  %7251 = vmatprep.subr.mxu1 %v7219_v50  ;;  %v6938_v50 = vld [vmem:[#allocation20 + $0x20] sm:$0xff] }
0x1250   :  { %v13479_v58 = vpop.f32.mrf.mxu1  ;;  %7252 = vmatpush1.msra.mxu1 %v7218_v34  ;;  %v7400_v34 = vld [vmem:[#allocation20 + $0x2a0] sm:$0xff] }
0x1251   :  { %13537 = vmatmul.mubr.f32.gmra.mxu1 %v6801_v44  ;;  %7253 = vmatprep.subr.mxu1 %v7217_v15  ;;  %v6937_v15 = vld [vmem:[#allocation20 + $0x18] sm:$0xff]  ;;  %v7398_v58 = vld [vmem:[#allocation20 + $0x290] sm:$0xff] }
0x1252   :  { %v6770_v47 = vpop.f32.mrf.mxu1  ;;  %13539 = vmatprep.mubr.msk.f32.mxu1 %vm14011_vm0, %v14010_v0  ;;  %7254 = vmatpush1.msra.mxu1 %v7216_v16  ;;  %v7399_v44 = vld [vmem:[#allocation20 + $0x298] sm:$0xff]  ;;  %v6936_v16 = vld [vmem:[#allocation20 + $0x10] sm:$0xff] }
0x1253   :  { %v6802_v6 = vmul.f32 %v6770_v47, %v15898_v46  ;;  %7255 = vmatprep.subr.mxu1 %v7215_v28  ;;  %v7397_v47 = vld [vmem:[#allocation20 + $0x288] sm:$0xff] }
0x1254   :  { %v13482_v54 = vpop.f32.mrf.mxu1  ;;  %7256 = vmatpush1.msra.mxu1 %v7214_v63  ;;  %v6935_v63 = vld [vmem:[#allocation20 + $0x8] sm:$0xff] }
0x1255   :  { %13540 = vmatmul.mubr.f32.gmra.mxu1 %v6802_v6  ;;  %7257 = vmatprep.subr.mxu1 %v7213_v49  ;;  %v6934_v49 = vld [vmem:[#allocation20] sm:$0xff]  ;;  %v7132_v54 = vld [vmem:[#allocation20 + $0x178] sm:$0xff] }
0x1256   :  { %v6775_v31 = vpop.f32.mrf.mxu1  ;;  %13542 = vmatprep.mubr.msk.f32.mxu1 %vm14011_vm0, %v14010_v0  ;;  %7258 = vmatpush1.msra.mxu1 %v7212_v52  ;;  %v7396_v52 = vld [vmem:[#allocation20 + $0x280] sm:$0xff] }
0x1257   :  { %v6803_v3 = vmul.f32 %v6775_v31, %v15892_v51  ;;  %7259 = vmatprep.subr.mxu1 %v7211_v20  ;;  %v7126_v20 = vld [vmem:[#allocation20 + $0x148] sm:$0xff] }
0x1258   :  { %v13485_v57 = vpop.f32.mrf.mxu1  ;;  %7260 = vmatpush1.msra.mxu1 %v7210_v7  ;;  %v7125_v7 = vld [vmem:[#allocation20 + $0x140] sm:$0xff] }
0x1259   :  { %13543 = vmatmul.mubr.f32.gmra.mxu1 %v6803_v3  ;;  %7431 = vmatprep.subr.mxu1 %v7411_v26  ;;  %v7597_v3 = vld [vmem:[#allocation20 + $0x3f8] sm:$0xff] }
0x125a   :  { %v6780_v45 = vpop.f32.mrf.mxu1  ;;  %13545 = vmatprep.mubr.msk.f32.mxu1 %vm14011_vm0, %v14010_v0 }
0x125b   :  { %v6804_v46 = vmul.f32 %v6780_v45, %v15886_v21  ;;  %v7131_v45 = vld [vmem:[#allocation20 + $0x170] sm:$0xff] }
0x125c   :  { %v13488_v48 = vpop.f32.mrf.mxu1 }
0x125d   :  { %13546 = vmatmul.mubr.f32.gmra.mxu1 %v6804_v46  ;;  %v7596_v46 = vld [vmem:[#allocation20 + $0x3f0] sm:$0xff] }
0x125e   :  { %v6785_v25 = vpop.f32.mrf.mxu1  ;;  %13548 = vmatprep.mubr.msk.f32.mxu1 %vm14011_vm0, %v14010_v0 }
0x125f   :  { %v6805_v59 = vmul.f32 %v6785_v25, %v15880_v53  ;;  %v6952_v53 = vld [vmem:[#allocation20 + $0x88] sm:$0xff] }
0x1260   :  { %v13491_v17 = vpop.f32.mrf.mxu1  ;;  %7002 = vmatprep.subr.mxu0 %v6952_v53  ;;  %v7130_v25 = vld [vmem:[#allocation20 + $0x168] sm:$0xff] }
0x1261   :  { %13549 = vmatmul.mubr.f32.gmra.mxu1 %v6805_v59  ;;  %7003 = vmatpush1.msra.mxu0 %v6951_v23  ;;  %v7595_v59 = vld [vmem:[#allocation20 + $0x3e8] sm:$0xff]  ;;  %v7129_v17 = vld [vmem:[#allocation20 + $0x160] sm:$0xff] }
0x1262   :  { %v6790_v1 = vpop.f32.mrf.mxu1  ;;  %13551 = vmatprep.mubr.msk.f32.mxu1 %vm14011_vm0, %v14010_v0  ;;  %v7591_v23 = vld [vmem:[#allocation20 + $0x3c8] sm:$0xff] }
0x1263   :  { %v6806_v51 = vmul.f32 %v6790_v1, %v15874_v13  ;;  %v6949_v13 = vld [vmem:[#allocation20 + $0x78] sm:$0xff]  ;;  %v7594_v1 = vld [vmem:[#allocation20 + $0x3e0] sm:$0xff] }
0x1264   :  { %v13494_v2 = vpop.f32.mrf.mxu1  ;;  %7061 = vmatprep.subr.mxu0 %v6949_v13  ;;  %v7590_v13 = vld [vmem:[#allocation20 + $0x3c0] sm:$0xff] }
0x1265   :  { %13552 = vmatmul.mubr.f32.gmra.mxu1 %v6806_v51  ;;  %v7128_v2 = vld [vmem:[#allocation20 + $0x158] sm:$0xff] }
0x1266   :  { %v6795_v4 = vpop.f32.mrf.mxu1  ;;  %13554 = vmatprep.mubr.msk.f32.mxu1 %vm14011_vm0, %v14010_v0 }
0x1267   :  { %v6807_v21 = vmul.f32 %v6795_v4, %v15870_v22  ;;  %v7593_v4 = vld [vmem:[#allocation20 + $0x3d8] sm:$0xff] }
0x1268   :  { %v13497_v55 = vpop.f32.mrf.mxu1 }
0x1269   :  { %13555 = vmatmul.mubr.f32.gmra.mxu1 %v6807_v21  ;;  %v7127_v21 = vld [vmem:[#allocation20 + $0x150] sm:$0xff] }
0x126a   :  { %7293 = vmatprep.mubr.f32.mxu1 %v14010_v0  ;;  %v7592_v55 = vld [vmem:[#allocation20 + $0x3d0] sm:$0xff] }
0x1309   :  { %v16075_v40 = vpop.f32.mrf.mxu1 }
0x130a   :  { %v6968_v22 = vrot.slane %v16075_v40, 2  ;;  %v7226_v27 = vrot.slane %v16075_v40, 6 }
0x130b   :  { %v13532_v9 = vpop.f32.mrf.mxu1 }
0x130c   :  { %10611 = vmatmul.mubr.msk.f32.vlgmr.msra.gmra.mxu0 %vm6969_vm8, %v6968_v22  ;;  %10614 = vmatmul.mubr.msk.f32.vlgmr.msra.gmra.mxu1 %vm6969_vm8, %v7226_v27  ;;  %v7124_v22 = vld [vmem:[#allocation20 + $0x138] sm:$0xff] }
0x130d   :  { %7062 = vmatpush1.msra.mxu0 %v6948_v38  ;;  %7432 = vmatpush1.msra.mxu1 %v7410_v29  ;;  %v16081_v11 = vpop.f32.mrf.mxu1  ;;  %v7589_v27 = vld [vmem:[#allocation20 + $0x3b8] sm:$0xff]  ;;  %v7123_v38 = vld [vmem:[#allocation20 + $0x130] sm:$0xff] }
0x130e   :  { %7063 = vmatprep.subr.mxu0 %v6947_v10  ;;  %7433 = vmatprep.subr.mxu1 %v7409_v30  ;;  %v7412_v57 = vrot.slane %v16081_v11, 2  ;;  %v7588_v29 = vld [vmem:[#allocation20 + $0x3b0] sm:$0xff]  ;;  %v7122_v10 = vld [vmem:[#allocation20 + $0x128] sm:$0xff] }
0x130f   :  { %7064 = vmatpush1.msra.mxu0 %v6946_v62  ;;  %7434 = vmatpush1.msra.mxu1 %v7408_v32  ;;  %v13535_v33 = vpop.f32.mrf.mxu1  ;;  %v7587_v30 = vld [vmem:[#allocation20 + $0x3a8] sm:$0xff]  ;;  %v7121_v62 = vld [vmem:[#allocation20 + $0x120] sm:$0xff] }
0x1310   :  { %7065 = vmatprep.subr.mxu0 %v6945_v61  ;;  %7435 = vmatprep.subr.mxu1 %v7407_v19  ;;  %v7586_v32 = vld [vmem:[#allocation20 + $0x3a0] sm:$0xff]  ;;  %v7120_v19 = vld [vmem:[#allocation20 + $0x118] sm:$0xff]  ;;  %v7584_v33 = vld [vmem:[#allocation20 + $0x390] sm:$0xff] }
0x1311   :  { %7066 = vmatpush1.msra.mxu0 %v6944_v18  ;;  %7436 = vmatpush1.msra.mxu1 %v7406_v8  ;;  %v16083_v5 = vpop.f32.mrf.mxu1  ;;  %v7585_v18 = vld [vmem:[#allocation20 + $0x398] sm:$0xff]  ;;  %v7119_v8 = vld [vmem:[#allocation20 + $0x110] sm:$0xff] }
0x1312   :  { %7067 = vmatprep.subr.mxu0 %v6943_v36  ;;  %7437 = vmatprep.subr.mxu1 %v7405_v12  ;;  %v7118_v12 = vld [vmem:[#allocation20 + $0x108] sm:$0xff] }
0x1313   :  { %7068 = vmatpush1.msra.mxu0 %v6942_v56  ;;  %7438 = vmatpush1.msra.mxu1 %v7404_v60  ;;  %v13538_v14 = vpop.f32.mrf.mxu1  ;;  %v7583_v56 = vld [vmem:[#allocation20 + $0x388] sm:$0xff]  ;;  %v7117_v60 = vld [vmem:[#allocation20 + $0x100] sm:$0xff] }
0x1314   :  { %7069 = vmatprep.subr.mxu0 %v6941_v24  ;;  %7439 = vmatprep.subr.mxu1 %v7403_v35  ;;  %v7582_v24 = vld [vmem:[#allocation20 + $0x380] sm:$0xff]  ;;  %v7783_v14 = vld [vmem:[#allocation20 + $0x4f8] sm:$0xff] }
0x1315   :  { %7070 = vmatpush1.msra.mxu0 %v6940_v43  ;;  %7440 = vmatpush1.msra.mxu1 %v7402_v37  ;;  %v16085_v42 = vpop.f32.mrf.mxu1  ;;  %v7318_v43 = vld [vmem:[#allocation20 + $0x278] sm:$0xff]  ;;  %v7133_v37 = vrot.slane %v16075_v40, 4 }
0x1316   :  { %7071 = vmatprep.subr.mxu0 %v6939_v39  ;;  %7441 = vmatprep.subr.mxu1 %v7401_v41  ;;  %v7598_v39 = vrot.slane %v16081_v11, 6  ;;  %v7317_v41 = vld [vmem:[#allocation20 + $0x270] sm:$0xff] }
0x1317   :  { %7072 = vmatpush1.msra.mxu0 %v6938_v50  ;;  %7442 = vmatpush1.msra.mxu1 %v7400_v34  ;;  %v13541_v28 = vpop.f32.mrf.mxu1  ;;  %v7782_v50 = vld [vmem:[#allocation20 + $0x4f0] sm:$0xff]  ;;  %v7316_v34 = vld [vmem:[#allocation20 + $0x268] sm:$0xff] }
0x1318   :  { %7073 = vmatprep.subr.mxu0 %v6937_v15  ;;  %7443 = vmatprep.subr.mxu1 %v7399_v44  ;;  %v7781_v15 = vld [vmem:[#allocation20 + $0x4e8] sm:$0xff]  ;;  %v7780_v44 = vld [vmem:[#allocation20 + $0x4e0] sm:$0xff]  ;;  %v7313_v28 = vld [vmem:[#allocation20 + $0x250] sm:$0xff] }
0x1319   :  { %7074 = vmatpush1.msra.mxu0 %v6936_v16  ;;  %7444 = vmatpush1.msra.mxu1 %v7398_v58  ;;  %v16087_v6 = vpop.f32.mrf.mxu1  ;;  %v7314_v16 = vld [vmem:[#allocation20 + $0x258] sm:$0xff] }
0x131a   :  { %7075 = vmatprep.subr.mxu0 %v6935_v63  ;;  %7445 = vmatprep.subr.mxu1 %v7397_v47  ;;  %v7779_v58 = vld [vmem:[#allocation20 + $0x4d8] sm:$0xff]  ;;  %v7778_v63 = vld [vmem:[#allocation20 + $0x4d0] sm:$0xff]  ;;  %v7312_v47 = vld [vmem:[#allocation20 + $0x248] sm:$0xff] }
0x131b   :  { %7076 = vmatpush1.msra.mxu0 %v6934_v49  ;;  %7109 = vmatprep.mubr.f32.mxu0 %v14010_v0  ;;  %v13544_v31 = vpop.f32.mrf.mxu1  ;;  %v7777_v49 = vld [vmem:[#allocation20 + $0x4c8] sm:$0xff] }
0x131c   :  { %7446 = vmatpush1.msra.mxu1 %v7396_v52  ;;  %7479 = vmatprep.mubr.f32.mxu1 %v14010_v0  ;;  %v7311_v52 = vld [vmem:[#allocation20 + $0x240] sm:$0xff]  ;;  %v7310_v31 = vld [vmem:[#allocation20 + $0x238] sm:$0xff] }
0x131d   :  { %10612 = vmatmul.mubr.msk.f32.vlgmr.msra.gmra.mxu0 %vm6969_vm8, %v16075_v40  ;;  %7152 = vmatprep.subr.mxu0 %v7132_v54  ;;  %v16094_v48 = vpop.f32.mrf.mxu1  ;;  %v7315_v40 = vld [vmem:[#allocation20 + $0x260] sm:$0xff] }
0x131e   :  { %10616 = vmatmul.mubr.msk.f32.vlgmr.msra.gmra.mxu1 %vm6969_vm8, %v7412_v57  ;;  %7617 = vmatprep.subr.mxu1 %v7597_v3  ;;  %v7776_v54 = vld [vmem:[#allocation20 + $0x4c0] sm:$0xff]  ;;  %v7775_v3 = vld [vmem:[#allocation20 + $0x4b8] sm:$0xff]  ;;  %v7309_v57 = vld [vmem:[#allocation20 + $0x230] sm:$0xff] }
0x131f   :  { %7153 = vmatpush1.msra.mxu0 %v7131_v45  ;;  %7618 = vmatpush1.msra.mxu1 %v7596_v46  ;;  %v13547_v51 = vpop.f32.mrf.mxu1  ;;  %v7774_v45 = vld [vmem:[#allocation20 + $0x4b0] sm:$0xff]  ;;  %v7308_v46 = vld [vmem:[#allocation20 + $0x228] sm:$0xff] }
0x1320   :  { %7154 = vmatprep.subr.mxu0 %v7130_v25  ;;  %7619 = vmatprep.subr.mxu1 %v7595_v59  ;;  %v7773_v25 = vld [vmem:[#allocation20 + $0x4a8] sm:$0xff]  ;;  %v7307_v59 = vld [vmem:[#allocation20 + $0x220] sm:$0xff]  ;;  %v7771_v51 = vld [vmem:[#allocation20 + $0x498] sm:$0xff] }
0x1321   :  { %7155 = vmatpush1.msra.mxu0 %v7129_v17  ;;  %7620 = vmatpush1.msra.mxu1 %v7594_v1  ;;  %v16097_v53 = vpop.f32.mrf.mxu1  ;;  %v7772_v17 = vld [vmem:[#allocation20 + $0x4a0] sm:$0xff]  ;;  %v7306_v1 = vld [vmem:[#allocation20 + $0x218] sm:$0xff] }
0x1322   :  { %7156 = vmatprep.subr.mxu0 %v7128_v2  ;;  %7621 = vmatprep.subr.mxu1 %v7593_v4  ;;  %v7305_v2 = vld [vmem:[#allocation20 + $0x210] sm:$0xff] }
0x1323   :  { %7157 = vmatpush1.msra.mxu0 %v7127_v21  ;;  %7622 = vmatpush1.msra.mxu1 %v7592_v55  ;;  %v13550_v26 = vpop.f32.mrf.mxu1  ;;  %v7770_v4 = vld [vmem:[#allocation20 + $0x490] sm:$0xff]  ;;  %v7304_v21 = vld [vmem:[#allocation20 + $0x208] sm:$0xff] }
0x1324   :  { %7158 = vmatprep.subr.mxu0 %v7126_v20  ;;  %7623 = vmatprep.subr.mxu1 %v7591_v23  ;;  %v7769_v55 = vld [vmem:[#allocation20 + $0x488] sm:$0xff]  ;;  %v7303_v20 = vld [vmem:[#allocation20 + $0x200] sm:$0xff]  ;;  %v7784_v26 = vrot.slane %v16083_v5, 2 }
0x1325   :  { %7159 = vmatpush1.msra.mxu0 %v7125_v7  ;;  %7624 = vmatpush1.msra.mxu1 %v7590_v13  ;;  %v16099_v9 = vpop.f32.mrf.mxu1  ;;  %v7768_v23 = vld [vmem:[#allocation20 + $0x480] sm:$0xff]  ;;  %v7504_v7 = vld [vmem:[#allocation20 + $0x378] sm:$0xff] }
0x1326   :  { %7160 = vmatprep.subr.mxu0 %v7124_v22  ;;  %7625 = vmatprep.subr.mxu1 %v7589_v27  ;;  %v7969_v13 = vld [vmem:[#allocation20 + $0x5f8] sm:$0xff]  ;;  %v7503_v22 = vld [vmem:[#allocation20 + $0x370] sm:$0xff] }
0x1327   :  { %7161 = vmatpush1.msra.mxu0 %v7123_v38  ;;  %7626 = vmatpush1.msra.mxu1 %v7588_v29  ;;  %v13553_v61 = vpop.f32.mrf.mxu1  ;;  %v7968_v27 = vld [vmem:[#allocation20 + $0x5f0] sm:$0xff]  ;;  %v7502_v38 = vld [vmem:[#allocation20 + $0x368] sm:$0xff] }
0x1328   :  { %7162 = vmatprep.subr.mxu0 %v7122_v10  ;;  %7627 = vmatprep.subr.mxu1 %v7587_v30  ;;  %v7967_v29 = vld [vmem:[#allocation20 + $0x5e8] sm:$0xff]  ;;  %v7501_v10 = vld [vmem:[#allocation20 + $0x360] sm:$0xff]  ;;  %v7499_v61 = vld [vmem:[#allocation20 + $0x350] sm:$0xff] }
0x1329   :  { %7163 = vmatpush1.msra.mxu0 %v7121_v62  ;;  %7628 = vmatpush1.msra.mxu1 %v7586_v32  ;;  %v16101_v36 = vpop.f32.mrf.mxu1  ;;  %v7966_v30 = vld [vmem:[#allocation20 + $0x5e0] sm:$0xff]  ;;  %v7500_v62 = vld [vmem:[#allocation20 + $0x358] sm:$0xff] }
0x132a   :  { %7164 = vmatprep.subr.mxu0 %v7120_v19  ;;  %7629 = vmatprep.subr.mxu1 %v7585_v18  ;;  %v7965_v32 = vld [vmem:[#allocation20 + $0x5d8] sm:$0xff]  ;;  %v7964_v19 = vld [vmem:[#allocation20 + $0x5d0] sm:$0xff]  ;;  %v7498_v18 = vld [vmem:[#allocation20 + $0x348] sm:$0xff] }
0x132b   :  { %7165 = vmatpush1.msra.mxu0 %v7119_v8  ;;  %7630 = vmatpush1.msra.mxu1 %v7584_v33  ;;  %v13556_v35 = vpop.f32.mrf.mxu1  ;;  %v7963_v8 = vld [vmem:[#allocation20 + $0x5c8] sm:$0xff]  ;;  %v7497_v33 = vld [vmem:[#allocation20 + $0x340] sm:$0xff] }
0x132c   :  { %7166 = vmatprep.subr.mxu0 %v7118_v12  ;;  %7631 = vmatprep.subr.mxu1 %v7583_v56  ;;  %v7962_v12 = vld [vmem:[#allocation20 + $0x5c0] sm:$0xff]  ;;  %v7496_v56 = vld [vmem:[#allocation20 + $0x338] sm:$0xff]  ;;  %v7960_v35 = vld [vmem:[#allocation20 + $0x5b0] sm:$0xff] }
0x132d   :  { %7167 = vmatpush1.msra.mxu0 %v7117_v60  ;;  %7200 = vmatprep.mubr.f32.mxu0 %v14010_v0  ;;  %v7961_v60 = vld [vmem:[#allocation20 + $0x5b8] sm:$0xff] }
0x132e   :  { %7632 = vmatpush1.msra.mxu1 %v7582_v24  ;;  %7665 = vmatprep.mubr.f32.mxu1 %v14010_v0  ;;  %v7495_v24 = vld [vmem:[#allocation20 + $0x330] sm:$0xff] }
0x132f   :  { %10613 = vmatmul.mubr.msk.f32.vlgmr.msra.gmra.mxu0 %vm6969_vm8, %v7133_v37  ;;  %7338 = vmatprep.subr.mxu0 %v7318_v43  ;;  %v7494_v43 = vld [vmem:[#allocation20 + $0x328] sm:$0xff] }
0x1330   :  { %10618 = vmatmul.mubr.msk.f32.vlgmr.msra.gmra.mxu1 %vm6969_vm8, %v7598_v39  ;;  %7803 = vmatprep.subr.mxu1 %v7783_v14  ;;  %v7959_v37 = vld [vmem:[#allocation20 + $0x5a8] sm:$0xff]  ;;  %v7493_v14 = vld [vmem:[#allocation20 + $0x320] sm:$0xff] }
0x1331   :  { %7339 = vmatpush1.msra.mxu0 %v7317_v41  ;;  %7804 = vmatpush1.msra.mxu1 %v7782_v50  ;;  %v7958_v39 = vld [vmem:[#allocation20 + $0x5a0] sm:$0xff]  ;;  %v7492_v41 = vld [vmem:[#allocation20 + $0x318] sm:$0xff] }
0x1332   :  { %7340 = vmatprep.subr.mxu0 %v7316_v34  ;;  %7805 = vmatprep.subr.mxu1 %v7781_v15  ;;  %v7957_v50 = vld [vmem:[#allocation20 + $0x598] sm:$0xff]  ;;  %v7491_v34 = vld [vmem:[#allocation20 + $0x310] sm:$0xff] }
0x1333   :  { %7341 = vmatpush1.msra.mxu0 %v7315_v40  ;;  %7806 = vmatpush1.msra.mxu1 %v7780_v44  ;;  %v7956_v15 = vld [vmem:[#allocation20 + $0x590] sm:$0xff]  ;;  %v7490_v40 = vld [vmem:[#allocation20 + $0x308] sm:$0xff] }
0x1334   :  { %7342 = vmatprep.subr.mxu0 %v7314_v16  ;;  %7807 = vmatprep.subr.mxu1 %v7779_v58  ;;  %v7955_v44 = vld [vmem:[#allocation20 + $0x588] sm:$0xff]  ;;  %v7489_v16 = vld [vmem:[#allocation20 + $0x300] sm:$0xff] }
0x1335   :  { %7343 = vmatpush1.msra.mxu0 %v7313_v28  ;;  %7808 = vmatpush1.msra.mxu1 %v7778_v63  ;;  %v7954_v58 = vld [vmem:[#allocation20 + $0x580] sm:$0xff]  ;;  %v7690_v28 = vld [vmem:[#allocation20 + $0x478] sm:$0xff]  ;;  %v7505_v63 = vrot.slane %v16081_v11, 4 }
0x1336   :  { %7344 = vmatprep.subr.mxu0 %v7312_v47  ;;  %7809 = vmatprep.subr.mxu1 %v7777_v49  ;;  %v8155_v47 = vld [vmem:[#allocation20 + $0x6f8] sm:$0xff]  ;;  %v7970_v49 = vrot.slane %v16083_v5, 6 }
0x1337   :  { %7345 = vmatpush1.msra.mxu0 %v7311_v52  ;;  %7810 = vmatpush1.msra.mxu1 %v7776_v54  ;;  %v7689_v52 = vld [vmem:[#allocation20 + $0x470] sm:$0xff] }
0x1338   :  { %7346 = vmatprep.subr.mxu0 %v7310_v31  ;;  %7811 = vmatprep.subr.mxu1 %v7775_v3  ;;  %v8154_v54 = vld [vmem:[#allocation20 + $0x6f0] sm:$0xff]  ;;  %v7688_v31 = vld [vmem:[#allocation20 + $0x468] sm:$0xff] }
0x1339   :  { %7347 = vmatpush1.msra.mxu0 %v7309_v57  ;;  %7812 = vmatpush1.msra.mxu1 %v7774_v45  ;;  %v8153_v3 = vld [vmem:[#allocation20 + $0x6e8] sm:$0xff]  ;;  %v8152_v57 = vld [vmem:[#allocation20 + $0x6e0] sm:$0xff]  ;;  %v7686_v45 = vld [vmem:[#allocation20 + $0x458] sm:$0xff] }
0x133a   :  { %7348 = vmatprep.subr.mxu0 %v7308_v46  ;;  %7813 = vmatprep.subr.mxu1 %v7773_v25  ;;  %v8151_v46 = vld [vmem:[#allocation20 + $0x6d8] sm:$0xff]  ;;  %v7685_v25 = vld [vmem:[#allocation20 + $0x450] sm:$0xff] }
0x133b   :  { %7349 = vmatpush1.msra.mxu0 %v7307_v59  ;;  %7814 = vmatpush1.msra.mxu1 %v7772_v17  ;;  %v8150_v59 = vld [vmem:[#allocation20 + $0x6d0] sm:$0xff]  ;;  %v7684_v17 = vld [vmem:[#allocation20 + $0x448] sm:$0xff] }
0x133c   :  { %7350 = vmatprep.subr.mxu0 %v7306_v1  ;;  %7815 = vmatprep.subr.mxu1 %v7771_v51  ;;  %v8149_v1 = vld [vmem:[#allocation20 + $0x6c8] sm:$0xff]  ;;  %v7683_v51 = vld [vmem:[#allocation20 + $0x440] sm:$0xff] }
0x133d   :  { %7351 = vmatpush1.msra.mxu0 %v7305_v2  ;;  %7816 = vmatpush1.msra.mxu1 %v7770_v4  ;;  %v8148_v2 = vld [vmem:[#allocation20 + $0x6c0] sm:$0xff]  ;;  %v7682_v4 = vld [vmem:[#allocation20 + $0x438] sm:$0xff] }
0x133e   :  { %7352 = vmatprep.subr.mxu0 %v7304_v21  ;;  %7817 = vmatprep.subr.mxu1 %v7769_v55  ;;  %v8147_v21 = vld [vmem:[#allocation20 + $0x6b8] sm:$0xff]  ;;  %v7681_v55 = vld [vmem:[#allocation20 + $0x430] sm:$0xff] }
0x133f   :  { %7353 = vmatpush1.msra.mxu0 %v7303_v20  ;;  %7386 = vmatprep.mubr.f32.mxu0 %v14010_v0  ;;  %v8146_v20 = vld [vmem:[#allocation20 + $0x6b0] sm:$0xff] }
0x1340   :  { %7818 = vmatpush1.msra.mxu1 %v7768_v23  ;;  %7851 = vmatprep.mubr.f32.mxu1 %v14010_v0  ;;  %v7680_v23 = vld [vmem:[#allocation20 + $0x428] sm:$0xff] }
0x1341   :  { %10615 = vmatmul.mubr.msk.f32.vlgmr.msra.gmra.mxu0 %vm6969_vm8, %v16081_v11  ;;  %7524 = vmatprep.subr.mxu0 %v7504_v7  ;;  %v7687_v11 = vld [vmem:[#allocation20 + $0x460] sm:$0xff]  ;;  %v8145_v7 = vld [vmem:[#allocation20 + $0x6a8] sm:$0xff] }
0x1342   :  { %10620 = vmatmul.mubr.msk.f32.vlgmr.msra.gmra.mxu1 %vm6969_vm8, %v7784_v26  ;;  %7989 = vmatprep.subr.mxu1 %v7969_v13  ;;  %v7679_v13 = vld [vmem:[#allocation20 + $0x420] sm:$0xff] }
0x1343   :  { %7525 = vmatpush1.msra.mxu0 %v7503_v22  ;;  %7990 = vmatpush1.msra.mxu1 %v7968_v27  ;;  %v8144_v26 = vld [vmem:[#allocation20 + $0x6a0] sm:$0xff]  ;;  %v7678_v22 = vld [vmem:[#allocation20 + $0x418] sm:$0xff] }
0x1344   :  { %7526 = vmatprep.subr.mxu0 %v7502_v38  ;;  %7991 = vmatprep.subr.mxu1 %v7967_v29  ;;  %v8143_v27 = vld [vmem:[#allocation20 + $0x698] sm:$0xff]  ;;  %v7677_v38 = vld [vmem:[#allocation20 + $0x410] sm:$0xff] }
0x1345   :  { %7527 = vmatpush1.msra.mxu0 %v7501_v10  ;;  %7992 = vmatpush1.msra.mxu1 %v7966_v30  ;;  %v8142_v29 = vld [vmem:[#allocation20 + $0x690] sm:$0xff]  ;;  %v7676_v10 = vld [vmem:[#allocation20 + $0x408] sm:$0xff] }
0x1346   :  { %7528 = vmatprep.subr.mxu0 %v7500_v62  ;;  %7993 = vmatprep.subr.mxu1 %v7965_v32  ;;  %v8141_v30 = vld [vmem:[#allocation20 + $0x688] sm:$0xff]  ;;  %v7675_v62 = vld [vmem:[#allocation20 + $0x400] sm:$0xff] }
0x1347   :  { %7529 = vmatpush1.msra.mxu0 %v7499_v61  ;;  %7994 = vmatpush1.msra.mxu1 %v7964_v19  ;;  %v8140_v32 = vld [vmem:[#allocation20 + $0x680] sm:$0xff]  ;;  %v7876_v61 = vld [vmem:[#allocation20 + $0x578] sm:$0xff] }
0x1348   :  { %7530 = vmatprep.subr.mxu0 %v7498_v18  ;;  %7995 = vmatprep.subr.mxu1 %v7963_v8  ;;  %v8341_v19 = vld [vmem:[#allocation20 + $0x7f8] sm:$0xff]  ;;  %v8156_v18 = vrot.slane %v16085_v42, 2  ;;  %v7875_v8 = vld [vmem:[#allocation20 + $0x570] sm:$0xff] }
0x1349   :  { %7531 = vmatpush1.msra.mxu0 %v7497_v33  ;;  %7996 = vmatpush1.msra.mxu1 %v7962_v12  ;;  %v8340_v33 = vld [vmem:[#allocation20 + $0x7f0] sm:$0xff]  ;;  %v7874_v12 = vld [vmem:[#allocation20 + $0x568] sm:$0xff] }
0x134a   :  { %7532 = vmatprep.subr.mxu0 %v7496_v56  ;;  %7997 = vmatprep.subr.mxu1 %v7961_v60  ;;  %v8339_v56 = vld [vmem:[#allocation20 + $0x7e8] sm:$0xff]  ;;  %v7873_v60 = vld [vmem:[#allocation20 + $0x560] sm:$0xff] }
0x134b   :  { %7533 = vmatpush1.msra.mxu0 %v7495_v24  ;;  %7998 = vmatpush1.msra.mxu1 %v7960_v35  ;;  %v8338_v24 = vld [vmem:[#allocation20 + $0x7e0] sm:$0xff]  ;;  %v7872_v35 = vld [vmem:[#allocation20 + $0x558] sm:$0xff] }
0x134c   :  { %7534 = vmatprep.subr.mxu0 %v7494_v43  ;;  %7999 = vmatprep.subr.mxu1 %v7959_v37  ;;  %v8337_v43 = vld [vmem:[#allocation20 + $0x7d8] sm:$0xff]  ;;  %v7871_v37 = vld [vmem:[#allocation20 + $0x550] sm:$0xff] }
0x134d   :  { %7535 = vmatpush1.msra.mxu0 %v7493_v14  ;;  %8000 = vmatpush1.msra.mxu1 %v7958_v39  ;;  %v8336_v14 = vld [vmem:[#allocation20 + $0x7d0] sm:$0xff]  ;;  %v7870_v39 = vld [vmem:[#allocation20 + $0x548] sm:$0xff] }
0x134e   :  { %7536 = vmatprep.subr.mxu0 %v7492_v41  ;;  %8001 = vmatprep.subr.mxu1 %v7957_v50  ;;  %v8335_v41 = vld [vmem:[#allocation20 + $0x7c8] sm:$0xff]  ;;  %v7869_v50 = vld [vmem:[#allocation20 + $0x540] sm:$0xff] }
0x134f   :  { %7537 = vmatpush1.msra.mxu0 %v7491_v34  ;;  %8002 = vmatpush1.msra.mxu1 %v7956_v15  ;;  %v8334_v34 = vld [vmem:[#allocation20 + $0x7c0] sm:$0xff]  ;;  %v7868_v15 = vld [vmem:[#allocation20 + $0x538] sm:$0xff] }
0x1350   :  { %7538 = vmatprep.subr.mxu0 %v7490_v40  ;;  %8003 = vmatprep.subr.mxu1 %v7955_v44  ;;  %v8333_v40 = vld [vmem:[#allocation20 + $0x7b8] sm:$0xff]  ;;  %v7867_v44 = vld [vmem:[#allocation20 + $0x530] sm:$0xff] }
0x1351   :  { %7539 = vmatpush1.msra.mxu0 %v7489_v16  ;;  %7572 = vmatprep.mubr.f32.mxu0 %v14010_v0  ;;  %v8332_v16 = vld [vmem:[#allocation20 + $0x7b0] sm:$0xff] }
0x1352   :  { %8004 = vmatpush1.msra.mxu1 %v7954_v58  ;;  %8037 = vmatprep.mubr.f32.mxu1 %v14010_v0  ;;  %v7866_v58 = vld [vmem:[#allocation20 + $0x528] sm:$0xff] }
0x1353   :  { %10617 = vmatmul.mubr.msk.f32.vlgmr.msra.gmra.mxu0 %vm6969_vm8, %v7505_v63  ;;  %7710 = vmatprep.subr.mxu0 %v7690_v28  ;;  %v8331_v28 = vld [vmem:[#allocation20 + $0x7a8] sm:$0xff]  ;;  %v7865_v63 = vld [vmem:[#allocation20 + $0x520] sm:$0xff] }
0x1354   :  { %10622 = vmatmul.mubr.msk.f32.vlgmr.msra.gmra.mxu1 %vm6969_vm8, %v7970_v49  ;;  %8175 = vmatprep.subr.mxu1 %v8155_v47  ;;  %v8330_v47 = vld [vmem:[#allocation20 + $0x7a0] sm:$0xff]  ;;  %v7864_v49 = vld [vmem:[#allocation20 + $0x518] sm:$0xff] }
0x1355   :  { %7711 = vmatpush1.msra.mxu0 %v7689_v52  ;;  %8176 = vmatpush1.msra.mxu1 %v8154_v54  ;;  %v8329_v52 = vld [vmem:[#allocation20 + $0x798] sm:$0xff]  ;;  %v7863_v54 = vld [vmem:[#allocation20 + $0x510] sm:$0xff] }
0x1356   :  { %7712 = vmatprep.subr.mxu0 %v7688_v31  ;;  %8177 = vmatprep.subr.mxu1 %v8153_v3  ;;  %v8328_v31 = vld [vmem:[#allocation20 + $0x790] sm:$0xff]  ;;  %v7862_v3 = vld [vmem:[#allocation20 + $0x508] sm:$0xff] }
0x1357   :  { %7713 = vmatpush1.msra.mxu0 %v7687_v11  ;;  %8178 = vmatpush1.msra.mxu1 %v8152_v57  ;;  %v8327_v11 = vld [vmem:[#allocation20 + $0x788] sm:$0xff]  ;;  %v7861_v57 = vld [vmem:[#allocation20 + $0x500] sm:$0xff] }
0x1358   :  { %7714 = vmatprep.subr.mxu0 %v7686_v45  ;;  %8179 = vmatprep.subr.mxu1 %v8151_v46  ;;  %v8326_v45 = vld [vmem:[#allocation20 + $0x780] sm:$0xff]  ;;  %v8062_v46 = vld [vmem:[#allocation20 + $0x678] sm:$0xff] }
0x1359   :  { %7715 = vmatpush1.msra.mxu0 %v7685_v25  ;;  %8180 = vmatpush1.msra.mxu1 %v8150_v59  ;;  %v7877_v25 = vrot.slane %v16083_v5, 4  ;;  %v8527_v59 = vld [vmem:[#allocation20 + $0x8f8] sm:$0xff] }
0x135a   :  { %7716 = vmatprep.subr.mxu0 %v7684_v17  ;;  %8181 = vmatprep.subr.mxu1 %v8149_v1  ;;  %v8342_v17 = vrot.slane %v16085_v42, 6  ;;  %v8061_v1 = vld [vmem:[#allocation20 + $0x670] sm:$0xff] }
0x135b   :  { %7717 = vmatpush1.msra.mxu0 %v7683_v51  ;;  %8182 = vmatpush1.msra.mxu1 %v8148_v2  ;;  %v8526_v51 = vld [vmem:[#allocation20 + $0x8f0] sm:$0xff]  ;;  %v8060_v2 = vld [vmem:[#allocation20 + $0x668] sm:$0xff] }
0x135c   :  { %7718 = vmatprep.subr.mxu0 %v7682_v4  ;;  %8183 = vmatprep.subr.mxu1 %v8147_v21  ;;  %v8525_v4 = vld [vmem:[#allocation20 + $0x8e8] sm:$0xff]  ;;  %v8524_v21 = vld [vmem:[#allocation20 + $0x8e0] sm:$0xff] }
0x135d   :  { %7719 = vmatpush1.msra.mxu0 %v7681_v55  ;;  %8184 = vmatpush1.msra.mxu1 %v8146_v20  ;;  %v8058_v55 = vld [vmem:[#allocation20 + $0x658] sm:$0xff] }
0x135e   :  { %7720 = vmatprep.subr.mxu0 %v7680_v23  ;;  %8185 = vmatprep.subr.mxu1 %v8145_v7  ;;  %v8523_v20 = vld [vmem:[#allocation20 + $0x8d8] sm:$0xff]  ;;  %v8057_v23 = vld [vmem:[#allocation20 + $0x650] sm:$0xff] }
0x135f   :  { %7721 = vmatpush1.msra.mxu0 %v7679_v13  ;;  %8186 = vmatpush1.msra.mxu1 %v8144_v26  ;;  %v8522_v7 = vld [vmem:[#allocation20 + $0x8d0] sm:$0xff]  ;;  %v8056_v13 = vld [vmem:[#allocation20 + $0x648] sm:$0xff] }
0x1360   :  { %7722 = vmatprep.subr.mxu0 %v7678_v22  ;;  %8187 = vmatprep.subr.mxu1 %v8143_v27  ;;  %v8521_v26 = vld [vmem:[#allocation20 + $0x8c8] sm:$0xff]  ;;  %v8055_v22 = vld [vmem:[#allocation20 + $0x640] sm:$0xff] }
0x1361   :  { %7723 = vmatpush1.msra.mxu0 %v7677_v38  ;;  %8188 = vmatpush1.msra.mxu1 %v8142_v29  ;;  %v8520_v27 = vld [vmem:[#allocation20 + $0x8c0] sm:$0xff]  ;;  %v8054_v38 = vld [vmem:[#allocation20 + $0x638] sm:$0xff] }
0x1362   :  { %7724 = vmatprep.subr.mxu0 %v7676_v10  ;;  %8189 = vmatprep.subr.mxu1 %v8141_v30  ;;  %v8519_v29 = vld [vmem:[#allocation20 + $0x8b8] sm:$0xff]  ;;  %v8053_v10 = vld [vmem:[#allocation20 + $0x630] sm:$0xff] }
0x1363   :  { %7725 = vmatpush1.msra.mxu0 %v7675_v62  ;;  %7758 = vmatprep.mubr.f32.mxu0 %v14010_v0  ;;  %v8518_v30 = vld [vmem:[#allocation20 + $0x8b0] sm:$0xff]  ;;  %v8052_v62 = vld [vmem:[#allocation20 + $0x628] sm:$0xff] }
0x1364   :  { %8190 = vmatpush1.msra.mxu1 %v8140_v32  ;;  %8223 = vmatprep.mubr.f32.mxu1 %v14010_v0  ;;  %v8517_v32 = vld [vmem:[#allocation20 + $0x8a8] sm:$0xff] }
0x1365   :  { %10619 = vmatmul.mubr.msk.f32.vlgmr.msra.gmra.mxu0 %vm6969_vm8, %v16083_v5  ;;  %7896 = vmatprep.subr.mxu0 %v7876_v61  ;;  %v8059_v5 = vld [vmem:[#allocation20 + $0x660] sm:$0xff] }
0x1366   :  { %10624 = vmatmul.mubr.msk.f32.vlgmr.msra.gmra.mxu1 %vm6969_vm8, %v8156_v18  ;;  %8361 = vmatprep.subr.mxu1 %v8341_v19  ;;  %v8051_v61 = vld [vmem:[#allocation20 + $0x620] sm:$0xff]  ;;  %v8050_v18 = vld [vmem:[#allocation20 + $0x618] sm:$0xff] }
0x1367   :  { %7897 = vmatpush1.msra.mxu0 %v7875_v8  ;;  %8362 = vmatpush1.msra.mxu1 %v8340_v33  ;;  %v8516_v19 = vld [vmem:[#allocation20 + $0x8a0] sm:$0xff]  ;;  %v8515_v8 = vld [vmem:[#allocation20 + $0x898] sm:$0xff]  ;;  %v8049_v33 = vld [vmem:[#allocation20 + $0x610] sm:$0xff] }
0x1368   :  { %7898 = vmatprep.subr.mxu0 %v7874_v12  ;;  %8363 = vmatprep.subr.mxu1 %v8339_v56  ;;  %v8514_v12 = vld [vmem:[#allocation20 + $0x890] sm:$0xff]  ;;  %v8048_v56 = vld [vmem:[#allocation20 + $0x608] sm:$0xff] }
0x1369   :  { %7899 = vmatpush1.msra.mxu0 %v7873_v60  ;;  %8364 = vmatpush1.msra.mxu1 %v8338_v24  ;;  %v8513_v60 = vld [vmem:[#allocation20 + $0x888] sm:$0xff]  ;;  %v8047_v24 = vld [vmem:[#allocation20 + $0x600] sm:$0xff] }
0x136a   :  { %7900 = vmatprep.subr.mxu0 %v7872_v35  ;;  %8365 = vmatprep.subr.mxu1 %v8337_v43  ;;  %v8512_v35 = vld [vmem:[#allocation20 + $0x880] sm:$0xff]  ;;  %v8248_v43 = vld [vmem:[#allocation20 + $0x778] sm:$0xff] }
0x136b   :  { %7901 = vmatpush1.msra.mxu0 %v7871_v37  ;;  %8366 = vmatpush1.msra.mxu1 %v8336_v14  ;;  %v8713_v37 = vld [vmem:[#allocation20 + $0x9f8] sm:$0xff]  ;;  %v8528_v14 = vrot.slane %v16087_v6, 2 }
0x136c   :  { %7902 = vmatprep.subr.mxu0 %v7870_v39  ;;  %8367 = vmatprep.subr.mxu1 %v8335_v41  ;;  %v8247_v39 = vld [vmem:[#allocation20 + $0x770] sm:$0xff] }
0x136d   :  { %7903 = vmatpush1.msra.mxu0 %v7869_v50  ;;  %8368 = vmatpush1.msra.mxu1 %v8334_v34  ;;  %v8712_v41 = vld [vmem:[#allocation20 + $0x9f0] sm:$0xff]  ;;  %v8246_v50 = vld [vmem:[#allocation20 + $0x768] sm:$0xff] }
0x136e   :  { %7904 = vmatprep.subr.mxu0 %v7868_v15  ;;  %8369 = vmatprep.subr.mxu1 %v8333_v40  ;;  %v8711_v34 = vld [vmem:[#allocation20 + $0x9e8] sm:$0xff]  ;;  %v8245_v15 = vld [vmem:[#allocation20 + $0x760] sm:$0xff] }
0x136f   :  { %7905 = vmatpush1.msra.mxu0 %v7867_v44  ;;  %8370 = vmatpush1.msra.mxu1 %v8332_v16  ;;  %v8710_v40 = vld [vmem:[#allocation20 + $0x9e0] sm:$0xff]  ;;  %v8244_v44 = vld [vmem:[#allocation20 + $0x758] sm:$0xff] }
0x1370   :  { %7906 = vmatprep.subr.mxu0 %v7866_v58  ;;  %8371 = vmatprep.subr.mxu1 %v8331_v28  ;;  %v8709_v16 = vld [vmem:[#allocation20 + $0x9d8] sm:$0xff]  ;;  %v8243_v58 = vld [vmem:[#allocation20 + $0x750] sm:$0xff] }
0x1371   :  { %7907 = vmatpush1.msra.mxu0 %v7865_v63  ;;  %8372 = vmatpush1.msra.mxu1 %v8330_v47  ;;  %v8708_v28 = vld [vmem:[#allocation20 + $0x9d0] sm:$0xff]  ;;  %v8242_v63 = vld [vmem:[#allocation20 + $0x748] sm:$0xff] }
0x1372   :  { %7908 = vmatprep.subr.mxu0 %v7864_v49  ;;  %8373 = vmatprep.subr.mxu1 %v8329_v52  ;;  %v8707_v47 = vld [vmem:[#allocation20 + $0x9c8] sm:$0xff]  ;;  %v8241_v49 = vld [vmem:[#allocation20 + $0x740] sm:$0xff] }
0x1373   :  { %7909 = vmatpush1.msra.mxu0 %v7863_v54  ;;  %8374 = vmatpush1.msra.mxu1 %v8328_v31  ;;  %v8706_v52 = vld [vmem:[#allocation20 + $0x9c0] sm:$0xff]  ;;  %v8240_v54 = vld [vmem:[#allocation20 + $0x738] sm:$0xff] }
0x1374   :  { %7910 = vmatprep.subr.mxu0 %v7862_v3  ;;  %8375 = vmatprep.subr.mxu1 %v8327_v11  ;;  %v8705_v31 = vld [vmem:[#allocation20 + $0x9b8] sm:$0xff]  ;;  %v8239_v3 = vld [vmem:[#allocation20 + $0x730] sm:$0xff] }
0x1375   :  { %7911 = vmatpush1.msra.mxu0 %v7861_v57  ;;  %7944 = vmatprep.mubr.f32.mxu0 %v14010_v0  ;;  %v8704_v11 = vld [vmem:[#allocation20 + $0x9b0] sm:$0xff]  ;;  %v8238_v57 = vld [vmem:[#allocation20 + $0x728] sm:$0xff] }
0x1376   :  { %8376 = vmatpush1.msra.mxu1 %v8326_v45  ;;  %8409 = vmatprep.mubr.f32.mxu1 %v14010_v0  ;;  %v8703_v45 = vld [vmem:[#allocation20 + $0x9a8] sm:$0xff] }
0x1377   :  { %10621 = vmatmul.mubr.msk.f32.vlgmr.msra.gmra.mxu0 %vm6969_vm8, %v7877_v25  ;;  %8082 = vmatprep.subr.mxu0 %v8062_v46  ;;  %v8237_v46 = vld [vmem:[#allocation20 + $0x720] sm:$0xff] }
0x1378   :  { %10626 = vmatmul.mubr.msk.f32.vlgmr.msra.gmra.mxu1 %vm6969_vm8, %v8342_v17  ;;  %8547 = vmatprep.subr.mxu1 %v8527_v59  ;;  %v8702_v25 = vld [vmem:[#allocation20 + $0x9a0] sm:$0xff]  ;;  %v8236_v59 = vld [vmem:[#allocation20 + $0x718] sm:$0xff] }
0x1379   :  { %8083 = vmatpush1.msra.mxu0 %v8061_v1  ;;  %8548 = vmatpush1.msra.mxu1 %v8526_v51  ;;  %v8701_v17 = vld [vmem:[#allocation20 + $0x998] sm:$0xff]  ;;  %v8235_v1 = vld [vmem:[#allocation20 + $0x710] sm:$0xff] }
0x137a   :  { %8084 = vmatprep.subr.mxu0 %v8060_v2  ;;  %8549 = vmatprep.subr.mxu1 %v8525_v4  ;;  %v8700_v51 = vld [vmem:[#allocation20 + $0x990] sm:$0xff]  ;;  %v8234_v2 = vld [vmem:[#allocation20 + $0x708] sm:$0xff] }
0x137b   :  { %8085 = vmatpush1.msra.mxu0 %v8059_v5  ;;  %8550 = vmatpush1.msra.mxu1 %v8524_v21  ;;  %v8699_v4 = vld [vmem:[#allocation20 + $0x988] sm:$0xff]  ;;  %v8233_v5 = vld [vmem:[#allocation20 + $0x700] sm:$0xff] }
0x137c   :  { %8086 = vmatprep.subr.mxu0 %v8058_v55  ;;  %8551 = vmatprep.subr.mxu1 %v8523_v20  ;;  %v8698_v21 = vld [vmem:[#allocation20 + $0x980] sm:$0xff]  ;;  %v8434_v55 = vld [vmem:[#allocation20 + $0x878] sm:$0xff]  ;;  %v8249_v20 = vrot.slane %v16085_v42, 4 }
0x137d   :  { %8087 = vmatpush1.msra.mxu0 %v8057_v23  ;;  %8552 = vmatpush1.msra.mxu1 %v8522_v7  ;;  %v8899_v23 = vld [vmem:[#allocation20 + $0xaf8] sm:$0xff]  ;;  %v8714_v7 = vrot.slane %v16087_v6, 6 }
0x137e   :  { %8088 = vmatprep.subr.mxu0 %v8056_v13  ;;  %8553 = vmatprep.subr.mxu1 %v8521_v26  ;;  %v8433_v13 = vld [vmem:[#allocation20 + $0x870] sm:$0xff] }
0x137f   :  { %8089 = vmatpush1.msra.mxu0 %v8055_v22  ;;  %8554 = vmatpush1.msra.mxu1 %v8520_v27  ;;  %v8898_v26 = vld [vmem:[#allocation20 + $0xaf0] sm:$0xff]  ;;  %v8432_v22 = vld [vmem:[#allocation20 + $0x868] sm:$0xff] }
0x1380   :  { %8090 = vmatprep.subr.mxu0 %v8054_v38  ;;  %8555 = vmatprep.subr.mxu1 %v8519_v29  ;;  %v8897_v27 = vld [vmem:[#allocation20 + $0xae8] sm:$0xff]  ;;  %v8896_v38 = vld [vmem:[#allocation20 + $0xae0] sm:$0xff]  ;;  %v8430_v29 = vld [vmem:[#allocation20 + $0x858] sm:$0xff] }
0x1381   :  { %8091 = vmatpush1.msra.mxu0 %v8053_v10  ;;  %8556 = vmatpush1.msra.mxu1 %v8518_v30  ;;  %v8895_v10 = vld [vmem:[#allocation20 + $0xad8] sm:$0xff]  ;;  %v8429_v30 = vld [vmem:[#allocation20 + $0x850] sm:$0xff] }
0x1382   :  { %8092 = vmatprep.subr.mxu0 %v8052_v62  ;;  %8557 = vmatprep.subr.mxu1 %v8517_v32  ;;  %v8894_v62 = vld [vmem:[#allocation20 + $0xad0] sm:$0xff]  ;;  %v8428_v32 = vld [vmem:[#allocation20 + $0x848] sm:$0xff] }
0x1383   :  { %8093 = vmatpush1.msra.mxu0 %v8051_v61  ;;  %8558 = vmatpush1.msra.mxu1 %v8516_v19  ;;  %v8893_v61 = vld [vmem:[#allocation20 + $0xac8] sm:$0xff]  ;;  %v8427_v19 = vld [vmem:[#allocation20 + $0x840] sm:$0xff] }
0x1384   :  { %8094 = vmatprep.subr.mxu0 %v8050_v18  ;;  %8559 = vmatprep.subr.mxu1 %v8515_v8  ;;  %v8892_v18 = vld [vmem:[#allocation20 + $0xac0] sm:$0xff]  ;;  %v8426_v8 = vld [vmem:[#allocation20 + $0x838] sm:$0xff] }
0x1385   :  { %8095 = vmatpush1.msra.mxu0 %v8049_v33  ;;  %8560 = vmatpush1.msra.mxu1 %v8514_v12  ;;  %v8891_v33 = vld [vmem:[#allocation20 + $0xab8] sm:$0xff]  ;;  %v8425_v12 = vld [vmem:[#allocation20 + $0x830] sm:$0xff] }
0x1386   :  { %8096 = vmatprep.subr.mxu0 %v8048_v56  ;;  %8561 = vmatprep.subr.mxu1 %v8513_v60  ;;  %v8890_v56 = vld [vmem:[#allocation20 + $0xab0] sm:$0xff]  ;;  %v8424_v60 = vld [vmem:[#allocation20 + $0x828] sm:$0xff] }
0x1387   :  { %8097 = vmatpush1.msra.mxu0 %v8047_v24  ;;  %8130 = vmatprep.mubr.f32.mxu0 %v14010_v0  ;;  %v8889_v24 = vld [vmem:[#allocation20 + $0xaa8] sm:$0xff] }
0x1388   :  { %8562 = vmatpush1.msra.mxu1 %v8512_v35  ;;  %8595 = vmatprep.mubr.f32.mxu1 %v14010_v0  ;;  %v8423_v35 = vld [vmem:[#allocation20 + $0x820] sm:$0xff] }
0x1389   :  { %10623 = vmatmul.mubr.msk.f32.vlgmr.msra.gmra.mxu0 %vm6969_vm8, %v16085_v42  ;;  %8268 = vmatprep.subr.mxu0 %v8248_v43  ;;  %v8431_v42 = vld [vmem:[#allocation20 + $0x860] sm:$0xff] }
0x138a   :  { %10628 = vmatmul.mubr.msk.f32.vlgmr.msra.gmra.mxu1 %vm6969_vm8, %v8528_v14  ;;  %8733 = vmatprep.subr.mxu1 %v8713_v37  ;;  %v8888_v43 = vld [vmem:[#allocation20 + $0xaa0] sm:$0xff]  ;;  %v8422_v37 = vld [vmem:[#allocation20 + $0x818] sm:$0xff] }
0x138b   :  { %8269 = vmatpush1.msra.mxu0 %v8247_v39  ;;  %8734 = vmatpush1.msra.mxu1 %v8712_v41  ;;  %v8887_v14 = vld [vmem:[#allocation20 + $0xa98] sm:$0xff]  ;;  %v8421_v39 = vld [vmem:[#allocation20 + $0x810] sm:$0xff] }
0x138c   :  { %8270 = vmatprep.subr.mxu0 %v8246_v50  ;;  %8735 = vmatprep.subr.mxu1 %v8711_v34  ;;  %v8886_v41 = vld [vmem:[#allocation20 + $0xa90] sm:$0xff]  ;;  %v8420_v50 = vld [vmem:[#allocation20 + $0x808] sm:$0xff] }
0x138d   :  { %8271 = vmatpush1.msra.mxu0 %v8245_v15  ;;  %8736 = vmatpush1.msra.mxu1 %v8710_v40  ;;  %v8885_v34 = vld [vmem:[#allocation20 + $0xa88] sm:$0xff]  ;;  %v8419_v15 = vld [vmem:[#allocation20 + $0x800] sm:$0xff] }
0x138e   :  { %8272 = vmatprep.subr.mxu0 %v8244_v44  ;;  %8737 = vmatprep.subr.mxu1 %v8709_v16  ;;  %v8884_v40 = vld [vmem:[#allocation20 + $0xa80] sm:$0xff]  ;;  %v8620_v44 = vld [vmem:[#allocation20 + $0x978] sm:$0xff] }
0x138f   :  { %8273 = vmatpush1.msra.mxu0 %v8243_v58  ;;  %8738 = vmatpush1.msra.mxu1 %v8708_v28  ;;  %v9085_v16 = vld [vmem:[#allocation20 + $0xbf8] sm:$0xff]  ;;  %v8900_v58 = vrot.slane %v16094_v48, 2  ;;  %v8619_v28 = vld [vmem:[#allocation20 + $0x970] sm:$0xff] }
0x1390   :  { %8274 = vmatprep.subr.mxu0 %v8242_v63  ;;  %8739 = vmatprep.subr.mxu1 %v8707_v47  ;;  %v9084_v63 = vld [vmem:[#allocation20 + $0xbf0] sm:$0xff]  ;;  %v8618_v47 = vld [vmem:[#allocation20 + $0x968] sm:$0xff] }
0x1391   :  { %8275 = vmatpush1.msra.mxu0 %v8241_v49  ;;  %8740 = vmatpush1.msra.mxu1 %v8706_v52  ;;  %v9083_v49 = vld [vmem:[#allocation20 + $0xbe8] sm:$0xff]  ;;  %v8617_v52 = vld [vmem:[#allocation20 + $0x960] sm:$0xff] }
0x1392   :  { %8276 = vmatprep.subr.mxu0 %v8240_v54  ;;  %8741 = vmatprep.subr.mxu1 %v8705_v31  ;;  %v9082_v54 = vld [vmem:[#allocation20 + $0xbe0] sm:$0xff]  ;;  %v8616_v31 = vld [vmem:[#allocation20 + $0x958] sm:$0xff] }
0x1393   :  { %8277 = vmatpush1.msra.mxu0 %v8239_v3  ;;  %8742 = vmatpush1.msra.mxu1 %v8704_v11  ;;  %v9081_v3 = vld [vmem:[#allocation20 + $0xbd8] sm:$0xff]  ;;  %v8615_v11 = vld [vmem:[#allocation20 + $0x950] sm:$0xff] }
0x1394   :  { %8278 = vmatprep.subr.mxu0 %v8238_v57  ;;  %8743 = vmatprep.subr.mxu1 %v8703_v45  ;;  %v9080_v57 = vld [vmem:[#allocation20 + $0xbd0] sm:$0xff]  ;;  %v8614_v45 = vld [vmem:[#allocation20 + $0x948] sm:$0xff] }
0x1395   :  { %8279 = vmatpush1.msra.mxu0 %v8237_v46  ;;  %8744 = vmatpush1.msra.mxu1 %v8702_v25  ;;  %v9079_v46 = vld [vmem:[#allocation20 + $0xbc8] sm:$0xff]  ;;  %v8613_v25 = vld [vmem:[#allocation20 + $0x940] sm:$0xff] }
0x1396   :  { %8280 = vmatprep.subr.mxu0 %v8236_v59  ;;  %8745 = vmatprep.subr.mxu1 %v8701_v17  ;;  %v9078_v59 = vld [vmem:[#allocation20 + $0xbc0] sm:$0xff]  ;;  %v8612_v17 = vld [vmem:[#allocation20 + $0x938] sm:$0xff] }
0x1397   :  { %8281 = vmatpush1.msra.mxu0 %v8235_v1  ;;  %8746 = vmatpush1.msra.mxu1 %v8700_v51  ;;  %v9077_v1 = vld [vmem:[#allocation20 + $0xbb8] sm:$0xff]  ;;  %v8611_v51 = vld [vmem:[#allocation20 + $0x930] sm:$0xff] }
0x1398   :  { %8282 = vmatprep.subr.mxu0 %v8234_v2  ;;  %8747 = vmatprep.subr.mxu1 %v8699_v4  ;;  %v9076_v2 = vld [vmem:[#allocation20 + $0xbb0] sm:$0xff]  ;;  %v8610_v4 = vld [vmem:[#allocation20 + $0x928] sm:$0xff] }
0x1399   :  { %8283 = vmatpush1.msra.mxu0 %v8233_v5  ;;  %8316 = vmatprep.mubr.f32.mxu0 %v14010_v0  ;;  %v9075_v5 = vld [vmem:[#allocation20 + $0xba8] sm:$0xff] }
0x139a   :  { %8748 = vmatpush1.msra.mxu1 %v8698_v21  ;;  %8781 = vmatprep.mubr.f32.mxu1 %v14010_v0  ;;  %v8609_v21 = vld [vmem:[#allocation20 + $0x920] sm:$0xff] }
0x139b   :  { %10625 = vmatmul.mubr.msk.f32.vlgmr.msra.gmra.mxu0 %vm6969_vm8, %v8249_v20  ;;  %8454 = vmatprep.subr.mxu0 %v8434_v55  ;;  %v9074_v55 = vld [vmem:[#allocation20 + $0xba0] sm:$0xff]  ;;  %v8608_v20 = vld [vmem:[#allocation20 + $0x918] sm:$0xff] }
0x139c   :  { %10630 = vmatmul.mubr.msk.f32.vlgmr.msra.gmra.mxu1 %vm6969_vm8, %v8714_v7  ;;  %8919 = vmatprep.subr.mxu1 %v8899_v23  ;;  %v9073_v23 = vld [vmem:[#allocation20 + $0xb98] sm:$0xff]  ;;  %v8607_v7 = vld [vmem:[#allocation20 + $0x910] sm:$0xff] }
0x139d   :  { %8455 = vmatpush1.msra.mxu0 %v8433_v13  ;;  %8920 = vmatpush1.msra.mxu1 %v8898_v26  ;;  %v9072_v13 = vld [vmem:[#allocation20 + $0xb90] sm:$0xff]  ;;  %v8606_v26 = vld [vmem:[#allocation20 + $0x908] sm:$0xff] }
0x139e   :  { %8456 = vmatprep.subr.mxu0 %v8432_v22  ;;  %8921 = vmatprep.subr.mxu1 %v8897_v27  ;;  %v9071_v22 = vld [vmem:[#allocation20 + $0xb88] sm:$0xff]  ;;  %v8605_v27 = vld [vmem:[#allocation20 + $0x900] sm:$0xff] }
0x139f   :  { %8457 = vmatpush1.msra.mxu0 %v8431_v42  ;;  %8922 = vmatpush1.msra.mxu1 %v8896_v38  ;;  %v9070_v42 = vld [vmem:[#allocation20 + $0xb80] sm:$0xff]  ;;  %v8806_v38 = vld [vmem:[#allocation20 + $0xa78] sm:$0xff] }
0x13a0   :  { %8458 = vmatprep.subr.mxu0 %v8430_v29  ;;  %8923 = vmatprep.subr.mxu1 %v8895_v10  ;;  %v8621_v29 = vrot.slane %v16087_v6, 4  ;;  %v9271_v10 = vld [vmem:[#allocation20 + $0xcf8] sm:$0xff] }
0x13a1   :  { %8459 = vmatpush1.msra.mxu0 %v8429_v30  ;;  %8924 = vmatpush1.msra.mxu1 %v8894_v62  ;;  %v9086_v30 = vrot.slane %v16094_v48, 6  ;;  %v8805_v62 = vld [vmem:[#allocation20 + $0xa70] sm:$0xff] }
0x13a2   :  { %8460 = vmatprep.subr.mxu0 %v8428_v32  ;;  %8925 = vmatprep.subr.mxu1 %v8893_v61  ;;  %v9270_v32 = vld [vmem:[#allocation20 + $0xcf0] sm:$0xff]  ;;  %v8804_v61 = vld [vmem:[#allocation20 + $0xa68] sm:$0xff] }
0x13a3   :  { %8461 = vmatpush1.msra.mxu0 %v8427_v19  ;;  %8926 = vmatpush1.msra.mxu1 %v8892_v18  ;;  %v9269_v19 = vld [vmem:[#allocation20 + $0xce8] sm:$0xff]  ;;  %v9268_v18 = vld [vmem:[#allocation20 + $0xce0] sm:$0xff] }
0x13a4   :  { %8462 = vmatprep.subr.mxu0 %v8426_v8  ;;  %8927 = vmatprep.subr.mxu1 %v8891_v33  ;;  %v8802_v8 = vld [vmem:[#allocation20 + $0xa58] sm:$0xff] }
0x13a5   :  { %8463 = vmatpush1.msra.mxu0 %v8425_v12  ;;  %8928 = vmatpush1.msra.mxu1 %v8890_v56  ;;  %v9267_v33 = vld [vmem:[#allocation20 + $0xcd8] sm:$0xff]  ;;  %v8801_v12 = vld [vmem:[#allocation20 + $0xa50] sm:$0xff] }
0x13a6   :  { %8464 = vmatprep.subr.mxu0 %v8424_v60  ;;  %8929 = vmatprep.subr.mxu1 %v8889_v24  ;;  %v9266_v56 = vld [vmem:[#allocation20 + $0xcd0] sm:$0xff]  ;;  %v8800_v60 = vld [vmem:[#allocation20 + $0xa48] sm:$0xff] }
0x13a7   :  { %8465 = vmatpush1.msra.mxu0 %v8423_v35  ;;  %8930 = vmatpush1.msra.mxu1 %v8888_v43  ;;  %v9265_v24 = vld [vmem:[#allocation20 + $0xcc8] sm:$0xff]  ;;  %v8799_v35 = vld [vmem:[#allocation20 + $0xa40] sm:$0xff] }
0x13a8   :  { %8466 = vmatprep.subr.mxu0 %v8422_v37  ;;  %8931 = vmatprep.subr.mxu1 %v8887_v14  ;;  %v9264_v43 = vld [vmem:[#allocation20 + $0xcc0] sm:$0xff]  ;;  %v8798_v37 = vld [vmem:[#allocation20 + $0xa38] sm:$0xff] }
0x13a9   :  { %8467 = vmatpush1.msra.mxu0 %v8421_v39  ;;  %8932 = vmatpush1.msra.mxu1 %v8886_v41  ;;  %v9263_v14 = vld [vmem:[#allocation20 + $0xcb8] sm:$0xff]  ;;  %v8797_v39 = vld [vmem:[#allocation20 + $0xa30] sm:$0xff] }
0x13aa   :  { %8468 = vmatprep.subr.mxu0 %v8420_v50  ;;  %8933 = vmatprep.subr.mxu1 %v8885_v34  ;;  %v9262_v41 = vld [vmem:[#allocation20 + $0xcb0] sm:$0xff]  ;;  %v8796_v50 = vld [vmem:[#allocation20 + $0xa28] sm:$0xff] }
0x13ab   :  { %8469 = vmatpush1.msra.mxu0 %v8419_v15  ;;  %8502 = vmatprep.mubr.f32.mxu0 %v14010_v0  ;;  %v9261_v34 = vld [vmem:[#allocation20 + $0xca8] sm:$0xff]  ;;  %v8795_v15 = vld [vmem:[#allocation20 + $0xa20] sm:$0xff] }
0x13ac   :  { %8934 = vmatpush1.msra.mxu1 %v8884_v40  ;;  %8967 = vmatprep.mubr.f32.mxu1 %v14010_v0  ;;  %v9260_v40 = vld [vmem:[#allocation20 + $0xca0] sm:$0xff] }
0x13ad   :  { %10627 = vmatmul.mubr.msk.f32.vlgmr.msra.gmra.mxu0 %vm6969_vm8, %v16087_v6  ;;  %8640 = vmatprep.subr.mxu0 %v8620_v44  ;;  %v8803_v6 = vld [vmem:[#allocation20 + $0xa60] sm:$0xff]  ;;  %v8794_v44 = vld [vmem:[#allocation20 + $0xa18] sm:$0xff] }
0x13ae   :  { %10632 = vmatmul.mubr.msk.f32.vlgmr.msra.gmra.mxu1 %vm6969_vm8, %v8900_v58  ;;  %9105 = vmatprep.subr.mxu1 %v9085_v16  ;;  %v9259_v16 = vld [vmem:[#allocation20 + $0xc98] sm:$0xff]  ;;  %v8793_v58 = vld [vmem:[#allocation20 + $0xa10] sm:$0xff] }
0x13af   :  { %8641 = vmatpush1.msra.mxu0 %v8619_v28  ;;  %9106 = vmatpush1.msra.mxu1 %v9084_v63  ;;  %v9258_v28 = vld [vmem:[#allocation20 + $0xc90] sm:$0xff]  ;;  %v8792_v63 = vld [vmem:[#allocation20 + $0xa08] sm:$0xff] }
0x13b0   :  { %8642 = vmatprep.subr.mxu0 %v8618_v47  ;;  %9107 = vmatprep.subr.mxu1 %v9083_v49  ;;  %v9257_v47 = vld [vmem:[#allocation20 + $0xc88] sm:$0xff]  ;;  %v8791_v49 = vld [vmem:[#allocation20 + $0xa00] sm:$0xff] }
0x13b1   :  { %8643 = vmatpush1.msra.mxu0 %v8617_v52  ;;  %9108 = vmatpush1.msra.mxu1 %v9082_v54  ;;  %v9256_v52 = vld [vmem:[#allocation20 + $0xc80] sm:$0xff]  ;;  %v8992_v54 = vld [vmem:[#allocation20 + $0xb78] sm:$0xff] }
0x13b2   :  { %8644 = vmatprep.subr.mxu0 %v8616_v31  ;;  %9109 = vmatprep.subr.mxu1 %v9081_v3  ;;  %v9457_v31 = vld [vmem:[#allocation20 + $0xdf8] sm:$0xff]  ;;  %v9272_v3 = vrot.slane %v16097_v53, 2 }
0x13b3   :  { %8645 = vmatpush1.msra.mxu0 %v8615_v11  ;;  %9110 = vmatpush1.msra.mxu1 %v9080_v57  ;;  %v8991_v11 = vld [vmem:[#allocation20 + $0xb70] sm:$0xff] }
0x13b4   :  { %8646 = vmatprep.subr.mxu0 %v8614_v45  ;;  %9111 = vmatprep.subr.mxu1 %v9079_v46  ;;  %v9456_v57 = vld [vmem:[#allocation20 + $0xdf0] sm:$0xff]  ;;  %v8990_v45 = vld [vmem:[#allocation20 + $0xb68] sm:$0xff] }
0x13b5   :  { %8647 = vmatpush1.msra.mxu0 %v8613_v25  ;;  %9112 = vmatpush1.msra.mxu1 %v9078_v59  ;;  %v9455_v46 = vld [vmem:[#allocation20 + $0xde8] sm:$0xff]  ;;  %v8989_v25 = vld [vmem:[#allocation20 + $0xb60] sm:$0xff] }
0x13b6   :  { %8648 = vmatprep.subr.mxu0 %v8612_v17  ;;  %9113 = vmatprep.subr.mxu1 %v9077_v1  ;;  %v9454_v59 = vld [vmem:[#allocation20 + $0xde0] sm:$0xff]  ;;  %v8988_v17 = vld [vmem:[#allocation20 + $0xb58] sm:$0xff] }
0x13b7   :  { %8649 = vmatpush1.msra.mxu0 %v8611_v51  ;;  %9114 = vmatpush1.msra.mxu1 %v9076_v2  ;;  %v9453_v1 = vld [vmem:[#allocation20 + $0xdd8] sm:$0xff]  ;;  %v8987_v51 = vld [vmem:[#allocation20 + $0xb50] sm:$0xff] }
0x13b8   :  { %8650 = vmatprep.subr.mxu0 %v8610_v4  ;;  %9115 = vmatprep.subr.mxu1 %v9075_v5  ;;  %v9452_v2 = vld [vmem:[#allocation20 + $0xdd0] sm:$0xff]  ;;  %v8986_v4 = vld [vmem:[#allocation20 + $0xb48] sm:$0xff] }
0x13b9   :  { %8651 = vmatpush1.msra.mxu0 %v8609_v21  ;;  %9116 = vmatpush1.msra.mxu1 %v9074_v55  ;;  %v9451_v5 = vld [vmem:[#allocation20 + $0xdc8] sm:$0xff]  ;;  %v8985_v21 = vld [vmem:[#allocation20 + $0xb40] sm:$0xff] }
0x13ba   :  { %8652 = vmatprep.subr.mxu0 %v8608_v20  ;;  %9117 = vmatprep.subr.mxu1 %v9073_v23  ;;  %v9450_v55 = vld [vmem:[#allocation20 + $0xdc0] sm:$0xff]  ;;  %v8984_v20 = vld [vmem:[#allocation20 + $0xb38] sm:$0xff] }
0x13bb   :  { %8653 = vmatpush1.msra.mxu0 %v8607_v7  ;;  %9118 = vmatpush1.msra.mxu1 %v9072_v13  ;;  %v9449_v23 = vld [vmem:[#allocation20 + $0xdb8] sm:$0xff]  ;;  %v8983_v7 = vld [vmem:[#allocation20 + $0xb30] sm:$0xff] }
0x13bc   :  { %8654 = vmatprep.subr.mxu0 %v8606_v26  ;;  %9119 = vmatprep.subr.mxu1 %v9071_v22  ;;  %v9448_v13 = vld [vmem:[#allocation20 + $0xdb0] sm:$0xff]  ;;  %v8982_v26 = vld [vmem:[#allocation20 + $0xb28] sm:$0xff] }
0x13bd   :  { %8655 = vmatpush1.msra.mxu0 %v8605_v27  ;;  %8688 = vmatprep.mubr.f32.mxu0 %v14010_v0  ;;  %v9447_v22 = vld [vmem:[#allocation20 + $0xda8] sm:$0xff]  ;;  %v8981_v27 = vld [vmem:[#allocation20 + $0xb20] sm:$0xff] }
0x13be   :  { %9120 = vmatpush1.msra.mxu1 %v9070_v42  ;;  %9153 = vmatprep.mubr.f32.mxu1 %v14010_v0  ;;  %v9446_v42 = vld [vmem:[#allocation20 + $0xda0] sm:$0xff] }
0x13bf   :  { %10629 = vmatmul.mubr.msk.f32.vlgmr.msra.gmra.mxu0 %vm6969_vm8, %v8621_v29  ;;  %8826 = vmatprep.subr.mxu0 %v8806_v38  ;;  %v8980_v38 = vld [vmem:[#allocation20 + $0xb18] sm:$0xff] }
0x13c0   :  { %10634 = vmatmul.mubr.msk.f32.vlgmr.msra.gmra.mxu1 %vm6969_vm8, %v9086_v30  ;;  %9291 = vmatprep.subr.mxu1 %v9271_v10  ;;  %v9445_v29 = vld [vmem:[#allocation20 + $0xd98] sm:$0xff]  ;;  %v8979_v10 = vld [vmem:[#allocation20 + $0xb10] sm:$0xff] }
0x13c1   :  { %8827 = vmatpush1.msra.mxu0 %v8805_v62  ;;  %9292 = vmatpush1.msra.mxu1 %v9270_v32  ;;  %v9444_v30 = vld [vmem:[#allocation20 + $0xd90] sm:$0xff]  ;;  %v8978_v62 = vld [vmem:[#allocation20 + $0xb08] sm:$0xff] }
0x13c2   :  { %8828 = vmatprep.subr.mxu0 %v8804_v61  ;;  %9293 = vmatprep.subr.mxu1 %v9269_v19  ;;  %v9443_v32 = vld [vmem:[#allocation20 + $0xd88] sm:$0xff]  ;;  %v8977_v61 = vld [vmem:[#allocation20 + $0xb00] sm:$0xff] }
0x13c3   :  { %8829 = vmatpush1.msra.mxu0 %v8803_v6  ;;  %9294 = vmatpush1.msra.mxu1 %v9268_v18  ;;  %v9442_v19 = vld [vmem:[#allocation20 + $0xd80] sm:$0xff]  ;;  %v9178_v6 = vld [vmem:[#allocation20 + $0xc78] sm:$0xff]  ;;  %v8993_v18 = vrot.slane %v16094_v48, 4 }
0x13c4   :  { %8830 = vmatprep.subr.mxu0 %v8802_v8  ;;  %9295 = vmatprep.subr.mxu1 %v9267_v33  ;;  %v9643_v8 = vld [vmem:[#allocation20 + $0xef8] sm:$0xff]  ;;  %v9458_v33 = vrot.slane %v16097_v53, 6 }
0x13c5   :  { %8831 = vmatpush1.msra.mxu0 %v8801_v12  ;;  %9296 = vmatpush1.msra.mxu1 %v9266_v56  ;;  %v9177_v12 = vld [vmem:[#allocation20 + $0xc70] sm:$0xff] }
0x13c6   :  { %8832 = vmatprep.subr.mxu0 %v8800_v60  ;;  %9297 = vmatprep.subr.mxu1 %v9265_v24  ;;  %v9642_v56 = vld [vmem:[#allocation20 + $0xef0] sm:$0xff]  ;;  %v9176_v60 = vld [vmem:[#allocation20 + $0xc68] sm:$0xff] }
0x13c7   :  { %8833 = vmatpush1.msra.mxu0 %v8799_v35  ;;  %9298 = vmatpush1.msra.mxu1 %v9264_v43  ;;  %v9641_v24 = vld [vmem:[#allocation20 + $0xee8] sm:$0xff]  ;;  %v9640_v35 = vld [vmem:[#allocation20 + $0xee0] sm:$0xff]  ;;  %v9174_v43 = vld [vmem:[#allocation20 + $0xc58] sm:$0xff] }
0x13c8   :  { %8834 = vmatprep.subr.mxu0 %v8798_v37  ;;  %9299 = vmatprep.subr.mxu1 %v9263_v14  ;;  %v9639_v37 = vld [vmem:[#allocation20 + $0xed8] sm:$0xff]  ;;  %v9173_v14 = vld [vmem:[#allocation20 + $0xc50] sm:$0xff] }
0x13c9   :  { %8835 = vmatpush1.msra.mxu0 %v8797_v39  ;;  %9300 = vmatpush1.msra.mxu1 %v9262_v41  ;;  %v9638_v39 = vld [vmem:[#allocation20 + $0xed0] sm:$0xff]  ;;  %v9172_v41 = vld [vmem:[#allocation20 + $0xc48] sm:$0xff] }
0x13ca   :  { %8836 = vmatprep.subr.mxu0 %v8796_v50  ;;  %9301 = vmatprep.subr.mxu1 %v9261_v34  ;;  %v9637_v50 = vld [vmem:[#allocation20 + $0xec8] sm:$0xff]  ;;  %v9171_v34 = vld [vmem:[#allocation20 + $0xc40] sm:$0xff] }
0x13cb   :  { %8837 = vmatpush1.msra.mxu0 %v8795_v15  ;;  %9302 = vmatpush1.msra.mxu1 %v9260_v40  ;;  %v9636_v15 = vld [vmem:[#allocation20 + $0xec0] sm:$0xff]  ;;  %v9170_v40 = vld [vmem:[#allocation20 + $0xc38] sm:$0xff] }
0x13cc   :  { %8838 = vmatprep.subr.mxu0 %v8794_v44  ;;  %9303 = vmatprep.subr.mxu1 %v9259_v16  ;;  %v9635_v44 = vld [vmem:[#allocation20 + $0xeb8] sm:$0xff]  ;;  %v9169_v16 = vld [vmem:[#allocation20 + $0xc30] sm:$0xff] }
0x13cd   :  { %8839 = vmatpush1.msra.mxu0 %v8793_v58  ;;  %9304 = vmatpush1.msra.mxu1 %v9258_v28  ;;  %v9634_v58 = vld [vmem:[#allocation20 + $0xeb0] sm:$0xff]  ;;  %v9168_v28 = vld [vmem:[#allocation20 + $0xc28] sm:$0xff] }
0x13ce   :  { %8840 = vmatprep.subr.mxu0 %v8792_v63  ;;  %9305 = vmatprep.subr.mxu1 %v9257_v47  ;;  %v9633_v63 = vld [vmem:[#allocation20 + $0xea8] sm:$0xff]  ;;  %v9167_v47 = vld [vmem:[#allocation20 + $0xc20] sm:$0xff] }
0x13cf   :  { %8841 = vmatpush1.msra.mxu0 %v8791_v49  ;;  %8874 = vmatprep.mubr.f32.mxu0 %v14010_v0  ;;  %v9632_v49 = vld [vmem:[#allocation20 + $0xea0] sm:$0xff] }
0x13d0   :  { %9306 = vmatpush1.msra.mxu1 %v9256_v52  ;;  %9339 = vmatprep.mubr.f32.mxu1 %v14010_v0  ;;  %v9166_v52 = vld [vmem:[#allocation20 + $0xc18] sm:$0xff] }
0x13d1   :  { %10631 = vmatmul.mubr.msk.f32.vlgmr.msra.gmra.mxu0 %vm6969_vm8, %v16094_v48  ;;  %9012 = vmatprep.subr.mxu0 %v8992_v54  ;;  %v9175_v48 = vld [vmem:[#allocation20 + $0xc60] sm:$0xff]  ;;  %v9631_v54 = vld [vmem:[#allocation20 + $0xe98] sm:$0xff] }
0x13d2   :  { %10636 = vmatmul.mubr.msk.f32.vlgmr.msra.gmra.mxu1 %vm6969_vm8, %v9272_v3  ;;  %9477 = vmatprep.subr.mxu1 %v9457_v31  ;;  %v9165_v31 = vld [vmem:[#allocation20 + $0xc10] sm:$0xff] }
0x13d3   :  { %9013 = vmatpush1.msra.mxu0 %v8991_v11  ;;  %9478 = vmatpush1.msra.mxu1 %v9456_v57  ;;  %v9630_v3 = vld [vmem:[#allocation20 + $0xe90] sm:$0xff]  ;;  %v9164_v11 = vld [vmem:[#allocation20 + $0xc08] sm:$0xff] }
0x13d4   :  { %9014 = vmatprep.subr.mxu0 %v8990_v45  ;;  %9479 = vmatprep.subr.mxu1 %v9455_v46  ;;  %v9629_v57 = vld [vmem:[#allocation20 + $0xe88] sm:$0xff]  ;;  %v9163_v45 = vld [vmem:[#allocation20 + $0xc00] sm:$0xff] }
0x13d5   :  { %9015 = vmatpush1.msra.mxu0 %v8989_v25  ;;  %9480 = vmatpush1.msra.mxu1 %v9454_v59  ;;  %v9628_v46 = vld [vmem:[#allocation20 + $0xe80] sm:$0xff]  ;;  %v9364_v25 = vld [vmem:[#allocation20 + $0xd78] sm:$0xff] }
0x13d6   :  { %9016 = vmatprep.subr.mxu0 %v8988_v17  ;;  %9481 = vmatprep.subr.mxu1 %v9453_v1  ;;  %v9829_v59 = vld [vmem:[#allocation20 + $0xff8] sm:$0xff]  ;;  %v9644_v17 = vrot.slane %v16099_v9, 2  ;;  %v9363_v1 = vld [vmem:[#allocation20 + $0xd70] sm:$0xff] }
0x13d7   :  { %9017 = vmatpush1.msra.mxu0 %v8987_v51  ;;  %9482 = vmatpush1.msra.mxu1 %v9452_v2  ;;  %v9828_v51 = vld [vmem:[#allocation20 + $0xff0] sm:$0xff]  ;;  %v9362_v2 = vld [vmem:[#allocation20 + $0xd68] sm:$0xff] }
0x13d8   :  { %9018 = vmatprep.subr.mxu0 %v8986_v4  ;;  %9483 = vmatprep.subr.mxu1 %v9451_v5  ;;  %v9827_v4 = vld [vmem:[#allocation20 + $0xfe8] sm:$0xff]  ;;  %v9361_v5 = vld [vmem:[#allocation20 + $0xd60] sm:$0xff] }
0x13d9   :  { %9019 = vmatpush1.msra.mxu0 %v8985_v21  ;;  %9484 = vmatpush1.msra.mxu1 %v9450_v55  ;;  %v9826_v21 = vld [vmem:[#allocation20 + $0xfe0] sm:$0xff]  ;;  %v9360_v55 = vld [vmem:[#allocation20 + $0xd58] sm:$0xff] }
0x13da   :  { %9020 = vmatprep.subr.mxu0 %v8984_v20  ;;  %9485 = vmatprep.subr.mxu1 %v9449_v23  ;;  %v9825_v20 = vld [vmem:[#allocation20 + $0xfd8] sm:$0xff]  ;;  %v9359_v23 = vld [vmem:[#allocation20 + $0xd50] sm:$0xff] }
0x13db   :  { %9021 = vmatpush1.msra.mxu0 %v8983_v7  ;;  %9486 = vmatpush1.msra.mxu1 %v9448_v13  ;;  %v9824_v7 = vld [vmem:[#allocation20 + $0xfd0] sm:$0xff]  ;;  %v9358_v13 = vld [vmem:[#allocation20 + $0xd48] sm:$0xff] }
0x13dc   :  { %9022 = vmatprep.subr.mxu0 %v8982_v26  ;;  %9487 = vmatprep.subr.mxu1 %v9447_v22  ;;  %v9823_v26 = vld [vmem:[#allocation20 + $0xfc8] sm:$0xff]  ;;  %v9357_v22 = vld [vmem:[#allocation20 + $0xd40] sm:$0xff] }
0x13dd   :  { %9023 = vmatpush1.msra.mxu0 %v8981_v27  ;;  %9488 = vmatpush1.msra.mxu1 %v9446_v42  ;;  %v9822_v27 = vld [vmem:[#allocation20 + $0xfc0] sm:$0xff]  ;;  %v9356_v42 = vld [vmem:[#allocation20 + $0xd38] sm:$0xff] }
0x13de   :  { %9024 = vmatprep.subr.mxu0 %v8980_v38  ;;  %9489 = vmatprep.subr.mxu1 %v9445_v29  ;;  %v9821_v38 = vld [vmem:[#allocation20 + $0xfb8] sm:$0xff]  ;;  %v9355_v29 = vld [vmem:[#allocation20 + $0xd30] sm:$0xff] }
0x13df   :  { %9025 = vmatpush1.msra.mxu0 %v8979_v10  ;;  %9490 = vmatpush1.msra.mxu1 %v9444_v30  ;;  %v9820_v10 = vld [vmem:[#allocation20 + $0xfb0] sm:$0xff]  ;;  %v9354_v30 = vld [vmem:[#allocation20 + $0xd28] sm:$0xff] }
0x13e0   :  { %9026 = vmatprep.subr.mxu0 %v8978_v62  ;;  %9491 = vmatprep.subr.mxu1 %v9443_v32  ;;  %v9819_v62 = vld [vmem:[#allocation20 + $0xfa8] sm:$0xff]  ;;  %v9353_v32 = vld [vmem:[#allocation20 + $0xd20] sm:$0xff] }
0x13e1   :  { %9027 = vmatpush1.msra.mxu0 %v8977_v61  ;;  %9060 = vmatprep.mubr.f32.mxu0 %v14010_v0  ;;  %v9818_v61 = vld [vmem:[#allocation20 + $0xfa0] sm:$0xff] }
0x13e2   :  { %9492 = vmatpush1.msra.mxu1 %v9442_v19  ;;  %9525 = vmatprep.mubr.f32.mxu1 %v14010_v0  ;;  %v9352_v19 = vld [vmem:[#allocation20 + $0xd18] sm:$0xff] }
0x13e3   :  { %10633 = vmatmul.mubr.msk.f32.vlgmr.msra.gmra.mxu0 %vm6969_vm8, %v8993_v18  ;;  %9198 = vmatprep.subr.mxu0 %v9178_v6  ;;  %v9817_v6 = vld [vmem:[#allocation20 + $0xf98] sm:$0xff]  ;;  %v9351_v18 = vld [vmem:[#allocation20 + $0xd10] sm:$0xff] }
0x13e4   :  { %10638 = vmatmul.mubr.msk.f32.vlgmr.msra.gmra.mxu1 %vm6969_vm8, %v9458_v33  ;;  %9663 = vmatprep.subr.mxu1 %v9643_v8  ;;  %v9816_v8 = vld [vmem:[#allocation20 + $0xf90] sm:$0xff]  ;;  %v9350_v33 = vld [vmem:[#allocation20 + $0xd08] sm:$0xff] }
0x13e5   :  { %9199 = vmatpush1.msra.mxu0 %v9177_v12  ;;  %9664 = vmatpush1.msra.mxu1 %v9642_v56  ;;  %v9815_v12 = vld [vmem:[#allocation20 + $0xf88] sm:$0xff]  ;;  %v9349_v56 = vld [vmem:[#allocation20 + $0xd00] sm:$0xff] }
0x13e6   :  { %9200 = vmatprep.subr.mxu0 %v9176_v60  ;;  %9665 = vmatprep.subr.mxu1 %v9641_v24  ;;  %v9814_v60 = vld [vmem:[#allocation20 + $0xf80] sm:$0xff]  ;;  %v9550_v24 = vld [vmem:[#allocation20 + $0xe78] sm:$0xff] }
0x13e7   :  { %9201 = vmatpush1.msra.mxu0 %v9175_v48  ;;  %9666 = vmatpush1.msra.mxu1 %v9640_v35  ;;  %v9365_v48 = vrot.slane %v16097_v53, 4  ;;  %v10015_v35 = vld [vmem:[#allocation20 + $0x10f8] sm:$0xff] }
0x13e8   :  { %9202 = vmatprep.subr.mxu0 %v9174_v43  ;;  %9667 = vmatprep.subr.mxu1 %v9639_v37  ;;  %v9830_v43 = vrot.slane %v16099_v9, 6  ;;  %v9549_v37 = vld [vmem:[#allocation20 + $0xe70] sm:$0xff] }
0x13e9   :  { %9203 = vmatpush1.msra.mxu0 %v9173_v14  ;;  %9668 = vmatpush1.msra.mxu1 %v9638_v39  ;;  %v10014_v14 = vld [vmem:[#allocation20 + $0x10f0] sm:$0xff]  ;;  %v9548_v39 = vld [vmem:[#allocation20 + $0xe68] sm:$0xff] }
0x13ea   :  { %9204 = vmatprep.subr.mxu0 %v9172_v41  ;;  %9669 = vmatprep.subr.mxu1 %v9637_v50  ;;  %v10013_v41 = vld [vmem:[#allocation20 + $0x10e8] sm:$0xff]  ;;  %v10012_v50 = vld [vmem:[#allocation20 + $0x10e0] sm:$0xff] }
0x13eb   :  { %9205 = vmatpush1.msra.mxu0 %v9171_v34  ;;  %9670 = vmatpush1.msra.mxu1 %v9636_v15  ;;  %v9546_v34 = vld [vmem:[#allocation20 + $0xe58] sm:$0xff] }
0x13ec   :  { %9206 = vmatprep.subr.mxu0 %v9170_v40  ;;  %9671 = vmatprep.subr.mxu1 %v9635_v44  ;;  %v10011_v15 = vld [vmem:[#allocation20 + $0x10d8] sm:$0xff]  ;;  %v9545_v40 = vld [vmem:[#allocation20 + $0xe50] sm:$0xff] }
0x13ed   :  { %9207 = vmatpush1.msra.mxu0 %v9169_v16  ;;  %9672 = vmatpush1.msra.mxu1 %v9634_v58  ;;  %v10010_v44 = vld [vmem:[#allocation20 + $0x10d0] sm:$0xff]  ;;  %v9544_v16 = vld [vmem:[#allocation20 + $0xe48] sm:$0xff] }
0x13ee   :  { %9208 = vmatprep.subr.mxu0 %v9168_v28  ;;  %9673 = vmatprep.subr.mxu1 %v9633_v63  ;;  %v10009_v58 = vld [vmem:[#allocation20 + $0x10c8] sm:$0xff]  ;;  %v9543_v28 = vld [vmem:[#allocation20 + $0xe40] sm:$0xff] }
0x13ef   :  { %9209 = vmatpush1.msra.mxu0 %v9167_v47  ;;  %9674 = vmatpush1.msra.mxu1 %v9632_v49  ;;  %v10008_v63 = vld [vmem:[#allocation20 + $0x10c0] sm:$0xff]  ;;  %v9542_v47 = vld [vmem:[#allocation20 + $0xe38] sm:$0xff] }
0x13f0   :  { %9210 = vmatprep.subr.mxu0 %v9166_v52  ;;  %9675 = vmatprep.subr.mxu1 %v9631_v54  ;;  %v10007_v49 = vld [vmem:[#allocation20 + $0x10b8] sm:$0xff]  ;;  %v9541_v52 = vld [vmem:[#allocation20 + $0xe30] sm:$0xff] }
0x13f1   :  { %9211 = vmatpush1.msra.mxu0 %v9165_v31  ;;  %9676 = vmatpush1.msra.mxu1 %v9630_v3  ;;  %v10006_v54 = vld [vmem:[#allocation20 + $0x10b0] sm:$0xff]  ;;  %v9540_v31 = vld [vmem:[#allocation20 + $0xe28] sm:$0xff] }
0x13f2   :  { %9212 = vmatprep.subr.mxu0 %v9164_v11  ;;  %9677 = vmatprep.subr.mxu1 %v9629_v57  ;;  %v10005_v3 = vld [vmem:[#allocation20 + $0x10a8] sm:$0xff]  ;;  %v9539_v11 = vld [vmem:[#allocation20 + $0xe20] sm:$0xff] }
0x13f3   :  { %9213 = vmatpush1.msra.mxu0 %v9163_v45  ;;  %9246 = vmatprep.mubr.f32.mxu0 %v14010_v0  ;;  %v10004_v57 = vld [vmem:[#allocation20 + $0x10a0] sm:$0xff]  ;;  %v9538_v45 = vld [vmem:[#allocation20 + $0xe18] sm:$0xff] }
0x13f4   :  { %9678 = vmatpush1.msra.mxu1 %v9628_v46  ;;  %9711 = vmatprep.mubr.f32.mxu1 %v14010_v0  ;;  %v10003_v46 = vld [vmem:[#allocation20 + $0x1098] sm:$0xff] }
0x13f5   :  { %10635 = vmatmul.mubr.msk.f32.vlgmr.msra.gmra.mxu0 %vm6969_vm8, %v16097_v53  ;;  %9384 = vmatprep.subr.mxu0 %v9364_v25  ;;  %v9547_v53 = vld [vmem:[#allocation20 + $0xe60] sm:$0xff]  ;;  %v9537_v25 = vld [vmem:[#allocation20 + $0xe10] sm:$0xff] }
0x13f6   :  { %10640 = vmatmul.mubr.msk.f32.vlgmr.msra.gmra.mxu1 %vm6969_vm8, %v9644_v17  ;;  %9849 = vmatprep.subr.mxu1 %v9829_v59  ;;  %v10002_v59 = vld [vmem:[#allocation20 + $0x1090] sm:$0xff]  ;;  %v9536_v17 = vld [vmem:[#allocation20 + $0xe08] sm:$0xff] }
0x13f7   :  { %9385 = vmatpush1.msra.mxu0 %v9363_v1  ;;  %9850 = vmatpush1.msra.mxu1 %v9828_v51  ;;  %v10001_v1 = vld [vmem:[#allocation20 + $0x1088] sm:$0xff]  ;;  %v9535_v51 = vld [vmem:[#allocation20 + $0xe00] sm:$0xff] }
0x13f8   :  { %9386 = vmatprep.subr.mxu0 %v9362_v2  ;;  %9851 = vmatprep.subr.mxu1 %v9827_v4  ;;  %v10000_v2 = vld [vmem:[#allocation20 + $0x1080] sm:$0xff]  ;;  %v9736_v4 = vld [vmem:[#allocation20 + $0xf78] sm:$0xff] }
0x13f9   :  { %9387 = vmatpush1.msra.mxu0 %v9361_v5  ;;  %9852 = vmatpush1.msra.mxu1 %v9826_v21  ;;  %v10201_v5 = vld [vmem:[#allocation20 + $0x11f8] sm:$0xff]  ;;  %v10016_v21 = vrot.slane %v16101_v36, 2 }
0x13fa   :  { %9388 = vmatprep.subr.mxu0 %v9360_v55  ;;  %9853 = vmatprep.subr.mxu1 %v9825_v20  ;;  %v9735_v55 = vld [vmem:[#allocation20 + $0xf70] sm:$0xff] }
0x13fb   :  { %9389 = vmatpush1.msra.mxu0 %v9359_v23  ;;  %9854 = vmatpush1.msra.mxu1 %v9824_v7  ;;  %v10200_v20 = vld [vmem:[#allocation20 + $0x11f0] sm:$0xff]  ;;  %v9734_v23 = vld [vmem:[#allocation20 + $0xf68] sm:$0xff] }
0x13fc   :  { %9390 = vmatprep.subr.mxu0 %v9358_v13  ;;  %9855 = vmatprep.subr.mxu1 %v9823_v26  ;;  %v10199_v7 = vld [vmem:[#allocation20 + $0x11e8] sm:$0xff]  ;;  %v9733_v13 = vld [vmem:[#allocation20 + $0xf60] sm:$0xff] }
0x13fd   :  { %9391 = vmatpush1.msra.mxu0 %v9357_v22  ;;  %9856 = vmatpush1.msra.mxu1 %v9822_v27  ;;  %v10198_v26 = vld [vmem:[#allocation20 + $0x11e0] sm:$0xff]  ;;  %v9732_v22 = vld [vmem:[#allocation20 + $0xf58] sm:$0xff] }
0x13fe   :  { %9392 = vmatprep.subr.mxu0 %v9356_v42  ;;  %9857 = vmatprep.subr.mxu1 %v9821_v38  ;;  %v10197_v27 = vld [vmem:[#allocation20 + $0x11d8] sm:$0xff]  ;;  %v9731_v42 = vld [vmem:[#allocation20 + $0xf50] sm:$0xff] }
0x13ff   :  { %9393 = vmatpush1.msra.mxu0 %v9355_v29  ;;  %9858 = vmatpush1.msra.mxu1 %v9820_v10  ;;  %v10196_v38 = vld [vmem:[#allocation20 + $0x11d0] sm:$0xff]  ;;  %v9730_v29 = vld [vmem:[#allocation20 + $0xf48] sm:$0xff] }
0x1400   :  { %9394 = vmatprep.subr.mxu0 %v9354_v30  ;;  %9859 = vmatprep.subr.mxu1 %v9819_v62  ;;  %v10195_v10 = vld [vmem:[#allocation20 + $0x11c8] sm:$0xff]  ;;  %v9729_v30 = vld [vmem:[#allocation20 + $0xf40] sm:$0xff] }
0x1401   :  { %9395 = vmatpush1.msra.mxu0 %v9353_v32  ;;  %9860 = vmatpush1.msra.mxu1 %v9818_v61  ;;  %v10194_v62 = vld [vmem:[#allocation20 + $0x11c0] sm:$0xff]  ;;  %v9728_v32 = vld [vmem:[#allocation20 + $0xf38] sm:$0xff] }
0x1402   :  { %9396 = vmatprep.subr.mxu0 %v9352_v19  ;;  %9861 = vmatprep.subr.mxu1 %v9817_v6  ;;  %v10193_v61 = vld [vmem:[#allocation20 + $0x11b8] sm:$0xff]  ;;  %v9727_v19 = vld [vmem:[#allocation20 + $0xf30] sm:$0xff] }
0x1403   :  { %9397 = vmatpush1.msra.mxu0 %v9351_v18  ;;  %9862 = vmatpush1.msra.mxu1 %v9816_v8  ;;  %v10192_v6 = vld [vmem:[#allocation20 + $0x11b0] sm:$0xff]  ;;  %v9726_v18 = vld [vmem:[#allocation20 + $0xf28] sm:$0xff] }
0x1404   :  { %9398 = vmatprep.subr.mxu0 %v9350_v33  ;;  %9863 = vmatprep.subr.mxu1 %v9815_v12  ;;  %v10191_v8 = vld [vmem:[#allocation20 + $0x11a8] sm:$0xff]  ;;  %v9725_v33 = vld [vmem:[#allocation20 + $0xf20] sm:$0xff] }
0x1405   :  { %9399 = vmatpush1.msra.mxu0 %v9349_v56  ;;  %9432 = vmatprep.mubr.f32.mxu0 %v14010_v0  ;;  %v10190_v12 = vld [vmem:[#allocation20 + $0x11a0] sm:$0xff]  ;;  %v9724_v56 = vld [vmem:[#allocation20 + $0xf18] sm:$0xff] }
0x1406   :  { %9864 = vmatpush1.msra.mxu1 %v9814_v60  ;;  %9897 = vmatprep.mubr.f32.mxu1 %v14010_v0  ;;  %v10189_v60 = vld [vmem:[#allocation20 + $0x1198] sm:$0xff] }
0x1407   :  { %10637 = vmatmul.mubr.msk.f32.vlgmr.msra.gmra.mxu0 %vm6969_vm8, %v9365_v48  ;;  %9570 = vmatprep.subr.mxu0 %v9550_v24  ;;  %v9723_v24 = vld [vmem:[#allocation20 + $0xf10] sm:$0xff] }
0x1408   :  { %10642 = vmatmul.mubr.msk.f32.vlgmr.msra.gmra.mxu1 %vm6969_vm8, %v9830_v43  ;;  %10035 = vmatprep.subr.mxu1 %v10015_v35  ;;  %v10188_v48 = vld [vmem:[#allocation20 + $0x1190] sm:$0xff]  ;;  %v9722_v35 = vld [vmem:[#allocation20 + $0xf08] sm:$0xff] }
0x1409   :  { %9571 = vmatpush1.msra.mxu0 %v9549_v37  ;;  %10036 = vmatpush1.msra.mxu1 %v10014_v14  ;;  %v10187_v43 = vld [vmem:[#allocation20 + $0x1188] sm:$0xff]  ;;  %v9721_v37 = vld [vmem:[#allocation20 + $0xf00] sm:$0xff] }
0x140a   :  { %9572 = vmatprep.subr.mxu0 %v9548_v39  ;;  %10037 = vmatprep.subr.mxu1 %v10013_v41  ;;  %v10186_v14 = vld [vmem:[#allocation20 + $0x1180] sm:$0xff]  ;;  %v9922_v39 = vld [vmem:[#allocation20 + $0x1078] sm:$0xff]  ;;  %v9737_v41 = vrot.slane %v16099_v9, 4 }
0x140b   :  { %9573 = vmatpush1.msra.mxu0 %v9547_v53  ;;  %10038 = vmatpush1.msra.mxu1 %v10012_v50  ;;  %v9921_v53 = vld [vmem:[#allocation20 + $0x1070] sm:$0xff]  ;;  %v10202_v50 = vrot.slane %v16101_v36, 6 }
0x140c   :  { %9574 = vmatprep.subr.mxu0 %v9546_v34  ;;  %10039 = vmatprep.subr.mxu1 %v10011_v15  ;;  %v9920_v34 = vld [vmem:[#allocation20 + $0x1068] sm:$0xff]  ;;  %v9919_v15 = vld [vmem:[#allocation20 + $0x1060] sm:$0xff] }
0x140d   :  { %9575 = vmatpush1.msra.mxu0 %v9545_v40  ;;  %10040 = vmatpush1.msra.mxu1 %v10010_v44  ;;  %v9918_v40 = vld [vmem:[#allocation20 + $0x1058] sm:$0xff]  ;;  %v9916_v44 = vld [vmem:[#allocation20 + $0x1048] sm:$0xff] }
0x140e   :  { %9576 = vmatprep.subr.mxu0 %v9544_v16  ;;  %10041 = vmatprep.subr.mxu1 %v10009_v58  ;;  %v9915_v16 = vld [vmem:[#allocation20 + $0x1040] sm:$0xff]  ;;  %v9914_v58 = vld [vmem:[#allocation20 + $0x1038] sm:$0xff] }
0x140f   :  { %9577 = vmatpush1.msra.mxu0 %v9543_v28  ;;  %10042 = vmatpush1.msra.mxu1 %v10008_v63  ;;  %v9913_v28 = vld [vmem:[#allocation20 + $0x1030] sm:$0xff]  ;;  %v9912_v63 = vld [vmem:[#allocation20 + $0x1028] sm:$0xff] }
0x1410   :  { %9578 = vmatprep.subr.mxu0 %v9542_v47  ;;  %10043 = vmatprep.subr.mxu1 %v10007_v49  ;;  %v9911_v47 = vld [vmem:[#allocation20 + $0x1020] sm:$0xff]  ;;  %v9910_v49 = vld [vmem:[#allocation20 + $0x1018] sm:$0xff] }
0x1411   :  { %9579 = vmatpush1.msra.mxu0 %v9541_v52  ;;  %10044 = vmatpush1.msra.mxu1 %v10006_v54  ;;  %v9909_v52 = vld [vmem:[#allocation20 + $0x1010] sm:$0xff]  ;;  %v9908_v54 = vld [vmem:[#allocation20 + $0x1008] sm:$0xff] }
0x1412   :  { %9580 = vmatprep.subr.mxu0 %v9540_v31  ;;  %10045 = vmatprep.subr.mxu1 %v10005_v3  ;;  %v9907_v31 = vld [vmem:[#allocation20 + $0x1000] sm:$0xff]  ;;  %v10108_v3 = vld [vmem:[#allocation20 + $0x1178] sm:$0xff] }
0x1413   :  { %9581 = vmatpush1.msra.mxu0 %v9539_v11  ;;  %10046 = vmatpush1.msra.mxu1 %v10004_v57  ;;  %v10107_v11 = vld [vmem:[#allocation20 + $0x1170] sm:$0xff]  ;;  %v10106_v57 = vld [vmem:[#allocation20 + $0x1168] sm:$0xff] }
0x1414   :  { %9582 = vmatprep.subr.mxu0 %v9538_v45  ;;  %10047 = vmatprep.subr.mxu1 %v10003_v46  ;;  %v10105_v45 = vld [vmem:[#allocation20 + $0x1160] sm:$0xff]  ;;  %v10104_v46 = vld [vmem:[#allocation20 + $0x1158] sm:$0xff] }
0x1415   :  { %9583 = vmatpush1.msra.mxu0 %v9537_v25  ;;  %10048 = vmatpush1.msra.mxu1 %v10002_v59  ;;  %v10103_v25 = vld [vmem:[#allocation20 + $0x1150] sm:$0xff]  ;;  %v10102_v59 = vld [vmem:[#allocation20 + $0x1148] sm:$0xff] }
0x1416   :  { %9584 = vmatprep.subr.mxu0 %v9536_v17  ;;  %10049 = vmatprep.subr.mxu1 %v10001_v1  ;;  %v10101_v17 = vld [vmem:[#allocation20 + $0x1140] sm:$0xff]  ;;  %v10100_v1 = vld [vmem:[#allocation20 + $0x1138] sm:$0xff] }
0x1417   :  { %9585 = vmatpush1.msra.mxu0 %v9535_v51  ;;  %9618 = vmatprep.mubr.f32.mxu0 %v14010_v0  ;;  %v10099_v51 = vld [vmem:[#allocation20 + $0x1130] sm:$0xff] }
0x1418   :  { %10050 = vmatpush1.msra.mxu1 %v10000_v2  ;;  %10083 = vmatprep.mubr.f32.mxu1 %v14010_v0  ;;  %v10098_v2 = vld [vmem:[#allocation20 + $0x1128] sm:$0xff] }
0x1419   :  { %10639 = vmatmul.mubr.msk.f32.vlgmr.msra.gmra.mxu0 %vm6969_vm8, %v16099_v9  ;;  %9756 = vmatprep.subr.mxu0 %v9736_v4  ;;  %v9917_v9 = vld [vmem:[#allocation20 + $0x1050] sm:$0xff]  ;;  %v10097_v4 = vld [vmem:[#allocation20 + $0x1120] sm:$0xff] }
0x141a   :  { %10644 = vmatmul.mubr.msk.f32.vlgmr.msra.gmra.mxu1 %vm6969_vm8, %v10016_v21  ;;  %10221 = vmatprep.subr.mxu1 %v10201_v5  ;;  %v10096_v5 = vld [vmem:[#allocation20 + $0x1118] sm:$0xff]  ;;  %v10095_v21 = vld [vmem:[#allocation20 + $0x1110] sm:$0xff] }
0x141b   :  { %9757 = vmatpush1.msra.mxu0 %v9735_v55  ;;  %10222 = vmatpush1.msra.mxu1 %v10200_v20  ;;  %v10093_v55 = vld [vmem:[#allocation20 + $0x1100] sm:$0xff]  ;;  %v10109_v20 = vrot.slane %v16101_v36, 4 }
0x141c   :  { %9758 = vmatprep.subr.mxu0 %v9734_v23  ;;  %10223 = vmatprep.subr.mxu1 %v10199_v7  ;;  %v10335_v23 = vld [vmem:[%s16317_s19 + $0xf8] sm:$0xff] }
0x141d   :  { %9759 = vmatpush1.msra.mxu0 %v9733_v13  ;;  %10224 = vmatpush1.msra.mxu1 %v10198_v26  ;;  %v10319_v7 = vld [vmem:[%s16317_s19 + $0x78] sm:$0xff]  ;;  %v10334_v13 = vld [vmem:[%s16317_s19 + $0xf0] sm:$0xff]  ;;  %v7038_v26 = vpop.f32.mrf.mxu0 }
0x141e   :  { %9760 = vmatprep.subr.mxu0 %v9732_v22  ;;  %10225 = vmatprep.subr.mxu1 %v10197_v27  ;;  %v10333_v22 = vld [vmem:[%s16317_s19 + $0xe8] sm:$0xff] }
0x141f   :  { %9761 = vmatpush1.msra.mxu0 %v9731_v42  ;;  %10226 = vmatpush1.msra.mxu1 %v10196_v38  ;;  %v10317_v27 = vld [vmem:[%s16317_s19 + $0x68] sm:$0xff]  ;;  %v10332_v42 = vld [vmem:[%s16317_s19 + $0xe0] sm:$0xff] }
0x1420   :  { %9762 = vmatprep.subr.mxu0 %v9730_v29  ;;  %10227 = vmatprep.subr.mxu1 %v10195_v10  ;;  %v10316_v38 = vld [vmem:[%s16317_s19 + $0x60] sm:$0xff]  ;;  %v7040_v29 = vpop.f32.mrf.mxu0  ;;  %v10331_v10 = vld [vmem:[%s16317_s19 + $0xd8] sm:$0xff] }
0x1421   :  { %9763 = vmatpush1.msra.mxu0 %v9729_v30  ;;  %10228 = vmatpush1.msra.mxu1 %v10194_v62  ;;  %v10315_v30 = vld [vmem:[%s16317_s19 + $0x58] sm:$0xff] }
0x1422   :  { %9764 = vmatprep.subr.mxu0 %v9728_v32  ;;  %10229 = vmatprep.subr.mxu1 %v10193_v61  ;;  %v7111_v62 = vpop.f32.mrf.mxu0  ;;  %v10330_v32 = vld [vmem:[%s16317_s19 + $0xd0] sm:$0xff] }
0x1423   :  { %9765 = vmatpush1.msra.mxu0 %v9727_v19  ;;  %10230 = vmatpush1.msra.mxu1 %v10192_v6  ;;  %v10314_v61 = vld [vmem:[%s16317_s19 + $0x50] sm:$0xff]  ;;  %v10329_v19 = vld [vmem:[%s16317_s19 + $0xc8] sm:$0xff] }
0x1424   :  { %9766 = vmatprep.subr.mxu0 %v9726_v18  ;;  %10231 = vmatprep.subr.mxu1 %v10191_v8  ;;  %v10313_v6 = vld [vmem:[%s16317_s19 + $0x48] sm:$0xff]  ;;  %v7113_v18 = vpop.f32.mrf.mxu0  ;;  %v10328_v8 = vld [vmem:[%s16317_s19 + $0xc0] sm:$0xff] }
0x1425   :  { %9767 = vmatpush1.msra.mxu0 %v9725_v33  ;;  %10232 = vmatpush1.msra.mxu1 %v10190_v12  ;;  %v10312_v33 = vld [vmem:[%s16317_s19 + $0x40] sm:$0xff] }
0x1426   :  { %9768 = vmatprep.subr.mxu0 %v9724_v56  ;;  %10233 = vmatprep.subr.mxu1 %v10189_v60  ;;  %v7202_v12 = vpop.f32.mrf.mxu0  ;;  %v10327_v56 = vld [vmem:[%s16317_s19 + $0xb8] sm:$0xff] }
0x1427   :  { %9769 = vmatpush1.msra.mxu0 %v9723_v24  ;;  %10234 = vmatpush1.msra.mxu1 %v10188_v48  ;;  %v10311_v60 = vld [vmem:[%s16317_s19 + $0x38] sm:$0xff]  ;;  %v10326_v24 = vld [vmem:[%s16317_s19 + $0xb0] sm:$0xff] }
0x1428   :  { %9770 = vmatprep.subr.mxu0 %v9722_v35  ;;  %10235 = vmatprep.subr.mxu1 %v10187_v43  ;;  %v10310_v48 = vld [vmem:[%s16317_s19 + $0x30] sm:$0xff]  ;;  %v10325_v35 = vld [vmem:[%s16317_s19 + $0xa8] sm:$0xff]  ;;  %v7112_v43 = vadd.f32 %v7111_v62, %v7038_v26 }
0x1429   :  { %9771 = vmatpush1.msra.mxu0 %v9721_v37  ;;  %9804 = vmatprep.mubr.f32.mxu0 %v14010_v0  ;;  %v10309_v37 = vld [vmem:[%s16317_s19 + $0x28] sm:$0xff] }
0x142a   :  { %10236 = vmatpush1.msra.mxu1 %v10186_v14  ;;  %10269 = vmatprep.mubr.f32.mxu1 %v14010_v0  ;;  %v7295_v14 = vpop.f32.mrf.mxu1 }
0x142b   :  { %10641 = vmatmul.mubr.msk.f32.vlgmr.msra.gmra.mxu0 %vm6969_vm8, %v9737_v41  ;;  %9942 = vmatprep.subr.mxu0 %v9922_v39  ;;  %v7204_v39 = vpop.f32.mrf.mxu0  ;;  %v10324_v41 = vld [vmem:[%s16317_s19 + $0xa0] sm:$0xff] }
0x142c   :  { %10646 = vmatmul.mubr.msk.f32.vlgmr.msra.gmra.mxu1 %vm6969_vm8, %v10202_v50  ;;  %9943 = vmatpush1.msra.mxu0 %v9921_v53  ;;  %v7114_v53 = vadd.f32 %v7113_v18, %v7040_v29  ;;  %v7207_v50 = vadd.f32 %v7202_v12, %v7112_v43 }
0x142d   :  { %9944 = vmatprep.subr.mxu0 %v9920_v34  ;;  %9990 = vmatprep.mubr.f32.mxu0 %v14010_v0  ;;  %v10308_v34 = vld [vmem:[%s16317_s19 + $0x20] sm:$0xff] }
0x142e   :  { %9945 = vmatpush1.msra.mxu0 %v9919_v15  ;;  %v7388_v15 = vpop.f32.mrf.mxu0 }
0x142f   :  { %9946 = vmatprep.subr.mxu0 %v9918_v40  ;;  %v10323_v40 = vld [vmem:[%s16317_s19 + $0x98] sm:$0xff] }
0x1430   :  { %9947 = vmatpush1.msra.mxu0 %v9917_v9  ;;  %v7208_v9 = vadd.f32 %v7204_v39, %v7114_v53 }
0x1431   :  { %9948 = vmatprep.subr.mxu0 %v9916_v44  ;;  %v10307_v44 = vld [vmem:[%s16317_s19 + $0x18] sm:$0xff] }
0x1432   :  { %9949 = vmatpush1.msra.mxu0 %v9915_v16  ;;  %v7297_v16 = vpop.f32.mrf.mxu1 }
0x1433   :  { %9950 = vmatprep.subr.mxu0 %v9914_v58  ;;  %v10322_v58 = vld [vmem:[%s16317_s19 + $0x90] sm:$0xff] }
0x1434   :  { %9951 = vmatpush1.msra.mxu0 %v9913_v28  ;;  %v7300_v28 = vadd.f32 %v7295_v14, %v7207_v50 }
0x1435   :  { %9952 = vmatprep.subr.mxu0 %v9912_v63  ;;  %v10306_v63 = vld [vmem:[%s16317_s19 + $0x10] sm:$0xff] }
0x1436   :  { %9953 = vmatpush1.msra.mxu0 %v9911_v47  ;;  %v7481_v47 = vpop.f32.mrf.mxu1 }
0x1437   :  { %9954 = vmatprep.subr.mxu0 %v9910_v49  ;;  %v7390_v49 = vpop.f32.mrf.mxu0 }
0x1438   :  { %9955 = vmatpush1.msra.mxu0 %v9909_v52  ;;  %v10321_v52 = vld [vmem:[%s16317_s19 + $0x88] sm:$0xff] }
0x1439   :  { %9956 = vmatprep.subr.mxu0 %v9908_v54  ;;  %v7393_v54 = vadd.f32 %v7388_v15, %v7300_v28 }
0x143a   :  { %9957 = vmatpush1.msra.mxu0 %v9907_v31  ;;  %v7301_v31 = vadd.f32 %v7297_v16, %v7208_v9 }
0x143b   :  { %10643 = vmatmul.mubr.msk.f32.vlgmr.msra.gmra.mxu0 %vm6969_vm8, %v16101_v36  ;;  %10128 = vmatprep.subr.mxu0 %v10108_v3  ;;  %v10318_v36 = vld [vmem:[%s16317_s19 + $0x70] sm:$0xff]  ;;  %v10305_v3 = vld [vmem:[%s16317_s19 + $0x8] sm:$0xff] }
0x143c   :  { %10129 = vmatpush1.msra.mxu0 %v10107_v11  ;;  %10176 = vmatprep.mubr.f32.mxu0 %v14010_v0  ;;  %v10094_v0 = vld [vmem:[#allocation20 + $0x1108] sm:$0xff]  ;;  %v7574_v11 = vpop.f32.mrf.mxu0 }
0x143d   :  { %10130 = vmatprep.subr.mxu0 %v10106_v57  ;;  %v10320_v57 = vld [vmem:[%s16317_s19 + $0x80] sm:$0xff] }
0x143e   :  { %10131 = vmatpush1.msra.mxu0 %v10105_v45  ;;  %v7394_v45 = vadd.f32 %v7390_v49, %v7301_v31 }
0x143f   :  { %10132 = vmatprep.subr.mxu0 %v10104_v46  ;;  %v10304_v46 = vld [vmem:[%s16317_s19] sm:$0xff]  ;;  %s14012_s19 = smov [#allocation25]  }
0x1440   :  { %10133 = vmatpush1.msra.mxu0 %v10103_v25  ;;  %v7483_v25 = vpop.f32.mrf.mxu1  ;;  %s10427_s13 = sshll.u32 %s14012_s19, 4  ;;  %s10428_s13 = int_to_ptr.vmem [resolvable:$true] %s10427_s13 }
0x1441   :  { %10134 = vmatprep.subr.mxu0 %v10102_v59  ;;  %v7486_v59 = vadd.f32 %v7481_v47, %v7393_v54  ;;  %s13952_s11 = scalar_lea.vmem %s10428_s13, 32  ;;  %p13957_p1 = scmp.lt.s32.totalorder %s10428_s13, %s10428_s13 }
0x1442   :  { %10135 = vmatpush1.msra.mxu0 %v10101_v17  ;;  %v7667_v17 = vpop.f32.mrf.mxu1  ;;  %p13953_p0 = scmp.ne.s32.totalorder %s10428_s13, %s13952_s11  ;;  %p13958_p2 = scmp.lt.s32.totalorder %s13952_s11, %s13952_s11 }
0x1443   :  { %10136 = vmatprep.subr.mxu0 %v10100_v1  ;;  %v7576_v1 = vpop.f32.mrf.mxu0 }
0x1444   :  { %10137 = vmatpush1.msra.mxu0 %v10099_v51  ;;  %v7579_v51 = vadd.f32 %v7574_v11, %v7486_v59  ;;  %p13959_p3 = por %p13958_p2, %p13957_p1 }
0x1445   :  { %10138 = vmatprep.subr.mxu0 %v10098_v2  ;;  %v7487_v2 = vadd.f32 %v7483_v25, %v7394_v45 }
0x1446   :  { %10139 = vmatpush1.msra.mxu0 %v10097_v4  ;;  %v7760_v4 = vpop.f32.mrf.mxu0  ;;  %p13960_p4 = pnand %p13959_p3, %p13953_p0 }
0x1447   :  { %10140 = vmatprep.subr.mxu0 %v10096_v5  ;;  %v7580_v5 = vadd.f32 %v7576_v1, %v7487_v2 }
0x1448   :  { %10141 = vmatpush1.msra.mxu0 %v10095_v21  ;;  %v7669_v21 = vpop.f32.mrf.mxu1 }
0x1449   :  { %10142 = vmatprep.subr.mxu0 %v10094_v0  ;;  %v7672_v0 = vadd.f32 %v7667_v17, %v7579_v51 }
0x144a   :  { %10143 = vmatpush1.msra.mxu0 %v10093_v55  ;;  %v7853_v55 = vpop.f32.mrf.mxu1 }
0x144b   :  { %10645 = vmatmul.mubr.msk.f32.vlgmr.msra.gmra.mxu0 %vm6969_vm8, %v10109_v20  ;;  %11545 = vmatprep.subr.mxu0 %v10335_v23  ;;  %v7762_v20 = vpop.f32.mrf.mxu0  ;;  %v7765_v23 = vadd.f32 %v7760_v4, %v7672_v0 }
0x144c   :  { %11546 = vmatpush3.msra.mxu0 %v10319_v7  ;;  %v7673_v7 = vadd.f32 %v7669_v21, %v7580_v5  ;;  %v7855_v26 = vpop.f32.mrf.mxu1 }
0x144d   :  { %11547 = vmatprep.subr.mxu0 %v10334_v13  ;;  %v7946_v13 = vpop.f32.mrf.mxu0 }
0x144e   :  { %11548 = vmatpush3.msra.mxu0 %v10318_v36  ;;  %v7766_v36 = vadd.f32 %v7762_v20, %v7673_v7 }
0x144f   :  { %11549 = vmatprep.subr.mxu0 %v10333_v22  ;;  %v7858_v22 = vadd.f32 %v7853_v55, %v7765_v23 }
0x1450   :  { %11550 = vmatpush3.msra.mxu0 %v10317_v27  ;;  %v8039_v27 = vpop.f32.mrf.mxu1  ;;  %v7859_v29 = vadd.f32 %v7855_v26, %v7766_v36 }
0x1451   :  { %11551 = vmatprep.subr.mxu0 %v10332_v42  ;;  %v7948_v42 = vpop.f32.mrf.mxu0 }
0x1452   :  { %11552 = vmatpush3.msra.mxu0 %v10316_v38  ;;  %v7951_v38 = vadd.f32 %v7946_v13, %v7858_v22  ;;  %v8041_v62 = vpop.f32.mrf.mxu1 }
0x1453   :  { %11553 = vmatprep.subr.mxu0 %v10331_v10  ;;  %v8132_v10 = vpop.f32.mrf.mxu0 }
0x1454   :  { %11554 = vmatpush3.msra.mxu0 %v10315_v30  ;;  %v7952_v30 = vadd.f32 %v7948_v42, %v7859_v29 }
0x1455   :  { %11555 = vmatprep.subr.mxu0 %v10330_v32  ;;  %v8044_v32 = vadd.f32 %v8039_v27, %v7951_v38 }
0x1456   :  { %11556 = vmatpush3.msra.mxu0 %v10314_v61  ;;  %v8225_v61 = vpop.f32.mrf.mxu1  ;;  %v8045_v18 = vadd.f32 %v8041_v62, %v7952_v30 }
0x1457   :  { %11557 = vmatprep.subr.mxu0 %v10329_v19  ;;  %v8134_v19 = vpop.f32.mrf.mxu0 }
0x1458   :  { %11558 = vmatpush3.msra.mxu0 %v10313_v6  ;;  %v8137_v6 = vadd.f32 %v8132_v10, %v8044_v32  ;;  %v8227_v12 = vpop.f32.mrf.mxu1 }
0x1459   :  { %11559 = vmatprep.subr.mxu0 %v10328_v8 }
0x145a   :  { %11560 = vmatpush3.msra.mxu0 %v10312_v33  ;;  %v8138_v33 = vadd.f32 %v8134_v19, %v8045_v18 }
0x145b   :  { %11561 = vmatprep.subr.mxu0 %v10327_v56  ;;  %v8318_v8 = vpop.f32.mrf.mxu0  ;;  %v8230_v56 = vadd.f32 %v8225_v61, %v8137_v6 }
0x145c   :  { %11562 = vmatpush3.msra.mxu0 %v10311_v60  ;;  %v8411_v60 = vpop.f32.mrf.mxu1 }
0x145d   :  { %11563 = vmatprep.subr.mxu0 %v10326_v24  ;;  %v8320_v24 = vpop.f32.mrf.mxu0 }
0x145e   :  { %11564 = vmatpush3.msra.mxu0 %v10310_v48  ;;  %v8323_v48 = vadd.f32 %v8318_v8, %v8230_v56  ;;  %v8413_v14 = vpop.f32.mrf.mxu1 }
0x145f   :  { %11565 = vmatprep.subr.mxu0 %v10325_v35  ;;  %v8231_v35 = vadd.f32 %v8227_v12, %v8138_v33 }
0x1460   :  { %11566 = vmatpush3.msra.mxu0 %v10309_v37  ;;  %v8416_v39 = vadd.f32 %v8411_v60, %v8323_v48 }
0x1461   :  { %11567 = vmatprep.subr.mxu0 %v10324_v41  ;;  %v8324_v37 = vadd.f32 %v8320_v24, %v8231_v35  ;;  %v8597_v41 = vpop.f32.mrf.mxu1 }
0x1462   :  { %11568 = vmatpush3.msra.mxu0 %v10308_v34 }
0x1463   :  { %11569 = vmatprep.subr.mxu0 %v10323_v40  ;;  %v8417_v34 = vadd.f32 %v8413_v14, %v8324_v37  ;;  %v8599_v9 = vpop.f32.mrf.mxu1 }
0x1464   :  { %11570 = vmatpush3.msra.mxu0 %v10307_v44 }
0x1465   :  { %11571 = vmatprep.subr.mxu0 %v10322_v58  ;;  %v8783_v16 = vpop.f32.mrf.mxu1 }
0x1466   :  { %11572 = vmatpush3.msra.mxu0 %v10306_v63 }
0x1467   :  { %11573 = vmatprep.subr.mxu0 %v10321_v52  ;;  %v8785_v52 = vpop.f32.mrf.mxu1 }
0x1468   :  { %11574 = vmatpush3.msra.mxu0 %v10305_v3 }
0x1469   :  { %11575 = vmatprep.subr.mxu0 %v10320_v57 }
0x146a   :  { %11576 = vmatpush3.msra.mxu0 %v10304_v46 }
0x146d   :  { %v8504_v43 = vpop.f32.mrf.mxu0 }
0x146e   :  { %v8509_v50 = vadd.f32 %v8504_v43, %v8416_v39  ;;  %v8969_v31 = vpop.f32.mrf.mxu1  ;;  %v10280_v43 = vlaneseq }
0x146f   :  { %v8506_v53 = vpop.f32.mrf.mxu0 }
0x1470   :  { %v8510_v40 = vadd.f32 %v8506_v53, %v8417_v34  ;;  %v8602_v44 = vadd.f32 %v8597_v41, %v8509_v50  ;;  %v8971_v25 = vpop.f32.mrf.mxu1  ;;  %v10281_v53 = vshrl.u32 %v10280_v43, 7 }
0x1472   :  { %v8603_v63 = vadd.f32 %v8599_v9, %v8510_v40 }
0x147f   :  { %v8690_v15 = vpop.f32.mrf.mxu0 }
0x1480   :  { %v8695_v28 = vadd.f32 %v8690_v15, %v8602_v44  ;;  %v9155_v17 = vpop.f32.mrf.mxu1  ;;  %v10282_v44 = vsub.s32 0, %v10281_v53 }
0x1481   :  { %v8692_v58 = vpop.f32.mrf.mxu0 }
0x1482   :  { %v8696_v49 = vadd.f32 %v8692_v58, %v8603_v63  ;;  %v8788_v54 = vadd.f32 %v8783_v16, %v8695_v28  ;;  %v9157_v21 = vpop.f32.mrf.mxu1  ;;  %v10278_v58 = vld [vmem:[#allocation22] sm:$0x3]  ;;  %v10286_v63 = vsub.s32 1, %v10281_v53 }
0x1484   :  { %v8789_v57 = vadd.f32 %v8785_v52, %v8696_v49 }
0x1491   :  { %v8876_v47 = vpop.f32.mrf.mxu0 }
0x1492   :  { %v8881_v11 = vadd.f32 %v8876_v47, %v8788_v54  ;;  %v9341_v55 = vpop.f32.mrf.mxu1  ;;  %v10283_v54 = vrot.slane %v10278_v58, %v10282_v44 }
0x1493   :  { %v8878_v3 = vpop.f32.mrf.mxu0 }
0x1494   :  { %v8882_v46 = vadd.f32 %v8878_v3, %v8789_v57  ;;  %v8974_v59 = vadd.f32 %v8969_v31, %v8881_v11  ;;  %v9343_v26 = vpop.f32.mrf.mxu1 }
0x1496   :  { %v8975_v2 = vadd.f32 %v8971_v25, %v8882_v46 }
0x14a3   :  { %v9062_v45 = vpop.f32.mrf.mxu0 }
0x14a4   :  { %v9067_v51 = vadd.f32 %v9062_v45, %v8974_v59  ;;  %v9527_v27 = vpop.f32.mrf.mxu1  ;;  %v10287_v45 = vrot.slane %v10278_v58, %v10286_v63 }
0x14a5   :  { %v9064_v1 = vpop.f32.mrf.mxu0 }
0x14a6   :  { %v9068_v5 = vadd.f32 %v9064_v1, %v8975_v2  ;;  %v9160_v0 = vadd.f32 %v9155_v17, %v9067_v51  ;;  %v9529_v62 = vpop.f32.mrf.mxu1 }
0x14a8   :  { %v9161_v7 = vadd.f32 %v9157_v21, %v9068_v5 }
0x14b5   :  { %v9248_v4 = vpop.f32.mrf.mxu0 }
0x14b6   :  { %v9253_v23 = vadd.f32 %v9248_v4, %v9160_v0  ;;  %v9713_v61 = vpop.f32.mrf.mxu1 }
0x14b7   :  { %v9250_v20 = vpop.f32.mrf.mxu0 }
0x14b8   :  { %v9254_v36 = vadd.f32 %v9250_v20, %v9161_v7  ;;  %v9346_v22 = vadd.f32 %v9341_v55, %v9253_v23  ;;  %v9715_v12 = vpop.f32.mrf.mxu1 }
0x14ba   :  { %v9347_v29 = vadd.f32 %v9343_v26, %v9254_v36 }
0x14c7   :  { %v9434_v13 = vpop.f32.mrf.mxu0 }
0x14c8   :  { %v9439_v38 = vadd.f32 %v9434_v13, %v9346_v22  ;;  %v9899_v60 = vpop.f32.mrf.mxu1  ;;  %v10647_v13 = vld [vmem:[#allocation23] ss:$0 sm:$0xff] }
0x14c9   :  { %v9436_v42 = vpop.f32.mrf.mxu0 }
0x14ca   :  { %v9440_v30 = vadd.f32 %v9436_v42, %v9347_v29  ;;  %v9532_v32 = vadd.f32 %v9527_v27, %v9439_v38  ;;  %v9901_v39 = vpop.f32.mrf.mxu1 }
0x14cc   :  { %v9533_v18 = vadd.f32 %v9529_v62, %v9440_v30 }
0x14d9   :  { %v9620_v10 = vpop.f32.mrf.mxu0 }
0x14da   :  { %v9625_v6 = vadd.f32 %v9620_v10, %v9532_v32  ;;  %v10085_v50 = vpop.f32.mrf.mxu1 }
0x14db   :  { %v9622_v19 = vpop.f32.mrf.mxu0 }
0x14dc   :  { %v9626_v33 = vadd.f32 %v9622_v19, %v9533_v18  ;;  %v9718_v56 = vadd.f32 %v9713_v61, %v9625_v6  ;;  %v10087_v16 = vpop.f32.mrf.mxu1 }
0x14de   :  { %v9719_v35 = vadd.f32 %v9715_v12, %v9626_v33 }
0x14eb   :  { %v9806_v8 = vpop.f32.mrf.mxu0 }
0x14ec   :  { %v9811_v48 = vadd.f32 %v9806_v8, %v9718_v56  ;;  %v10271_v47 = vpop.f32.mrf.mxu1 }
0x14ed   :  { %v9808_v24 = vpop.f32.mrf.mxu0 }
0x14ee   :  { %v9812_v14 = vadd.f32 %v9808_v24, %v9719_v35  ;;  %v9904_v41 = vadd.f32 %v9899_v60, %v9811_v48  ;;  %v10273_v46 = vpop.f32.mrf.mxu1 }
0x14f0   :  { %v9905_v40 = vadd.f32 %v9901_v39, %v9812_v14 }
0x14fb   :  { %v9992_v37 = vpop.f32.mrf.mxu0 }
0x14fc   :  { %v9997_v15 = vadd.f32 %v9992_v37, %v9904_v41 }
0x14fd   :  { %v9994_v34 = vpop.f32.mrf.mxu0 }
0x14fe   :  { %v9998_v9 = vadd.f32 %v9994_v34, %v9905_v40  ;;  %v10090_v28 = vadd.f32 %v10085_v50, %v9997_v15 }
0x1500   :  { %v10091_v31 = vadd.f32 %v10087_v16, %v9998_v9 }
0x150b   :  { %v10178_v49 = vpop.f32.mrf.mxu0 }
0x150c   :  { %v10183_v52 = vadd.f32 %v10178_v49, %v10090_v28 }
0x150d   :  { %v10180_v3 = vpop.f32.mrf.mxu0 }
0x150e   :  { %v10276_v11 = vadd.f32 %v10271_v47, %v10183_v52  ;;  %v10184_v57 = vadd.f32 %v10180_v3, %v10091_v31 }
0x1510   :  { %v10290_v25 = vadd.f32 %v10283_v54, %v10276_v11  ;;  %v10277_v59 = vadd.f32 %v10273_v46, %v10184_v57 }
0x1512   :  { %v10292_v17 = vsub.f32 0.0, %v10290_v25  ;;  %v10291_v1 = vadd.f32 %v10287_v45, %v10277_v59 }
0x1514   :  { %v10294_v51 = vmul.f32 1.442695, %v10292_v17  ;;  %v10293_v2 = vsub.f32 0.0, %v10291_v1 }
0x1516   :  { %13644 = vpow2.f32 %v10294_v51  ;;  %v10296_v4 = vmul.f32 1.442695, %v10293_v2 }
0x1518   :  { %13646 = vpow2.f32 %v10296_v4 }
0x1523   :  { %v13645_v5 = vpop.eup %13644 }
0x1524   :  { %v10298_v0 = vadd.f32 1.0, %v13645_v5 }
0x1525   :  { %v13647_v21 = vpop.eup %13646 }
0x1526   :  { %v10299_v55 = vadd.f32 1.0, %v13647_v21 }
0x1528   :  { %13648 = vrcp.f32 %v10299_v55 }
0x1529   :  { %13650 = vrcp.f32 %v10298_v0 }
0x1535   :  { %v13649_v20 = vpop.eup %13648 }
0x1536   :  { %v13651_v23 = vpop.eup %13650  ;;  %10407 = vmatprep.mubr.f32.mxu0 %v13649_v20 }
0x1537   :  { %10408 = vmatmul.mubr.f32.vlgmr.msra.gmra.mxu0 %v13651_v23 }
0x15f7   :  { %v11577_v7 = vpop.f32.mrf.mxu0 }
0x15f9   :  { %v11578_v36 = vpop.f32.mrf.mxu0 }
0x15fa   :  { %v11579_v26 = vadd.f32 %v11578_v36, %v11577_v7 }
0x15fc   :  { %v10410_v22 = vadd.f32 %v11579_v26, %v10647_v13 }
0x15fe   :  { %v10413_v27 = vsub.f32 0.0, %v10410_v22 }
0x1600   :  { %v10414_v42 = vmul.f32 1.442695, %v10413_v27 }
0x1602   :  { %13652 = vpow2.f32 %v10414_v42 }
0x160f   :  { %v13653_v38 = vpop.eup %13652 }
0x1610   :  { %v10416_v29 = vadd.f32 1.0, %v13653_v38 }
0x1612   :  { %13654 = vrcp.f32 %v10416_v29 }
0x161f   :  { %v13655_v10 = vpop.eup %13654 }
0x1620   :  { %10420 = vst.msk [vmem:[#allocation25] sm:$0x3] %vm10419_vm9, %v13655_v10 }
0x1621   :  { %13963 = shalt.err (!%p13960_p4)
}
0x1622   :  { %10430 = dma.vmem_to_hbm [thread:$0]  %s10428_s13, 32, %s16319_s21, [#allocation4]  }
0x1623   :  { %13988 = dma.done.wait [#allocation4], 32  }
0x1624   :  { %13989 = vsyncadd [#allocation4], 4294967264 }
0x1625   :  { %10434 = vsyncpa [#allocation3], 1 }
0x1626   :  { %10435 = vsyncpa [#allocation6], 1 }
0x1627   :  { %10436 = vsyncpa [#allocation9], 1 }
0x1628   :  { %10437 = vsyncpa [#allocation12], 1 }
0x1629   :  { %10438 = vsyncpa [#allocation15], 1 }
0x162a   :  { %10439 = vsyncpa [#allocation18], 1 }
0x162b   :  { %10440 = vsyncpa [#allocation21], 1 }
0x162c   :  { %10441 = vsyncpa [#allocation24], 1 }
0x162d   :  { %10442 = vsyncpa [#allocation4], 1 }

</bundles_post_ra>
